<compile_context>
chip_gen: v6e
topology: v6e:2x2x1
jax: 0.10.0
libtpu: 0.0.40
codegen_flags: <defaults>
</compile_context>

<pallas_src>
import math
import jax
import jax.numpy as jnp
from jax.experimental import pallas as pl
from jax.experimental.pallas import tpu as pltpu

# Module hyper-parameters (LanguageModel defaults).
N_EMBED = 32
N_HEAD = 16
HEAD_SIZE = N_EMBED // N_HEAD          # = 2
N_LAYER = 3
BLOCK_SIZE = 64
EPS = 1e-5                             # nn.LayerNorm default eps


def _layernorm(x, w, b):
    # x: (T, C); w, b: (1, C)
    mu = jnp.mean(x, axis=-1, keepdims=True)
    var = jnp.mean((x - mu) ** 2, axis=-1, keepdims=True)
    return (x - mu) * jax.lax.rsqrt(var + EPS) * w + b


def fused_lm_kernel(x_ref, pos_ref,
                    ln1w_ref, ln1b_ref, wq_ref, wk_ref, wv_ref,
                    wproj_ref, bproj_ref, ln2w_ref, ln2b_ref,
                    w1_ref, b1_ref, w2_ref, b2_ref,
                    lmw_ref, lmb_ref, out_ref):
    # One batch element per grid step; x_ref block is (1, T, C).
    T = x_ref.shape[1]
    C = x_ref.shape[2]
    H, HS = N_HEAD, HEAD_SIZE

    # tok_emb + pos_emb fused into the kernel.
    x = x_ref[0] + pos_ref[...]                               # (T, C)

    # Causal additive bias (0 / -inf), built once, shared by all layers/heads.
    row = jax.lax.broadcasted_iota(jnp.int32, (T, T), 0)
    col = jax.lax.broadcasted_iota(jnp.int32, (T, T), 1)
    bias = jnp.where(row >= col, 0.0, -jnp.inf).astype(jnp.float32)   # (T, T)

    scale = 1.0 / math.sqrt(C)   # reference scales scores by sqrt(n_embed)

    for l in range(N_LAYER):     # static unroll; all weights resident in VMEM
        # ---- x = ln1(x) ----
        x1 = _layernorm(x, ln1w_ref[l], ln1b_ref[l])

        # ---- multi-head self-attention (residual is around the ln1 output) ----
        q = jnp.dot(x1, wq_ref[l], preferred_element_type=jnp.float32) * scale
        k = jnp.dot(x1, wk_ref[l], preferred_element_type=jnp.float32)
        v = jnp.dot(x1, wv_ref[l], preferred_element_type=jnp.float32)

        qh = jnp.swapaxes(q.reshape(T, H, HS), 0, 1)          # (H, T, hs)
        kh = jnp.swapaxes(k.reshape(T, H, HS), 0, 1)          # (H, T, hs)
        vh = jnp.swapaxes(v.reshape(T, H, HS), 0, 1)          # (H, T, hs)

        # All heads in one batched contraction (no per-head slice/concat).
        wei = jnp.einsum('htd,hsd->hts', qh, kh,
                         preferred_element_type=jnp.float32)  # (H, T, T)
        wei = wei + bias[None, :, :]
        m = jnp.max(wei, axis=-1, keepdims=True)
        e = jnp.exp(wei - m)
        p = e / jnp.sum(e, axis=-1, keepdims=True)

        att = jnp.einsum('hts,hsd->htd', p, vh,
                         preferred_element_type=jnp.float32)  # (H, T, hs)
        att = jnp.swapaxes(att, 0, 1).reshape(T, C)           # == torch.cat(heads, -1)
        att = jnp.dot(att, wproj_ref[l],
                      preferred_element_type=jnp.float32) + bproj_ref[l]

        x2 = x1 + att                                         # x = x + sa(x)

        # ---- x = ln2(x); x = x + ffwd(x) ----
        x3 = _layernorm(x2, ln2w_ref[l], ln2b_ref[l])
        h1 = jnp.maximum(
            jnp.dot(x3, w1_ref[l], preferred_element_type=jnp.float32) + b1_ref[l],
            0.0)
        ff = jnp.dot(h1, w2_ref[l], preferred_element_type=jnp.float32) + b2_ref[l]
        x = x3 + ff

    # ---- lm_head (vocab padded to a lane multiple for dense stores) ----
    out_ref[0] = jnp.dot(x, lmw_ref[...],
                         preferred_element_type=jnp.float32) + lmb_ref[...]


def _full_spec(a):
    nd = a.ndim
    return pl.BlockSpec(a.shape, lambda b, _nd=nd: (0,) * _nd)


def language_model_forward(tokens, params):
    """tokens: (B, T) int32.  Returns (logits (B, T, vocab), loss=None)."""
    B, T = tokens.shape
    C = N_EMBED

    # Token-embedding gather stays as plain-JAX glue; the add is fused in-kernel.
    tok_emb = jnp.take(params['tok_emb'], tokens, axis=0)     # (B, T, C)
    pos = params['pos_emb'][:T]                               # (T, C)

    V = params['lm_w'].shape[1]
    VPAD = max(128, ((V + 127) // 128) * 128)
    lm_w = jnp.pad(params['lm_w'], ((0, 0), (0, VPAD - V)))
    lm_b = jnp.pad(params['lm_b'], ((0, 0), (0, VPAD - V)))

    blk = params['blocks']
    weights = (blk['ln1w'], blk['ln1b'], blk['wq'], blk['wk'], blk['wv'],
               blk['wproj'], blk['bproj'], blk['ln2w'], blk['ln2b'],
               blk['w1'], blk['b1'], blk['w2'], blk['b2'])

    in_specs = ([pl.BlockSpec((1, T, C), lambda b: (b, 0, 0)), _full_spec(pos)]
                + [_full_spec(w) for w in weights]
                + [_full_spec(lm_w), _full_spec(lm_b)])

    logits_pad = pl.pallas_call(
        fused_lm_kernel,
        out_shape=jax.ShapeDtypeStruct((B, T, VPAD), jnp.float32),
        grid=(B,),
        in_specs=in_specs,
        out_specs=pl.BlockSpec((1, T, VPAD), lambda b: (b, 0, 0)),
        compiler_params=pltpu.CompilerParams(
            dimension_semantics=("parallel",)),
    )(tok_emb, pos, *weights, lm_w, lm_b)

    return logits_pad[:, :, :V], None     # y is None -> loss None
    # TODO(synk): CrossEntropyLoss branch (y != None) not implemented; inference only.


# ---------------- pure-JAX reference (for correctness check) ----------------
def reference_forward(tokens, params):
    T = tokens.shape[1]
    x = jnp.take(params['tok_emb'], tokens, axis=0) + params['pos_emb'][:T]
    mask = jnp.tril(jnp.ones((T, T), jnp.float32))
    blk = params['blocks']
    for l in range(N_LAYER):
        mu = x.mean(-1, keepdims=True)
        var = ((x - mu) ** 2).mean(-1, keepdims=True)
        x1 = (x - mu) / jnp.sqrt(var + EPS) * blk['ln1w'][l, 0] + blk['ln1b'][l, 0]
        q, k, v = x1 @ blk['wq'][l], x1 @ blk['wk'][l], x1 @ blk['wv'][l]
        heads = []
        for h in range(N_HEAD):
            lo = h * HEAD_SIZE
            qh = q[..., lo:lo + HEAD_SIZE]
            kh = k[..., lo:lo + HEAD_SIZE]
            vh = v[..., lo:lo + HEAD_SIZE]
            wei = jnp.einsum('btd,bsd->bts', qh, kh)
            wei = jnp.where(mask == 0.0, -jnp.inf, wei) / math.sqrt(N_EMBED)
            wei = jax.nn.softmax(wei, axis=-1)
            heads.append(jnp.einsum('bts,bsd->btd', wei, vh))
        att = jnp.concatenate(heads, -1) @ blk['wproj'][l] + blk['bproj'][l, 0]
        x2 = x1 + att
        mu = x2.mean(-1, keepdims=True)
        var = ((x2 - mu) ** 2).mean(-1, keepdims=True)
        x3 = (x2 - mu) / jnp.sqrt(var + EPS) * blk['ln2w'][l, 0] + blk['ln2b'][l, 0]
        ff = jnp.maximum(x3 @ blk['w1'][l] + blk['b1'][l, 0], 0.0) @ blk['w2'][l] \
             + blk['b2'][l, 0]
        x = x3 + ff
    return x @ params['lm_w'] + params['lm_b'][0]


def init_params(key, vocab_size):
    ks = iter(jax.random.split(key, 64))

    def w(shape, scale=0.02):
        return (scale * jax.random.normal(next(ks), shape)).astype(jnp.float32)

    L, C = N_LAYER, N_EMBED
    return {
        'tok_emb': w((vocab_size, C)),
        'pos_emb': w((BLOCK_SIZE, C)),
        'lm_w': w((C, vocab_size)),
        'lm_b': w((1, vocab_size)),
        'blocks': {
            'ln1w': (1.0 + w((L, 1, C))).astype(jnp.float32),
            'ln1b': w((L, 1, C)),
            'wq': w((L, C, C)),
            'wk': w((L, C, C)),
            'wv': w((L, C, C)),
            'wproj': w((L, C, C)),
            'bproj': w((L, 1, C)),
            'ln2w': (1.0 + w((L, 1, C))).astype(jnp.float32),
            'ln2b': w((L, 1, C)),
            'w1': w((L, C, 4 * C)),
            'b1': w((L, 1, 4 * C)),
            'w2': w((L, 4 * C, C)),
            'b2': w((L, 1, C)),
        },
    }


if __name__ == "__main__":
    key = jax.random.PRNGKey(0)
    k_params, k_tok = jax.random.split(key)

    VOCAB = 65                    # Shakespeare-style character vocab
    B, T = 2, 8                   # T <= block_size (64)

    params = init_params(k_params, VOCAB)
    tokens = jax.random.randint(k_tok, (B, T), 0, VOCAB, dtype=jnp.int32)

    logits, loss = language_model_forward(tokens, params)
    logits = jax.block_until_ready(logits)
    assert logits.shape == (B, T, VOCAB)
    assert loss is None

    ref = jax.block_until_ready(reference_forward(tokens, params))
    assert jnp.allclose(logits, ref, atol=1e-4, rtol=1e-3), \
        f"max abs diff {jnp.max(jnp.abs(logits - ref))}"

    print("KERNEL_OK")
</pallas_src>

<mosaic_0001>
module attributes {stable_mosaic.version = 11 : i64} {
  func.func @fused_lm_kernel(%arg0: i32, %arg1: memref<1x8x32xf32, #tpu.memory_space<vmem>>, %arg2: memref<8x32xf32, #tpu.memory_space<vmem>>, %arg3: memref<3x1x32xf32, #tpu.memory_space<vmem>>, %arg4: memref<3x1x32xf32, #tpu.memory_space<vmem>>, %arg5: memref<3x32x32xf32, #tpu.memory_space<vmem>>, %arg6: memref<3x32x32xf32, #tpu.memory_space<vmem>>, %arg7: memref<3x32x32xf32, #tpu.memory_space<vmem>>, %arg8: memref<3x32x32xf32, #tpu.memory_space<vmem>>, %arg9: memref<3x1x32xf32, #tpu.memory_space<vmem>>, %arg10: memref<3x1x32xf32, #tpu.memory_space<vmem>>, %arg11: memref<3x1x32xf32, #tpu.memory_space<vmem>>, %arg12: memref<3x32x128xf32, #tpu.memory_space<vmem>>, %arg13: memref<3x1x128xf32, #tpu.memory_space<vmem>>, %arg14: memref<3x128x32xf32, #tpu.memory_space<vmem>>, %arg15: memref<3x1x32xf32, #tpu.memory_space<vmem>>, %arg16: memref<32x128xf32, #tpu.memory_space<vmem>>, %arg17: memref<1x128xf32, #tpu.memory_space<vmem>>, %arg18: memref<1x8x128xf32, #tpu.memory_space<vmem>>) attributes {dimension_semantics = [#tpu.dimension_semantics<parallel>], iteration_bounds = array<i64: 2>, scalar_prefetch = 0 : i64, scratch_operands = 0 : i64, tpu.core_type = #tpu.core_type<tc>, window_params = [{transform_indices = @transform_0, window_bounds = array<i64: 1, 8, 32>}, {pipeline_mode = #tpu.pipeline_mode<synchronous>, transform_indices = @transform_1, window_bounds = array<i64: 8, 32>}, {pipeline_mode = #tpu.pipeline_mode<synchronous>, transform_indices = @transform_2, window_bounds = array<i64: 3, 1, 32>}, {pipeline_mode = #tpu.pipeline_mode<synchronous>, transform_indices = @transform_3, window_bounds = array<i64: 3, 1, 32>}, {pipeline_mode = #tpu.pipeline_mode<synchronous>, transform_indices = @transform_4, window_bounds = array<i64: 3, 32, 32>}, {pipeline_mode = #tpu.pipeline_mode<synchronous>, transform_indices = @transform_5, window_bounds = array<i64: 3, 32, 32>}, {pipeline_mode = #tpu.pipeline_mode<synchronous>, transform_indices = @transform_6, window_bounds = array<i64: 3, 32, 32>}, {pipeline_mode = #tpu.pipeline_mode<synchronous>, transform_indices = @transform_7, window_bounds = array<i64: 3, 32, 32>}, {pipeline_mode = #tpu.pipeline_mode<synchronous>, transform_indices = @transform_8, window_bounds = array<i64: 3, 1, 32>}, {pipeline_mode = #tpu.pipeline_mode<synchronous>, transform_indices = @transform_9, window_bounds = array<i64: 3, 1, 32>}, {pipeline_mode = #tpu.pipeline_mode<synchronous>, transform_indices = @transform_10, window_bounds = array<i64: 3, 1, 32>}, {pipeline_mode = #tpu.pipeline_mode<synchronous>, transform_indices = @transform_11, window_bounds = array<i64: 3, 32, 128>}, {pipeline_mode = #tpu.pipeline_mode<synchronous>, transform_indices = @transform_12, window_bounds = array<i64: 3, 1, 128>}, {pipeline_mode = #tpu.pipeline_mode<synchronous>, transform_indices = @transform_13, window_bounds = array<i64: 3, 128, 32>}, {pipeline_mode = #tpu.pipeline_mode<synchronous>, transform_indices = @transform_14, window_bounds = array<i64: 3, 1, 32>}, {pipeline_mode = #tpu.pipeline_mode<synchronous>, transform_indices = @transform_15, window_bounds = array<i64: 32, 128>}, {pipeline_mode = #tpu.pipeline_mode<synchronous>, transform_indices = @transform_16, window_bounds = array<i64: 1, 128>}, {transform_indices = @transform_17, window_bounds = array<i64: 1, 8, 128>}]} {
    %c0 = arith.constant 0 : index
    %c0_0 = arith.constant 0 : index
    %c0_1 = arith.constant 0 : index
    %0 = vector.load %arg1[%c0, %c0_0, %c0_1] : memref<1x8x32xf32, #tpu.memory_space<vmem>>, vector<1x8x32xf32>
    %1 = vector.shape_cast %0 : vector<1x8x32xf32> to vector<8x32xf32>
    %c0_2 = arith.constant 0 : index
    %c0_3 = arith.constant 0 : index
    %2 = vector.load %arg2[%c0_2, %c0_3] : memref<8x32xf32, #tpu.memory_space<vmem>>, vector<8x32xf32>
    %3 = arith.addf %1, %2 : vector<8x32xf32>
    %4 = tpu.iota {dimensions = array<i32: 0>} : vector<8x8xi32>
    %5 = tpu.iota {dimensions = array<i32: 1>} : vector<8x8xi32>
    %6 = arith.cmpi sge, %4, %5 : vector<8x8xi32>
    %cst = arith.constant 0.000000e+00 : f32
    %cst_4 = arith.constant 0xFF800000 : f32
    %7 = vector.broadcast %cst : f32 to vector<8x8xf32>
    %8 = vector.broadcast %cst_4 : f32 to vector<8x8xf32>
    %9 = arith.select %6, %7, %8 : vector<8x8xi1>, vector<8x8xf32>
    %c0_5 = arith.constant 0 : index
    %c0_6 = arith.constant 0 : index
    %c0_7 = arith.constant 0 : index
    %10 = vector.load %arg3[%c0_5, %c0_6, %c0_7] : memref<3x1x32xf32, #tpu.memory_space<vmem>>, vector<1x1x32xf32>
    %11 = vector.shape_cast %10 : vector<1x1x32xf32> to vector<1x32xf32>
    %c0_8 = arith.constant 0 : index
    %c0_9 = arith.constant 0 : index
    %c0_10 = arith.constant 0 : index
    %12 = vector.load %arg4[%c0_8, %c0_9, %c0_10] : memref<3x1x32xf32, #tpu.memory_space<vmem>>, vector<1x1x32xf32>
    %13 = vector.shape_cast %12 : vector<1x1x32xf32> to vector<1x32xf32>
    %cst_11 = arith.constant dense<0.000000e+00> : vector<8xf32>
    %14 = vector.multi_reduction <add>, %3, %cst_11 [1] : vector<8x32xf32> to vector<8xf32>
    %15 = vector.shape_cast %14 : vector<8xf32> to vector<8x1xf32>
    %cst_12 = arith.constant 3.200000e+01 : f32
    %16 = vector.broadcast %cst_12 : f32 to vector<8x1xf32>
    %17 = arith.divf %15, %16 : vector<8x1xf32>
    %18 = vector.broadcast %17 : vector<8x1xf32> to vector<8x32xf32>
    %19 = arith.subf %3, %18 : vector<8x32xf32>
    %20 = arith.mulf %19, %19 : vector<8x32xf32>
    %cst_13 = arith.constant dense<0.000000e+00> : vector<8xf32>
    %21 = vector.multi_reduction <add>, %20, %cst_13 [1] : vector<8x32xf32> to vector<8xf32>
    %22 = vector.shape_cast %21 : vector<8xf32> to vector<8x1xf32>
    %cst_14 = arith.constant 3.200000e+01 : f32
    %23 = vector.broadcast %cst_14 : f32 to vector<8x1xf32>
    %24 = arith.divf %22, %23 : vector<8x1xf32>
    %25 = vector.broadcast %17 : vector<8x1xf32> to vector<8x32xf32>
    %26 = arith.subf %3, %25 : vector<8x32xf32>
    %cst_15 = arith.constant 9.99999974E-6 : f32
    %27 = vector.broadcast %cst_15 : f32 to vector<8x1xf32>
    %28 = arith.addf %24, %27 : vector<8x1xf32>
    %29 = math.rsqrt %28 : vector<8x1xf32>
    %30 = vector.broadcast %29 : vector<8x1xf32> to vector<8x32xf32>
    %31 = arith.mulf %26, %30 : vector<8x32xf32>
    %32 = vector.broadcast %11 : vector<1x32xf32> to vector<8x32xf32>
    %33 = arith.mulf %31, %32 : vector<8x32xf32>
    %34 = vector.broadcast %13 : vector<1x32xf32> to vector<8x32xf32>
    %35 = arith.addf %33, %34 : vector<8x32xf32>
    %c0_16 = arith.constant 0 : index
    %c0_17 = arith.constant 0 : index
    %c0_18 = arith.constant 0 : index
    %36 = vector.load %arg5[%c0_16, %c0_17, %c0_18] : memref<3x32x32xf32, #tpu.memory_space<vmem>>, vector<1x32x32xf32>
    %37 = vector.shape_cast %36 : vector<1x32x32xf32> to vector<32x32xf32>
    %cst_19 = arith.constant dense<0.000000e+00> : vector<8x32xf32>
    %38 = tpu.matmul %35, %37, %cst_19 {dimension_numbers = #tpu.dot_dimension_numbers<[1], [0], [0], [1], [0, 0, 1, 1], [], []>} : vector<8x32xf32>, vector<32x32xf32>, vector<8x32xf32> -> vector<8x32xf32>
    %cst_20 = arith.constant 0.176776692 : f32
    %39 = vector.broadcast %cst_20 : f32 to vector<8x32xf32>
    %40 = arith.mulf %38, %39 : vector<8x32xf32>
    %c0_21 = arith.constant 0 : index
    %c0_22 = arith.constant 0 : index
    %c0_23 = arith.constant 0 : index
    %41 = vector.load %arg6[%c0_21, %c0_22, %c0_23] : memref<3x32x32xf32, #tpu.memory_space<vmem>>, vector<1x32x32xf32>
    %42 = vector.shape_cast %41 : vector<1x32x32xf32> to vector<32x32xf32>
    %cst_24 = arith.constant dense<0.000000e+00> : vector<8x32xf32>
    %43 = tpu.matmul %35, %42, %cst_24 {dimension_numbers = #tpu.dot_dimension_numbers<[1], [0], [0], [1], [0, 0, 1, 1], [], []>} : vector<8x32xf32>, vector<32x32xf32>, vector<8x32xf32> -> vector<8x32xf32>
    %c0_25 = arith.constant 0 : index
    %c0_26 = arith.constant 0 : index
    %c0_27 = arith.constant 0 : index
    %44 = vector.load %arg7[%c0_25, %c0_26, %c0_27] : memref<3x32x32xf32, #tpu.memory_space<vmem>>, vector<1x32x32xf32>
    %45 = vector.shape_cast %44 : vector<1x32x32xf32> to vector<32x32xf32>
    %cst_28 = arith.constant dense<0.000000e+00> : vector<8x32xf32>
    %46 = tpu.matmul %35, %45, %cst_28 {dimension_numbers = #tpu.dot_dimension_numbers<[1], [0], [0], [1], [0, 0, 1, 1], [], []>} : vector<8x32xf32>, vector<32x32xf32>, vector<8x32xf32> -> vector<8x32xf32>
    %47 = vector.shape_cast %40 : vector<8x32xf32> to vector<8x16x2xf32>
    %48 = tpu.transpose %47, [1, 0, 2] : vector<8x16x2xf32> -> vector<16x8x2xf32>
    %49 = vector.shape_cast %43 : vector<8x32xf32> to vector<8x16x2xf32>
    %50 = tpu.transpose %49, [1, 0, 2] : vector<8x16x2xf32> -> vector<16x8x2xf32>
    %51 = vector.shape_cast %46 : vector<8x32xf32> to vector<8x16x2xf32>
    %52 = tpu.transpose %51, [1, 0, 2] : vector<8x16x2xf32> -> vector<16x8x2xf32>
    "tpu.trace_start"() <{level = 10 : i32, message = "htd,hsd->hts"}> : () -> ()
    %cst_29 = arith.constant dense<0.000000e+00> : vector<16x8x8xf32>
    %53 = tpu.matmul %48, %50, %cst_29 {dimension_numbers = #tpu.dot_dimension_numbers<[2], [2], [1], [1], [0, 0, 0, 1, 1, 1], [0], [0]>} : vector<16x8x2xf32>, vector<16x8x2xf32>, vector<16x8x8xf32> -> vector<16x8x8xf32>
    "tpu.trace_stop"() : () -> ()
    %54 = vector.shape_cast %9 : vector<8x8xf32> to vector<1x8x8xf32>
    %55 = vector.broadcast %54 : vector<1x8x8xf32> to vector<16x8x8xf32>
    %56 = arith.addf %53, %55 : vector<16x8x8xf32>
    %cst_30 = arith.constant dense<0xFF800000> : vector<16x8xf32>
    %57 = vector.multi_reduction <maximumf>, %56, %cst_30 [2] : vector<16x8x8xf32> to vector<16x8xf32>
    %58 = vector.shape_cast %57 : vector<16x8xf32> to vector<16x8x1xf32>
    %59 = vector.broadcast %58 : vector<16x8x1xf32> to vector<16x8x8xf32>
    %60 = arith.subf %56, %59 : vector<16x8x8xf32>
    %61 = math.exp %60 : vector<16x8x8xf32>
    %cst_31 = arith.constant dense<0.000000e+00> : vector<16x8xf32>
    %62 = vector.multi_reduction <add>, %61, %cst_31 [2] : vector<16x8x8xf32> to vector<16x8xf32>
    %63 = vector.shape_cast %62 : vector<16x8xf32> to vector<16x8x1xf32>
    %64 = vector.broadcast %63 : vector<16x8x1xf32> to vector<16x8x8xf32>
    %65 = arith.divf %61, %64 : vector<16x8x8xf32>
    "tpu.trace_start"() <{level = 10 : i32, message = "hts,hsd->htd"}> : () -> ()
    %cst_32 = arith.constant dense<0.000000e+00> : vector<16x8x2xf32>
    %66 = tpu.matmul %65, %52, %cst_32 {dimension_numbers = #tpu.dot_dimension_numbers<[2], [1], [1], [2], [0, 0, 0, 1, 1, 2], [0], [0]>} : vector<16x8x8xf32>, vector<16x8x2xf32>, vector<16x8x2xf32> -> vector<16x8x2xf32>
    "tpu.trace_stop"() : () -> ()
    %67 = tpu.transpose %66, [1, 0, 2] : vector<16x8x2xf32> -> vector<8x16x2xf32>
    %68 = vector.shape_cast %67 : vector<8x16x2xf32> to vector<8x32xf32>
    %c0_33 = arith.constant 0 : index
    %c0_34 = arith.constant 0 : index
    %c0_35 = arith.constant 0 : index
    %69 = vector.load %arg8[%c0_33, %c0_34, %c0_35] : memref<3x32x32xf32, #tpu.memory_space<vmem>>, vector<1x32x32xf32>
    %70 = vector.shape_cast %69 : vector<1x32x32xf32> to vector<32x32xf32>
    %cst_36 = arith.constant dense<0.000000e+00> : vector<8x32xf32>
    %71 = tpu.matmul %68, %70, %cst_36 {dimension_numbers = #tpu.dot_dimension_numbers<[1], [0], [0], [1], [0, 0, 1, 1], [], []>} : vector<8x32xf32>, vector<32x32xf32>, vector<8x32xf32> -> vector<8x32xf32>
    %c0_37 = arith.constant 0 : index
    %c0_38 = arith.constant 0 : index
    %c0_39 = arith.constant 0 : index
    %72 = vector.load %arg9[%c0_37, %c0_38, %c0_39] : memref<3x1x32xf32, #tpu.memory_space<vmem>>, vector<1x1x32xf32>
    %73 = vector.shape_cast %72 : vector<1x1x32xf32> to vector<1x32xf32>
    %74 = vector.broadcast %73 : vector<1x32xf32> to vector<8x32xf32>
    %75 = arith.addf %71, %74 : vector<8x32xf32>
    %76 = arith.addf %35, %75 : vector<8x32xf32>
    %c0_40 = arith.constant 0 : index
    %c0_41 = arith.constant 0 : index
    %c0_42 = arith.constant 0 : index
    %77 = vector.load %arg10[%c0_40, %c0_41, %c0_42] : memref<3x1x32xf32, #tpu.memory_space<vmem>>, vector<1x1x32xf32>
    %78 = vector.shape_cast %77 : vector<1x1x32xf32> to vector<1x32xf32>
    %c0_43 = arith.constant 0 : index
    %c0_44 = arith.constant 0 : index
    %c0_45 = arith.constant 0 : index
    %79 = vector.load %arg11[%c0_43, %c0_44, %c0_45] : memref<3x1x32xf32, #tpu.memory_space<vmem>>, vector<1x1x32xf32>
    %80 = vector.shape_cast %79 : vector<1x1x32xf32> to vector<1x32xf32>
    %cst_46 = arith.constant dense<0.000000e+00> : vector<8xf32>
    %81 = vector.multi_reduction <add>, %76, %cst_46 [1] : vector<8x32xf32> to vector<8xf32>
    %82 = vector.shape_cast %81 : vector<8xf32> to vector<8x1xf32>
    %cst_47 = arith.constant 3.200000e+01 : f32
    %83 = vector.broadcast %cst_47 : f32 to vector<8x1xf32>
    %84 = arith.divf %82, %83 : vector<8x1xf32>
    %85 = vector.broadcast %84 : vector<8x1xf32> to vector<8x32xf32>
    %86 = arith.subf %76, %85 : vector<8x32xf32>
    %87 = arith.mulf %86, %86 : vector<8x32xf32>
    %cst_48 = arith.constant dense<0.000000e+00> : vector<8xf32>
    %88 = vector.multi_reduction <add>, %87, %cst_48 [1] : vector<8x32xf32> to vector<8xf32>
    %89 = vector.shape_cast %88 : vector<8xf32> to vector<8x1xf32>
    %cst_49 = arith.constant 3.200000e+01 : f32
    %90 = vector.broadcast %cst_49 : f32 to vector<8x1xf32>
    %91 = arith.divf %89, %90 : vector<8x1xf32>
    %92 = vector.broadcast %84 : vector<8x1xf32> to vector<8x32xf32>
    %93 = arith.subf %76, %92 : vector<8x32xf32>
    %cst_50 = arith.constant 9.99999974E-6 : f32
    %94 = vector.broadcast %cst_50 : f32 to vector<8x1xf32>
    %95 = arith.addf %91, %94 : vector<8x1xf32>
    %96 = math.rsqrt %95 : vector<8x1xf32>
    %97 = vector.broadcast %96 : vector<8x1xf32> to vector<8x32xf32>
    %98 = arith.mulf %93, %97 : vector<8x32xf32>
    %99 = vector.broadcast %78 : vector<1x32xf32> to vector<8x32xf32>
    %100 = arith.mulf %98, %99 : vector<8x32xf32>
    %101 = vector.broadcast %80 : vector<1x32xf32> to vector<8x32xf32>
    %102 = arith.addf %100, %101 : vector<8x32xf32>
    %c0_51 = arith.constant 0 : index
    %c0_52 = arith.constant 0 : index
    %c0_53 = arith.constant 0 : index
    %103 = vector.load %arg12[%c0_51, %c0_52, %c0_53] : memref<3x32x128xf32, #tpu.memory_space<vmem>>, vector<1x32x128xf32>
    %104 = vector.shape_cast %103 : vector<1x32x128xf32> to vector<32x128xf32>
    %cst_54 = arith.constant dense<0.000000e+00> : vector<8x128xf32>
    %105 = tpu.matmul %102, %104, %cst_54 {dimension_numbers = #tpu.dot_dimension_numbers<[1], [0], [0], [1], [0, 0, 1, 1], [], []>} : vector<8x32xf32>, vector<32x128xf32>, vector<8x128xf32> -> vector<8x128xf32>
    %c0_55 = arith.constant 0 : index
    %c0_56 = arith.constant 0 : index
    %c0_57 = arith.constant 0 : index
    %106 = vector.load %arg13[%c0_55, %c0_56, %c0_57] : memref<3x1x128xf32, #tpu.memory_space<vmem>>, vector<1x1x128xf32>
    %107 = vector.shape_cast %106 : vector<1x1x128xf32> to vector<1x128xf32>
    %108 = vector.broadcast %107 : vector<1x128xf32> to vector<8x128xf32>
    %109 = arith.addf %105, %108 : vector<8x128xf32>
    %cst_58 = arith.constant 0.000000e+00 : f32
    %110 = vector.broadcast %cst_58 : f32 to vector<8x128xf32>
    %111 = arith.maximumf %109, %110 : vector<8x128xf32>
    %c0_59 = arith.constant 0 : index
    %c0_60 = arith.constant 0 : index
    %c0_61 = arith.constant 0 : index
    %112 = vector.load %arg14[%c0_59, %c0_60, %c0_61] : memref<3x128x32xf32, #tpu.memory_space<vmem>>, vector<1x128x32xf32>
    %113 = vector.shape_cast %112 : vector<1x128x32xf32> to vector<128x32xf32>
    %cst_62 = arith.constant dense<0.000000e+00> : vector<8x32xf32>
    %114 = tpu.matmul %111, %113, %cst_62 {dimension_numbers = #tpu.dot_dimension_numbers<[1], [0], [0], [1], [0, 0, 1, 1], [], []>} : vector<8x128xf32>, vector<128x32xf32>, vector<8x32xf32> -> vector<8x32xf32>
    %c0_63 = arith.constant 0 : index
    %c0_64 = arith.constant 0 : index
    %c0_65 = arith.constant 0 : index
    %115 = vector.load %arg15[%c0_63, %c0_64, %c0_65] : memref<3x1x32xf32, #tpu.memory_space<vmem>>, vector<1x1x32xf32>
    %116 = vector.shape_cast %115 : vector<1x1x32xf32> to vector<1x32xf32>
    %117 = vector.broadcast %116 : vector<1x32xf32> to vector<8x32xf32>
    %118 = arith.addf %114, %117 : vector<8x32xf32>
    %119 = arith.addf %102, %118 : vector<8x32xf32>
    %c1 = arith.constant 1 : index
    %c0_66 = arith.constant 0 : index
    %c0_67 = arith.constant 0 : index
    %120 = vector.load %arg3[%c1, %c0_66, %c0_67] : memref<3x1x32xf32, #tpu.memory_space<vmem>>, vector<1x1x32xf32>
    %121 = vector.shape_cast %120 : vector<1x1x32xf32> to vector<1x32xf32>
    %c1_68 = arith.constant 1 : index
    %c0_69 = arith.constant 0 : index
    %c0_70 = arith.constant 0 : index
    %122 = vector.load %arg4[%c1_68, %c0_69, %c0_70] : memref<3x1x32xf32, #tpu.memory_space<vmem>>, vector<1x1x32xf32>
    %123 = vector.shape_cast %122 : vector<1x1x32xf32> to vector<1x32xf32>
    %cst_71 = arith.constant dense<0.000000e+00> : vector<8xf32>
    %124 = vector.multi_reduction <add>, %119, %cst_71 [1] : vector<8x32xf32> to vector<8xf32>
    %125 = vector.shape_cast %124 : vector<8xf32> to vector<8x1xf32>
    %cst_72 = arith.constant 3.200000e+01 : f32
    %126 = vector.broadcast %cst_72 : f32 to vector<8x1xf32>
    %127 = arith.divf %125, %126 : vector<8x1xf32>
    %128 = vector.broadcast %127 : vector<8x1xf32> to vector<8x32xf32>
    %129 = arith.subf %119, %128 : vector<8x32xf32>
    %130 = arith.mulf %129, %129 : vector<8x32xf32>
    %cst_73 = arith.constant dense<0.000000e+00> : vector<8xf32>
    %131 = vector.multi_reduction <add>, %130, %cst_73 [1] : vector<8x32xf32> to vector<8xf32>
    %132 = vector.shape_cast %131 : vector<8xf32> to vector<8x1xf32>
    %cst_74 = arith.constant 3.200000e+01 : f32
    %133 = vector.broadcast %cst_74 : f32 to vector<8x1xf32>
    %134 = arith.divf %132, %133 : vector<8x1xf32>
    %135 = vector.broadcast %127 : vector<8x1xf32> to vector<8x32xf32>
    %136 = arith.subf %119, %135 : vector<8x32xf32>
    %cst_75 = arith.constant 9.99999974E-6 : f32
    %137 = vector.broadcast %cst_75 : f32 to vector<8x1xf32>
    %138 = arith.addf %134, %137 : vector<8x1xf32>
    %139 = math.rsqrt %138 : vector<8x1xf32>
    %140 = vector.broadcast %139 : vector<8x1xf32> to vector<8x32xf32>
    %141 = arith.mulf %136, %140 : vector<8x32xf32>
    %142 = vector.broadcast %121 : vector<1x32xf32> to vector<8x32xf32>
    %143 = arith.mulf %141, %142 : vector<8x32xf32>
    %144 = vector.broadcast %123 : vector<1x32xf32> to vector<8x32xf32>
    %145 = arith.addf %143, %144 : vector<8x32xf32>
    %c1_76 = arith.constant 1 : index
    %c0_77 = arith.constant 0 : index
    %c0_78 = arith.constant 0 : index
    %146 = vector.load %arg5[%c1_76, %c0_77, %c0_78] : memref<3x32x32xf32, #tpu.memory_space<vmem>>, vector<1x32x32xf32>
    %147 = vector.shape_cast %146 : vector<1x32x32xf32> to vector<32x32xf32>
    %cst_79 = arith.constant dense<0.000000e+00> : vector<8x32xf32>
    %148 = tpu.matmul %145, %147, %cst_79 {dimension_numbers = #tpu.dot_dimension_numbers<[1], [0], [0], [1], [0, 0, 1, 1], [], []>} : vector<8x32xf32>, vector<32x32xf32>, vector<8x32xf32> -> vector<8x32xf32>
    %cst_80 = arith.constant 0.176776692 : f32
    %149 = vector.broadcast %cst_80 : f32 to vector<8x32xf32>
    %150 = arith.mulf %148, %149 : vector<8x32xf32>
    %c1_81 = arith.constant 1 : index
    %c0_82 = arith.constant 0 : index
    %c0_83 = arith.constant 0 : index
    %151 = vector.load %arg6[%c1_81, %c0_82, %c0_83] : memref<3x32x32xf32, #tpu.memory_space<vmem>>, vector<1x32x32xf32>
    %152 = vector.shape_cast %151 : vector<1x32x32xf32> to vector<32x32xf32>
    %cst_84 = arith.constant dense<0.000000e+00> : vector<8x32xf32>
    %153 = tpu.matmul %145, %152, %cst_84 {dimension_numbers = #tpu.dot_dimension_numbers<[1], [0], [0], [1], [0, 0, 1, 1], [], []>} : vector<8x32xf32>, vector<32x32xf32>, vector<8x32xf32> -> vector<8x32xf32>
    %c1_85 = arith.constant 1 : index
    %c0_86 = arith.constant 0 : index
    %c0_87 = arith.constant 0 : index
    %154 = vector.load %arg7[%c1_85, %c0_86, %c0_87] : memref<3x32x32xf32, #tpu.memory_space<vmem>>, vector<1x32x32xf32>
    %155 = vector.shape_cast %154 : vector<1x32x32xf32> to vector<32x32xf32>
    %cst_88 = arith.constant dense<0.000000e+00> : vector<8x32xf32>
    %156 = tpu.matmul %145, %155, %cst_88 {dimension_numbers = #tpu.dot_dimension_numbers<[1], [0], [0], [1], [0, 0, 1, 1], [], []>} : vector<8x32xf32>, vector<32x32xf32>, vector<8x32xf32> -> vector<8x32xf32>
    %157 = vector.shape_cast %150 : vector<8x32xf32> to vector<8x16x2xf32>
    %158 = tpu.transpose %157, [1, 0, 2] : vector<8x16x2xf32> -> vector<16x8x2xf32>
    %159 = vector.shape_cast %153 : vector<8x32xf32> to vector<8x16x2xf32>
    %160 = tpu.transpose %159, [1, 0, 2] : vector<8x16x2xf32> -> vector<16x8x2xf32>
    %161 = vector.shape_cast %156 : vector<8x32xf32> to vector<8x16x2xf32>
    %162 = tpu.transpose %161, [1, 0, 2] : vector<8x16x2xf32> -> vector<16x8x2xf32>
    "tpu.trace_start"() <{level = 10 : i32, message = "htd,hsd->hts"}> : () -> ()
    %cst_89 = arith.constant dense<0.000000e+00> : vector<16x8x8xf32>
    %163 = tpu.matmul %158, %160, %cst_89 {dimension_numbers = #tpu.dot_dimension_numbers<[2], [2], [1], [1], [0, 0, 0, 1, 1, 1], [0], [0]>} : vector<16x8x2xf32>, vector<16x8x2xf32>, vector<16x8x8xf32> -> vector<16x8x8xf32>
    "tpu.trace_stop"() : () -> ()
    %164 = vector.shape_cast %9 : vector<8x8xf32> to vector<1x8x8xf32>
    %165 = vector.broadcast %164 : vector<1x8x8xf32> to vector<16x8x8xf32>
    %166 = arith.addf %163, %165 : vector<16x8x8xf32>
    %cst_90 = arith.constant dense<0xFF800000> : vector<16x8xf32>
    %167 = vector.multi_reduction <maximumf>, %166, %cst_90 [2] : vector<16x8x8xf32> to vector<16x8xf32>
    %168 = vector.shape_cast %167 : vector<16x8xf32> to vector<16x8x1xf32>
    %169 = vector.broadcast %168 : vector<16x8x1xf32> to vector<16x8x8xf32>
    %170 = arith.subf %166, %169 : vector<16x8x8xf32>
    %171 = math.exp %170 : vector<16x8x8xf32>
    %cst_91 = arith.constant dense<0.000000e+00> : vector<16x8xf32>
    %172 = vector.multi_reduction <add>, %171, %cst_91 [2] : vector<16x8x8xf32> to vector<16x8xf32>
    %173 = vector.shape_cast %172 : vector<16x8xf32> to vector<16x8x1xf32>
    %174 = vector.broadcast %173 : vector<16x8x1xf32> to vector<16x8x8xf32>
    %175 = arith.divf %171, %174 : vector<16x8x8xf32>
    "tpu.trace_start"() <{level = 10 : i32, message = "hts,hsd->htd"}> : () -> ()
    %cst_92 = arith.constant dense<0.000000e+00> : vector<16x8x2xf32>
    %176 = tpu.matmul %175, %162, %cst_92 {dimension_numbers = #tpu.dot_dimension_numbers<[2], [1], [1], [2], [0, 0, 0, 1, 1, 2], [0], [0]>} : vector<16x8x8xf32>, vector<16x8x2xf32>, vector<16x8x2xf32> -> vector<16x8x2xf32>
    "tpu.trace_stop"() : () -> ()
    %177 = tpu.transpose %176, [1, 0, 2] : vector<16x8x2xf32> -> vector<8x16x2xf32>
    %178 = vector.shape_cast %177 : vector<8x16x2xf32> to vector<8x32xf32>
    %c1_93 = arith.constant 1 : index
    %c0_94 = arith.constant 0 : index
    %c0_95 = arith.constant 0 : index
    %179 = vector.load %arg8[%c1_93, %c0_94, %c0_95] : memref<3x32x32xf32, #tpu.memory_space<vmem>>, vector<1x32x32xf32>
    %180 = vector.shape_cast %179 : vector<1x32x32xf32> to vector<32x32xf32>
    %cst_96 = arith.constant dense<0.000000e+00> : vector<8x32xf32>
    %181 = tpu.matmul %178, %180, %cst_96 {dimension_numbers = #tpu.dot_dimension_numbers<[1], [0], [0], [1], [0, 0, 1, 1], [], []>} : vector<8x32xf32>, vector<32x32xf32>, vector<8x32xf32> -> vector<8x32xf32>
    %c1_97 = arith.constant 1 : index
    %c0_98 = arith.constant 0 : index
    %c0_99 = arith.constant 0 : index
    %182 = vector.load %arg9[%c1_97, %c0_98, %c0_99] : memref<3x1x32xf32, #tpu.memory_space<vmem>>, vector<1x1x32xf32>
    %183 = vector.shape_cast %182 : vector<1x1x32xf32> to vector<1x32xf32>
    %184 = vector.broadcast %183 : vector<1x32xf32> to vector<8x32xf32>
    %185 = arith.addf %181, %184 : vector<8x32xf32>
    %186 = arith.addf %145, %185 : vector<8x32xf32>
    %c1_100 = arith.constant 1 : index
    %c0_101 = arith.constant 0 : index
    %c0_102 = arith.constant 0 : index
    %187 = vector.load %arg10[%c1_100, %c0_101, %c0_102] : memref<3x1x32xf32, #tpu.memory_space<vmem>>, vector<1x1x32xf32>
    %188 = vector.shape_cast %187 : vector<1x1x32xf32> to vector<1x32xf32>
    %c1_103 = arith.constant 1 : index
    %c0_104 = arith.constant 0 : index
    %c0_105 = arith.constant 0 : index
    %189 = vector.load %arg11[%c1_103, %c0_104, %c0_105] : memref<3x1x32xf32, #tpu.memory_space<vmem>>, vector<1x1x32xf32>
    %190 = vector.shape_cast %189 : vector<1x1x32xf32> to vector<1x32xf32>
    %cst_106 = arith.constant dense<0.000000e+00> : vector<8xf32>
    %191 = vector.multi_reduction <add>, %186, %cst_106 [1] : vector<8x32xf32> to vector<8xf32>
    %192 = vector.shape_cast %191 : vector<8xf32> to vector<8x1xf32>
    %cst_107 = arith.constant 3.200000e+01 : f32
    %193 = vector.broadcast %cst_107 : f32 to vector<8x1xf32>
    %194 = arith.divf %192, %193 : vector<8x1xf32>
    %195 = vector.broadcast %194 : vector<8x1xf32> to vector<8x32xf32>
    %196 = arith.subf %186, %195 : vector<8x32xf32>
    %197 = arith.mulf %196, %196 : vector<8x32xf32>
    %cst_108 = arith.constant dense<0.000000e+00> : vector<8xf32>
    %198 = vector.multi_reduction <add>, %197, %cst_108 [1] : vector<8x32xf32> to vector<8xf32>
    %199 = vector.shape_cast %198 : vector<8xf32> to vector<8x1xf32>
    %cst_109 = arith.constant 3.200000e+01 : f32
    %200 = vector.broadcast %cst_109 : f32 to vector<8x1xf32>
    %201 = arith.divf %199, %200 : vector<8x1xf32>
    %202 = vector.broadcast %194 : vector<8x1xf32> to vector<8x32xf32>
    %203 = arith.subf %186, %202 : vector<8x32xf32>
    %cst_110 = arith.constant 9.99999974E-6 : f32
    %204 = vector.broadcast %cst_110 : f32 to vector<8x1xf32>
    %205 = arith.addf %201, %204 : vector<8x1xf32>
    %206 = math.rsqrt %205 : vector<8x1xf32>
    %207 = vector.broadcast %206 : vector<8x1xf32> to vector<8x32xf32>
    %208 = arith.mulf %203, %207 : vector<8x32xf32>
    %209 = vector.broadcast %188 : vector<1x32xf32> to vector<8x32xf32>
    %210 = arith.mulf %208, %209 : vector<8x32xf32>
    %211 = vector.broadcast %190 : vector<1x32xf32> to vector<8x32xf32>
    %212 = arith.addf %210, %211 : vector<8x32xf32>
    %c1_111 = arith.constant 1 : index
    %c0_112 = arith.constant 0 : index
    %c0_113 = arith.constant 0 : index
    %213 = vector.load %arg12[%c1_111, %c0_112, %c0_113] : memref<3x32x128xf32, #tpu.memory_space<vmem>>, vector<1x32x128xf32>
    %214 = vector.shape_cast %213 : vector<1x32x128xf32> to vector<32x128xf32>
    %cst_114 = arith.constant dense<0.000000e+00> : vector<8x128xf32>
    %215 = tpu.matmul %212, %214, %cst_114 {dimension_numbers = #tpu.dot_dimension_numbers<[1], [0], [0], [1], [0, 0, 1, 1], [], []>} : vector<8x32xf32>, vector<32x128xf32>, vector<8x128xf32> -> vector<8x128xf32>
    %c1_115 = arith.constant 1 : index
    %c0_116 = arith.constant 0 : index
    %c0_117 = arith.constant 0 : index
    %216 = vector.load %arg13[%c1_115, %c0_116, %c0_117] : memref<3x1x128xf32, #tpu.memory_space<vmem>>, vector<1x1x128xf32>
    %217 = vector.shape_cast %216 : vector<1x1x128xf32> to vector<1x128xf32>
    %218 = vector.broadcast %217 : vector<1x128xf32> to vector<8x128xf32>
    %219 = arith.addf %215, %218 : vector<8x128xf32>
    %cst_118 = arith.constant 0.000000e+00 : f32
    %220 = vector.broadcast %cst_118 : f32 to vector<8x128xf32>
    %221 = arith.maximumf %219, %220 : vector<8x128xf32>
    %c1_119 = arith.constant 1 : index
    %c0_120 = arith.constant 0 : index
    %c0_121 = arith.constant 0 : index
    %222 = vector.load %arg14[%c1_119, %c0_120, %c0_121] : memref<3x128x32xf32, #tpu.memory_space<vmem>>, vector<1x128x32xf32>
    %223 = vector.shape_cast %222 : vector<1x128x32xf32> to vector<128x32xf32>
    %cst_122 = arith.constant dense<0.000000e+00> : vector<8x32xf32>
    %224 = tpu.matmul %221, %223, %cst_122 {dimension_numbers = #tpu.dot_dimension_numbers<[1], [0], [0], [1], [0, 0, 1, 1], [], []>} : vector<8x128xf32>, vector<128x32xf32>, vector<8x32xf32> -> vector<8x32xf32>
    %c1_123 = arith.constant 1 : index
    %c0_124 = arith.constant 0 : index
    %c0_125 = arith.constant 0 : index
    %225 = vector.load %arg15[%c1_123, %c0_124, %c0_125] : memref<3x1x32xf32, #tpu.memory_space<vmem>>, vector<1x1x32xf32>
    %226 = vector.shape_cast %225 : vector<1x1x32xf32> to vector<1x32xf32>
    %227 = vector.broadcast %226 : vector<1x32xf32> to vector<8x32xf32>
    %228 = arith.addf %224, %227 : vector<8x32xf32>
    %229 = arith.addf %212, %228 : vector<8x32xf32>
    %c2 = arith.constant 2 : index
    %c0_126 = arith.constant 0 : index
    %c0_127 = arith.constant 0 : index
    %230 = vector.load %arg3[%c2, %c0_126, %c0_127] : memref<3x1x32xf32, #tpu.memory_space<vmem>>, vector<1x1x32xf32>
    %231 = vector.shape_cast %230 : vector<1x1x32xf32> to vector<1x32xf32>
    %c2_128 = arith.constant 2 : index
    %c0_129 = arith.constant 0 : index
    %c0_130 = arith.constant 0 : index
    %232 = vector.load %arg4[%c2_128, %c0_129, %c0_130] : memref<3x1x32xf32, #tpu.memory_space<vmem>>, vector<1x1x32xf32>
    %233 = vector.shape_cast %232 : vector<1x1x32xf32> to vector<1x32xf32>
    %cst_131 = arith.constant dense<0.000000e+00> : vector<8xf32>
    %234 = vector.multi_reduction <add>, %229, %cst_131 [1] : vector<8x32xf32> to vector<8xf32>
    %235 = vector.shape_cast %234 : vector<8xf32> to vector<8x1xf32>
    %cst_132 = arith.constant 3.200000e+01 : f32
    %236 = vector.broadcast %cst_132 : f32 to vector<8x1xf32>
    %237 = arith.divf %235, %236 : vector<8x1xf32>
    %238 = vector.broadcast %237 : vector<8x1xf32> to vector<8x32xf32>
    %239 = arith.subf %229, %238 : vector<8x32xf32>
    %240 = arith.mulf %239, %239 : vector<8x32xf32>
    %cst_133 = arith.constant dense<0.000000e+00> : vector<8xf32>
    %241 = vector.multi_reduction <add>, %240, %cst_133 [1] : vector<8x32xf32> to vector<8xf32>
    %242 = vector.shape_cast %241 : vector<8xf32> to vector<8x1xf32>
    %cst_134 = arith.constant 3.200000e+01 : f32
    %243 = vector.broadcast %cst_134 : f32 to vector<8x1xf32>
    %244 = arith.divf %242, %243 : vector<8x1xf32>
    %245 = vector.broadcast %237 : vector<8x1xf32> to vector<8x32xf32>
    %246 = arith.subf %229, %245 : vector<8x32xf32>
    %cst_135 = arith.constant 9.99999974E-6 : f32
    %247 = vector.broadcast %cst_135 : f32 to vector<8x1xf32>
    %248 = arith.addf %244, %247 : vector<8x1xf32>
    %249 = math.rsqrt %248 : vector<8x1xf32>
    %250 = vector.broadcast %249 : vector<8x1xf32> to vector<8x32xf32>
    %251 = arith.mulf %246, %250 : vector<8x32xf32>
    %252 = vector.broadcast %231 : vector<1x32xf32> to vector<8x32xf32>
    %253 = arith.mulf %251, %252 : vector<8x32xf32>
    %254 = vector.broadcast %233 : vector<1x32xf32> to vector<8x32xf32>
    %255 = arith.addf %253, %254 : vector<8x32xf32>
    %c2_136 = arith.constant 2 : index
    %c0_137 = arith.constant 0 : index
    %c0_138 = arith.constant 0 : index
    %256 = vector.load %arg5[%c2_136, %c0_137, %c0_138] : memref<3x32x32xf32, #tpu.memory_space<vmem>>, vector<1x32x32xf32>
    %257 = vector.shape_cast %256 : vector<1x32x32xf32> to vector<32x32xf32>
    %cst_139 = arith.constant dense<0.000000e+00> : vector<8x32xf32>
    %258 = tpu.matmul %255, %257, %cst_139 {dimension_numbers = #tpu.dot_dimension_numbers<[1], [0], [0], [1], [0, 0, 1, 1], [], []>} : vector<8x32xf32>, vector<32x32xf32>, vector<8x32xf32> -> vector<8x32xf32>
    %cst_140 = arith.constant 0.176776692 : f32
    %259 = vector.broadcast %cst_140 : f32 to vector<8x32xf32>
    %260 = arith.mulf %258, %259 : vector<8x32xf32>
    %c2_141 = arith.constant 2 : index
    %c0_142 = arith.constant 0 : index
    %c0_143 = arith.constant 0 : index
    %261 = vector.load %arg6[%c2_141, %c0_142, %c0_143] : memref<3x32x32xf32, #tpu.memory_space<vmem>>, vector<1x32x32xf32>
    %262 = vector.shape_cast %261 : vector<1x32x32xf32> to vector<32x32xf32>
    %cst_144 = arith.constant dense<0.000000e+00> : vector<8x32xf32>
    %263 = tpu.matmul %255, %262, %cst_144 {dimension_numbers = #tpu.dot_dimension_numbers<[1], [0], [0], [1], [0, 0, 1, 1], [], []>} : vector<8x32xf32>, vector<32x32xf32>, vector<8x32xf32> -> vector<8x32xf32>
    %c2_145 = arith.constant 2 : index
    %c0_146 = arith.constant 0 : index
    %c0_147 = arith.constant 0 : index
    %264 = vector.load %arg7[%c2_145, %c0_146, %c0_147] : memref<3x32x32xf32, #tpu.memory_space<vmem>>, vector<1x32x32xf32>
    %265 = vector.shape_cast %264 : vector<1x32x32xf32> to vector<32x32xf32>
    %cst_148 = arith.constant dense<0.000000e+00> : vector<8x32xf32>
    %266 = tpu.matmul %255, %265, %cst_148 {dimension_numbers = #tpu.dot_dimension_numbers<[1], [0], [0], [1], [0, 0, 1, 1], [], []>} : vector<8x32xf32>, vector<32x32xf32>, vector<8x32xf32> -> vector<8x32xf32>
    %267 = vector.shape_cast %260 : vector<8x32xf32> to vector<8x16x2xf32>
    %268 = tpu.transpose %267, [1, 0, 2] : vector<8x16x2xf32> -> vector<16x8x2xf32>
    %269 = vector.shape_cast %263 : vector<8x32xf32> to vector<8x16x2xf32>
    %270 = tpu.transpose %269, [1, 0, 2] : vector<8x16x2xf32> -> vector<16x8x2xf32>
    %271 = vector.shape_cast %266 : vector<8x32xf32> to vector<8x16x2xf32>
    %272 = tpu.transpose %271, [1, 0, 2] : vector<8x16x2xf32> -> vector<16x8x2xf32>
    "tpu.trace_start"() <{level = 10 : i32, message = "htd,hsd->hts"}> : () -> ()
    %cst_149 = arith.constant dense<0.000000e+00> : vector<16x8x8xf32>
    %273 = tpu.matmul %268, %270, %cst_149 {dimension_numbers = #tpu.dot_dimension_numbers<[2], [2], [1], [1], [0, 0, 0, 1, 1, 1], [0], [0]>} : vector<16x8x2xf32>, vector<16x8x2xf32>, vector<16x8x8xf32> -> vector<16x8x8xf32>
    "tpu.trace_stop"() : () -> ()
    %274 = vector.shape_cast %9 : vector<8x8xf32> to vector<1x8x8xf32>
    %275 = vector.broadcast %274 : vector<1x8x8xf32> to vector<16x8x8xf32>
    %276 = arith.addf %273, %275 : vector<16x8x8xf32>
    %cst_150 = arith.constant dense<0xFF800000> : vector<16x8xf32>
    %277 = vector.multi_reduction <maximumf>, %276, %cst_150 [2] : vector<16x8x8xf32> to vector<16x8xf32>
    %278 = vector.shape_cast %277 : vector<16x8xf32> to vector<16x8x1xf32>
    %279 = vector.broadcast %278 : vector<16x8x1xf32> to vector<16x8x8xf32>
    %280 = arith.subf %276, %279 : vector<16x8x8xf32>
    %281 = math.exp %280 : vector<16x8x8xf32>
    %cst_151 = arith.constant dense<0.000000e+00> : vector<16x8xf32>
    %282 = vector.multi_reduction <add>, %281, %cst_151 [2] : vector<16x8x8xf32> to vector<16x8xf32>
    %283 = vector.shape_cast %282 : vector<16x8xf32> to vector<16x8x1xf32>
    %284 = vector.broadcast %283 : vector<16x8x1xf32> to vector<16x8x8xf32>
    %285 = arith.divf %281, %284 : vector<16x8x8xf32>
    "tpu.trace_start"() <{level = 10 : i32, message = "hts,hsd->htd"}> : () -> ()
    %cst_152 = arith.constant dense<0.000000e+00> : vector<16x8x2xf32>
    %286 = tpu.matmul %285, %272, %cst_152 {dimension_numbers = #tpu.dot_dimension_numbers<[2], [1], [1], [2], [0, 0, 0, 1, 1, 2], [0], [0]>} : vector<16x8x8xf32>, vector<16x8x2xf32>, vector<16x8x2xf32> -> vector<16x8x2xf32>
    "tpu.trace_stop"() : () -> ()
    %287 = tpu.transpose %286, [1, 0, 2] : vector<16x8x2xf32> -> vector<8x16x2xf32>
    %288 = vector.shape_cast %287 : vector<8x16x2xf32> to vector<8x32xf32>
    %c2_153 = arith.constant 2 : index
    %c0_154 = arith.constant 0 : index
    %c0_155 = arith.constant 0 : index
    %289 = vector.load %arg8[%c2_153, %c0_154, %c0_155] : memref<3x32x32xf32, #tpu.memory_space<vmem>>, vector<1x32x32xf32>
    %290 = vector.shape_cast %289 : vector<1x32x32xf32> to vector<32x32xf32>
    %cst_156 = arith.constant dense<0.000000e+00> : vector<8x32xf32>
    %291 = tpu.matmul %288, %290, %cst_156 {dimension_numbers = #tpu.dot_dimension_numbers<[1], [0], [0], [1], [0, 0, 1, 1], [], []>} : vector<8x32xf32>, vector<32x32xf32>, vector<8x32xf32> -> vector<8x32xf32>
    %c2_157 = arith.constant 2 : index
    %c0_158 = arith.constant 0 : index
    %c0_159 = arith.constant 0 : index
    %292 = vector.load %arg9[%c2_157, %c0_158, %c0_159] : memref<3x1x32xf32, #tpu.memory_space<vmem>>, vector<1x1x32xf32>
    %293 = vector.shape_cast %292 : vector<1x1x32xf32> to vector<1x32xf32>
    %294 = vector.broadcast %293 : vector<1x32xf32> to vector<8x32xf32>
    %295 = arith.addf %291, %294 : vector<8x32xf32>
    %296 = arith.addf %255, %295 : vector<8x32xf32>
    %c2_160 = arith.constant 2 : index
    %c0_161 = arith.constant 0 : index
    %c0_162 = arith.constant 0 : index
    %297 = vector.load %arg10[%c2_160, %c0_161, %c0_162] : memref<3x1x32xf32, #tpu.memory_space<vmem>>, vector<1x1x32xf32>
    %298 = vector.shape_cast %297 : vector<1x1x32xf32> to vector<1x32xf32>
    %c2_163 = arith.constant 2 : index
    %c0_164 = arith.constant 0 : index
    %c0_165 = arith.constant 0 : index
    %299 = vector.load %arg11[%c2_163, %c0_164, %c0_165] : memref<3x1x32xf32, #tpu.memory_space<vmem>>, vector<1x1x32xf32>
    %300 = vector.shape_cast %299 : vector<1x1x32xf32> to vector<1x32xf32>
    %cst_166 = arith.constant dense<0.000000e+00> : vector<8xf32>
    %301 = vector.multi_reduction <add>, %296, %cst_166 [1] : vector<8x32xf32> to vector<8xf32>
    %302 = vector.shape_cast %301 : vector<8xf32> to vector<8x1xf32>
    %cst_167 = arith.constant 3.200000e+01 : f32
    %303 = vector.broadcast %cst_167 : f32 to vector<8x1xf32>
    %304 = arith.divf %302, %303 : vector<8x1xf32>
    %305 = vector.broadcast %304 : vector<8x1xf32> to vector<8x32xf32>
    %306 = arith.subf %296, %305 : vector<8x32xf32>
    %307 = arith.mulf %306, %306 : vector<8x32xf32>
    %cst_168 = arith.constant dense<0.000000e+00> : vector<8xf32>
    %308 = vector.multi_reduction <add>, %307, %cst_168 [1] : vector<8x32xf32> to vector<8xf32>
    %309 = vector.shape_cast %308 : vector<8xf32> to vector<8x1xf32>
    %cst_169 = arith.constant 3.200000e+01 : f32
    %310 = vector.broadcast %cst_169 : f32 to vector<8x1xf32>
    %311 = arith.divf %309, %310 : vector<8x1xf32>
    %312 = vector.broadcast %304 : vector<8x1xf32> to vector<8x32xf32>
    %313 = arith.subf %296, %312 : vector<8x32xf32>
    %cst_170 = arith.constant 9.99999974E-6 : f32
    %314 = vector.broadcast %cst_170 : f32 to vector<8x1xf32>
    %315 = arith.addf %311, %314 : vector<8x1xf32>
    %316 = math.rsqrt %315 : vector<8x1xf32>
    %317 = vector.broadcast %316 : vector<8x1xf32> to vector<8x32xf32>
    %318 = arith.mulf %313, %317 : vector<8x32xf32>
    %319 = vector.broadcast %298 : vector<1x32xf32> to vector<8x32xf32>
    %320 = arith.mulf %318, %319 : vector<8x32xf32>
    %321 = vector.broadcast %300 : vector<1x32xf32> to vector<8x32xf32>
    %322 = arith.addf %320, %321 : vector<8x32xf32>
    %c2_171 = arith.constant 2 : index
    %c0_172 = arith.constant 0 : index
    %c0_173 = arith.constant 0 : index
    %323 = vector.load %arg12[%c2_171, %c0_172, %c0_173] : memref<3x32x128xf32, #tpu.memory_space<vmem>>, vector<1x32x128xf32>
    %324 = vector.shape_cast %323 : vector<1x32x128xf32> to vector<32x128xf32>
    %cst_174 = arith.constant dense<0.000000e+00> : vector<8x128xf32>
    %325 = tpu.matmul %322, %324, %cst_174 {dimension_numbers = #tpu.dot_dimension_numbers<[1], [0], [0], [1], [0, 0, 1, 1], [], []>} : vector<8x32xf32>, vector<32x128xf32>, vector<8x128xf32> -> vector<8x128xf32>
    %c2_175 = arith.constant 2 : index
    %c0_176 = arith.constant 0 : index
    %c0_177 = arith.constant 0 : index
    %326 = vector.load %arg13[%c2_175, %c0_176, %c0_177] : memref<3x1x128xf32, #tpu.memory_space<vmem>>, vector<1x1x128xf32>
    %327 = vector.shape_cast %326 : vector<1x1x128xf32> to vector<1x128xf32>
    %328 = vector.broadcast %327 : vector<1x128xf32> to vector<8x128xf32>
    %329 = arith.addf %325, %328 : vector<8x128xf32>
    %cst_178 = arith.constant 0.000000e+00 : f32
    %330 = vector.broadcast %cst_178 : f32 to vector<8x128xf32>
    %331 = arith.maximumf %329, %330 : vector<8x128xf32>
    %c2_179 = arith.constant 2 : index
    %c0_180 = arith.constant 0 : index
    %c0_181 = arith.constant 0 : index
    %332 = vector.load %arg14[%c2_179, %c0_180, %c0_181] : memref<3x128x32xf32, #tpu.memory_space<vmem>>, vector<1x128x32xf32>
    %333 = vector.shape_cast %332 : vector<1x128x32xf32> to vector<128x32xf32>
    %cst_182 = arith.constant dense<0.000000e+00> : vector<8x32xf32>
    %334 = tpu.matmul %331, %333, %cst_182 {dimension_numbers = #tpu.dot_dimension_numbers<[1], [0], [0], [1], [0, 0, 1, 1], [], []>} : vector<8x128xf32>, vector<128x32xf32>, vector<8x32xf32> -> vector<8x32xf32>
    %c2_183 = arith.constant 2 : index
    %c0_184 = arith.constant 0 : index
    %c0_185 = arith.constant 0 : index
    %335 = vector.load %arg15[%c2_183, %c0_184, %c0_185] : memref<3x1x32xf32, #tpu.memory_space<vmem>>, vector<1x1x32xf32>
    %336 = vector.shape_cast %335 : vector<1x1x32xf32> to vector<1x32xf32>
    %337 = vector.broadcast %336 : vector<1x32xf32> to vector<8x32xf32>
    %338 = arith.addf %334, %337 : vector<8x32xf32>
    %339 = arith.addf %322, %338 : vector<8x32xf32>
    %c0_186 = arith.constant 0 : index
    %c0_187 = arith.constant 0 : index
    %340 = vector.load %arg16[%c0_186, %c0_187] : memref<32x128xf32, #tpu.memory_space<vmem>>, vector<32x128xf32>
    %cst_188 = arith.constant dense<0.000000e+00> : vector<8x128xf32>
    %341 = tpu.matmul %339, %340, %cst_188 {dimension_numbers = #tpu.dot_dimension_numbers<[1], [0], [0], [1], [0, 0, 1, 1], [], []>} : vector<8x32xf32>, vector<32x128xf32>, vector<8x128xf32> -> vector<8x128xf32>
    %c0_189 = arith.constant 0 : index
    %c0_190 = arith.constant 0 : index
    %342 = vector.load %arg17[%c0_189, %c0_190] : memref<1x128xf32, #tpu.memory_space<vmem>>, vector<1x128xf32>
    %343 = vector.broadcast %342 : vector<1x128xf32> to vector<8x128xf32>
    %344 = arith.addf %341, %343 : vector<8x128xf32>
    %c0_191 = arith.constant 0 : index
    %c0_192 = arith.constant 0 : index
    %c0_193 = arith.constant 0 : index
    %345 = vector.load %arg18[%c0_191, %c0_192, %c0_193] : memref<1x8x128xf32, #tpu.memory_space<vmem>>, vector<1x8x128xf32>
    %346 = vector.shape_cast %345 : vector<1x8x128xf32> to vector<8x128xf32>
    %347 = vector.shape_cast %344 : vector<8x128xf32> to vector<1x8x128xf32>
    tpu.vector_store %arg18[%c0_191, %c0_192, %c0_193], %347 {strides = array<i32>} : memref<1x8x128xf32, #tpu.memory_space<vmem>>, vector<1x8x128xf32>,
    return
  }
  func.func @transform_0(%arg0: i32) -> (i32, i32, i32) {
    %c0_i32 = arith.constant 0 : i32
    %c0_i32_0 = arith.constant 0 : i32
    %c0_i32_1 = arith.constant 0 : i32
    return %arg0, %c0_i32, %c0_i32_0 : i32, i32, i32
  }
  func.func @transform_1(%arg0: i32) -> (i32, i32) {
    %c0_i32 = arith.constant 0 : i32
    %c0_i32_0 = arith.constant 0 : i32
    %c0_i32_1 = arith.constant 0 : i32
    return %c0_i32, %c0_i32_0 : i32, i32
  }
  func.func @transform_2(%arg0: i32) -> (i32, i32, i32) {
    %c0_i32 = arith.constant 0 : i32
    %c0_i32_0 = arith.constant 0 : i32
    %c0_i32_1 = arith.constant 0 : i32
    %c0_i32_2 = arith.constant 0 : i32
    return %c0_i32, %c0_i32_0, %c0_i32_1 : i32, i32, i32
  }
  func.func @transform_3(%arg0: i32) -> (i32, i32, i32) {
    %c0_i32 = arith.constant 0 : i32
    %c0_i32_0 = arith.constant 0 : i32
    %c0_i32_1 = arith.constant 0 : i32
    %c0_i32_2 = arith.constant 0 : i32
    return %c0_i32, %c0_i32_0, %c0_i32_1 : i32, i32, i32
  }
  func.func @transform_4(%arg0: i32) -> (i32, i32, i32) {
    %c0_i32 = arith.constant 0 : i32
    %c0_i32_0 = arith.constant 0 : i32
    %c0_i32_1 = arith.constant 0 : i32
    %c0_i32_2 = arith.constant 0 : i32
    return %c0_i32, %c0_i32_0, %c0_i32_1 : i32, i32, i32
  }
  func.func @transform_5(%arg0: i32) -> (i32, i32, i32) {
    %c0_i32 = arith.constant 0 : i32
    %c0_i32_0 = arith.constant 0 : i32
    %c0_i32_1 = arith.constant 0 : i32
    %c0_i32_2 = arith.constant 0 : i32
    return %c0_i32, %c0_i32_0, %c0_i32_1 : i32, i32, i32
  }
  func.func @transform_6(%arg0: i32) -> (i32, i32, i32) {
    %c0_i32 = arith.constant 0 : i32
    %c0_i32_0 = arith.constant 0 : i32
    %c0_i32_1 = arith.constant 0 : i32
    %c0_i32_2 = arith.constant 0 : i32
    return %c0_i32, %c0_i32_0, %c0_i32_1 : i32, i32, i32
  }
  func.func @transform_7(%arg0: i32) -> (i32, i32, i32) {
    %c0_i32 = arith.constant 0 : i32
    %c0_i32_0 = arith.constant 0 : i32
    %c0_i32_1 = arith.constant 0 : i32
    %c0_i32_2 = arith.constant 0 : i32
    return %c0_i32, %c0_i32_0, %c0_i32_1 : i32, i32, i32
  }
  func.func @transform_8(%arg0: i32) -> (i32, i32, i32) {
    %c0_i32 = arith.constant 0 : i32
    %c0_i32_0 = arith.constant 0 : i32
    %c0_i32_1 = arith.constant 0 : i32
    %c0_i32_2 = arith.constant 0 : i32
    return %c0_i32, %c0_i32_0, %c0_i32_1 : i32, i32, i32
  }
  func.func @transform_9(%arg0: i32) -> (i32, i32, i32) {
    %c0_i32 = arith.constant 0 : i32
    %c0_i32_0 = arith.constant 0 : i32
    %c0_i32_1 = arith.constant 0 : i32
    %c0_i32_2 = arith.constant 0 : i32
    return %c0_i32, %c0_i32_0, %c0_i32_1 : i32, i32, i32
  }
  func.func @transform_10(%arg0: i32) -> (i32, i32, i32) {
    %c0_i32 = arith.constant 0 : i32
    %c0_i32_0 = arith.constant 0 : i32
    %c0_i32_1 = arith.constant 0 : i32
    %c0_i32_2 = arith.constant 0 : i32
    return %c0_i32, %c0_i32_0, %c0_i32_1 : i32, i32, i32
  }
  func.func @transform_11(%arg0: i32) -> (i32, i32, i32) {
    %c0_i32 = arith.constant 0 : i32
    %c0_i32_0 = arith.constant 0 : i32
    %c0_i32_1 = arith.constant 0 : i32
    %c0_i32_2 = arith.constant 0 : i32
    return %c0_i32, %c0_i32_0, %c0_i32_1 : i32, i32, i32
  }
  func.func @transform_12(%arg0: i32) -> (i32, i32, i32) {
    %c0_i32 = arith.constant 0 : i32
    %c0_i32_0 = arith.constant 0 : i32
    %c0_i32_1 = arith.constant 0 : i32
    %c0_i32_2 = arith.constant 0 : i32
    return %c0_i32, %c0_i32_0, %c0_i32_1 : i32, i32, i32
  }
  func.func @transform_13(%arg0: i32) -> (i32, i32, i32) {
    %c0_i32 = arith.constant 0 : i32
    %c0_i32_0 = arith.constant 0 : i32
    %c0_i32_1 = arith.constant 0 : i32
    %c0_i32_2 = arith.constant 0 : i32
    return %c0_i32, %c0_i32_0, %c0_i32_1 : i32, i32, i32
  }
  func.func @transform_14(%arg0: i32) -> (i32, i32, i32) {
    %c0_i32 = arith.constant 0 : i32
    %c0_i32_0 = arith.constant 0 : i32
    %c0_i32_1 = arith.constant 0 : i32
    %c0_i32_2 = arith.constant 0 : i32
    return %c0_i32, %c0_i32_0, %c0_i32_1 : i32, i32, i32
  }
  func.func @transform_15(%arg0: i32) -> (i32, i32) {
    %c0_i32 = arith.constant 0 : i32
    %c0_i32_0 = arith.constant 0 : i32
    %c0_i32_1 = arith.constant 0 : i32
    return %c0_i32, %c0_i32_0 : i32, i32
  }
  func.func @transform_16(%arg0: i32) -> (i32, i32) {
    %c0_i32 = arith.constant 0 : i32
    %c0_i32_0 = arith.constant 0 : i32
    %c0_i32_1 = arith.constant 0 : i32
    return %c0_i32, %c0_i32_0 : i32, i32
  }
  func.func @transform_17(%arg0: i32) -> (i32, i32, i32) {
    %c0_i32 = arith.constant 0 : i32
    %c0_i32_0 = arith.constant 0 : i32
    %c0_i32_1 = arith.constant 0 : i32
    return %arg0, %c0_i32, %c0_i32_0 : i32, i32, i32
  }
}

</mosaic_0001>

<bundles_post_ra>
// kernel: tpu_custom_call.1
= control target key start
LH: loop header
LB: loop body
LE: loop exit
PB: predicated region body
PF: predicated region fallthrough
CT: control target
= control target key end

     0   :  { %s23316_s0 = inlined_call_operand.hbm [shape: f32[2,8,32], index: 0, kind: input, shape index: {}]   ;;  %s23317_s1 = inlined_call_operand.hbm [shape: f32[8,32], index: 1, kind: input, shape index: {}]   ;;  %s23318_s2 = inlined_call_operand.hbm [shape: f32[3,1,32], index: 2, kind: input, shape index: {}]   ;;  %s23319_s3 = inlined_call_operand.vmem [shape: f32[3,1,32], index: 3, kind: input, shape index: {}]   ;;  %s23320_s4 = inlined_call_operand.vmem [shape: f32[3,32,32], index: 4, kind: input, shape index: {}]   ;;  %s23321_s5 = inlined_call_operand.vmem [shape: f32[3,32,32], index: 5, kind: input, shape index: {}]   ;;  %s23322_s6 = inlined_call_operand.vmem [shape: f32[3,32,32], index: 6, kind: input, shape index: {}]   ;;  %s23323_s7 = inlined_call_operand.vmem [shape: f32[3,32,32], index: 7, kind: input, shape index: {}]   ;;  %s23324_s8 = inlined_call_operand.vmem [shape: f32[3,1,32], index: 8, kind: input, shape index: {}]   ;;  %s23325_s9 = inlined_call_operand.vmem [shape: f32[3,1,32], index: 9, kind: input, shape index: {}]   ;;  %s23326_s10 = inlined_call_operand.vmem [shape: f32[3,1,32], index: 10, kind: input, shape index: {}]   ;;  %s23327_s11 = inlined_call_operand.vmem [shape: f32[3,32,128], index: 11, kind: input, shape index: {}]   ;;  %s23328_s12 = inlined_call_operand.vmem [shape: f32[3,1,128], index: 12, kind: input, shape index: {}]   ;;  %s23329_s13 = inlined_call_operand.vmem [shape: f32[3,128,32], index: 13, kind: input, shape index: {}]   ;;  %s23330_s14 = inlined_call_operand.vmem [shape: f32[3,1,32], index: 14, kind: input, shape index: {}]   ;;  %s23331_s15 = inlined_call_operand.hbm [shape: f32[32,128], index: 15, kind: input, shape index: {}]   ;;  %s23332_s16 = inlined_call_operand.vmem [shape: f32[1,128], index: 16, kind: input, shape index: {}]   ;;  %s23333_s17 = inlined_call_operand.hbm [shape: f32[2,8,128], index: 17, kind: output, shape index: {}]  }
   0x1   :  { %23419 = sst [smem:[#allocation25_spill]] %s23316_s0 }
   0x2   :  { %23420 = sst [smem:[#allocation26_spill]] %s23317_s1 }
   0x3   :  { %23421 = sst [smem:[#allocation27_spill]] %s23318_s2 }
   0x4   :  { %23422 = sst [smem:[#allocation28_spill]] %s23323_s7 }
   0x5   :  { %23423 = sst [smem:[#allocation29_spill]] %s23324_s8 }
   0x6   :  { %23424 = sst [smem:[#allocation30_spill]] %s23331_s15 }
   0x7   :  { %23425 = sst [smem:[#allocation31_spill]] %s23332_s16 }
   0x8   :  { %23426 = sst [smem:[#allocation32_spill]] %s23333_s17 }
   0x9   :  { %22 = vsyncpa [#allocation3], 0 }
   0xa   :  { %24 = vsyncpa [#allocation3 + $0x1], 0 }
   0xb   :  { %25 = vsyncpa [#allocation6], 0 }
   0xc   :  { %26 = vsyncpa [#allocation9], 0 }
   0xd   :  { %27 = vsyncpa [#allocation4], 0 }
   0xe   :  { %29 = vsyncpa [#allocation4 + $0x1], 0  ;;  %s19541_s24 = smov 0   ;;  %s19543_s25 = smov 0  }
   0xf   :  { %s19545_s26 = smov 0   ;;  %s19547_s27 = smov 0  }
  0x10 LB: > { %23427 = sst [smem:[#allocation15_spill]] %s19393_s24  ;;  %s19562_s28 = sadd.s32 4294967295, %s19405_s27   ;;  %s19405_s27 = sphi %s19547_s27, %s23518_s27   ;;  %s19401_s26 = sphi %s19545_s26, %s23521_s26   ;;  %s19397_s25 = sphi %s19543_s25, %s23520_s25   ;;  %s19393_s24 = sphi %s19541_s24, %s23519_s24  }
  0x11   : > { %23428 = sst [smem:[#allocation16_spill]] %s19397_s25  ;;  %s17347_s29 = sadd.s32 4294967294, %s19405_s27  }
  0x12   : > { %23429 = sst [smem:[#allocation17_spill]] %s19401_s26  ;;  %p55_p0 = scmp.ne.s32.totalorder %s19397_s25, %s19393_s24 }
  0x13   : > { %23430 = sst [smem:[#allocation18_spill]] %s19405_s27  ;;  %p23337_p1 = scmp.eq.s32.totalorder %s19562_s28, 0 }
  0x14   : > { %23431 = sst [smem:[#allocation19_spill]] %s19562_s28  ;;  %p415_p2 = scmp.eq.s32.totalorder %s19562_s28, 1 }
  0x15   : > { %p421_p3 = scmp.eq.s32.totalorder %s17347_s29, 1  ;;  %p19571_p4 = por %p23337_p1, %p55_p0 }
  0x16   : > { %p17348_p5 = scmp.ge.s32.totalorder %s19405_s27, 1  ;;  %p428_p7 = scmp.lt.s32.totalorder %s19405_s27, 3 }
  0x17   : > { %s23432_s0 = scalar_select %p19571_p4, 1, 0 }
  0x18   : > { %p19576_p6 = por %p421_p3, %p55_p0  ;;  %p19581_p8 = pnand %p17348_p5, %p428_p7 }
  0x19   : > { %s19407_s19 = smov [#allocation5]   ;;  %s19408_s20 = smov [#allocation7]  }
  0x1a   : > { %s23433_s30 = scalar_select %p19576_p6, 1, 0 }
  0x1b   : > { %s23435_s18 = scalar_select %p19581_p8, 1, 0 }
  0x1c   : > { %23434 = sst [smem:[#allocation20_spill]] %s23433_s30  ;;  %s441_s1 = sshll.u32 %s19407_s19, 4  ;;  %s442_s1 = int_to_ptr.vmem [resolvable:$true] %s441_s1 }
  0x1d   : > { %p18923_p10 = pneg %p19581_p8  ;;  %s451_s21 = sshll.u32 %s19408_s20, 4  ;;  %s19594_s21 = int_to_ptr.vmem [resolvable:$true] %s451_s21 }
  0x1e   : > { %s19409_s23 = smov [#allocation8]   ;;  %s19238_s19 = scalar_lea.vmem %s442_s1, 128 }
  0x1f   : > { %p19590_p11 = pnand %p18923_p10, %p23337_p1  ;;  %s500_s29 = sshll.u32 %s19409_s23, 4  ;;  %s501_s29 = int_to_ptr.vmem [resolvable:$true] %s500_s29 }
  0x20   : > { %p19239_p13 = scmp.ne.s32.totalorder %s442_s1, %s19238_s19  ;;  %p19246_p5 = scmp.lt.s32.totalorder %s442_s1, %s442_s1 }
  0x21   : > { %p19229_p12 = pneg %p19590_p11  ;;  %p19247_p7 = scmp.lt.s32.totalorder %s19238_s19, %s19238_s19 }
  0x23   : > { %p19241_p0 = pnand %p19239_p13, %p19229_p12  ;;  %p19248_p10 = por %p19247_p7, %p19246_p5 }
  0x25   : > { %p19242_p3 = pneg %p19241_p0 }
  0x27   : > { %p19249_p9 = pnand %p19248_p10, %p19242_p3 }
  0x29   : > { %19252 = shalt.err (!%p19249_p9)
}
  0x2a   : > { %s23437_s24 = sld [smem:[#allocation26_spill]]  ;;  %s19264_s23 = scalar_lea.vmem %s19594_s21, 48 }
  0x2b   : > { %p19265_p1 = scmp.ne.s32.totalorder %s19594_s21, %s19264_s23  ;;  %s19271_s19 = scalar_lea.vmem %s19594_s21, 64 }
  0x2c   : > { %p19272_p9 = scmp.lt.s32.totalorder %s19594_s21, %s19594_s21  ;;  %p19273_p3 = scmp.lt.s32.totalorder %s19271_s19, %s19264_s23 }
  0x2d   : > { %p19267_p13 = pnand %p19265_p1, %p19229_p12 }
  0x2e   : > { %p19274_p5 = por %p19273_p3, %p19272_p9 }
  0x2f   : > { %p19268_p0 = pneg %p19267_p13 }
  0x30   : > { %18926 = dma.hbm_to_vmem [thread:$0]  (!%p19590_p11), %s23437_s24, 128, %s442_s1, [#allocation6]  }
  0x31   : > { %p19275_p7 = pnand %p19274_p5, %p19268_p0 }
  0x33   : > { %19278 = shalt.err (!%p19275_p7)
}
  0x34   : > { %s19410_s30 = smov 16   ;;  %s19411_s20 = smov 1  }
  0x35   : > { %s23438_s2 = sld [smem:[#allocation27_spill]]  ;;  %s19290_s17 = scalar_lea.vmem %s501_s29, 512 }
  0x36   : > { %p19291_p1 = scmp.ne.s32.totalorder %s501_s29, %s19290_s17  ;;  %p19298_p9 = scmp.lt.s32.totalorder %s501_s29, %s501_s29 }
  0x37   : > { %p19299_p0 = scmp.lt.s32.totalorder %s19290_s17, %s19290_s17 }
  0x38   : > { %p19293_p10 = pnand %p19291_p1, %p19229_p12 }
  0x39   : > { %p19300_p3 = por %p19299_p0, %p19298_p9 }
  0x3a   : > { %p19294_p13 = pneg %p19293_p10 }
  0x3b   : > { %18929 = dma.hbm_to_vmem [thread:$0]  (!%p19590_p11), %s23438_s2, 48, %s19594_s21, [#allocation6], %s19410_s30, %s19410_s30, %s19411_s20  }
  0x3c   : > { %p19301_p5 = pnand %p19300_p3, %p19294_p13 }
  0x3e   : > { %19304 = shalt.err (!%p19301_p5)
}
  0x3f   : > { %s19412_s23 = smov 128   ;;  %s19413_s21 = smov 8  }
  0x40   : > { %s23439_s15 = sld [smem:[#allocation30_spill]]  ;;  %s19629_s30 = sadd.s32 1, %s19405_s27  }
  0x41   : > { %23440 = sst [smem:[#allocation21_spill]] %s19629_s30  ;;  %s39_s20 = ssub.s32 %s19405_s27, %s19629_s30 }
  0x42   : > { %s42_s24 = sadd.s32 1, %s19401_s26  ;;  %p40_p12 = scmp.eq.s32.totalorder %s39_s20, 0 }
  0x43   : > { %p49_p7 = scmp.ne.s32.totalorder %s19401_s26, %s19397_s25  ;;  %p50_p1 = scmp.eq.s32.totalorder %s19405_s27, 0 }
  0x44   : > { %p18944_p10 = scmp.lt.s32.totalorder %s19405_s27, 2  ;;  %s517_s22 = sand.u32 1, %s19401_s26  }
  0x45   : > { %s19639_s1 = scalar_select %p40_p12, %s19401_s26, %s42_s24  }
  0x46   : > { %18932 = dma.hbm_to_vmem [thread:$0]  (!%p19590_p11), %s23439_s15, 512, %s501_s29, [#allocation9], %s19412_s23, %s19412_s23, %s19413_s21  }
  0x47   : > { %23441 = sst [smem:[#allocation22_spill]] %s19639_s1  ;;  %p51_p13 = por %p50_p1, %p49_p7 }
  0x48   : > { %p19643_p9 = por %p415_p2, %p49_p7  ;;  %s17354_s19 = sshll.u32 %s19405_s27, 7 }
  0x49   : > { %s17353_s29 = sshll.u32 %s517_s22, 3  ;;  %s23444_s17 = sld [smem:[#allocation25_spill]] }
  0x4a   : > { %s23442_s2 = scalar_select %p19643_p9, 1, 0 }
  0x4b   : > { %s521_s20 = scalar_lea.vmem [#allocation2], %s17353_s29  ;;  %p19654_p11 = pnand %p18944_p10, %p51_p13 }
  0x4c   : > { %23443 = sst [smem:[#allocation23_spill]] %s23442_s2  ;;  %s528_s24 = sshll.u32 %s521_s20, 4  ;;  %s529_s24 = int_to_ptr.vmem [resolvable:$true] %s528_s24 }
  0x4d   : > { %s518_s30 = scalar_lea.sflag [#allocation3], %s517_s22  ;;  %p19307_p0 = pneg %p19654_p11 }
  0x4f   : > { %s19652_s15 = scalar_lea.hbm %s23444_s17, %s17354_s19  ;;  %s19310_s21 = scalar_lea.hbm %s23444_s17, 256 }
  0x50   : > { %s19305_s26 = scalar_lea.hbm %s19652_s15, 128  ;;  %p19311_p12 = scmp.lt.s32.totalorder %s19652_s15, %s23444_s17 }
  0x51   : > { %p19306_p2 = scmp.ne.s32.totalorder %s19652_s15, %s19305_s26  ;;  %p19312_p7 = scmp.lt.s32.totalorder %s19310_s21, %s19305_s26 }
  0x53   : > { %p19308_p3 = pnand %p19307_p0, %p19306_p2  ;;  %p19313_p1 = por %p19312_p7, %p19311_p12 }
  0x55   : > { %p19309_p5 = pneg %p19308_p3 }
  0x57   : > { %p19314_p10 = pnand %p19313_p1, %p19309_p5 }
  0x59   : > { %19317 = shalt.err (!%p19314_p10)
}
  0x5a   : > { %s19318_s20 = scalar_lea.vmem %s529_s24, 128  ;;  %s19414_s22 = smov [#allocation2]  }
  0x5b   : > { %p19319_p13 = scmp.ne.s32.totalorder %s529_s24, %s19318_s20  ;;  %s19323_s16 = sshll.u32 %s19414_s22, 4  ;;  %s19324_s16 = int_to_ptr.vmem [resolvable:$false] %s19323_s16 }
  0x5c   : > { %s19325_s2 = scalar_lea.vmem %s19324_s16, 256  ;;  %p19326_p2 = scmp.lt.s32.totalorder %s529_s24, %s19324_s16 }
  0x5d   : > { %p19321_p6 = pnand %p19319_p13, %p19307_p0  ;;  %p19327_p3 = scmp.lt.s32.totalorder %s19325_s2, %s19318_s20 }
  0x5f   : > { %p19322_p9 = pneg %p19321_p6  ;;  %p19328_p4 = por %p19327_p3, %p19326_p2 }
  0x61   : > { %p19329_p8 = pnand %p19328_p4, %p19322_p9 }
  0x63   : > { %19332 = shalt.err (!%p19329_p8)
}
  0x64   : > { %18936 = dma.hbm_to_vmem [thread:$0]  (!%p19654_p11), %s19652_s15, 128, %s529_s24, %s518_s30  }
  0x65   : > { %p23446_p5 = scmp.ne.s32.totalorder %s23435_s18, 0 }
  0x67   : > { %537 = sbr.rel (%p23446_p5) target bundleno = 7742 (0x1e3e), region = 88 }
  0x6c   : > { %s19675_s26 = sand.u32 1, %s19397_s25   ;;  %p23448_p4 = scmp.ne.s32.totalorder %s23432_s0, 0 }
  0x6d   : > { %23447 = sst [smem:[#allocation24_spill]] %s19675_s26  ;;  %s23348_s27 = sshll.u32 %s19675_s26, 3 }
  0x6e   : > { %s540_s16 = scalar_lea.sflag [#allocation3], %s19675_s26  ;;  %s543_s2 = scalar_lea.vmem [#allocation2], %s23348_s27 }
  0x6f   : > { %19376 = dma.done.wait (%p23448_p4), %s540_s16, 128  }
  0x70   : > { %19378 = vsyncadd (%p23448_p4), %s540_s16, 4294967168  ;;  %p23449_p6 = scmp.eq.s32.totalorder %s19562_s28, 0 }
  0x72   : > { %19380 = dma.done.wait (%p23449_p6), [#allocation6], 176   ;;  %p23450_p8 = pmov %p23449_p6 }
  0x73   : > { %p23451_p9 = pmov %p23449_p6 }
  0x74   : > { %19382 = vsyncadd (%p23450_p8), [#allocation6], 4294967120 }
  0x75   : > { %19384 = dma.done.wait (%p23451_p9), [#allocation9], 512   ;;  %p23452_p11 = pmov %p23449_p6 }
  0x76   : > { %v606_v0 = vld [vmem:[%s543_s2] sm:$0xff]  ;;  %v607_v1 = vld [vmem:[#allocation5] sm:$0xff]  ;;  %vm23418_vm0 = vcmask 261120   ;;  %v649_v9 = vld [vmem:[%s23320_s4 + $0x18] sm:$0xff]  ;;  %v19415_v11 = vmov 0.0   ;;  %vm23415_vm1 = vmmov 0   ;;  %v609_v38 = vlaneseq }
  0x77   : > { %19386 = vsyncadd (%p23452_p11), [#allocation9], 4294966784  ;;  %v608_v2 = vadd.f32 %v607_v1, %v606_v0  ;;  %v801_v10 = vld [vmem:[%s23322_s6 + $0x18] sm:$0xff]  ;;  %18146 = vmatprep.subr.mxu1 %v19415_v11  ;;  %18168 = vmatprep.subr.mxu0 %v19415_v11  ;;  %v648_v12 = vld [vmem:[%s23320_s4 + $0x10] sm:$0xff]  ;;  %s23398_s16 = smov 118   ;;  %s23406_s2 = smov 126  }
  0x78   : > { %v800_v13 = vld [vmem:[%s23322_s6 + $0x10] sm:$0xff]  ;;  %18147 = vmatpush3.msra.mxu1 %v649_v9  ;;  %18169 = vmatpush3.msra.mxu0 %v801_v10  ;;  %v647_v14 = vld [vmem:[%s23320_s4 + $0x8] sm:$0xff]  ;;  %v646_v16 = vld [vmem:[%s23320_s4] sm:$0xff]  ;;  %s23394_s15 = smov 114   ;;  %s23408_s0 = smov 124   ;;  %v19855_v45 = vshrl.u32 %v609_v38, 7 }
  0x79   : > { %v618_v3 = vsel %vm23418_vm0, %v608_v2, 0.0  ;;  %18148 = vmatprep.subr.mxu1 %v19415_v11  ;;  %18170 = vmatprep.subr.mxu0 %v19415_v11  ;;  %v799_v15 = vld [vmem:[%s23322_s6 + $0x8] sm:$0xff]  ;;  %v798_v17 = vld [vmem:[%s23322_s6] sm:$0xff]  ;;  %v17361_v22 = vld [vmem:[#allocation7] ss:$0 sm:$0xff]  ;;  %s23402_s18 = smov 122  }
  0x7a   : > { %619 = vadd.xlane.f32.xlu0 %v618_v3  ;;  %18149 = vmatpush3.msra.mxu1 %v648_v12  ;;  %v17362_v24 = vld [vmem:[%s23319_s3] ss:$0 sm:$0xff]  ;;  %v727_v27 = vld [vmem:[%s23321_s5 + $0x18] sm:$0xff]  ;;  %v726_v28 = vld [vmem:[%s23321_s5 + $0x10] sm:$0xff]  ;;  %s23404_s30 = smov 120   ;;  %s23373_s1 = smov 110  }
  0x7b   : > { %18171 = vmatpush3.msra.mxu0 %v800_v13  ;;  %18150 = vmatprep.subr.mxu1 %v19415_v11  ;;  %v725_v29 = vld [vmem:[%s23321_s5 + $0x8] sm:$0xff]  ;;  %v724_v30 = vld [vmem:[%s23321_s5] sm:$0xff]  ;;  %s23400_s24 = smov 116   ;;  %s23371_s19 = smov 106   ;;  %v19432_v39 = vmov 1983009808  }
  0x7c   : > { %18172 = vmatprep.subr.mxu0 %v19415_v11  ;;  %18151 = vmatpush3.msra.mxu1 %v647_v14  ;;  %s23396_s23 = smov 112   ;;  %s23359_s21 = smov 102   ;;  %v921_v40 = vunpack.c.l.s4 %v19432_v39  ;;  %v19433_v43 = vmov 1934713408   ;;  %vm2642_vm2 = vcmask 15360   ;;  %vm3859_vm4 = vcmask 64512  }
  0x7d   : > { %18173 = vmatpush3.msra.mxu0 %v799_v15  ;;  %18152 = vmatprep.subr.mxu1 %v19415_v11  ;;  %s23392_s29 = smov 108   ;;  %s23369_s20 = smov 104   ;;  %v985_v44 = vunpack.c.l.s4 %v19433_v43  ;;  %vm5809_vm5 = vcmask 31744   ;;  %vm5811_vm6 = vcmask 48128   ;;  %vm5814_vm7 = vcmask 80896  }
  0x7e   : > { %18174 = vmatprep.subr.mxu0 %v19415_v11  ;;  %18153 = vmatpush3.msra.mxu1 %v646_v16  ;;  %s23349_s22 = smov 98   ;;  %s23351_s27 = smov 100   ;;  %v922_v46 = vunpack.c.0.s8 %v921_v40  ;;  %vm5816_vm8 = vcmask 97280   ;;  %vm23379_vm9 = vcmask 113664   ;;  %vm5820_vm10 = vcmask 130048  }
  0x7f   : > { %18154 = vmatprep.mubr.msk.f32.mxu1 %vm23415_vm1, %v19415_v11  ;;  %18157 = vmatprep.subr.mxu1 %v19415_v11  ;;  %v986_v49 = vunpack.c.0.s8 %v985_v44  ;;  %s23453_s7 = sld [smem:[#allocation28_spill]]  ;;  %vm5822_vm11 = vcmask 146432   ;;  %vm5824_vm12 = vcmask 162816   ;;  %vm5826_vm13 = vcmask 179200   ;;  %s23470_s25 = smov 18  }
  0x80   : > { %18175 = vmatpush3.msra.mxu0 %v798_v17  ;;  %18176 = vmatprep.mubr.msk.f32.mxu0 %vm23415_vm1, %v19415_v11  ;;  %v19858_v50 = vsub.s32 %v922_v46, %v19855_v45  ;;  %vm5828_vm14 = vcmask 195584   ;;  %vm5830_vm15 = vcmask 211968   ;;  %s23454_s8 = sld [smem:[#allocation29_spill]]  ;;  %s23471_s17 = smov 16  }
  0x81   : > { %18199 = vmatprep.subr.mxu0 %v19415_v11  ;;  %v19865_v57 = vsub.s32 %v986_v49, %v19855_v45  ;;  %s23472_s26 = smov 22   ;;  %s23473_s28 = smov 20  }
 0x103   : > { %v620_v4 = vpop.xlane.xlu0 %619 }
 0x104   : > { %v622_v5 = vmul.f32 0.03125, %v620_v4 }
 0x106   : > { %v623_v6 = vsub.f32 %v608_v2, %v622_v5 }
 0x108   : > { %v624_v7 = vmul.f32 %v623_v6, %v623_v6 }
 0x10a   : > { %v625_v8 = vsel %vm23418_vm0, %v624_v7, 0.0 }
 0x10b   : > { %626 = vadd.xlane.f32.xlu0 %v625_v8 }
 0x194   : > { %v627_v18 = vpop.xlane.xlu0 %626 }
 0x195   : > { %v628_v19 = vmul.f32 0.03125, %v627_v18 }
 0x197   : > { %v629_v20 = vadd.f32 1e-05, %v628_v19 }
 0x199   : > { %19023 = vrsqrt.f32 %v629_v20 }
 0x1a6   : > { %v19024_v21 = vpop.eup %19023 }
 0x1a7   : > { %v631_v23 = vmul.f32 %v19024_v21, %v623_v6 }
 0x1a9   : > { %v638_v25 = vmul.f32 %v17361_v22, %v631_v23 }
 0x1ab   : > { %v19736_v26 = vadd.f32 %v17362_v24, %v638_v25 }
 0x1ad   : > { %18155 = vmatmul.mubr.msk.f32.vlgmr.msra.gmra.mxu1 %vm23418_vm0, %v19736_v26  ;;  %18177 = vmatmul.mubr.msk.f32.vlgmr.msra.gmra.mxu0 %vm23418_vm0, %v19736_v26 }
 0x1ae   : > { %18158 = vmatpush3.msra.mxu1 %v727_v27  ;;  %18165 = vmatprep.mubr.msk.f32.mxu1 %vm23415_vm1, %v19415_v11 }
 0x1af   : > { %18159 = vmatprep.subr.mxu1 %v19415_v11  ;;  %18201 = vmatprep.mubr.msk.f32.mxu0 %vm23415_vm1, %v19415_v11 }
 0x1b0   : > { %18160 = vmatpush3.msra.mxu1 %v726_v28 }
 0x1b1   : > { %18161 = vmatprep.subr.mxu1 %v19415_v11 }
 0x1b2   : > { %18162 = vmatpush3.msra.mxu1 %v725_v29 }
 0x1b3   : > { %18163 = vmatprep.subr.mxu1 %v19415_v11 }
 0x1b4   : > { %18164 = vmatpush3.msra.mxu1 %v724_v30 }
 0x1b5   : > { %18166 = vmatmul.mubr.msk.f32.vlgmr.msra.gmra.mxu1 %vm23418_vm0, %v19736_v26  ;;  %18179 = vmatprep.subr.mxu1 %v19415_v11 }
 0x1b6   : > { %18181 = vmatprep.mubr.msk.f32.mxu1 %vm23415_vm1, %v19415_v11 }
 0x26d   : > { %v719_v31 = vpop.f32.mrf.mxu1  ;;  %v19766_v32 = vpop.f32.mrf.mxu0 }
 0x26e   : > { %v19768_v33 = vmul.f32 0.17677669, %v719_v31 }
 0x26f   : > { %v18156_v34 = vpop.f32.mrf.mxu1  ;;  %v18178_v35 = vpop.f32.mrf.mxu0 }
 0x270   : > { %885 = vrot.lane.b32.xlu0 %v19768_v33, %s23398_s16  ;;  %873 = vrot.lane.b32.xlu1 %v19768_v33, %s23406_s2 }
 0x274   : > { %891 = vrot.lane.b32.xlu0 %v19768_v33, %s23394_s15  ;;  %876 = vrot.lane.b32.xlu1 %v19768_v33, %s23408_s0 }
 0x275   : > { %v19778_v36 = vpop.f32.mrf.mxu1 }
 0x277   : > { %v18167_v37 = vpop.f32.mrf.mxu1 }
 0x278   : > { %879 = vrot.lane.b32.xlu1 %v19768_v33, %s23402_s18  ;;  %1469 = vrot.lane.b32.xlu0 %v19778_v36, %s23402_s18 }
 0x27c   : > { %882 = vrot.lane.b32.xlu1 %v19768_v33, %s23404_s30  ;;  %897 = vrot.lane.b32.xlu0 %v19768_v33, %s23373_s1 }
 0x280   : > { %888 = vrot.lane.b32.xlu1 %v19768_v33, %s23400_s24  ;;  %903 = vrot.lane.b32.xlu0 %v19768_v33, %s23371_s19 }
 0x284   : > { %894 = vrot.lane.b32.xlu1 %v19768_v33, %s23396_s23  ;;  %909 = vrot.lane.b32.xlu0 %v19768_v33, %s23359_s21 }
 0x288   : > { %1481 = vrot.lane.b32.xlu0 %v19778_v36, %s23394_s15  ;;  %1463 = vrot.lane.b32.xlu1 %v19778_v36, %s23406_s2 }
 0x28c   : > { %1487 = vrot.lane.b32.xlu0 %v19778_v36, %s23373_s1  ;;  %1466 = vrot.lane.b32.xlu1 %v19778_v36, %s23408_s0 }
 0x290   : > { %1493 = vrot.lane.b32.xlu0 %v19778_v36, %s23371_s19  ;;  %900 = vrot.lane.b32.xlu1 %v19768_v33, %s23392_s29 }
 0x294   : > { %1499 = vrot.lane.b32.xlu0 %v19778_v36, %s23359_s21  ;;  %906 = vrot.lane.b32.xlu1 %v19768_v33, %s23369_s20 }
 0x298   : > { %1505 = vrot.lane.b32.xlu0 %v19778_v36, %s23349_s22  ;;  %1472 = vrot.lane.b32.xlu1 %v19778_v36, %s23404_s30 }
 0x29c   : > { %915 = vrot.lane.b32.xlu0 %v19768_v33, %s23349_s22  ;;  %1475 = vrot.lane.b32.xlu1 %v19778_v36, %s23398_s16 }
 0x2a0   : > { %2053 = vrot.lane.b32.xlu0 %v19766_v32, %s23406_s2  ;;  %1478 = vrot.lane.b32.xlu1 %v19778_v36, %s23400_s24 }
 0x2a4   : > { %2065 = vrot.lane.b32.xlu0 %v19766_v32, %s23398_s16  ;;  %1484 = vrot.lane.b32.xlu1 %v19778_v36, %s23396_s23 }
 0x2a8   : > { %2077 = vrot.lane.b32.xlu0 %v19766_v32, %s23373_s1  ;;  %1490 = vrot.lane.b32.xlu1 %v19778_v36, %s23392_s29  ;;  %s23388_s1 = smov 16  }
 0x2ac   : > { %1496 = vrot.lane.b32.xlu1 %v19778_v36, %s23369_s20 }
 0x2b0   : > { %1502 = vrot.lane.b32.xlu1 %v19778_v36, %s23351_s27 }
 0x2b4   : > { %912 = vrot.lane.b32.xlu1 %v19768_v33, %s23351_s27 }
 0x2b8   : > { %2056 = vrot.lane.b32.xlu1 %v19766_v32, %s23408_s0 }
 0x2bc   : > { %2059 = vrot.lane.b32.xlu1 %v19766_v32, %s23402_s18 }
 0x2c0   : > { %2062 = vrot.lane.b32.xlu1 %v19766_v32, %s23404_s30 }
 0x2c4   : > { %2068 = vrot.lane.b32.xlu1 %v19766_v32, %s23400_s24 }
 0x2c8   : > { %2071 = vrot.lane.b32.xlu1 %v19766_v32, %s23394_s15  ;;  %s23458_s15 = smov 106  }
 0x2cc   : > { %2074 = vrot.lane.b32.xlu1 %v19766_v32, %s23396_s23 }
 0x2d0   : > { %2080 = vrot.lane.b32.xlu1 %v19766_v32, %s23392_s29  ;;  %s23459_s29 = smov 104  }
 0x2d4   : > { %2083 = vrot.lane.b32.xlu1 %v19766_v32, %s23371_s19  ;;  %s23390_s19 = smov 18  }
 0x2e2   : > { %v886_v41 = vpop.permute.xlu0 %885  ;;  %v874_v42 = vpop.permute.xlu1 %873 }
 0x2e6   : > { %v892_v47 = vpop.permute.xlu0 %891  ;;  %v877_v48 = vpop.permute.xlu1 %876 }
 0x2e7   : > { %v918_v51 = vcombine.low %v19768_v33, %v877_v48  ;;  %v919_v52 = vcombine.high %v19768_v33, %v877_v48  ;;  %v966_v8 = vcombine.low %v886_v41, %v892_v47  ;;  %v967_v9 = vcombine.high %v886_v41, %v892_v47 }
 0x2e9   : > { %v926_v58 = vrot.slane %v918_v51, %v19858_v50  ;;  %v933_v59 = vrot.slane %v919_v52, %v19858_v50  ;;  %v974_v19 = vrot.slane %v966_v8, %v19858_v50  ;;  %v981_v20 = vrot.slane %v967_v9, %v19858_v50 }
 0x2ea   : > { %v880_v53 = vpop.permute.xlu1 %879  ;;  %v19862_v54 = vpop.permute.xlu0 %1469 }
 0x2eb   : > { %v934_v55 = vcombine.low %v874_v42, %v880_v53  ;;  %v935_v56 = vcombine.high %v874_v42, %v880_v53 }
 0x2ed   : > { %v942_v60 = vrot.slane %v934_v55, %v19858_v50  ;;  %v949_v61 = vrot.slane %v935_v56, %v19858_v50 }
 0x2ee   : > { %v883_v62 = vpop.permute.xlu1 %882  ;;  %v898_v63 = vpop.permute.xlu0 %897 }
 0x2ef   : > { %v982_v0 = vcombine.low %v926_v58, %v942_v60  ;;  %v983_v1 = vcombine.high %v926_v58, %v942_v60  ;;  %v998_v2 = vcombine.low %v933_v59, %v949_v61  ;;  %v999_v3 = vcombine.high %v933_v59, %v949_v61 }
 0x2f1   : > { %v990_v4 = vrot.slane %v982_v0, %v19865_v57  ;;  %v997_v5 = vrot.slane %v983_v1, %v19865_v57  ;;  %v1006_v6 = vrot.slane %v998_v2, %v19865_v57  ;;  %v1013_v7 = vrot.slane %v999_v3, %v19865_v57 }
 0x2f2   : > { %v889_v10 = vpop.permute.xlu1 %888  ;;  %v904_v12 = vpop.permute.xlu0 %903 }
 0x2f3   : > { %v17366_v13 = vcombine.low %v990_v4, %v997_v5  ;;  %v17368_v14 = vcombine.high %v990_v4, %v997_v5  ;;  %v17370_v15 = vcombine.low %v1006_v6, %v1013_v7  ;;  %v17372_v16 = vcombine.high %v1006_v6, %v1013_v7 }
 0x2f4   : > { %v950_v17 = vcombine.low %v883_v62, %v889_v10  ;;  %v951_v18 = vcombine.high %v883_v62, %v889_v10  ;;  %v1070_v42 = vcombine.low %v898_v63, %v904_v12  ;;  %v1071_v43 = vcombine.high %v898_v63, %v904_v12 }
 0x2f5   : > { %v1198_v25 = vrot.slane %v17366_v13, %v19858_v50  ;;  %v1214_v27 = vrot.slane %v17368_v14, %v19858_v50  ;;  %v1230_v28 = vrot.slane %v17370_v15, %v19858_v50  ;;  %v1246_v29 = vrot.slane %v17372_v16, %v19858_v50 }
 0x2f6   : > { %v958_v21 = vrot.slane %v950_v17, %v19858_v50  ;;  %v965_v22 = vrot.slane %v951_v18, %v19858_v50  ;;  %v895_v23 = vpop.permute.xlu1 %894  ;;  %v19879_v24 = vpop.permute.xlu0 %909  ;;  %v1078_v59 = vrot.slane %v1070_v42, %v19858_v50  ;;  %v1085_v60 = vrot.slane %v1071_v43, %v19858_v50 }
 0x2f7   : > { %v1254_v41 = vcombine.low %v1198_v25, %v1214_v27  ;;  %v1255_v44 = vcombine.high %v1198_v25, %v1214_v27  ;;  %v1286_v46 = vcombine.low %v1230_v28, %v1246_v29  ;;  %v1287_v52 = vcombine.high %v1230_v28, %v1246_v29 }
 0x2f8   : > { %v1014_v30 = vcombine.low %v958_v21, %v974_v19  ;;  %v1015_v31 = vcombine.high %v958_v21, %v974_v19  ;;  %v1030_v33 = vcombine.low %v965_v22, %v981_v20  ;;  %v1031_v34 = vcombine.high %v965_v22, %v981_v20 }
 0x2f9   : > { %v19900_v0 = vrot.slane %v1254_v41, %v19865_v57  ;;  %v19906_v1 = vrot.slane %v1255_v44, %v19865_v57  ;;  %v19921_v10 = vrot.slane %v1287_v52, %v19865_v57 }
 0x2fa   : > { %v1022_v35 = vrot.slane %v1014_v30, %v19865_v57  ;;  %v1029_v37 = vrot.slane %v1015_v31, %v19865_v57  ;;  %v19887_v39 = vpop.permute.xlu0 %1481  ;;  %v1464_v40 = vpop.permute.xlu1 %1463  ;;  %v1038_v47 = vrot.slane %v1030_v33, %v19865_v57  ;;  %v1045_v48 = vrot.slane %v1031_v34, %v19865_v57 }
 0x2fb   : > { %v1524_v49 = vcombine.low %v1464_v40, %v19862_v54  ;;  %v1525_v51 = vcombine.high %v1464_v40, %v19862_v54  ;;  %v19903_v54 = vrot.slane %v1286_v46, %v19865_v57 }
 0x2fc   : > { %v17367_v53 = vcombine.low %v1022_v35, %v1029_v37  ;;  %v17369_v55 = vcombine.high %v1022_v35, %v1029_v37  ;;  %v17371_v63 = vcombine.low %v1038_v47, %v1045_v48  ;;  %v17373_v7 = vcombine.high %v1038_v47, %v1045_v48 }
 0x2fd   : > { %v1532_v2 = vrot.slane %v1524_v49, %v19858_v50  ;;  %v1539_v3 = vrot.slane %v1525_v51, %v19858_v50  ;;  %v1318_v19 = vcombine.low %v19900_v0, %v19903_v54 }
 0x2fe   : > { %v19893_v56 = vpop.permute.xlu0 %1487  ;;  %v1467_v58 = vpop.permute.xlu1 %1466  ;;  %v19916_v6 = vrot.slane %v17369_v55, %v19858_v50  ;;  %v1237_v16 = vrot.slane %v17371_v63, %v19858_v50  ;;  %v1253_v27 = vrot.slane %v17373_v7, %v19858_v50 }
 0x2ff   : > { %v1508_v61 = vcombine.low %v19778_v36, %v1467_v58  ;;  %v1509_v62 = vcombine.high %v19778_v36, %v1467_v58  ;;  %v19913_v36 = vrot.slane %v17367_v53, %v19858_v50 }
 0x300   : > { %v1303_v63 = vcombine.high %v1237_v16, %v1253_v27 }
 0x301   : > { %v1516_v4 = vrot.slane %v1508_v61, %v19858_v50  ;;  %v1523_v5 = vrot.slane %v1509_v62, %v19858_v50  ;;  %v1270_v28 = vcombine.low %v19913_v36, %v19916_v6  ;;  %v1271_v58 = vcombine.high %v19913_v36, %v19916_v6 }
 0x302   : > { %v19918_v8 = vpop.permute.xlu0 %1493  ;;  %v901_v9 = vpop.permute.xlu1 %900  ;;  %v1320_v36 = vcombine.low %v19906_v1, %v19921_v10  ;;  %v1321_v6 = vcombine.high %v19906_v1, %v19921_v10 }
 0x303   : > { %v1572_v12 = vcombine.low %v1516_v4, %v1532_v2  ;;  %v1573_v13 = vcombine.high %v1516_v4, %v1532_v2  ;;  %v1588_v14 = vcombine.low %v1523_v5, %v1539_v3  ;;  %v1589_v15 = vcombine.high %v1523_v5, %v1539_v3 }
 0x304   : > { %v1054_v17 = vcombine.low %v895_v23, %v901_v9  ;;  %v1055_v18 = vcombine.high %v895_v23, %v901_v9  ;;  %v1319_v4 = vcombine.high %v19900_v0, %v19903_v54  ;;  %v1660_v5 = vcombine.low %v19893_v56, %v19918_v8 }
 0x305   : > { %v1580_v20 = vrot.slane %v1572_v12, %v19865_v57  ;;  %v1587_v21 = vrot.slane %v1573_v13, %v19865_v57  ;;  %v1596_v22 = vrot.slane %v1588_v14, %v19865_v57  ;;  %v1603_v25 = vrot.slane %v1589_v15, %v19865_v57 }
 0x306   : > { %v1062_v29 = vrot.slane %v1054_v17, %v19858_v50  ;;  %v1069_v23 = vrot.slane %v1055_v18, %v19858_v50  ;;  %v1500_v30 = vpop.permute.xlu0 %1499  ;;  %v19935_v31 = vpop.permute.xlu1 %906  ;;  %v1661_v7 = vcombine.high %v19893_v56, %v19918_v8  ;;  %v19969_v15 = vrot.slane %v1270_v28, %v19865_v57 }
 0x307   : > { %v17382_v33 = vcombine.low %v1580_v20, %v1587_v21  ;;  %v17384_v34 = vcombine.high %v1580_v20, %v1587_v21  ;;  %v17386_v35 = vcombine.low %v1596_v22, %v1603_v25  ;;  %v17388_v37 = vcombine.high %v1596_v22, %v1603_v25 }
 0x308   : > { %v1118_v40 = vcombine.low %v1062_v29, %v1078_v59  ;;  %v1119_v41 = vcombine.high %v1062_v29, %v1078_v59  ;;  %v1134_v42 = vcombine.low %v1069_v23, %v1085_v60  ;;  %v1135_v43 = vcombine.high %v1069_v23, %v1085_v60 }
 0x309   : > { %v19938_v44 = vrot.slane %v17382_v33, %v19858_v50  ;;  %v19941_v46 = vrot.slane %v17384_v34, %v19858_v50  ;;  %v19944_v47 = vrot.slane %v17386_v35, %v19858_v50  ;;  %v1836_v48 = vrot.slane %v17388_v37, %v19858_v50 }
 0x30a   : > { %v1126_v49 = vrot.slane %v1118_v40, %v19865_v57  ;;  %v1133_v51 = vrot.slane %v1119_v41, %v19865_v57  ;;  %v1142_v52 = vrot.slane %v1134_v42, %v19865_v57  ;;  %v1149_v53 = vrot.slane %v1135_v43, %v19865_v57  ;;  %v1473_v55 = vpop.permute.xlu1 %1472  ;;  %v1506_v62 = vpop.permute.xlu0 %1505 }
 0x30b   : > { %v1302_v59 = vcombine.low %v1237_v16, %v1253_v27  ;;  %v1844_v60 = vcombine.low %v19938_v44, %v19941_v46  ;;  %v1876_v61 = vcombine.low %v19944_v47, %v1836_v48  ;;  %v1692_v17 = vcombine.low %v1500_v30, %v1506_v62 }
 0x30c   : > { %v17374_v2 = vcombine.low %v1126_v49, %v1133_v51  ;;  %v17376_v3 = vcombine.high %v1126_v49, %v1133_v51  ;;  %v17378_v9 = vcombine.low %v1142_v52, %v1149_v53  ;;  %v17380_v16 = vcombine.high %v1142_v52, %v1149_v53 }
 0x30d   : > { %v1852_v13 = vrot.slane %v1844_v60, %v19865_v57  ;;  %v1884_v14 = vrot.slane %v1876_v61, %v19865_v57  ;;  %v19972_v18 = vrot.slane %v1302_v59, %v19865_v57  ;;  %v19975_v56 = vrot.slane %v1271_v58, %v19865_v57 }
 0x30e   : > { %v1476_v12 = vpop.permute.xlu1 %1475  ;;  %v19978_v8 = vrot.slane %v17374_v2, %v19858_v50  ;;  %v19981_v20 = vrot.slane %v17376_v3, %v19858_v50  ;;  %v1693_v21 = vcombine.high %v1500_v30, %v1506_v62  ;;  %v19984_v22 = vrot.slane %v1303_v63, %v19865_v57  ;;  %v916_v28 = vpop.permute.xlu0 %915 }
 0x30f   : > { %v19987_v25 = vrot.slane %v1660_v5, %v19858_v50  ;;  %v19990_v27 = vrot.slane %v1661_v7, %v19858_v50  ;;  %v1556_v29 = vcombine.low %v1476_v12, %v19887_v39  ;;  %v1557_v23 = vcombine.high %v1476_v12, %v19887_v39 }
 0x310   : > { %v1845_v33 = vcombine.high %v19938_v44, %v19941_v46  ;;  %v1877_v34 = vcombine.high %v19944_v47, %v1836_v48  ;;  %v19998_v30 = vrot.slane %v17378_v9, %v19858_v50  ;;  %v1908_v35 = vcombine.low %v1852_v13, %v1884_v14 }
 0x311   : > { %v20001_v40 = vrot.slane %v17380_v16, %v19858_v50  ;;  %v20004_v41 = vrot.slane %v1692_v17, %v19858_v50  ;;  %v1390_v39 = vcombine.low %v19978_v8, %v19981_v20  ;;  %v20009_v44 = vrot.slane %v1693_v21, %v19858_v50 }
 0x312   : > { %v1479_v37 = vpop.permute.xlu1 %1478  ;;  %v1102_v46 = vcombine.low %v19879_v24, %v916_v28  ;;  %v1103_v47 = vcombine.high %v19879_v24, %v916_v28  ;;  %18180 = vmatpush3.xpose.msk.msra.mxu1 %vm2642_vm2, %v1908_v35  ;;  %v1564_v48 = vrot.slane %v1556_v29, %v19858_v50  ;;  %v1571_v49 = vrot.slane %v1557_v23, %v19858_v50 }
 0x313   : > { %v1540_v42 = vcombine.low %v1473_v55, %v1479_v37  ;;  %v1541_v43 = vcombine.high %v1473_v55, %v1479_v37  ;;  %18184 = vmatprep.subr.mxu1 %v19415_v11  ;;  %v1391_v53 = vcombine.high %v19978_v8, %v19981_v20  ;;  %v1909_v55 = vcombine.high %v1852_v13, %v1884_v14 }
 0x314   : > { %v1859_v59 = vrot.slane %v1845_v33, %v19865_v57  ;;  %v1891_v24 = vrot.slane %v1877_v34, %v19865_v57  ;;  %v1422_v2 = vcombine.low %v19998_v30, %v20001_v40  ;;  %v1423_v3 = vcombine.high %v19998_v30, %v20001_v40 }
 0x315   : > { %v1548_v51 = vrot.slane %v1540_v42, %v19858_v50  ;;  %v1555_v52 = vrot.slane %v1541_v43, %v19858_v50  ;;  %18182 = vmatmul.mubr.msk.f32.vlgmr.msra.gmra.mxu1 %vm2642_vm2, %v1318_v19  ;;  %v20032_v5 = vrot.slane %v1102_v46, %v19858_v50  ;;  %v20043_v13 = vrot.slane %v1103_v47, %v19858_v50 }
 0x316   : > { %v1485_v58 = vpop.permute.xlu1 %1484  ;;  %18185 = vmatpush3.xpose.msk.msra.mxu1 %vm2642_vm2, %v1909_v55  ;;  %18186 = vmatprep.mubr.msk.f32.mxu1 %vm23415_vm1, %v19415_v11  ;;  %v1910_v14 = vcombine.low %v1859_v59, %v1891_v24  ;;  %v1911_v17 = vcombine.high %v1859_v59, %v1891_v24  ;;  %v1322_v21 = vcombine.low %v19969_v15, %v19972_v18 }
 0x317   : > { %v1604_v60 = vcombine.low %v1548_v51, %v1564_v48  ;;  %v1605_v61 = vcombine.high %v1548_v51, %v1564_v48  ;;  %v1620_v62 = vcombine.low %v1555_v52, %v1571_v49  ;;  %v1621_v63 = vcombine.high %v1555_v52, %v1571_v49  ;;  %18189 = vmatprep.subr.mxu1 %v19415_v11 }
 0x318   : > { %v1323_v37 = vcombine.high %v19969_v15, %v19972_v18  ;;  %v1324_v48 = vcombine.low %v19975_v56, %v19984_v22  ;;  %v1325_v49 = vcombine.high %v19975_v56, %v19984_v22  ;;  %v20102_v1 = vrot.slane %v1422_v2, %v19865_v57 }
 0x319   : > { %v1612_v7 = vrot.slane %v1604_v60, %v19865_v57  ;;  %v1619_v9 = vrot.slane %v1605_v61, %v19865_v57  ;;  %v1628_v19 = vrot.slane %v1620_v62, %v19865_v57  ;;  %v1635_v12 = vrot.slane %v1621_v63, %v19865_v57  ;;  %18187 = vmatmul.mubr.msk.f32.vlgmr.msra.gmra.mxu1 %vm2642_vm2, %v1319_v4 }
 0x31a   : > { %v1491_v16 = vpop.permute.xlu1 %1490  ;;  %18190 = vmatpush3.xpose.msk.msra.mxu1 %vm2642_vm2, %v1910_v14  ;;  %18191 = vmatprep.mubr.msk.f32.mxu1 %vm23415_vm1, %v19415_v11 }
 0x31b   : > { %v17383_v28 = vcombine.low %v1612_v7, %v1619_v9  ;;  %v17385_v29 = vcombine.high %v1612_v7, %v1619_v9  ;;  %v17387_v23 = vcombine.low %v1628_v19, %v1635_v12  ;;  %v17389_v33 = vcombine.high %v1628_v19, %v1635_v12  ;;  %18194 = vmatprep.subr.mxu1 %v19415_v11 }
 0x31c   : > { %v1644_v34 = vcombine.low %v1485_v58, %v1491_v16  ;;  %v1645_v35 = vcombine.high %v1485_v58, %v1491_v16  ;;  %v20072_v58 = vrot.slane %v1390_v39, %v19865_v57 }
 0x31d   : > { %v1795_v42 = vrot.slane %v17383_v28, %v19858_v50  ;;  %v1811_v43 = vrot.slane %v17385_v29, %v19858_v50  ;;  %v1827_v46 = vrot.slane %v17387_v23, %v19858_v50  ;;  %v1843_v0 = vrot.slane %v17389_v33, %v19858_v50  ;;  %18192 = vmatmul.mubr.msk.f32.vlgmr.msra.gmra.mxu1 %vm2642_vm2, %v1320_v36 }
 0x31e   : > { %v1652_v54 = vrot.slane %v1644_v34, %v19858_v50  ;;  %v1659_v4 = vrot.slane %v1645_v35, %v19858_v50  ;;  %v1497_v47 = vpop.permute.xlu1 %1496  ;;  %18195 = vmatpush3.xpose.msk.msra.mxu1 %vm2642_vm2, %v1911_v17  ;;  %18196 = vmatprep.mubr.msk.f32.mxu1 %vm23415_vm1, %v19415_v11 }
 0x31f   : > { %v1860_v51 = vcombine.low %v1795_v42, %v1811_v43  ;;  %v1861_v52 = vcombine.high %v1795_v42, %v1811_v43  ;;  %v1892_v55 = vcombine.low %v1827_v46, %v1843_v0  ;;  %v1893_v62 = vcombine.high %v1827_v46, %v1843_v0  ;;  %18204 = vmatprep.subr.mxu1 %v19415_v11 }
 0x320   : > { %v1708_v59 = vcombine.low %v1652_v54, %v19987_v25  ;;  %v1709_v24 = vcombine.high %v1652_v54, %v19987_v25  ;;  %v1724_v60 = vcombine.low %v1659_v4, %v19990_v27  ;;  %v1725_v61 = vcombine.high %v1659_v4, %v19990_v27 }
 0x321   : > { %v1868_v36 = vrot.slane %v1860_v51, %v19865_v57  ;;  %v1900_v39 = vrot.slane %v1892_v55, %v19865_v57  ;;  %18197 = vmatmul.mubr.msk.f32.vlgmr.msra.gmra.mxu1 %vm2642_vm2, %v1321_v6  ;;  %v1875_v6 = vrot.slane %v1861_v52, %v19865_v57  ;;  %v1907_v35 = vrot.slane %v1893_v62, %v19865_v57 }
 0x322   : > { %v1716_v63 = vrot.slane %v1708_v59, %v19865_v57  ;;  %v1723_v25 = vrot.slane %v1709_v24, %v19865_v57  ;;  %v1732_v7 = vrot.slane %v1724_v60, %v19865_v57  ;;  %v1739_v27 = vrot.slane %v1725_v61, %v19865_v57  ;;  %v1503_v9 = vpop.permute.xlu1 %1502  ;;  %18206 = vmatprep.mubr.msk.f32.mxu1 %vm23415_vm1, %v19415_v11 }
 0x323   : > { %v1676_v19 = vcombine.low %v1497_v47, %v1503_v9  ;;  %v1677_v12 = vcombine.high %v1497_v47, %v1503_v9  ;;  %v1912_v14 = vcombine.low %v1868_v36, %v1900_v39  ;;  %v1913_v16 = vcombine.high %v1868_v36, %v1900_v39 }
 0x324   : > { %v17390_v17 = vcombine.low %v1716_v63, %v1723_v25  ;;  %v17392_v28 = vcombine.high %v1716_v63, %v1723_v25  ;;  %v17394_v29 = vcombine.low %v1732_v7, %v1739_v27  ;;  %v17396_v23 = vcombine.high %v1732_v7, %v1739_v27 }
 0x325   : > { %v1684_v33 = vrot.slane %v1676_v19, %v19858_v50  ;;  %v1691_v34 = vrot.slane %v1677_v12, %v19858_v50  ;;  %18200 = vmatpush3.xpose.msk.msra.mxu0 %vm2642_vm2, %v1912_v14  ;;  %18205 = vmatpush3.xpose.msk.msra.mxu1 %vm2642_vm2, %v1913_v16  ;;  %v20111_v42 = vrot.slane %v1391_v53, %v19865_v57 }
 0x326   : > { %v913_v10 = vpop.permute.xlu1 %912  ;;  %18209 = vmatprep.subr.mxu0 %v19415_v11  ;;  %v20117_v43 = vrot.slane %v1423_v3, %v19865_v57  ;;  %18214 = vmatprep.subr.mxu1 %v19415_v11  ;;  %v20125_v8 = vrot.slane %v17390_v17, %v19858_v50  ;;  %v20128_v20 = vrot.slane %v17392_v28, %v19858_v50 }
 0x327   : > { %v1740_v2 = vcombine.low %v1684_v33, %v20004_v41  ;;  %v1741_v46 = vcombine.high %v1684_v33, %v20004_v41  ;;  %v1756_v0 = vcombine.low %v1691_v34, %v20009_v44  ;;  %v1757_v54 = vcombine.high %v1691_v34, %v20009_v44  ;;  %v2054_v33 = vpop.permute.xlu0 %2053 }
 0x328   : > { %v20131_v30 = vrot.slane %v17394_v29, %v19858_v50  ;;  %v20134_v40 = vrot.slane %v17396_v23, %v19858_v50  ;;  %18202 = vmatmul.mubr.msk.f32.vlgmr.msra.gmra.mxu0 %vm2642_vm2, %v1322_v21  ;;  %18207 = vmatmul.mubr.msk.f32.vlgmr.msra.gmra.mxu1 %vm2642_vm2, %v1323_v37  ;;  %v1086_v4 = vcombine.low %v19935_v31, %v913_v10 }
 0x329   : > { %v1748_v41 = vrot.slane %v1740_v2, %v19865_v57  ;;  %v1755_v44 = vrot.slane %v1741_v46, %v19865_v57  ;;  %v1764_v53 = vrot.slane %v1756_v0, %v19865_v57  ;;  %v1771_v3 = vrot.slane %v1757_v54, %v19865_v57  ;;  %18211 = vmatprep.mubr.msk.f32.mxu0 %vm23415_vm1, %v19415_v11 }
 0x32a   : > { %v1087_v47 = vcombine.high %v19935_v31, %v913_v10  ;;  %v1914_v51 = vcombine.low %v1875_v6, %v1907_v35  ;;  %v1915_v52 = vcombine.high %v1875_v6, %v1907_v35  ;;  %v2057_v21 = vpop.permute.xlu1 %2056  ;;  %18216 = vmatprep.mubr.msk.f32.mxu1 %vm23415_vm1, %v19415_v11  ;;  %v1980_v15 = vcombine.low %v20125_v8, %v20128_v20 }
 0x32b   : > { %v17391_v55 = vcombine.low %v1748_v41, %v1755_v44  ;;  %v17393_v59 = vcombine.high %v1748_v41, %v1755_v44  ;;  %v17395_v24 = vcombine.low %v1764_v53, %v1771_v3  ;;  %v17397_v60 = vcombine.high %v1764_v53, %v1771_v3 }
 0x32c   : > { %v1094_v18 = vrot.slane %v1086_v4, %v19858_v50  ;;  %v1101_v31 = vrot.slane %v1087_v47, %v19858_v50  ;;  %18210 = vmatpush3.xpose.msk.msra.mxu0 %vm2642_vm2, %v1914_v51  ;;  %18215 = vmatpush3.xpose.msk.msra.mxu1 %vm2642_vm2, %v1915_v52  ;;  %v1981_v37 = vcombine.high %v20125_v8, %v20128_v20 }
 0x32d   : > { %v2012_v61 = vcombine.low %v20131_v30, %v20134_v40  ;;  %v20165_v62 = vrot.slane %v17391_v55, %v19858_v50  ;;  %v20168_v36 = vrot.slane %v17393_v59, %v19858_v50  ;;  %18219 = vmatprep.subr.mxu0 %v19415_v11  ;;  %18224 = vmatprep.subr.mxu1 %v19415_v11 }
 0x32e   : > { %v1150_v39 = vcombine.low %v1094_v18, %v20032_v5  ;;  %v1151_v63 = vcombine.high %v1094_v18, %v20032_v5  ;;  %v1166_v25 = vcombine.low %v1101_v31, %v20043_v13  ;;  %v1167_v7 = vcombine.high %v1101_v31, %v20043_v13  ;;  %v2060_v17 = vpop.permute.xlu1 %2059 }
 0x32f   : > { %v2013_v27 = vcombine.high %v20131_v30, %v20134_v40  ;;  %v20179_v9 = vrot.slane %v17395_v24, %v19858_v50  ;;  %v20182_v19 = vrot.slane %v17397_v60, %v19858_v50  ;;  %v2098_v12 = vcombine.low %v19766_v32, %v2057_v21  ;;  %18212 = vmatmul.mubr.msk.f32.vlgmr.msra.gmra.mxu0 %vm2642_vm2, %v1324_v48 }
 0x330   : > { %v1158_v5 = vrot.slane %v1150_v39, %v19865_v57  ;;  %v1165_v13 = vrot.slane %v1151_v63, %v19865_v57  ;;  %v1174_v14 = vrot.slane %v1166_v25, %v19865_v57  ;;  %v1181_v16 = vrot.slane %v1167_v7, %v19865_v57  ;;  %18217 = vmatmul.mubr.msk.f32.vlgmr.msra.gmra.mxu1 %vm2642_vm2, %v1325_v49 }
 0x331   : > { %v1996_v28 = vcombine.low %v20165_v62, %v20168_v36  ;;  %v2099_v29 = vcombine.high %v19766_v32, %v2057_v21  ;;  %v1988_v48 = vrot.slane %v1980_v15, %v19865_v57  ;;  %v2020_v23 = vrot.slane %v2012_v61, %v19865_v57  ;;  %18221 = vmatprep.mubr.msk.f32.mxu0 %vm23415_vm1, %v19415_v11 }
 0x332   : > { %v17375_v34 = vcombine.low %v1158_v5, %v1165_v13  ;;  %v17377_v10 = vcombine.high %v1158_v5, %v1165_v13  ;;  %v17379_v6 = vcombine.low %v1174_v14, %v1181_v16  ;;  %v17381_v56 = vcombine.high %v1174_v14, %v1181_v16  ;;  %18226 = vmatprep.mubr.msk.f32.mxu1 %vm23415_vm1, %v19415_v11 }
 0x333   : > { %v2028_v22 = vcombine.low %v20179_v9, %v20182_v19  ;;  %v2044_v49 = vcombine.low %v1988_v48, %v2020_v23  ;;  %v2045_v35 = vcombine.high %v1988_v48, %v2020_v23  ;;  %v2114_v2 = vcombine.low %v2054_v33, %v2060_v17 }
 0x334   : > { %v1341_v46 = vrot.slane %v17375_v34, %v19858_v50  ;;  %v1357_v0 = vrot.slane %v17377_v10, %v19858_v50  ;;  %v1373_v54 = vrot.slane %v17379_v6, %v19858_v50  ;;  %v2106_v8 = vrot.slane %v2098_v12, %v19858_v50 }
 0x335   : > { %v1389_v20 = vrot.slane %v17381_v56, %v19858_v50  ;;  %18220 = vmatpush3.xpose.msk.msra.mxu0 %vm2642_vm2, %v2044_v49  ;;  %18225 = vmatpush3.xpose.msk.msra.mxu1 %vm2642_vm2, %v2045_v35  ;;  %v2115_v30 = vcombine.high %v2054_v33, %v2060_v17  ;;  %v2122_v40 = vrot.slane %v2114_v2, %v19858_v50 }
 0x336   : > { %v2113_v41 = vrot.slane %v2099_v29, %v19858_v50  ;;  %v1454_v44 = vcombine.low %v20072_v58, %v20102_v1  ;;  %v1455_v53 = vcombine.high %v20072_v58, %v20102_v1  ;;  %18229 = vmatprep.subr.mxu0 %v19415_v11  ;;  %v1995_v3 = vrot.slane %v1981_v37, %v19865_v57 }
 0x337   : > { %v2129_v4 = vrot.slane %v2115_v30, %v19858_v50  ;;  %v2162_v47 = vcombine.low %v2106_v8, %v2122_v40  ;;  %v2163_v51 = vcombine.high %v2106_v8, %v2122_v40  ;;  %18234 = vmatprep.subr.mxu1 %v19415_v11  ;;  %v2027_v52 = vrot.slane %v2013_v27, %v19865_v57 }
 0x338   : > { %v1406_v21 = vcombine.low %v1341_v46, %v1357_v0  ;;  %18222 = vmatmul.mubr.msk.f32.vlgmr.msra.gmra.mxu0 %vm2642_vm2, %v1454_v44  ;;  %18227 = vmatmul.mubr.msk.f32.vlgmr.msra.gmra.mxu1 %vm2642_vm2, %v1455_v53  ;;  %v2004_v55 = vrot.slane %v1996_v28, %v19865_v57  ;;  %v2036_v58 = vrot.slane %v2028_v22, %v19865_v57 }
 0x339   : > { %v1997_v1 = vcombine.high %v20165_v62, %v20168_v36  ;;  %v2029_v59 = vcombine.high %v20179_v9, %v20182_v19  ;;  %v1438_v24 = vcombine.low %v1373_v54, %v1389_v20  ;;  %18231 = vmatprep.mubr.msk.f32.mxu0 %vm23415_vm1, %v19415_v11  ;;  %v2178_v60 = vcombine.low %v2113_v41, %v2129_v4 }
 0x33a   : > { %v2179_v15 = vcombine.high %v2113_v41, %v2129_v4  ;;  %v2046_v18 = vcombine.low %v1995_v3, %v2027_v52  ;;  %v2047_v31 = vcombine.high %v1995_v3, %v2027_v52  ;;  %18236 = vmatprep.mubr.msk.f32.mxu1 %vm23415_vm1, %v19415_v11  ;;  %v2170_v37 = vrot.slane %v2162_v47, %v19865_v57 }
 0x33b   : > { %v2177_v61 = vrot.slane %v2163_v51, %v19865_v57  ;;  %v1456_v62 = vcombine.low %v20111_v42, %v20117_v43  ;;  %v1457_v36 = vcombine.high %v20111_v42, %v20117_v43  ;;  %v2048_v39 = vcombine.low %v2004_v55, %v2036_v58 }
 0x33c   : > { %18230 = vmatpush3.xpose.msk.msra.mxu0 %vm2642_vm2, %v2046_v18  ;;  %18235 = vmatpush3.xpose.msk.msra.mxu1 %vm2642_vm2, %v2047_v31  ;;  %v2049_v63 = vcombine.high %v2004_v55, %v2036_v58  ;;  %v1414_v25 = vrot.slane %v1406_v21, %v19865_v57  ;;  %v1407_v7 = vcombine.high %v1341_v46, %v1357_v0  ;;  %v612_v3 = vand.u32 127, %v609_v38 }
 0x33d   : > { %v1439_v27 = vcombine.high %v1373_v54, %v1389_v20  ;;  %18239 = vmatprep.subr.mxu0 %v19415_v11  ;;  %18244 = vmatprep.subr.mxu1 %v19415_v11  ;;  %v1446_v9 = vrot.slane %v1438_v24, %v19865_v57  ;;  %v2186_v19 = vrot.slane %v2178_v60, %v19865_v57  ;;  %v19434_v4 = vmov -inf  }
 0x33e   : > { %v2193_v42 = vrot.slane %v2179_v15, %v19865_v57  ;;  %v2011_v43 = vrot.slane %v1997_v1, %v19865_v57  ;;  %v2043_v12 = vrot.slane %v2029_v59, %v19865_v57  ;;  %v17398_v14 = vcombine.low %v2170_v37, %v2177_v61 }
 0x33f   : > { %18232 = vmatmul.mubr.msk.f32.vlgmr.msra.gmra.mxu0 %vm2642_vm2, %v1456_v62  ;;  %18237 = vmatmul.mubr.msk.f32.vlgmr.msra.gmra.mxu1 %vm2642_vm2, %v1457_v36  ;;  %v1458_v5 = vcombine.low %v1414_v25, %v1446_v9  ;;  %v1459_v13 = vcombine.high %v1414_v25, %v1446_v9  ;;  %v17400_v16 = vcombine.high %v2170_v37, %v2177_v61 }
 0x340   : > { %18240 = vmatpush3.xpose.msk.msra.mxu0 %vm2642_vm2, %v2048_v39  ;;  %18245 = vmatpush3.xpose.msk.msra.mxu1 %vm2642_vm2, %v2049_v63  ;;  %v1421_v17 = vrot.slane %v1407_v7, %v19865_v57  ;;  %v1453_v28 = vrot.slane %v1439_v27, %v19865_v57  ;;  %v17402_v29 = vcombine.low %v2186_v19, %v2193_v42 }
 0x341   : > { %18241 = vmatprep.mubr.msk.f32.mxu0 %vm23415_vm1, %v19415_v11  ;;  %18246 = vmatprep.mubr.msk.f32.mxu1 %vm23415_vm1, %v19415_v11  ;;  %v2050_v48 = vcombine.low %v2011_v43, %v2043_v12  ;;  %v2051_v23 = vcombine.high %v2011_v43, %v2043_v12  ;;  %v17404_v33 = vcombine.high %v2186_v19, %v2193_v42 }
 0x342   : > { %18249 = vmatprep.subr.mxu0 %v19415_v11  ;;  %18254 = vmatprep.subr.mxu1 %v19415_v11  ;;  %v2378_v34 = vrot.slane %v17398_v14, %v19858_v50  ;;  %v1460_v10 = vcombine.low %v1421_v17, %v1453_v28  ;;  %v1461_v6 = vcombine.high %v1421_v17, %v1453_v28 }
 0x343   : > { %18242 = vmatmul.mubr.msk.f32.vlgmr.msra.gmra.mxu0 %vm2642_vm2, %v1458_v5  ;;  %18247 = vmatmul.mubr.msk.f32.vlgmr.msra.gmra.mxu1 %vm2642_vm2, %v1459_v13  ;;  %v2394_v56 = vrot.slane %v17400_v16, %v19858_v50  ;;  %v2410_v22 = vrot.slane %v17402_v29, %v19858_v50  ;;  %v2426_v49 = vrot.slane %v17404_v33, %v19858_v50 }
 0x344   : > { %18250 = vmatpush3.xpose.msk.msra.mxu0 %vm2642_vm2, %v2050_v48  ;;  %18255 = vmatpush3.xpose.msk.msra.mxu1 %vm2642_vm2, %v2051_v23  ;;  %vm613_vm3 = vcmp.ge.s32.totalorder %v19855_v45, %v612_v3 }
 0x345   : > { %18251 = vmatprep.mubr.msk.f32.mxu0 %vm23415_vm1, %v19415_v11  ;;  %18256 = vmatprep.mubr.msk.f32.mxu1 %vm23415_vm1, %v19415_v11  ;;  %v2434_v35 = vcombine.low %v2378_v34, %v2394_v56  ;;  %v2466_v2 = vcombine.low %v2410_v22, %v2426_v49  ;;  %v2435_v46 = vcombine.high %v2378_v34, %v2394_v56  ;;  %v20302_v47 = vsel %vm613_vm3, 0.0, %v19434_v4 }
 0x346   : > { %18259 = vmatprep.subr.mxu0 %v19415_v11  ;;  %18264 = vmatprep.subr.mxu1 %v19415_v11  ;;  %v2467_v0 = vcombine.high %v2410_v22, %v2426_v49  ;;  %vm5832_vm3 = vcmask 228352  }
 0x347   : > { %18252 = vmatmul.mubr.msk.f32.vlgmr.msra.gmra.mxu0 %vm2642_vm2, %v1460_v10  ;;  %18257 = vmatmul.mubr.msk.f32.vlgmr.msra.gmra.mxu1 %vm2642_vm2, %v1461_v6  ;;  %v2442_v54 = vrot.slane %v2434_v35, %v19865_v57  ;;  %v2474_v8 = vrot.slane %v2466_v2, %v19865_v57  ;;  %v20289_v20 = vrot.slane %v2435_v46, %v19865_v57 }
 0x348   : > { %18261 = vmatprep.mubr.msk.f32.mxu0 %vm23415_vm1, %v19415_v11  ;;  %18266 = vmatprep.mubr.msk.f32.mxu1 %vm23415_vm1, %v19415_v11  ;;  %v20292_v30 = vrot.slane %v2467_v0, %v19865_v57 }
 0x349   : > { %v2498_v40 = vcombine.low %v2442_v54, %v2474_v8  ;;  %v2499_v41 = vcombine.high %v2442_v54, %v2474_v8 }
 0x34a   : > { %v2500_v44 = vcombine.low %v20289_v20, %v20292_v30  ;;  %v2501_v53 = vcombine.high %v20289_v20, %v20292_v30 }
 0x34b   : > { %18260 = vmatpush3.msra.mxu0 %v2498_v40  ;;  %18265 = vmatpush3.msra.mxu1 %v2499_v41 }
 0x34c   : > { %18269 = vmatprep.subr.mxu0 %v19415_v11  ;;  %18274 = vmatprep.subr.mxu1 %v19415_v11 }
 0x3d5   : > { %v2715_v51 = vpop.f32.mrf.mxu1 }
 0x3d6   : > { %v20305_v52 = vadd.f32 %v2715_v51, %v20302_v47 }
 0x3d7   : > { %v18183_v21 = vpop.f32.mrf.mxu1 }
 0x3d8   : > { %v3860_v55 = vsel %vm3859_vm4, %v20305_v52, -inf }
 0x3d9   : > { %3861 = vmax.xlane.f32.xlu1 %v3860_v55  ;;  %v2791_v58 = vpop.f32.mrf.mxu1 }
 0x3da   : > { %v20321_v36 = vadd.f32 %v2791_v58, %v20302_v47 }
 0x3db   : > { %v18188_v1 = vpop.f32.mrf.mxu1 }
 0x3dc   : > { %v3863_v27 = vsel %vm3859_vm4, %v20321_v36, -inf }
 0x3dd   : > { %v2867_v59 = vpop.f32.mrf.mxu1 }
 0x3de   : > { %v20336_v5 = vadd.f32 %v2867_v59, %v20302_v47 }
 0x3df   : > { %v18193_v24 = vpop.f32.mrf.mxu1 }
 0x3e0   : > { %v3866_v16 = vsel %vm3859_vm4, %v20336_v5, -inf }
 0x3e1   : > { %v2943_v38 = vpop.f32.mrf.mxu1 }
 0x3e2   : > { %v20310_v45 = vadd.f32 %v2943_v38, %v20302_v47 }
 0x3e3   : > { %v18198_v60 = vpop.f32.mrf.mxu1 }
 0x3e4   : > { %v3869_v15 = vsel %vm3859_vm4, %v20310_v45, -inf }
 0x3e5   : > { %3870 = vmax.xlane.f32.xlu1 %v3869_v15 }
 0x3e8   : > { %v3019_v18 = vpop.f32.mrf.mxu0  ;;  %v3095_v37 = vpop.f32.mrf.mxu1 }
 0x3e9   : > { %v20315_v31 = vadd.f32 %v3019_v18, %v20302_v47  ;;  %v20318_v61 = vadd.f32 %v3095_v37, %v20302_v47  ;;  %v20388_v18 = vpop.permute.xlu1 %2062 }
 0x3ea   : > { %v18203_v62 = vpop.f32.mrf.mxu0  ;;  %v18208_v39 = vpop.f32.mrf.mxu1 }
 0x3eb   : > { %v3872_v63 = vsel %vm3859_vm4, %v20315_v31, -inf  ;;  %v3875_v25 = vsel %vm3859_vm4, %v20318_v61, -inf }
 0x3ec   : > { %3873 = vmax.xlane.f32.xlu0 %v3872_v63  ;;  %3876 = vmax.xlane.f32.xlu1 %v3875_v25 }
 0x3ed   : > { %v20390_v37 = vpop.permute.xlu1 %2068 }
 0x3ef   : > { %v3171_v7 = vpop.f32.mrf.mxu0 }
 0x3f0   : > { %v20330_v9 = vadd.f32 %v3171_v7, %v20302_v47  ;;  %v3247_v19 = vpop.f32.mrf.mxu1  ;;  %3864 = vmax.xlane.f32.xlu0 %v3863_v27 }
 0x3f1   : > { %v20333_v42 = vadd.f32 %v3247_v19, %v20302_v47  ;;  %v18213_v43 = vpop.f32.mrf.mxu0  ;;  %v20392_v62 = vpop.permute.xlu1 %2071 }
 0x3f2   : > { %v18218_v12 = vpop.f32.mrf.mxu1  ;;  %v3878_v14 = vsel %vm3859_vm4, %v20330_v9, -inf  ;;  %v20401_v43 = vpop.permute.xlu0 %2065 }
 0x3f3   : > { %v3881_v13 = vsel %vm3859_vm4, %v20333_v42, -inf }
 0x3f4   : > { %3882 = vmax.xlane.f32.xlu1 %v3881_v13  ;;  %3879 = vmax.xlane.f32.xlu0 %v3878_v14 }
 0x3f5   : > { %v20394_v39 = vpop.permute.xlu1 %2074 }
 0x3f6   : > { %v20403_v12 = vpop.permute.xlu0 %2077 }
 0x3f8   : > { %v3323_v17 = vpop.f32.mrf.mxu0  ;;  %v3399_v28 = vpop.f32.mrf.mxu1  ;;  %3867 = vmax.xlane.f32.xlu0 %v3866_v16 }
 0x3f9   : > { %v20345_v29 = vadd.f32 %v3323_v17, %v20302_v47  ;;  %v20348_v48 = vadd.f32 %v3399_v28, %v20302_v47  ;;  %v20396_v63 = vpop.permute.xlu1 %2080 }
 0x3fa   : > { %v18223_v23 = vpop.f32.mrf.mxu0  ;;  %v18228_v33 = vpop.f32.mrf.mxu1 }
 0x3fb   : > { %v3887_v34 = vsel %vm3859_vm4, %v20348_v48, -inf  ;;  %v3884_v10 = vsel %vm3859_vm4, %v20345_v29, -inf }
 0x3fc   : > { %3888 = vmax.xlane.f32.xlu1 %v3887_v34  ;;  %3885 = vmax.xlane.f32.xlu0 %v3884_v10 }
 0x3fd   : > { %v20398_v25 = vpop.permute.xlu1 %2083 }
 0x3ff   : > { %v3475_v6 = vpop.f32.mrf.mxu0  ;;  %v3551_v56 = vpop.f32.mrf.mxu1 }
 0x400   : > { %v20355_v22 = vadd.f32 %v3475_v6, %v20302_v47  ;;  %v20358_v49 = vadd.f32 %v3551_v56, %v20302_v47 }
 0x401   : > { %v18233_v35 = vpop.f32.mrf.mxu0  ;;  %v18238_v2 = vpop.f32.mrf.mxu1 }
 0x402   : > { %v3893_v46 = vsel %vm3859_vm4, %v20358_v49, -inf  ;;  %v3890_v0 = vsel %vm3859_vm4, %v20355_v22, -inf }
 0x403   : > { %3894 = vmax.xlane.f32.xlu1 %v3893_v46  ;;  %v3627_v54 = vpop.f32.mrf.mxu0  ;;  %v3703_v8 = vpop.f32.mrf.mxu1  ;;  %3891 = vmax.xlane.f32.xlu0 %v3890_v0 }
 0x404   : > { %v20365_v40 = vadd.f32 %v3627_v54, %v20302_v47  ;;  %v20368_v41 = vadd.f32 %v3703_v8, %v20302_v47 }
 0x405   : > { %v18243_v3 = vpop.f32.mrf.mxu0  ;;  %v18248_v4 = vpop.f32.mrf.mxu1 }
 0x406   : > { %v3899_v51 = vsel %vm3859_vm4, %v20368_v41, -inf  ;;  %v3896_v21 = vsel %vm3859_vm4, %v20365_v40, -inf }
 0x407   : > { %v3779_v55 = vpop.f32.mrf.mxu0  ;;  %3900 = vmax.xlane.f32.xlu1 %v3899_v51  ;;  %v3855_v58 = vpop.f32.mrf.mxu1  ;;  %3897 = vmax.xlane.f32.xlu0 %v3896_v21 }
 0x408   : > { %v20375_v1 = vadd.f32 %v3779_v55, %v20302_v47  ;;  %v20378_v59 = vadd.f32 %v3855_v58, %v20302_v47 }
 0x409   : > { %v18253_v24 = vpop.f32.mrf.mxu0  ;;  %v18258_v38 = vpop.f32.mrf.mxu1 }
 0x40a   : > { %v3905_v60 = vsel %vm3859_vm4, %v20378_v59, -inf  ;;  %v3902_v15 = vsel %vm3859_vm4, %v20375_v1, -inf }
 0x40b   : > { %3906 = vmax.xlane.f32.xlu1 %v3905_v60  ;;  %3903 = vmax.xlane.f32.xlu0 %v3902_v15 }
 0x41c   : > { %2089 = vrot.lane.b32.xlu1 %v19766_v32, %s23359_s21  ;;  %s23365_s21 = smov 14  }
 0x421   : > { %2086 = vrot.lane.b32.xlu0 %v19766_v32, %s23369_s20  ;;  %s23386_s20 = smov 26  }
 0x462   : > { %v3862_v7 = vpop.xlane.xlu1 %3861 }
 0x463   : > { %v3908_v27 = vsub.f32 %v20305_v52, %v3862_v7 }
 0x465   : > { %v3924_v19 = vmul.f32 1.442695, %v3908_v27 }
 0x467   : > { %19025 = vpow2.f32 %v3924_v19 }
 0x46e   : > { %v3871_v13 = vpop.xlane.xlu1 %3870 }
 0x46f   : > { %v3911_v33 = vsub.f32 %v20310_v45, %v3871_v13 }
 0x471   : > { %v3930_v6 = vmul.f32 1.442695, %v3911_v33 }
 0x474   : > { %v20405_v16 = vpop.eup %19025 }
 0x475   : > { %v3874_v14 = vpop.xlane.xlu0 %3873  ;;  %v3956_v28 = vsel %vm3859_vm4, %v20405_v16, 0.0  ;;  %v3877_v23 = vpop.xlane.xlu1 %3876 }
 0x476   : > { %v3912_v17 = vsub.f32 %v20315_v31, %v3874_v14  ;;  %3957 = vadd.xlane.f32.xlu0 %v3956_v28  ;;  %v3913_v56 = vsub.f32 %v20318_v61, %v3877_v23 }
 0x478   : > { %v3932_v34 = vmul.f32 1.442695, %v3912_v17  ;;  %v3934_v0 = vmul.f32 1.442695, %v3913_v56 }
 0x479   : > { %v3865_v52 = vpop.xlane.xlu0 %3864 }
 0x47a   : > { %19027 = vpow2.f32 %v3932_v34  ;;  %v3909_v10 = vsub.f32 %v20321_v36, %v3865_v52 }
 0x47c   : > { %v3926_v35 = vmul.f32 1.442695, %v3909_v10 }
 0x47d   : > { %v3883_v2 = vpop.xlane.xlu1 %3882  ;;  %v3880_v46 = vpop.xlane.xlu0 %3879 }
 0x47e   : > { %19029 = vpow2.f32 %v3926_v35  ;;  %v3914_v31 = vsub.f32 %v20330_v9, %v3880_v46  ;;  %v3915_v54 = vsub.f32 %v20333_v42, %v3883_v2 }
 0x47f   : > { %19031 = vpow2.f32 %v3930_v6 }
 0x480   : > { %v3936_v45 = vmul.f32 1.442695, %v3914_v31  ;;  %v3938_v36 = vmul.f32 1.442695, %v3915_v54 }
 0x481   : > { %v3868_v8 = vpop.xlane.xlu0 %3867 }
 0x482   : > { %v3910_v3 = vsub.f32 %v20336_v5, %v3868_v8  ;;  %19033 = vpow2.f32 %v3936_v45 }
 0x483   : > { %19035 = vpow2.f32 %v3934_v0 }
 0x484   : > { %v3928_v4 = vmul.f32 1.442695, %v3910_v3 }
 0x485   : > { %v3886_v51 = vpop.xlane.xlu0 %3885  ;;  %v3889_v61 = vpop.xlane.xlu1 %3888 }
 0x486   : > { %19037 = vpow2.f32 %v3928_v4  ;;  %v3916_v21 = vsub.f32 %v20345_v29, %v3886_v51  ;;  %v3917_v34 = vsub.f32 %v20348_v48, %v3889_v61 }
 0x487   : > { %v20417_v55 = vpop.eup %19027  ;;  %19039 = vpow2.f32 %v3938_v36 }
 0x488   : > { %v3940_v9 = vmul.f32 1.442695, %v3916_v21  ;;  %v3968_v42 = vsel %vm3859_vm4, %v20417_v55, 0.0  ;;  %v3942_v0 = vmul.f32 1.442695, %v3917_v34 }
 0x489   : > { %3969 = vadd.xlane.f32.xlu0 %v3968_v42 }
 0x48a   : > { %19041 = vpow2.f32 %v3940_v9 }
 0x48b   : > { %v20421_v58 = vpop.eup %19029 }
 0x48c   : > { %v3895_v5 = vpop.xlane.xlu1 %3894  ;;  %v3892_v24 = vpop.xlane.xlu0 %3891  ;;  %v3959_v38 = vsel %vm3859_vm4, %v20421_v58, 0.0 }
 0x48d   : > { %v20425_v60 = vpop.eup %19031  ;;  %v3919_v29 = vsub.f32 %v20358_v49, %v3895_v5  ;;  %v3918_v15 = vsub.f32 %v20355_v22, %v3892_v24  ;;  %3960 = vadd.xlane.f32.xlu1 %v3959_v38 }
 0x48e   : > { %v3965_v17 = vsel %vm3859_vm4, %v20425_v60, 0.0 }
 0x48f   : > { %v3946_v7 = vmul.f32 1.442695, %v3919_v29  ;;  %v3944_v27 = vmul.f32 1.442695, %v3918_v15  ;;  %v20429_v19 = vpop.eup %19033 }
 0x490   : > { %v3901_v13 = vpop.xlane.xlu1 %3900  ;;  %v3898_v14 = vpop.xlane.xlu0 %3897  ;;  %v3974_v49 = vsel %vm3859_vm4, %v20429_v19, 0.0 }
 0x491   : > { %v20433_v28 = vpop.eup %19035  ;;  %19043 = vpow2.f32 %v3946_v7  ;;  %v3920_v23 = vsub.f32 %v20365_v40, %v3898_v14  ;;  %3966 = vadd.xlane.f32.xlu1 %v3965_v17  ;;  %3975 = vadd.xlane.f32.xlu0 %v3974_v49  ;;  %v3921_v54 = vsub.f32 %v20368_v41, %v3901_v13  ;;  %v2147_v13 = vcombine.high %v20401_v43, %v20392_v62 }
 0x492   : > { %19045 = vpow2.f32 %v3944_v27  ;;  %v3971_v56 = vsel %vm3859_vm4, %v20433_v28, 0.0  ;;  %v2146_v27 = vcombine.low %v20401_v43, %v20392_v62  ;;  %v2130_v14 = vcombine.low %v20388_v18, %v20390_v37 }
 0x493   : > { %v20438_v22 = vpop.eup %19037  ;;  %v3948_v33 = vmul.f32 1.442695, %v3920_v23  ;;  %v2131_v17 = vcombine.high %v20388_v18, %v20390_v37  ;;  %v2250_v62 = vcombine.low %v20403_v12, %v20398_v25  ;;  %v2251_v18 = vcombine.high %v20403_v12, %v20398_v25 }
 0x494   : > { %v3907_v52 = vpop.xlane.xlu1 %3906  ;;  %v3904_v10 = vpop.xlane.xlu0 %3903  ;;  %v3962_v6 = vsel %vm3859_vm4, %v20438_v22, 0.0  ;;  %v2154_v23 = vrot.slane %v2146_v27, %v19858_v50 }
 0x495   : > { %v20445_v40 = vpop.eup %19039  ;;  %v3923_v35 = vsub.f32 %v20378_v59, %v3907_v52  ;;  %v3922_v2 = vsub.f32 %v20375_v1, %v3904_v10  ;;  %3972 = vadd.xlane.f32.xlu1 %v3971_v56  ;;  %19047 = vpow2.f32 %v3948_v33  ;;  %3963 = vadd.xlane.f32.xlu0 %v3962_v6  ;;  %v3950_v1 = vmul.f32 1.442695, %v3921_v54 }
 0x496   : > { %v3977_v45 = vsel %vm3859_vm4, %v20445_v40, 0.0  ;;  %v2138_v33 = vrot.slane %v2130_v14, %v19858_v50  ;;  %v2145_v34 = vrot.slane %v2131_v17, %v19858_v50 }
 0x497   : > { %v3954_v46 = vmul.f32 1.442695, %v3923_v35  ;;  %v3952_v31 = vmul.f32 1.442695, %v3922_v2  ;;  %v20449_v48 = vpop.eup %19041  ;;  %v2234_v35 = vcombine.low %v20394_v39, %v20396_v63  ;;  %v2258_v2 = vrot.slane %v2250_v62, %v19858_v50 }
 0x498   : > { %v3980_v8 = vsel %vm3859_vm4, %v20449_v48, 0.0  ;;  %v20488_v15 = vpop.permute.xlu0 %2086  ;;  %v2194_v10 = vcombine.low %v2138_v33, %v2154_v23  ;;  %v2195_v6 = vcombine.high %v2138_v33, %v2154_v23  ;;  %v20507_v37 = vpop.permute.xlu1 %2089 }
 0x499   : > { %19049 = vpow2.f32 %v3954_v46  ;;  %3978 = vadd.xlane.f32.xlu1 %v3977_v45  ;;  %3981 = vadd.xlane.f32.xlu0 %v3980_v8  ;;  %v2242_v54 = vrot.slane %v2234_v35, %v19858_v50 }
 0x49a   : > { %19051 = vpow2.f32 %v3952_v31  ;;  %v2202_v25 = vrot.slane %v2194_v10, %v19865_v57  ;;  %v2209_v12 = vrot.slane %v2195_v6, %v19865_v57 }
 0x49b   : > { %19053 = vpow2.f32 %v3942_v0 }
 0x49c   : > { %19055 = vpow2.f32 %v3950_v1  ;;  %v17401_v8 = vcombine.high %v2202_v25, %v2209_v12  ;;  %v2298_v1 = vcombine.low %v2242_v54, %v2258_v2 }
 0x49e   : > { %v20456_v59 = vpop.eup %19043  ;;  %v2401_v14 = vrot.slane %v17401_v8, %v19858_v50 }
 0x49f   : > { %v20458_v3 = vpop.eup %19045  ;;  %v3989_v36 = vsel %vm3859_vm4, %v20456_v59, 0.0 }
 0x4a0   : > { %v3986_v41 = vsel %vm3859_vm4, %v20458_v3, 0.0  ;;  %3990 = vadd.xlane.f32.xlu1 %v3989_v36  ;;  %v2299_v36 = vcombine.high %v2242_v54, %v2258_v2 }
 0x4a1   : > { %3987 = vadd.xlane.f32.xlu0 %v3986_v41 }
 0x4a2   : > { %v20464_v4 = vpop.eup %19047  ;;  %v2313_v27 = vrot.slane %v2299_v36, %v19865_v57 }
 0x4a3   : > { %v3992_v51 = vsel %vm3859_vm4, %v20464_v4, 0.0 }
 0x4a5   : > { %3993 = vadd.xlane.f32.xlu0 %v3992_v51 }
 0x4a6   : > { %v20468_v61 = vpop.eup %19049 }
 0x4a7   : > { %v20470_v21 = vpop.eup %19051  ;;  %v4001_v9 = vsel %vm3859_vm4, %v20468_v61, 0.0 }
 0x4a8   : > { %4002 = vadd.xlane.f32.xlu1 %v4001_v9  ;;  %v3998_v42 = vsel %vm3859_vm4, %v20470_v21, 0.0  ;;  %v20476_v5 = vpop.eup %19053 }
 0x4a9   : > { %3999 = vadd.xlane.f32.xlu0 %v3998_v42  ;;  %v3983_v24 = vsel %vm3859_vm4, %v20476_v5, 0.0  ;;  %v20480_v38 = vpop.eup %19055 }
 0x4aa   : > { %v3995_v29 = vsel %vm3859_vm4, %v20480_v38, 0.0 }
 0x4ad   : > { %3984 = vadd.xlane.f32.xlu0 %v3983_v24 }
 0x4b1   : > { %3996 = vadd.xlane.f32.xlu0 %v3995_v29 }
 0x4b9   : > { %2095 = vrot.lane.b32.xlu1 %v19766_v32, %s23349_s22  ;;  %s23353_s22 = smov 4  }
 0x4c7   : > { %2092 = vrot.lane.b32.xlu0 %v19766_v32, %s23351_s27  ;;  %v2161_v32 = vrot.slane %v2147_v13, %v19858_v50  ;;  %s23355_s27 = smov 2  }
 0x4c9   : > { %v2210_v43 = vcombine.low %v2145_v34, %v2161_v32  ;;  %v2211_v56 = vcombine.high %v2145_v34, %v2161_v32 }
 0x4cb   : > { %v2218_v46 = vrot.slane %v2210_v43, %v19865_v57  ;;  %v2225_v31 = vrot.slane %v2211_v56, %v19865_v57 }
 0x4cd   : > { %v17403_v41 = vcombine.low %v2218_v46, %v2225_v31  ;;  %v17405_v51 = vcombine.high %v2218_v46, %v2225_v31 }
 0x4cf   : > { %v2433_v33 = vrot.slane %v17405_v51, %v19858_v50 }
 0x4ff   : > { %v3958_v7 = vpop.xlane.xlu0 %3957 }
 0x500   : > { %19057 = vrcp.f32 %v3958_v7  ;;  %v2306_v7 = vrot.slane %v2298_v1, %v19865_v57 }
 0x502   : > { %v17408_v10 = vcombine.high %v2306_v7, %v2313_v27 }
 0x50d   : > { %v19058_v49 = vpop.eup %19057 }
 0x50e   : > { %v4005_v52 = vmul.f32 %v19058_v49, %v20405_v16  ;;  %v2235_v16 = vcombine.high %v20394_v39, %v20396_v63  ;;  %v17399_v63 = vcombine.low %v2202_v25, %v2209_v12  ;;  %v2417_v49 = vrot.slane %v17403_v41, %v19858_v50 }
 0x510   : > { %18262 = vmatmul.mubr.msk.f32.vlgmr.msra.gmra.mxu0 %vm3859_vm4, %v4005_v52  ;;  %v2249_v39 = vrot.slane %v2235_v16, %v19858_v50  ;;  %v2385_v13 = vrot.slane %v17399_v63, %v19858_v50  ;;  %v17406_v52 = vcombine.low %v2306_v7, %v2313_v27  ;;  %v2483_v12 = vcombine.high %v2417_v49, %v2433_v33 }
 0x511   : > { %18270 = vmatpush3.msra.mxu0 %v2500_v44  ;;  %18271 = vmatprep.mubr.msk.f32.mxu0 %vm23415_vm1, %v19415_v11  ;;  %v2265_v44 = vrot.slane %v2251_v18, %v19858_v50  ;;  %v2482_v18 = vcombine.low %v2417_v49, %v2433_v33 }
 0x512   : > { %18279 = vmatprep.subr.mxu0 %v19415_v11  ;;  %v3970_v45 = vpop.xlane.xlu0 %3969  ;;  %v2450_v6 = vcombine.low %v2385_v13, %v2401_v14  ;;  %v2451_v25 = vcombine.high %v2385_v13, %v2401_v14  ;;  %v20539_v31 = vrot.slane %v17406_v52, %v19858_v50  ;;  %v2497_v8 = vrot.slane %v2483_v12, %v19865_v57 }
 0x513   : > { %v2314_v9 = vcombine.low %v2249_v39, %v2265_v44  ;;  %v2315_v42 = vcombine.high %v2249_v39, %v2265_v44  ;;  %v20542_v44 = vrot.slane %v17408_v10, %v19858_v50 }
 0x514   : > { %v2458_v46 = vrot.slane %v2450_v6, %v19865_v57  ;;  %v2465_v63 = vrot.slane %v2451_v25, %v19865_v57 }
 0x515   : > { %v2322_v17 = vrot.slane %v2314_v9, %v19865_v57  ;;  %v2329_v23 = vrot.slane %v2315_v42, %v19865_v57  ;;  %v2570_v41 = vcombine.low %v20539_v31, %v20542_v44 }
 0x516   : > { %v3961_v0 = vpop.xlane.xlu1 %3960  ;;  %v2505_v9 = vcombine.high %v2465_v63, %v2497_v8  ;;  %v2504_v33 = vcombine.low %v2465_v63, %v2497_v8 }
 0x517   : > { %19059 = vrcp.f32 %v3961_v0  ;;  %v17410_v62 = vcombine.low %v2322_v17, %v2329_v23  ;;  %v17412_v43 = vcombine.high %v2322_v17, %v2329_v23  ;;  %v2490_v0 = vrot.slane %v2482_v18, %v19865_v57 }
 0x519   : > { %v20546_v54 = vrot.slane %v17410_v62, %v19858_v50  ;;  %v2503_v36 = vcombine.high %v2458_v46, %v2490_v0  ;;  %v2502_v13 = vcombine.low %v2458_v46, %v2490_v0 }
 0x51a   : > { %v3967_v24 = vpop.xlane.xlu1 %3966  ;;  %v3976_v29 = vpop.xlane.xlu0 %3975 }
 0x51b   : > { %19061 = vrcp.f32 %v3967_v24 }
 0x51e   : > { %v3973_v32 = vpop.xlane.xlu1 %3972  ;;  %v3964_v34 = vpop.xlane.xlu0 %3963 }
 0x51f   : > { %19063 = vrcp.f32 %v3973_v32 }
 0x520   : > { %19065 = vrcp.f32 %v3964_v34  ;;  %v2571_v34 = vcombine.high %v20539_v31, %v20542_v44 }
 0x521   : > { %19067 = vrcp.f32 %v3970_v45  ;;  %v2562_v45 = vrot.slane %v17412_v43, %v19858_v50 }
 0x522   : > { %v3979_v56 = vpop.xlane.xlu1 %3978  ;;  %v3982_v16 = vpop.xlane.xlu0 %3981  ;;  %v2585_v62 = vrot.slane %v2571_v34, %v19865_v57 }
 0x523   : > { %19069 = vrcp.f32 %v3979_v56  ;;  %v2602_v20 = vcombine.low %v20546_v54, %v2562_v45 }
 0x524   : > { %v19060_v35 = vpop.eup %19059  ;;  %19071 = vrcp.f32 %v3976_v29  ;;  %v2578_v29 = vrot.slane %v2570_v41, %v19865_v57 }
 0x525   : > { %v4007_v2 = vmul.f32 %v19060_v35, %v20421_v58  ;;  %19073 = vrcp.f32 %v3982_v16  ;;  %v2610_v7 = vrot.slane %v2602_v20, %v19865_v57 }
 0x527   : > { %18267 = vmatmul.mubr.msk.f32.vlgmr.msra.gmra.mxu1 %vm3859_vm4, %v4007_v2  ;;  %v2635_v23 = vcombine.high %v2578_v29, %v2610_v7  ;;  %v2634_v6 = vcombine.low %v2578_v29, %v2610_v7 }
 0x528   : > { %v19062_v39 = vpop.eup %19061  ;;  %18275 = vmatpush3.msra.mxu1 %v2501_v53  ;;  %18276 = vmatprep.mubr.msk.f32.mxu1 %vm23415_vm1, %v19415_v11 }
 0x529   : > { %18284 = vmatprep.subr.mxu1 %v19415_v11  ;;  %v4011_v58 = vmul.f32 %v19062_v39, %v20425_v60  ;;  %v3991_v60 = vpop.xlane.xlu1 %3990 }
 0x52a   : > { %v3988_v1 = vpop.xlane.xlu0 %3987 }
 0x52b   : > { %18277 = vmatmul.mubr.msk.f32.vlgmr.msra.gmra.mxu1 %vm3859_vm4, %v4011_v58  ;;  %19075 = vrcp.f32 %v3988_v1 }
 0x52c   : > { %v19064_v30 = vpop.eup %19063  ;;  %18285 = vmatpush3.msra.mxu1 %v2503_v36  ;;  %18286 = vmatprep.mubr.msk.f32.mxu1 %vm23415_vm1, %v19415_v11 }
 0x52d   : > { %v19066_v53 = vpop.eup %19065  ;;  %18294 = vmatprep.subr.mxu1 %v19415_v11  ;;  %v4015_v51 = vmul.f32 %v19064_v30, %v20433_v28 }
 0x52e   : > { %v3994_v42 = vpop.xlane.xlu0 %3993  ;;  %v4009_v24 = vmul.f32 %v19066_v53, %v20438_v22  ;;  %v19068_v27 = vpop.eup %19067 }
 0x52f   : > { %18287 = vmatmul.mubr.msk.f32.vlgmr.msra.gmra.mxu1 %vm3859_vm4, %v4015_v51  ;;  %v4013_v22 = vmul.f32 %v19068_v27, %v20417_v55 }
 0x530   : > { %v19070_v14 = vpop.eup %19069  ;;  %18272 = vmatmul.mubr.msk.f32.vlgmr.msra.gmra.mxu0 %vm3859_vm4, %v4009_v24  ;;  %18295 = vmatpush3.msra.mxu1 %v2505_v9 }
 0x531   : > { %18280 = vmatpush3.msra.mxu0 %v2502_v13  ;;  %18281 = vmatprep.mubr.msk.f32.mxu0 %vm23415_vm1, %v19415_v11  ;;  %v4019_v28 = vmul.f32 %v19070_v14, %v20445_v40  ;;  %v19072_v32 = vpop.eup %19071  ;;  %v4003_v49 = vpop.xlane.xlu1 %4002  ;;  %v2603_v40 = vcombine.high %v20546_v54, %v2562_v45 }
 0x532   : > { %v4000_v17 = vpop.xlane.xlu0 %3999  ;;  %18289 = vmatprep.subr.mxu0 %v19415_v11  ;;  %18296 = vmatprep.mubr.msk.f32.mxu1 %vm23415_vm1, %v19415_v11  ;;  %v4017_v52 = vmul.f32 %v19072_v32, %v20429_v19  ;;  %v19074_v10 = vpop.eup %19073 }
 0x533   : > { %18304 = vmatprep.subr.mxu1 %v19415_v11  ;;  %18297 = vmatmul.mubr.msk.f32.vlgmr.msra.gmra.mxu1 %vm3859_vm4, %v4019_v28  ;;  %v2617_v43 = vrot.slane %v2603_v40, %v19865_v57  ;;  %v4021_v18 = vmul.f32 %v19074_v10, %v20449_v48 }
 0x534   : > { %18282 = vmatmul.mubr.msk.f32.vlgmr.msra.gmra.mxu0 %vm3859_vm4, %v4013_v22  ;;  %18305 = vmatpush3.msra.mxu1 %v2635_v23 }
 0x535   : > { %18290 = vmatpush3.msra.mxu0 %v2504_v33  ;;  %18291 = vmatprep.mubr.msk.f32.mxu0 %vm23415_vm1, %v19415_v11  ;;  %v2096_v56 = vpop.permute.xlu1 %2095  ;;  %v2636_v16 = vcombine.low %v2585_v62, %v2617_v43  ;;  %v2637_v20 = vcombine.high %v2585_v62, %v2617_v43 }
 0x536   : > { %v3985_v55 = vpop.xlane.xlu0 %3984  ;;  %18299 = vmatprep.subr.mxu0 %v19415_v11  ;;  %18306 = vmatprep.mubr.msk.f32.mxu1 %vm23415_vm1, %v19415_v11  ;;  %v2282_v25 = vcombine.low %v20507_v37, %v2096_v56  ;;  %v2283_v12 = vcombine.high %v20507_v37, %v2096_v56 }
 0x537   : > { %19077 = vrcp.f32 %v3985_v55  ;;  %18314 = vmatprep.subr.mxu1 %v19415_v11 }
 0x538   : > { %18292 = vmatmul.mubr.msk.f32.vlgmr.msra.gmra.mxu0 %vm3859_vm4, %v4017_v52  ;;  %19079 = vrcp.f32 %v3991_v60  ;;  %v19076_v35 = vpop.eup %19075  ;;  %v2290_v44 = vrot.slane %v2282_v25, %v19858_v50  ;;  %v2297_v37 = vrot.slane %v2283_v12, %v19858_v50 }
 0x539   : > { %18300 = vmatpush3.msra.mxu0 %v2634_v6  ;;  %18301 = vmatprep.mubr.msk.f32.mxu0 %vm23415_vm1, %v19415_v11  ;;  %v4025_v46 = vmul.f32 %v19076_v35, %v20458_v3  ;;  %19081 = vrcp.f32 %v3994_v42 }
 0x53a   : > { %v3997_v19 = vpop.xlane.xlu0 %3996  ;;  %18309 = vmatprep.subr.mxu0 %v19415_v11 }
 0x53b   : > { %19083 = vrcp.f32 %v3997_v19 }
 0x53c   : > { %18302 = vmatmul.mubr.msk.f32.vlgmr.msra.gmra.mxu0 %vm3859_vm4, %v4021_v18  ;;  %19085 = vrcp.f32 %v4003_v49 }
 0x53d   : > { %18310 = vmatpush3.msra.mxu0 %v2636_v16  ;;  %18311 = vmatprep.mubr.msk.f32.mxu0 %vm23415_vm1, %v19415_v11  ;;  %19087 = vrcp.f32 %v4000_v17 }
 0x53e   : > { %v2093_v2 = vpop.permute.xlu0 %2092  ;;  %18319 = vmatprep.subr.mxu0 %v19415_v11 }
 0x53f   : > { %v2266_v31 = vcombine.low %v20488_v15, %v2093_v2  ;;  %v2267_v48 = vcombine.high %v20488_v15, %v2093_v2 }
 0x540   : > { %18312 = vmatmul.mubr.msk.f32.vlgmr.msra.gmra.mxu0 %vm3859_vm4, %v4025_v46 }
 0x541   : > { %v2274_v0 = vrot.slane %v2266_v31, %v19858_v50  ;;  %v2281_v54 = vrot.slane %v2267_v48, %v19858_v50  ;;  %18321 = vmatprep.mubr.msk.f32.mxu0 %vm23415_vm1, %v19415_v11 }
 0x543   : > { %v2330_v3 = vcombine.low %v2274_v0, %v2290_v44  ;;  %v2331_v45 = vcombine.high %v2274_v0, %v2290_v44  ;;  %v2346_v39 = vcombine.low %v2281_v54, %v2297_v37  ;;  %v2347_v15 = vcombine.high %v2281_v54, %v2297_v37 }
 0x544   : > { %v19078_v58 = vpop.eup %19077 }
 0x545   : > { %v2338_v63 = vrot.slane %v2330_v3, %v19865_v57  ;;  %v2345_v8 = vrot.slane %v2331_v45, %v19865_v57  ;;  %v2354_v1 = vrot.slane %v2346_v39, %v19865_v57  ;;  %v2361_v36 = vrot.slane %v2347_v15, %v19865_v57  ;;  %v19080_v30 = vpop.eup %19079 }
 0x546   : > { %v4023_v41 = vmul.f32 %v19078_v58, %v20476_v5  ;;  %v4027_v5 = vmul.f32 %v19080_v30, %v20456_v59  ;;  %v19082_v17 = vpop.eup %19081 }
 0x547   : > { %v17407_v53 = vcombine.low %v2338_v63, %v2345_v8  ;;  %v17409_v60 = vcombine.high %v2338_v63, %v2345_v8  ;;  %v17411_v51 = vcombine.low %v2354_v1, %v2361_v36  ;;  %v17413_v9 = vcombine.high %v2354_v1, %v2361_v36 }
 0x548   : > { %18307 = vmatmul.mubr.msk.f32.vlgmr.msra.gmra.mxu1 %vm3859_vm4, %v4023_v41  ;;  %v19084_v23 = vpop.eup %19083  ;;  %v4029_v52 = vmul.f32 %v19082_v17, %v20464_v4 }
 0x549   : > { %18315 = vmatpush3.msra.mxu1 %v2637_v20  ;;  %18316 = vmatprep.mubr.msk.f32.mxu1 %vm23415_vm1, %v19415_v11  ;;  %v2521_v42 = vrot.slane %v17407_v53, %v19858_v50  ;;  %v2537_v24 = vrot.slane %v17409_v60, %v19858_v50  ;;  %v2553_v29 = vrot.slane %v17411_v51, %v19858_v50  ;;  %v19086_v59 = vpop.eup %19085 }
 0x54a   : > { %18324 = vmatprep.subr.mxu1 %v19415_v11  ;;  %v2569_v7 = vrot.slane %v17413_v9, %v19858_v50  ;;  %v19088_v55 = vpop.eup %19087  ;;  %v4031_v10 = vmul.f32 %v19084_v23, %v20480_v38  ;;  %v4035_v4 = vmul.f32 %v19086_v59, %v20468_v61 }
 0x54b   : > { %v2586_v27 = vcombine.low %v2521_v42, %v2537_v24  ;;  %v2587_v13 = vcombine.high %v2521_v42, %v2537_v24  ;;  %v4033_v43 = vmul.f32 %v19088_v55, %v20470_v21 }
 0x54c   : > { %18317 = vmatmul.mubr.msk.f32.vlgmr.msra.gmra.mxu1 %vm3859_vm4, %v4027_v5  ;;  %v2618_v14 = vcombine.low %v2553_v29, %v2569_v7  ;;  %v2619_v28 = vcombine.high %v2553_v29, %v2569_v7 }
 0x54d   : > { %v2594_v22 = vrot.slane %v2586_v27, %v19865_v57  ;;  %18326 = vmatprep.mubr.msk.f32.mxu1 %vm23415_vm1, %v19415_v11  ;;  %v2601_v49 = vrot.slane %v2587_v13, %v19865_v57 }
 0x54e   : > { %v2626_v32 = vrot.slane %v2618_v14, %v19865_v57  ;;  %v2633_v33 = vrot.slane %v2619_v28, %v19865_v57 }
 0x550   : > { %v2638_v34 = vcombine.low %v2594_v22, %v2626_v32  ;;  %v2639_v40 = vcombine.high %v2594_v22, %v2626_v32  ;;  %v2640_v6 = vcombine.low %v2601_v49, %v2633_v33  ;;  %v2641_v62 = vcombine.high %v2601_v49, %v2633_v33 }
 0x552   : > { %18320 = vmatpush3.msra.mxu0 %v2638_v34  ;;  %18325 = vmatpush3.msra.mxu1 %v2639_v40 }
 0x553   : > { %18322 = vmatmul.mubr.msk.f32.vlgmr.msra.gmra.mxu0 %vm3859_vm4, %v4029_v52  ;;  %18327 = vmatmul.mubr.msk.f32.vlgmr.msra.gmra.mxu1 %vm3859_vm4, %v4031_v10 }
 0x554   : > { %18329 = vmatprep.subr.mxu0 %v19415_v11  ;;  %18334 = vmatprep.subr.mxu1 %v19415_v11 }
 0x555   : > { %18330 = vmatpush3.msra.mxu0 %v2640_v6  ;;  %18335 = vmatpush3.msra.mxu1 %v2641_v62 }
 0x556   : > { %18331 = vmatprep.mubr.msk.f32.mxu0 %vm23415_vm1, %v19415_v11  ;;  %18336 = vmatprep.mubr.msk.f32.mxu1 %vm23415_vm1, %v19415_v11 }
 0x557   : > { %18332 = vmatmul.mubr.msk.f32.vlgmr.msra.gmra.mxu0 %vm3859_vm4, %v4033_v43  ;;  %18337 = vmatmul.mubr.msk.f32.vlgmr.msra.gmra.mxu1 %vm3859_vm4, %v4035_v4 }
 0x558   : > { %18339 = vmatprep.subr.mxu0 %v19415_v11  ;;  %18347 = vmatprep.mubr.msk.f32.mxu0 %vm23415_vm1, %v19415_v11 }
 0x559   : > { %18350 = vmatprep.subr.mxu1 %v19415_v11  ;;  %18358 = vmatprep.mubr.msk.f32.mxu1 %vm23415_vm1, %v19415_v11 }
 0x5d0   : > { %v4105_v61 = vpop.f32.mrf.mxu0 }
 0x5d2   : > { %v18263_v21 = vpop.f32.mrf.mxu0 }
 0x5e7   : > { %v4178_v38 = vpop.f32.mrf.mxu1 }
 0x5e9   : > { %v18268_v56 = vpop.f32.mrf.mxu1 }
 0x5eb   : > { %v4324_v19 = vpop.f32.mrf.mxu1 }
 0x5ec   : > { %v5220_v35 = vcombine.low %v4178_v38, %v4324_v19  ;;  %v5221_v16 = vcombine.high %v4178_v38, %v4324_v19 }
 0x5ed   : > { %v18278_v18 = vpop.f32.mrf.mxu1 }
 0x5ee   : > { %v5228_v44 = vrot.slane %v5220_v35, %v19858_v50  ;;  %v5235_v37 = vrot.slane %v5221_v16, %v19858_v50 }
 0x5ef   : > { %v4470_v25 = vpop.f32.mrf.mxu1 }
 0x5f0   : > { %v4251_v12 = vpop.f32.mrf.mxu0 }
 0x5f1   : > { %v5204_v2 = vcombine.low %v4105_v61, %v4251_v12  ;;  %v5205_v46 = vcombine.high %v4105_v61, %v4251_v12  ;;  %v18288_v31 = vpop.f32.mrf.mxu1 }
 0x5f2   : > { %v18273_v48 = vpop.f32.mrf.mxu0 }
 0x5f3   : > { %v5212_v0 = vrot.slane %v5204_v2, %v19858_v50  ;;  %v5219_v54 = vrot.slane %v5205_v46, %v19858_v50  ;;  %v4616_v3 = vpop.f32.mrf.mxu1 }
 0x5f4   : > { %v4397_v45 = vpop.f32.mrf.mxu0  ;;  %v5252_v53 = vcombine.low %v4470_v25, %v4616_v3  ;;  %v5253_v60 = vcombine.high %v4470_v25, %v4616_v3 }
 0x5f5   : > { %v5268_v39 = vcombine.low %v5212_v0, %v5228_v44  ;;  %v5269_v15 = vcombine.high %v5212_v0, %v5228_v44  ;;  %v5284_v58 = vcombine.low %v5219_v54, %v5235_v37  ;;  %v5285_v63 = vcombine.high %v5219_v54, %v5235_v37  ;;  %v18298_v8 = vpop.f32.mrf.mxu1 }
 0x5f6   : > { %v18283_v1 = vpop.f32.mrf.mxu0  ;;  %v5260_v22 = vrot.slane %v5252_v53, %v19858_v50  ;;  %v5267_v23 = vrot.slane %v5253_v60, %v19858_v50 }
 0x5f7   : > { %v5276_v36 = vrot.slane %v5268_v39, %v19865_v57  ;;  %v5283_v41 = vrot.slane %v5269_v15, %v19865_v57  ;;  %v5292_v20 = vrot.slane %v5284_v58, %v19865_v57  ;;  %v5299_v30 = vrot.slane %v5285_v63, %v19865_v57 }
 0x5f8   : > { %v4543_v51 = vpop.f32.mrf.mxu0 }
 0x5f9   : > { %v17462_v9 = vcombine.low %v5276_v36, %v5283_v41  ;;  %v17464_v42 = vcombine.high %v5276_v36, %v5283_v41  ;;  %v17466_v24 = vcombine.low %v5292_v20, %v5299_v30  ;;  %v17468_v29 = vcombine.high %v5292_v20, %v5299_v30 }
 0x5fa   : > { %v5236_v5 = vcombine.low %v4397_v45, %v4543_v51  ;;  %v5237_v7 = vcombine.high %v4397_v45, %v4543_v51  ;;  %v18293_v27 = vpop.f32.mrf.mxu0 }
 0x5fb   : > { %v5484_v13 = vrot.slane %v17462_v9, %v19858_v50  ;;  %v5500_v14 = vrot.slane %v17464_v42, %v19858_v50  ;;  %v5516_v28 = vrot.slane %v17466_v24, %v19858_v50  ;;  %v5532_v17 = vrot.slane %v17468_v29, %v19858_v50 }
 0x5fc   : > { %v5244_v32 = vrot.slane %v5236_v5, %v19858_v50  ;;  %v5251_v59 = vrot.slane %v5237_v7, %v19858_v50  ;;  %v20672_v49 = vpop.f32.mrf.mxu0 }
 0x5fd   : > { %v5541_v33 = vcombine.high %v5484_v13, %v5500_v14  ;;  %v5573_v34 = vcombine.high %v5516_v28, %v5532_v17  ;;  %v5540_v40 = vcombine.low %v5484_v13, %v5500_v14  ;;  %v5572_v55 = vcombine.low %v5516_v28, %v5532_v17 }
 0x5fe   : > { %v5300_v52 = vcombine.low %v5244_v32, %v5260_v22  ;;  %v5301_v10 = vcombine.high %v5244_v32, %v5260_v22  ;;  %v5316_v6 = vcombine.low %v5251_v59, %v5267_v23  ;;  %v5317_v62 = vcombine.high %v5251_v59, %v5267_v23  ;;  %v18303_v43 = vpop.f32.mrf.mxu0 }
 0x5ff   : > { %v5555_v4 = vrot.slane %v5541_v33, %v19865_v57  ;;  %v5587_v61 = vrot.slane %v5573_v34, %v19865_v57  ;;  %v20677_v21 = vrot.slane %v5540_v40, %v19865_v57  ;;  %v20680_v38 = vrot.slane %v5572_v55, %v19865_v57 }
 0x600   : > { %v5308_v56 = vrot.slane %v5300_v52, %v19865_v57  ;;  %v5315_v19 = vrot.slane %v5301_v10, %v19865_v57  ;;  %v5324_v18 = vrot.slane %v5316_v6, %v19865_v57  ;;  %v5331_v35 = vrot.slane %v5317_v62, %v19865_v57  ;;  %v4835_v16 = vpop.f32.mrf.mxu0 }
 0x601   : > { %v5606_v25 = vcombine.low %v5555_v4, %v5587_v61  ;;  %v5605_v12 = vcombine.high %v20677_v21, %v20680_v38  ;;  %v5607_v45 = vcombine.high %v5555_v4, %v5587_v61  ;;  %v5604_v39 = vcombine.low %v20677_v21, %v20680_v38 }
 0x602   : > { %v17463_v2 = vcombine.low %v5308_v56, %v5315_v19  ;;  %v17465_v46 = vcombine.high %v5308_v56, %v5315_v19  ;;  %v17467_v31 = vcombine.low %v5324_v18, %v5331_v35  ;;  %v17469_v48 = vcombine.high %v5324_v18, %v5331_v35  ;;  %v18313_v44 = vpop.f32.mrf.mxu0  ;;  %v5839_v19 = vld [vmem:[%s23453_s7 + $0x18] sm:$0xff] }
 0x603   : > { %5753 = vrot.lane.b32.xlu1 %v5606_v25, %s23353_s22  ;;  %5749 = vrot.lane.b32.xlu0 %v5605_v12, %s23355_s27  ;;  %s23357_s22 = smov 6   ;;  %v5340_v9 = vcombine.low %v20672_v49, %v4835_v16  ;;  %v5341_v42 = vcombine.high %v20672_v49, %v4835_v16  ;;  %s23361_s27 = smov 10  }
 0x604   : > { %v5491_v37 = vrot.slane %v17463_v2, %v19858_v50  ;;  %v5507_v0 = vrot.slane %v17465_v46, %v19858_v50  ;;  %v5523_v54 = vrot.slane %v17467_v31, %v19858_v50  ;;  %v5539_v3 = vrot.slane %v17469_v48, %v19858_v50  ;;  %18340 = vmatpush3.msra.mxu0 %v5839_v19 }
 0x605   : > { %v5348_v14 = vrot.slane %v5340_v9, %v19858_v50  ;;  %v5355_v28 = vrot.slane %v5341_v42, %v19858_v50  ;;  %18341 = vmatprep.subr.mxu0 %v19415_v11 }
 0x606   : > { %v5556_v15 = vcombine.low %v5491_v37, %v5507_v0  ;;  %v5588_v58 = vcombine.low %v5523_v54, %v5539_v3  ;;  %v5557_v63 = vcombine.high %v5491_v37, %v5507_v0  ;;  %v5589_v8 = vcombine.high %v5523_v54, %v5539_v3 }
 0x607   : > { %5757 = vrot.lane.b32.xlu0 %v5607_v45, %s23357_s22  ;;  %s23367_s22 = smov 8  }
 0x608   : > { %v4762_v1 = vpop.f32.mrf.mxu1  ;;  %v5564_v36 = vrot.slane %v5556_v15, %v19865_v57  ;;  %v5596_v41 = vrot.slane %v5588_v58, %v19865_v57  ;;  %v5571_v60 = vrot.slane %v5557_v63, %v19865_v57  ;;  %v5603_v51 = vrot.slane %v5589_v8, %v19865_v57 }
 0x60a   : > { %v18308_v20 = vpop.f32.mrf.mxu1  ;;  %v5609_v30 = vcombine.high %v5564_v36, %v5596_v41  ;;  %v5608_v53 = vcombine.low %v5564_v36, %v5596_v41  ;;  %v5611_v27 = vcombine.high %v5571_v60, %v5603_v51  ;;  %v5610_v13 = vcombine.low %v5571_v60, %v5603_v51 }
 0x60c   : > { %v4908_v24 = vpop.f32.mrf.mxu1  ;;  %5765 = vrot.lane.b32.xlu0 %v5609_v30, %s23361_s27  ;;  %5761 = vrot.lane.b32.xlu1 %v5608_v53, %s23367_s22  ;;  %s23363_s27 = smov 12   ;;  %s23384_s22 = smov 24  }
 0x60d   : > { %v5356_v29 = vcombine.low %v4762_v1, %v4908_v24  ;;  %v5357_v5 = vcombine.high %v4762_v1, %v4908_v24 }
 0x60e   : > { %v18318_v7 = vpop.f32.mrf.mxu1 }
 0x60f   : > { %v5364_v17 = vrot.slane %v5356_v29, %v19858_v50  ;;  %v5371_v22 = vrot.slane %v5357_v5, %v19858_v50  ;;  %v5838_v29 = vld [vmem:[%s23453_s7 + $0x10] sm:$0xff] }
 0x610   : > { %5773 = vrot.lane.b32.xlu0 %v5611_v27, %s23365_s21  ;;  %5769 = vrot.lane.b32.xlu1 %v5610_v13, %s23363_s27  ;;  %s23377_s27 = smov 22   ;;  %s23375_s21 = smov 20  }
 0x611   : > { %v5404_v23 = vcombine.low %v5348_v14, %v5364_v17  ;;  %v5405_v32 = vcombine.high %v5348_v14, %v5364_v17  ;;  %v5420_v59 = vcombine.low %v5355_v28, %v5371_v22  ;;  %v5421_v49 = vcombine.high %v5355_v28, %v5371_v22  ;;  %18342 = vmatpush3.msra.mxu0 %v5838_v29  ;;  %v5837_v14 = vld [vmem:[%s23453_s7 + $0x8] sm:$0xff]  ;;  %v17478_v29 = vld [vmem:[%s23454_s8] ss:$0 sm:$0xff] }
 0x612   : > { %18343 = vmatprep.subr.mxu0 %v19415_v11 }
 0x613   : > { %v5412_v33 = vrot.slane %v5404_v23, %v19865_v57  ;;  %v5419_v34 = vrot.slane %v5405_v32, %v19865_v57  ;;  %v5428_v40 = vrot.slane %v5420_v59, %v19865_v57  ;;  %v5435_v55 = vrot.slane %v5421_v49, %v19865_v57  ;;  %v4981_v52 = vpop.f32.mrf.mxu0  ;;  %v5054_v10 = vpop.f32.mrf.mxu1  ;;  %18344 = vmatpush3.msra.mxu0 %v5837_v14 }
 0x614   : > { %18345 = vmatprep.subr.mxu0 %v19415_v11 }
 0x615   : > { %v17470_v6 = vcombine.low %v5412_v33, %v5419_v34  ;;  %v17472_v62 = vcombine.high %v5412_v33, %v5419_v34  ;;  %v17474_v43 = vcombine.low %v5428_v40, %v5435_v55  ;;  %v17476_v4 = vcombine.high %v5428_v40, %v5435_v55  ;;  %v18323_v61 = vpop.f32.mrf.mxu0  ;;  %v18328_v56 = vpop.f32.mrf.mxu1  ;;  %v5836_v55 = vld [vmem:[%s23453_s7] sm:$0xff] }
 0x616   : > { %18346 = vmatpush3.msra.mxu0 %v5836_v55  ;;  %v6048_v55 = vld [vmem:[%s23329_s13 + $0x68] sm:$0xff] }
 0x617   : > { %v5127_v18 = vpop.f32.mrf.mxu0  ;;  %v5200_v35 = vpop.f32.mrf.mxu1  ;;  %v5620_v16 = vrot.slane %v17470_v6, %v19858_v50  ;;  %v5636_v25 = vrot.slane %v17472_v62, %v19858_v50  ;;  %v5652_v12 = vrot.slane %v17474_v43, %v19858_v50  ;;  %v5668_v2 = vrot.slane %v17476_v4, %v19858_v50  ;;  %18361 = vmatprep.subr.mxu0 %v19415_v11 }
 0x618   : > { %v5372_v46 = vcombine.low %v4981_v52, %v5127_v18  ;;  %v5373_v31 = vcombine.high %v4981_v52, %v5127_v18  ;;  %v5388_v48 = vcombine.low %v5054_v10, %v5200_v35  ;;  %v5389_v44 = vcombine.high %v5054_v10, %v5200_v35 }
 0x619   : > { %v18333_v37 = vpop.f32.mrf.mxu0  ;;  %v18338_v0 = vpop.f32.mrf.mxu1  ;;  %v5676_v54 = vcombine.low %v5620_v16, %v5636_v25  ;;  %v5708_v3 = vcombine.low %v5652_v12, %v5668_v2  ;;  %v5677_v45 = vcombine.high %v5620_v16, %v5636_v25  ;;  %v5709_v15 = vcombine.high %v5652_v12, %v5668_v2 }
 0x61a   : > { %v5380_v58 = vrot.slane %v5372_v46, %v19858_v50  ;;  %v5387_v63 = vrot.slane %v5373_v31, %v19858_v50  ;;  %v5396_v8 = vrot.slane %v5388_v48, %v19858_v50  ;;  %v5403_v1 = vrot.slane %v5389_v44, %v19858_v50 }
 0x61b   : > { %v5684_v36 = vrot.slane %v5676_v54, %v19865_v57  ;;  %v5716_v41 = vrot.slane %v5708_v3, %v19865_v57  ;;  %v5691_v42 = vrot.slane %v5677_v45, %v19865_v57  ;;  %v5723_v24 = vrot.slane %v5709_v15, %v19865_v57 }
 0x61c   : > { %v5436_v20 = vcombine.low %v5380_v58, %v5396_v8  ;;  %v5437_v30 = vcombine.high %v5380_v58, %v5396_v8  ;;  %v5452_v53 = vcombine.low %v5387_v63, %v5403_v1  ;;  %v5453_v60 = vcombine.high %v5387_v63, %v5403_v1 }
 0x61d   : > { %v5741_v51 = vcombine.high %v5684_v36, %v5716_v41  ;;  %v5740_v9 = vcombine.low %v5684_v36, %v5716_v41  ;;  %v5743_v32 = vcombine.high %v5691_v42, %v5723_v24  ;;  %v5742_v59 = vcombine.low %v5691_v42, %v5723_v24 }
 0x61e   : > { %v5444_v5 = vrot.slane %v5436_v20, %v19865_v57  ;;  %v5451_v7 = vrot.slane %v5437_v30, %v19865_v57  ;;  %v5460_v27 = vrot.slane %v5452_v53, %v19865_v57  ;;  %v5467_v13 = vrot.slane %v5453_v60, %v19865_v57 }
 0x61f   : > { %5781 = vrot.lane.b32.xlu0 %v5741_v51, %s23390_s19  ;;  %5777 = vrot.lane.b32.xlu1 %v5740_v9, %s23388_s1  ;;  %s23456_s1 = smov 108   ;;  %s23457_s19 = smov 110  }
 0x620   : > { %v17471_v28 = vcombine.low %v5444_v5, %v5451_v7  ;;  %v17473_v17 = vcombine.high %v5444_v5, %v5451_v7  ;;  %v17475_v22 = vcombine.low %v5460_v27, %v5467_v13  ;;  %v17477_v23 = vcombine.high %v5460_v27, %v5467_v13 }
 0x622   : > { %v5627_v49 = vrot.slane %v17471_v28, %v19858_v50  ;;  %v5643_v33 = vrot.slane %v17473_v17, %v19858_v50  ;;  %v5659_v34 = vrot.slane %v17475_v22, %v19858_v50  ;;  %v5675_v40 = vrot.slane %v17477_v23, %v19858_v50 }
 0x623   : > { %5789 = vrot.lane.b32.xlu0 %v5743_v32, %s23377_s27  ;;  %5785 = vrot.lane.b32.xlu1 %v5742_v59, %s23375_s21  ;;  %s23382_s21 = smov 30   ;;  %s23380_s27 = smov 28   ;;  %v5953_v59 = vld [vmem:[%s23327_s11 + $0x18] sm:$0xff] }
 0x624   : > { %v5692_v52 = vcombine.low %v5627_v49, %v5643_v33  ;;  %v5724_v10 = vcombine.low %v5659_v34, %v5675_v40  ;;  %v5693_v6 = vcombine.high %v5627_v49, %v5643_v33  ;;  %v5725_v62 = vcombine.high %v5659_v34, %v5675_v40  ;;  %v5952_v49 = vld [vmem:[%s23327_s11 + $0x10] sm:$0xff]  ;;  %18351 = vmatpush3.msra.mxu1 %v5953_v59  ;;  %v5950_v33 = vld [vmem:[%s23327_s11] sm:$0xff]  ;;  %v6050_v34 = vld [vmem:[%s23329_s13 + $0x78] sm:$0xff] }
 0x625   : > { %18352 = vmatprep.subr.mxu1 %v19415_v11  ;;  %v6049_v40 = vld [vmem:[%s23329_s13 + $0x70] sm:$0xff]  ;;  %v17494_v59 = vld [vmem:[%s23321_s5 + $0x28] sm:$0xff] }
 0x626   : > { %v5700_v43 = vrot.slane %v5692_v52, %v19865_v57  ;;  %v5732_v4 = vrot.slane %v5724_v10, %v19865_v57  ;;  %v5707_v19 = vrot.slane %v5693_v6, %v19865_v57  ;;  %v5739_v18 = vrot.slane %v5725_v62, %v19865_v57  ;;  %18353 = vmatpush3.msra.mxu1 %v5952_v49  ;;  %v6047_v52 = vld [vmem:[%s23329_s13 + $0x60] sm:$0xff]  ;;  %v6046_v10 = vld [vmem:[%s23329_s13 + $0x58] sm:$0xff]  ;;  %v6045_v6 = vld [vmem:[%s23329_s13 + $0x50] sm:$0xff] }
 0x627   : > { %18354 = vmatprep.subr.mxu1 %v19415_v11  ;;  %v6044_v62 = vld [vmem:[%s23329_s13 + $0x48] sm:$0xff]  ;;  %v17493_v49 = vld [vmem:[%s23321_s5 + $0x20] sm:$0xff] }
 0x628   : > { %v5745_v61 = vcombine.high %v5700_v43, %v5732_v4  ;;  %v5744_v56 = vcombine.low %v5700_v43, %v5732_v4  ;;  %v5747_v35 = vcombine.high %v5707_v19, %v5739_v18  ;;  %v5746_v16 = vcombine.low %v5707_v19, %v5739_v18  ;;  %v6043_v43 = vld [vmem:[%s23329_s13 + $0x40] sm:$0xff]  ;;  %v6042_v4 = vld [vmem:[%s23329_s13 + $0x38] sm:$0xff] }
 0x629   : > { %v6039_v19 = vld [vmem:[%s23329_s13 + $0x20] sm:$0xff]  ;;  %v6038_v18 = vld [vmem:[%s23329_s13 + $0x18] sm:$0xff] }
 0x62a   : > { %5797 = vrot.lane.b32.xlu0 %v5745_v61, %s23386_s20  ;;  %5793 = vrot.lane.b32.xlu1 %v5744_v56, %s23384_s22  ;;  %v6041_v61 = vld [vmem:[%s23329_s13 + $0x30] sm:$0xff]  ;;  %v6040_v56 = vld [vmem:[%s23329_s13 + $0x28] sm:$0xff]  ;;  %s23461_s20 = smov 100   ;;  %s23462_s22 = smov 98  }
 0x62e   : > { %5805 = vrot.lane.b32.xlu0 %v5747_v35, %s23382_s21  ;;  %5801 = vrot.lane.b32.xlu1 %v5746_v16, %s23380_s27  ;;  %s23455_s27 = smov 114   ;;  %s23460_s21 = smov 102  }
 0x675   : > { %v5750_v25 = vpop.permute.xlu0 %5749  ;;  %v5754_v2 = vpop.permute.xlu1 %5753 }
 0x676   : > { %v5808_v31 = vsel %vm2642_vm2, %v5604_v39, %v5750_v25 }
 0x677   : > { %v5810_v44 = vsel %vm5809_vm5, %v5808_v31, %v5754_v2  ;;  %v17480_v2 = vld [vmem:[%s23325_s9] ss:$0 sm:$0xff] }
 0x678   : > { %v17481_v31 = vld [vmem:[%s23326_s10] ss:$0 sm:$0xff] }
 0x679   : > { %v5758_v12 = vpop.permute.xlu0 %5757 }
 0x67a   : > { %v5812_v37 = vsel %vm5811_vm6, %v5810_v44, %v5758_v12 }
 0x67e   : > { %v5762_v46 = vpop.permute.xlu1 %5761  ;;  %v5766_v48 = vpop.permute.xlu0 %5765 }
 0x67f   : > { %v5813_v0 = vsel %vm3859_vm4, %v5812_v37, %v5762_v46  ;;  %v6037_v37 = vld [vmem:[%s23329_s13 + $0x10] sm:$0xff] }
 0x680   : > { %v5815_v45 = vsel %vm5814_vm7, %v5813_v0, %v5766_v48  ;;  %v6036_v0 = vld [vmem:[%s23329_s13 + $0x8] sm:$0xff] }
 0x682   : > { %v5770_v54 = vpop.permute.xlu1 %5769  ;;  %v5774_v3 = vpop.permute.xlu0 %5773 }
 0x683   : > { %v5817_v15 = vsel %vm5816_vm8, %v5815_v45, %v5770_v54  ;;  %v6035_v54 = vld [vmem:[%s23329_s13] sm:$0xff] }
 0x684   : > { %v5819_v39 = vsel %vm23379_vm9, %v5817_v15, %v5774_v3  ;;  %vm5834_vm9 = vcmask 244736   ;;  %v17482_v3 = vld [vmem:[%s23328_s12] ss:$0 sm:$0xff] }
 0x691   : > { %v5778_v21 = vpop.permute.xlu1 %5777  ;;  %v5782_v38 = vpop.permute.xlu0 %5781 }
 0x692   : > { %v5821_v58 = vsel %vm5820_vm10, %v5819_v39, %v5778_v21  ;;  %v17484_v39 = vld [vmem:[%s23330_s14] ss:$0 sm:$0xff] }
 0x693   : > { %v5823_v1 = vsel %vm5822_vm11, %v5821_v58, %v5782_v38 }
 0x695   : > { %v5786_v63 = vpop.permute.xlu1 %5785  ;;  %v5790_v8 = vpop.permute.xlu0 %5789 }
 0x696   : > { %v5825_v36 = vsel %vm5824_vm12, %v5823_v1, %v5786_v63 }
 0x697   : > { %v5827_v20 = vsel %vm5826_vm13, %v5825_v36, %v5790_v8 }
 0x69c   : > { %v5798_v41 = vpop.permute.xlu0 %5797  ;;  %v5794_v30 = vpop.permute.xlu1 %5793 }
 0x69d   : > { %v5829_v53 = vsel %vm5828_vm14, %v5827_v20, %v5794_v30 }
 0x69e   : > { %v5831_v51 = vsel %vm5830_vm15, %v5829_v53, %v5798_v41 }
 0x6a0   : > { %v5806_v60 = vpop.permute.xlu0 %5805  ;;  %v5802_v9 = vpop.permute.xlu1 %5801 }
 0x6a1   : > { %v5833_v42 = vsel %vm5832_vm3, %v5831_v51, %v5802_v9  ;;  %v17491_v51 = vld [vmem:[%s23320_s4 + $0x38] sm:$0xff]  ;;  %v17490_v9 = vld [vmem:[%s23320_s4 + $0x30] sm:$0xff] }
 0x6a2   : > { %v5835_v24 = vsel %vm5834_vm9, %v5833_v42, %v5806_v60  ;;  %v17489_v42 = vld [vmem:[%s23320_s4 + $0x28] sm:$0xff] }
 0x6a3   : > { %18348 = vmatmul.mubr.msk.f32.vlgmr.msra.gmra.mxu0 %vm23418_vm0, %v5835_v24  ;;  %v17488_v24 = vld [vmem:[%s23320_s4 + $0x20] sm:$0xff] }
 0x6a4   : > { %18393 = vmatprep.mubr.msk.f32.mxu0 %vm23415_vm1, %v19415_v11  ;;  %18362 = vmatpush3.msra.mxu0 %v6050_v34  ;;  %v17499_v34 = vld [vmem:[%s23322_s6 + $0x28] sm:$0xff] }
 0x6a5   : > { %18363 = vmatprep.subr.mxu0 %v19415_v11 }
 0x6a6   : > { %18364 = vmatpush3.msra.mxu0 %v6049_v40  ;;  %v17498_v40 = vld [vmem:[%s23322_s6 + $0x20] sm:$0xff] }
 0x6a7   : > { %18365 = vmatprep.subr.mxu0 %v19415_v11 }
 0x6a8   : > { %18366 = vmatpush3.msra.mxu0 %v6048_v55 }
 0x6a9   : > { %18367 = vmatprep.subr.mxu0 %v19415_v11 }
 0x6aa   : > { %18368 = vmatpush3.msra.mxu0 %v6047_v52 }
 0x6ab   : > { %18369 = vmatprep.subr.mxu0 %v19415_v11 }
 0x6ac   : > { %18370 = vmatpush3.msra.mxu0 %v6046_v10 }
 0x6ad   : > { %18371 = vmatprep.subr.mxu0 %v19415_v11 }
 0x6ae   : > { %18372 = vmatpush3.msra.mxu0 %v6045_v6 }
 0x6af   : > { %18373 = vmatprep.subr.mxu0 %v19415_v11 }
 0x6b0   : > { %18374 = vmatpush3.msra.mxu0 %v6044_v62 }
 0x6b1   : > { %18375 = vmatprep.subr.mxu0 %v19415_v11 }
 0x6b2   : > { %18376 = vmatpush3.msra.mxu0 %v6043_v43 }
 0x6b3   : > { %18377 = vmatprep.subr.mxu0 %v19415_v11 }
 0x6b4   : > { %18378 = vmatpush3.msra.mxu0 %v6042_v4 }
 0x6b5   : > { %18379 = vmatprep.subr.mxu0 %v19415_v11 }
 0x6b6   : > { %18380 = vmatpush3.msra.mxu0 %v6041_v61 }
 0x6b7   : > { %18381 = vmatprep.subr.mxu0 %v19415_v11 }
 0x6b8   : > { %18382 = vmatpush3.msra.mxu0 %v6040_v56 }
 0x6b9   : > { %18383 = vmatprep.subr.mxu0 %v19415_v11 }
 0x6ba   : > { %18384 = vmatpush3.msra.mxu0 %v6039_v19 }
 0x6bb   : > { %18385 = vmatprep.subr.mxu0 %v19415_v11 }
 0x6bc   : > { %18386 = vmatpush3.msra.mxu0 %v6038_v18 }
 0x6bd   : > { %18387 = vmatprep.subr.mxu0 %v19415_v11 }
 0x6be   : > { %18388 = vmatpush3.msra.mxu0 %v6037_v37 }
 0x6bf   : > { %18389 = vmatprep.subr.mxu0 %v19415_v11 }
 0x6c0   : > { %18390 = vmatpush3.msra.mxu0 %v6036_v0 }
 0x6c1   : > { %18391 = vmatprep.subr.mxu0 %v19415_v11 }
 0x6c2   : > { %18392 = vmatpush3.msra.mxu0 %v6035_v54 }
 0x6c3   : > { %18439 = vmatprep.subr.mxu0 %v19415_v11 }
 0x763   : > { %v5916_v5 = vpop.f32.mrf.mxu0 }
 0x764   : > { %v5917_v7 = vadd.f32 %v17478_v29, %v5916_v5 }
 0x765   : > { %v18349_v27 = vpop.f32.mrf.mxu0 }
 0x766   : > { %v5920_v13 = vadd.f32 %v5917_v7, %v19736_v26  ;;  %v5951_v26 = vld [vmem:[%s23327_s11 + $0x8] sm:$0xff] }
 0x767   : > { %18355 = vmatpush3.msra.mxu1 %v5951_v26  ;;  %v17501_v26 = vld [vmem:[%s23322_s6 + $0x38] sm:$0xff] }
 0x768   : > { %v5923_v14 = vsel %vm23418_vm0, %v5920_v13, 0.0  ;;  %18356 = vmatprep.subr.mxu1 %v19415_v11 }
 0x769   : > { %5924 = vadd.xlane.f32.xlu1 %v5923_v14  ;;  %18357 = vmatpush3.msra.mxu1 %v5950_v33  ;;  %v17500_v33 = vld [vmem:[%s23322_s6 + $0x30] sm:$0xff] }
 0x76a   : > { %18396 = vmatprep.subr.mxu1 %v19415_v11 }
 0x7f2   : > { %v5925_v28 = vpop.xlane.xlu1 %5924 }
 0x7f3   : > { %v5926_v17 = vmul.f32 0.03125, %v5925_v28  ;;  %v17487_v28 = vld [vmem:[%s23319_s3 + $0x1] ss:$0 sm:$0xff] }
 0x7f5   : > { %v5927_v22 = vsub.f32 %v5920_v13, %v5926_v17  ;;  %v17486_v13 = vld [vmem:[#allocation7 + $0x1] ss:$0 sm:$0xff] }
 0x7f7   : > { %v5928_v23 = vmul.f32 %v5927_v22, %v5927_v22 }
 0x7f9   : > { %v5929_v32 = vsel %vm23418_vm0, %v5928_v23, 0.0  ;;  %v17496_v23 = vld [vmem:[%s23321_s5 + $0x38] sm:$0xff] }
 0x7fa   : > { %5930 = vadd.xlane.f32.xlu0 %v5929_v32  ;;  %v17495_v32 = vld [vmem:[%s23321_s5 + $0x30] sm:$0xff] }
 0x883   : > { %v5931_v35 = vpop.xlane.xlu0 %5930 }
 0x884   : > { %v5932_v16 = vmul.f32 0.03125, %v5931_v35 }
 0x886   : > { %v5933_v25 = vadd.f32 1e-05, %v5932_v16 }
 0x888   : > { %19089 = vrsqrt.f32 %v5933_v25 }
 0x895   : > { %v19090_v12 = vpop.eup %19089 }
 0x896   : > { %v5935_v46 = vmul.f32 %v19090_v12, %v5927_v22 }
 0x898   : > { %v5942_v48 = vmul.f32 %v17480_v2, %v5935_v46 }
 0x89a   : > { %v5949_v44 = vadd.f32 %v17481_v31, %v5942_v48 }
 0x89c   : > { %18359 = vmatmul.mubr.msk.f32.vlgmr.msra.gmra.mxu1 %vm23418_vm0, %v5949_v44 }
 0x89d   : > { %18404 = vmatprep.mubr.msk.f32.mxu1 %vm23415_vm1, %v19415_v11  ;;  %18397 = vmatpush3.msra.mxu1 %v17491_v51 }
 0x89e   : > { %18398 = vmatprep.subr.mxu1 %v19415_v11 }
 0x89f   : > { %18399 = vmatpush3.msra.mxu1 %v17490_v9 }
 0x8a0   : > { %18400 = vmatprep.subr.mxu1 %v19415_v11 }
 0x8a1   : > { %18401 = vmatpush3.msra.mxu1 %v17489_v42 }
 0x8a2   : > { %18402 = vmatprep.subr.mxu1 %v19415_v11 }
 0x8a3   : > { %18403 = vmatpush3.msra.mxu1 %v17488_v24 }
 0x8a4   : > { %18407 = vmatprep.subr.mxu1 %v19415_v11 }
 0x95c   : > { %v6030_v45 = vpop.f32.mrf.mxu1 }
 0x95d   : > { %v6031_v15 = vadd.f32 %v17482_v3, %v6030_v45 }
 0x95e   : > { %v18360_v21 = vpop.f32.mrf.mxu1 }
 0x95f   : > { %v6034_v38 = vmax.f32 %v6031_v15, 0.0 }
 0x961   : > { %18394 = vmatmul.mubr.f32.vlgmr.msra.gmra.mxu0 %v6034_v38 }
 0x962   : > { %18441 = vmatprep.mubr.msk.f32.mxu0 %vm23415_vm1, %v19415_v11 }
 0xa21   : > { %v6124_v58 = vpop.f32.mrf.mxu0 }
 0xa22   : > { %v6125_v63 = vadd.f32 %v17484_v39, %v6124_v58 }
 0xa23   : > { %v18395_v8 = vpop.f32.mrf.mxu0 }
 0xa24   : > { %v6128_v1 = vadd.f32 %v6125_v63, %v5949_v44 }
 0xa26   : > { %v6133_v36 = vsel %vm23418_vm0, %v6128_v1, 0.0 }
 0xa27   : > { %6134 = vadd.xlane.f32.xlu0 %v6133_v36 }
 0xab0   : > { %v6135_v41 = vpop.xlane.xlu0 %6134 }
 0xab1   : > { %v6136_v20 = vmul.f32 0.03125, %v6135_v41 }
 0xab3   : > { %v6137_v30 = vsub.f32 %v6128_v1, %v6136_v20 }
 0xab5   : > { %v6138_v53 = vmul.f32 %v6137_v30, %v6137_v30 }
 0xab7   : > { %v6139_v60 = vsel %vm23418_vm0, %v6138_v53, 0.0 }
 0xab8   : > { %6140 = vadd.xlane.f32.xlu1 %v6139_v60 }
 0xb41   : > { %v6141_v29 = vpop.xlane.xlu1 %6140 }
 0xb42   : > { %v6142_v5 = vmul.f32 0.03125, %v6141_v29 }
 0xb44   : > { %v6143_v7 = vadd.f32 1e-05, %v6142_v5 }
 0xb46   : > { %19091 = vrsqrt.f32 %v6143_v7 }
 0xb53   : > { %v19092_v27 = vpop.eup %19091 }
 0xb54   : > { %v6145_v14 = vmul.f32 %v19092_v27, %v6137_v30 }
 0xb56   : > { %v6152_v17 = vmul.f32 %v17486_v13, %v6145_v14 }
 0xb58   : > { %v20908_v22 = vadd.f32 %v17487_v28, %v6152_v17 }
 0xb5a   : > { %18405 = vmatmul.mubr.msk.f32.vlgmr.msra.gmra.mxu1 %vm23418_vm0, %v20908_v22 }
 0xb5b   : > { %18408 = vmatpush3.msra.mxu1 %v17496_v23  ;;  %18415 = vmatprep.mubr.msk.f32.mxu1 %vm23415_vm1, %v19415_v11 }
 0xb5c   : > { %18409 = vmatprep.subr.mxu1 %v19415_v11 }
 0xb5d   : > { %18410 = vmatpush3.msra.mxu1 %v17495_v32 }
 0xb5e   : > { %18411 = vmatprep.subr.mxu1 %v19415_v11 }
 0xb5f   : > { %18412 = vmatpush3.msra.mxu1 %v17494_v59 }
 0xb60   : > { %18413 = vmatprep.subr.mxu1 %v19415_v11 }
 0xb61   : > { %18414 = vmatpush3.msra.mxu1 %v17493_v49 }
 0xb62   : > { %18416 = vmatmul.mubr.msk.f32.vlgmr.msra.gmra.mxu1 %vm23418_vm0, %v20908_v22  ;;  %18418 = vmatprep.subr.mxu1 %v19415_v11 }
 0xb63   : > { %18419 = vmatpush3.msra.mxu1 %v17501_v26  ;;  %18426 = vmatprep.mubr.msk.f32.mxu1 %vm23415_vm1, %v19415_v11 }
 0xb64   : > { %18420 = vmatprep.subr.mxu1 %v19415_v11 }
 0xb65   : > { %18421 = vmatpush3.msra.mxu1 %v17500_v33 }
 0xb66   : > { %18422 = vmatprep.subr.mxu1 %v19415_v11 }
 0xb67   : > { %18423 = vmatpush3.msra.mxu1 %v17499_v34 }
 0xb68   : > { %18424 = vmatprep.subr.mxu1 %v19415_v11 }
 0xb69   : > { %18425 = vmatpush3.msra.mxu1 %v17498_v40 }
 0xb6a   : > { %18427 = vmatmul.mubr.msk.f32.vlgmr.msra.gmra.mxu1 %vm23418_vm0, %v20908_v22  ;;  %18429 = vmatprep.subr.mxu1 %v19415_v11 }
 0xb6b   : > { %18431 = vmatprep.mubr.msk.f32.mxu1 %vm23415_vm1, %v19415_v11 }
 0xc1a   : > { %v6234_v55 = vpop.f32.mrf.mxu1 }
 0xc1b   : > { %v6238_v52 = vmul.f32 0.17677669, %v6234_v55 }
 0xc1c   : > { %v18406_v10 = vpop.f32.mrf.mxu1 }
 0xc1d   : > { %6393 = vrot.lane.b32.xlu1 %v6238_v52, %s23408_s0  ;;  %6390 = vrot.lane.b32.xlu0 %v6238_v52, %s23406_s2 }
 0xc21   : > { %6399 = vrot.lane.b32.xlu1 %v6238_v52, %s23404_s30  ;;  %6396 = vrot.lane.b32.xlu0 %v6238_v52, %s23402_s18 }
 0xc22   : > { %v20958_v6 = vpop.f32.mrf.mxu1 }
 0xc24   : > { %v18417_v62 = vpop.f32.mrf.mxu1 }
 0xc25   : > { %6405 = vrot.lane.b32.xlu1 %v6238_v52, %s23400_s24  ;;  %6402 = vrot.lane.b32.xlu0 %v6238_v52, %s23398_s16 }
 0xc29   : > { %6411 = vrot.lane.b32.xlu1 %v6238_v52, %s23396_s23  ;;  %6408 = vrot.lane.b32.xlu0 %v6238_v52, %s23455_s27 }
 0xc2a   : > { %v20964_v43 = vpop.f32.mrf.mxu1 }
 0xc2c   : > { %v18428_v4 = vpop.f32.mrf.mxu1 }
 0xc2d   : > { %6417 = vrot.lane.b32.xlu1 %v6238_v52, %s23456_s1  ;;  %6414 = vrot.lane.b32.xlu0 %v6238_v52, %s23457_s19 }
 0xc31   : > { %6420 = vrot.lane.b32.xlu0 %v6238_v52, %s23458_s15  ;;  %6983 = vrot.lane.b32.xlu1 %v20958_v6, %s23408_s0 }
 0xc35   : > { %6986 = vrot.lane.b32.xlu1 %v20958_v6, %s23402_s18  ;;  %6980 = vrot.lane.b32.xlu0 %v20958_v6, %s23406_s2 }
 0xc39   : > { %6423 = vrot.lane.b32.xlu1 %v6238_v52, %s23459_s29  ;;  %6426 = vrot.lane.b32.xlu0 %v6238_v52, %s23460_s21 }
 0xc3d   : > { %6989 = vrot.lane.b32.xlu1 %v20958_v6, %s23404_s30  ;;  %6992 = vrot.lane.b32.xlu0 %v20958_v6, %s23398_s16 }
 0xc41   : > { %6995 = vrot.lane.b32.xlu1 %v20958_v6, %s23400_s24  ;;  %6998 = vrot.lane.b32.xlu0 %v20958_v6, %s23455_s27 }
 0xc45   : > { %7001 = vrot.lane.b32.xlu1 %v20958_v6, %s23396_s23  ;;  %7004 = vrot.lane.b32.xlu0 %v20958_v6, %s23457_s19 }
 0xc49   : > { %7007 = vrot.lane.b32.xlu1 %v20958_v6, %s23456_s1  ;;  %7010 = vrot.lane.b32.xlu0 %v20958_v6, %s23458_s15 }
 0xc4d   : > { %7013 = vrot.lane.b32.xlu1 %v20958_v6, %s23459_s29  ;;  %7016 = vrot.lane.b32.xlu0 %v20958_v6, %s23460_s21 }
 0xc51   : > { %7019 = vrot.lane.b32.xlu1 %v20958_v6, %s23461_s20  ;;  %7022 = vrot.lane.b32.xlu0 %v20958_v6, %s23462_s22 }
 0xc55   : > { %6429 = vrot.lane.b32.xlu1 %v6238_v52, %s23461_s20  ;;  %6432 = vrot.lane.b32.xlu0 %v6238_v52, %s23462_s22 }
 0xc59   : > { %7573 = vrot.lane.b32.xlu1 %v20964_v43, %s23408_s0  ;;  %7570 = vrot.lane.b32.xlu0 %v20964_v43, %s23406_s2  ;;  %s23468_s2 = smov 14   ;;  %s23469_s0 = smov 12  }
 0xc5d   : > { %7576 = vrot.lane.b32.xlu1 %v20964_v43, %s23402_s18  ;;  %7582 = vrot.lane.b32.xlu0 %v20964_v43, %s23398_s16  ;;  %s23464_s16 = smov 2   ;;  %s23466_s18 = smov 10  }
 0xc61   : > { %7579 = vrot.lane.b32.xlu1 %v20964_v43, %s23404_s30  ;;  %7594 = vrot.lane.b32.xlu0 %v20964_v43, %s23457_s19  ;;  %s23467_s30 = smov 8  }
 0xc65   : > { %7585 = vrot.lane.b32.xlu1 %v20964_v43, %s23400_s24  ;;  %s23465_s24 = smov 6  }
 0xc69   : > { %7588 = vrot.lane.b32.xlu1 %v20964_v43, %s23455_s27 }
 0xc6d   : > { %7591 = vrot.lane.b32.xlu1 %v20964_v43, %s23396_s23  ;;  %s23463_s23 = smov 4  }
 0xc71   : > { %7597 = vrot.lane.b32.xlu1 %v20964_v43, %s23456_s1 }
 0xc75   : > { %7600 = vrot.lane.b32.xlu1 %v20964_v43, %s23458_s15 }
 0xc8f   : > { %v6394_v61 = vpop.permute.xlu1 %6393  ;;  %v6391_v56 = vpop.permute.xlu0 %6390 }
 0xc90   : > { %v6435_v19 = vcombine.low %v6238_v52, %v6394_v61  ;;  %v6436_v18 = vcombine.high %v6238_v52, %v6394_v61 }
 0xc92   : > { %v6443_v2 = vrot.slane %v6435_v19, %v19858_v50  ;;  %v6450_v46 = vrot.slane %v6436_v18, %v19858_v50 }
 0xc93   : > { %v6400_v35 = vpop.permute.xlu1 %6399  ;;  %v6397_v16 = vpop.permute.xlu0 %6396 }
 0xc94   : > { %v6451_v25 = vcombine.low %v6391_v56, %v6397_v16  ;;  %v6452_v12 = vcombine.high %v6391_v56, %v6397_v16 }
 0xc96   : > { %v6459_v31 = vrot.slane %v6451_v25, %v19858_v50  ;;  %v6466_v48 = vrot.slane %v6452_v12, %v19858_v50 }
 0xc97   : > { %v6406_v44 = vpop.permute.xlu1 %6405  ;;  %v6403_v37 = vpop.permute.xlu0 %6402 }
 0xc98   : > { %v6499_v0 = vcombine.low %v6443_v2, %v6459_v31  ;;  %v6500_v54 = vcombine.high %v6443_v2, %v6459_v31  ;;  %v6515_v3 = vcombine.low %v6450_v46, %v6466_v48  ;;  %v6516_v45 = vcombine.high %v6450_v46, %v6466_v48 }
 0xc99   : > { %v6467_v58 = vcombine.low %v6400_v35, %v6406_v44  ;;  %v6468_v63 = vcombine.high %v6400_v35, %v6406_v44 }
 0xc9a   : > { %v6507_v15 = vrot.slane %v6499_v0, %v19865_v57  ;;  %v6514_v21 = vrot.slane %v6500_v54, %v19865_v57  ;;  %v6523_v38 = vrot.slane %v6515_v3, %v19865_v57  ;;  %v6530_v39 = vrot.slane %v6516_v45, %v19865_v57 }
 0xc9b   : > { %v6412_v8 = vpop.permute.xlu1 %6411  ;;  %v6409_v1 = vpop.permute.xlu0 %6408  ;;  %v6475_v29 = vrot.slane %v6467_v58, %v19858_v50  ;;  %v6482_v5 = vrot.slane %v6468_v63, %v19858_v50 }
 0xc9c   : > { %v17503_v36 = vcombine.low %v6507_v15, %v6514_v21  ;;  %v17505_v41 = vcombine.high %v6507_v15, %v6514_v21  ;;  %v17507_v20 = vcombine.low %v6523_v38, %v6530_v39  ;;  %v17509_v30 = vcombine.high %v6523_v38, %v6530_v39 }
 0xc9d   : > { %v6483_v53 = vcombine.low %v6403_v37, %v6409_v1  ;;  %v6484_v60 = vcombine.high %v6403_v37, %v6409_v1 }
 0xc9e   : > { %v21034_v51 = vrot.slane %v17503_v36, %v19858_v50  ;;  %v21037_v9 = vrot.slane %v17505_v41, %v19858_v50  ;;  %v21040_v42 = vrot.slane %v17507_v20, %v19858_v50  ;;  %v21043_v24 = vrot.slane %v17509_v30, %v19858_v50 }
 0xc9f   : > { %v6491_v7 = vrot.slane %v6483_v53, %v19858_v50  ;;  %v6498_v27 = vrot.slane %v6484_v60, %v19858_v50  ;;  %v6418_v13 = vpop.permute.xlu1 %6417  ;;  %v6415_v14 = vpop.permute.xlu0 %6414 }
 0xca0   : > { %v6771_v59 = vcombine.low %v21034_v51, %v21037_v9  ;;  %v6803_v49 = vcombine.low %v21040_v42, %v21043_v24  ;;  %v6571_v26 = vcombine.low %v6412_v8, %v6418_v13  ;;  %v6572_v33 = vcombine.high %v6412_v8, %v6418_v13 }
 0xca1   : > { %v6531_v28 = vcombine.low %v6475_v29, %v6491_v7  ;;  %v6532_v17 = vcombine.high %v6475_v29, %v6491_v7  ;;  %v6547_v23 = vcombine.low %v6482_v5, %v6498_v27  ;;  %v6548_v32 = vcombine.high %v6482_v5, %v6498_v27 }
 0xca2   : > { %v6772_v4 = vcombine.high %v21034_v51, %v21037_v9  ;;  %v6804_v61 = vcombine.high %v21040_v42, %v21043_v24  ;;  %v6579_v12 = vrot.slane %v6571_v26, %v19858_v50  ;;  %v6586_v2 = vrot.slane %v6572_v33, %v19858_v50 }
 0xca3   : > { %v6539_v34 = vrot.slane %v6531_v28, %v19865_v57  ;;  %v6546_v40 = vrot.slane %v6532_v17, %v19865_v57  ;;  %v6555_v55 = vrot.slane %v6547_v23, %v19865_v57  ;;  %v6562_v52 = vrot.slane %v6548_v32, %v19865_v57  ;;  %v6421_v10 = vpop.permute.xlu0 %6420  ;;  %v6984_v62 = vpop.permute.xlu1 %6983 }
 0xca4   : > { %v6587_v56 = vcombine.low %v6415_v14, %v6421_v10  ;;  %v6588_v19 = vcombine.high %v6415_v14, %v6421_v10  ;;  %v21072_v54 = vrot.slane %v6771_v59, %v19865_v57  ;;  %v21075_v3 = vrot.slane %v6803_v49, %v19865_v57 }
 0xca5   : > { %v17504_v18 = vcombine.low %v6539_v34, %v6546_v40  ;;  %v17506_v35 = vcombine.high %v6539_v34, %v6546_v40  ;;  %v17508_v16 = vcombine.low %v6555_v55, %v6562_v52  ;;  %v17510_v25 = vcombine.high %v6555_v55, %v6562_v52 }
 0xca6   : > { %v6595_v46 = vrot.slane %v6587_v56, %v19858_v50  ;;  %v6602_v31 = vrot.slane %v6588_v19, %v19858_v50  ;;  %v7025_v63 = vcombine.low %v20958_v6, %v6984_v62  ;;  %v7026_v8 = vcombine.high %v20958_v6, %v6984_v62 }
 0xca7   : > { %v21066_v48 = vrot.slane %v17504_v18, %v19858_v50  ;;  %v21069_v44 = vrot.slane %v17506_v35, %v19858_v50  ;;  %v6987_v37 = vpop.permute.xlu1 %6986  ;;  %v6981_v0 = vpop.permute.xlu0 %6980  ;;  %v21078_v39 = vrot.slane %v17508_v16, %v19858_v50  ;;  %v21081_v58 = vrot.slane %v17510_v25, %v19858_v50 }
 0xca8   : > { %v6635_v45 = vcombine.low %v6579_v12, %v6595_v46  ;;  %v6636_v15 = vcombine.high %v6579_v12, %v6595_v46  ;;  %v6651_v21 = vcombine.low %v6586_v2, %v6602_v31  ;;  %v6652_v38 = vcombine.high %v6586_v2, %v6602_v31 }
 0xca9   : > { %v6787_v30 = vcombine.low %v21066_v48, %v21069_v44  ;;  %v6788_v53 = vcombine.high %v21066_v48, %v21069_v44  ;;  %v7041_v60 = vcombine.low %v6981_v0, %v6987_v37  ;;  %v7042_v51 = vcombine.high %v6981_v0, %v6987_v37 }
 0xcaa   : > { %v6643_v1 = vrot.slane %v6635_v45, %v19865_v57  ;;  %v6650_v36 = vrot.slane %v6636_v15, %v19865_v57  ;;  %v6659_v41 = vrot.slane %v6651_v21, %v19865_v57  ;;  %v6666_v20 = vrot.slane %v6652_v38, %v19865_v57 }
 0xcab   : > { %v21093_v9 = vpop.permute.xlu1 %6423  ;;  %v21095_v29 = vpop.permute.xlu0 %6426  ;;  %v7033_v13 = vrot.slane %v7025_v63, %v19858_v50  ;;  %v7040_v14 = vrot.slane %v7026_v8, %v19858_v50  ;;  %v7049_v28 = vrot.slane %v7041_v60, %v19858_v50  ;;  %v7056_v17 = vrot.slane %v7042_v51, %v19858_v50 }
 0xcac   : > { %v17511_v6 = vcombine.low %v6643_v1, %v6650_v36  ;;  %v17513_v5 = vcombine.high %v6643_v1, %v6650_v36  ;;  %v17515_v7 = vcombine.low %v6659_v41, %v6666_v20  ;;  %v17517_v27 = vcombine.high %v6659_v41, %v6666_v20 }
 0xcad   : > { %v7089_v26 = vcombine.low %v7033_v13, %v7049_v28  ;;  %v7090_v33 = vcombine.high %v7033_v13, %v7049_v28  ;;  %v7105_v34 = vcombine.low %v7040_v14, %v7056_v17  ;;  %v7106_v40 = vcombine.high %v7040_v14, %v7056_v17 }
 0xcae   : > { %v21102_v23 = vrot.slane %v17511_v6, %v19858_v50  ;;  %v21105_v32 = vrot.slane %v17513_v5, %v19858_v50  ;;  %v21108_v59 = vrot.slane %v17515_v7, %v19858_v50  ;;  %v21111_v49 = vrot.slane %v17517_v27, %v19858_v50 }
 0xcaf   : > { %v6990_v55 = vpop.permute.xlu1 %6989  ;;  %v6993_v52 = vpop.permute.xlu0 %6992  ;;  %v6819_v10 = vcombine.low %v21078_v39, %v21081_v58  ;;  %v6820_v62 = vcombine.high %v21078_v39, %v21081_v58  ;;  %v6835_v56 = vcombine.low %v21072_v54, %v21075_v3  ;;  %v21120_v19 = vrot.slane %v6772_v4, %v19865_v57 }
 0xcb0   : > { %v7097_v18 = vrot.slane %v7089_v26, %v19865_v57  ;;  %v7104_v35 = vrot.slane %v7090_v33, %v19865_v57  ;;  %v7113_v16 = vrot.slane %v7105_v34, %v19865_v57  ;;  %v7120_v25 = vrot.slane %v7106_v40, %v19865_v57 }
 0xcb1   : > { %v6907_v12 = vcombine.low %v21102_v23, %v21105_v32  ;;  %v6908_v2 = vcombine.high %v21102_v23, %v21105_v32  ;;  %v6939_v46 = vcombine.low %v21108_v59, %v21111_v49  ;;  %v21136_v4 = vrot.slane %v6804_v61, %v19865_v57 }
 0xcb2   : > { %v17519_v31 = vcombine.low %v7097_v18, %v7104_v35  ;;  %v17521_v37 = vcombine.high %v7097_v18, %v7104_v35  ;;  %v17523_v0 = vcombine.low %v7113_v16, %v7120_v25  ;;  %v17525_v45 = vcombine.high %v7113_v16, %v7120_v25 }
 0xcb3   : > { %v6996_v15 = vpop.permute.xlu1 %6995  ;;  %v6999_v21 = vpop.permute.xlu0 %6998 }
 0xcb4   : > { %v7057_v38 = vcombine.low %v6990_v55, %v6996_v15  ;;  %v7058_v63 = vcombine.high %v6990_v55, %v6996_v15  ;;  %v7073_v8 = vcombine.low %v6993_v52, %v6999_v21  ;;  %v7074_v1 = vcombine.high %v6993_v52, %v6999_v21 }
 0xcb5   : > { %v7305_v36 = vrot.slane %v17519_v31, %v19858_v50  ;;  %v7321_v41 = vrot.slane %v17521_v37, %v19858_v50  ;;  %v7337_v20 = vrot.slane %v17523_v0, %v19858_v50  ;;  %v7353_v42 = vrot.slane %v17525_v45, %v19858_v50 }
 0xcb6   : > { %v7065_v24 = vrot.slane %v7057_v38, %v19858_v50  ;;  %v7072_v61 = vrot.slane %v7058_v63, %v19858_v50  ;;  %v7081_v60 = vrot.slane %v7073_v8, %v19858_v50  ;;  %v7088_v51 = vrot.slane %v7074_v1, %v19858_v50 }
 0xcb7   : > { %v7361_v6 = vcombine.low %v7305_v36, %v7321_v41  ;;  %v7362_v5 = vcombine.high %v7305_v36, %v7321_v41  ;;  %v7393_v7 = vcombine.low %v7337_v20, %v7353_v42  ;;  %v7394_v27 = vcombine.high %v7337_v20, %v7353_v42  ;;  %v7002_v13 = vpop.permute.xlu1 %7001  ;;  %v7005_v14 = vpop.permute.xlu0 %7004 }
 0xcb8   : > { %v7121_v28 = vcombine.low %v7065_v24, %v7081_v60  ;;  %v7122_v17 = vcombine.high %v7065_v24, %v7081_v60  ;;  %v7137_v26 = vcombine.low %v7072_v61, %v7088_v51  ;;  %v7138_v33 = vcombine.high %v7072_v61, %v7088_v51 }
 0xcb9   : > { %v7369_v34 = vrot.slane %v7361_v6, %v19865_v57  ;;  %v7401_v40 = vrot.slane %v7393_v7, %v19865_v57  ;;  %v21149_v55 = vrot.slane %v7362_v5, %v19865_v57  ;;  %v21152_v52 = vrot.slane %v7394_v27, %v19865_v57 }
 0xcba   : > { %v7129_v18 = vrot.slane %v7121_v28, %v19865_v57  ;;  %v7136_v35 = vrot.slane %v7122_v17, %v19865_v57  ;;  %v7145_v16 = vrot.slane %v7137_v26, %v19865_v57  ;;  %v7152_v25 = vrot.slane %v7138_v33, %v19865_v57 }
 0xcbb   : > { %v6940_v31 = vcombine.high %v21108_v59, %v21111_v49  ;;  %v7425_v37 = vcombine.low %v7369_v34, %v7401_v40  ;;  %v7427_v0 = vcombine.low %v21149_v55, %v21152_v52  ;;  %v7008_v45 = vpop.permute.xlu1 %7007  ;;  %v7011_v15 = vpop.permute.xlu0 %7010  ;;  %v6836_v21 = vcombine.high %v21072_v54, %v21075_v3 }
 0xcbc   : > { %v17520_v38 = vcombine.low %v7129_v18, %v7136_v35  ;;  %v17522_v63 = vcombine.high %v7129_v18, %v7136_v35  ;;  %v17524_v8 = vcombine.low %v7145_v16, %v7152_v25  ;;  %v17526_v1 = vcombine.high %v7145_v16, %v7152_v25 }
 0xcbd   : > { %18430 = vmatpush3.xpose.msk.msra.mxu1 %vm2642_vm2, %v7425_v37  ;;  %18440 = vmatpush3.xpose.msk.msra.mxu0 %vm2642_vm2, %v7427_v0  ;;  %v7161_v36 = vcombine.low %v7002_v13, %v7008_v45  ;;  %v7162_v41 = vcombine.high %v7002_v13, %v7008_v45  ;;  %v7177_v20 = vcombine.low %v7005_v14, %v7011_v15 }
 0xcbe   : > { %v21167_v42 = vrot.slane %v17520_v38, %v19858_v50  ;;  %v21170_v24 = vrot.slane %v17522_v63, %v19858_v50  ;;  %18434 = vmatprep.subr.mxu1 %v19415_v11  ;;  %v6837_v61 = vcombine.low %v21120_v19, %v21136_v4  ;;  %v7426_v60 = vcombine.high %v7369_v34, %v7401_v40 }
 0xcbf   : > { %v7169_v51 = vrot.slane %v7161_v36, %v19858_v50  ;;  %v7176_v6 = vrot.slane %v7162_v41, %v19858_v50  ;;  %v7178_v5 = vcombine.high %v7005_v14, %v7011_v15  ;;  %v7185_v7 = vrot.slane %v7177_v20, %v19858_v50  ;;  %v7014_v27 = vpop.permute.xlu1 %7013  ;;  %v7017_v13 = vpop.permute.xlu0 %7016  ;;  %18449 = vmatprep.subr.mxu0 %v19415_v11 }
 0xcc0   : > { %v21180_v28 = vrot.slane %v17524_v8, %v19858_v50  ;;  %v21183_v17 = vrot.slane %v17526_v1, %v19858_v50  ;;  %18432 = vmatmul.mubr.msk.f32.vlgmr.msra.gmra.mxu1 %vm2642_vm2, %v6835_v56  ;;  %v21193_v14 = vrot.slane %v6787_v30, %v19865_v57  ;;  %v21199_v26 = vrot.slane %v6819_v10, %v19865_v57 }
 0xcc1   : > { %v7192_v33 = vrot.slane %v7178_v5, %v19858_v50  ;;  %v7225_v34 = vcombine.low %v7169_v51, %v7185_v7  ;;  %v7226_v40 = vcombine.high %v7169_v51, %v7185_v7  ;;  %18442 = vmatmul.mubr.msk.f32.vlgmr.msra.gmra.mxu0 %vm2642_vm2, %v6837_v61  ;;  %18435 = vmatpush3.xpose.msk.msra.mxu1 %vm2642_vm2, %v7426_v60 }
 0xcc2   : > { %v7377_v54 = vcombine.low %v21167_v42, %v21170_v24  ;;  %18436 = vmatprep.mubr.msk.f32.mxu1 %vm23415_vm1, %v19415_v11  ;;  %18444 = vmatprep.subr.mxu1 %v19415_v11  ;;  %v7428_v3 = vcombine.high %v21149_v55, %v21152_v52  ;;  %v6838_v30 = vcombine.high %v21120_v19, %v21136_v4 }
 0xcc3   : > { %v7233_v10 = vrot.slane %v7225_v34, %v19865_v57  ;;  %v7240_v56 = vrot.slane %v7226_v40, %v19865_v57  ;;  %v7241_v18 = vcombine.low %v7176_v6, %v7192_v33  ;;  %v7242_v35 = vcombine.high %v7176_v6, %v7192_v33  ;;  %v7020_v16 = vpop.permute.xlu1 %7019  ;;  %v7023_v25 = vpop.permute.xlu0 %7022  ;;  %18451 = vmatprep.mubr.msk.f32.mxu0 %vm23415_vm1, %v19415_v11 }
 0xcc4   : > { %18437 = vmatmul.mubr.msk.f32.vlgmr.msra.gmra.mxu1 %vm2642_vm2, %v6836_v21  ;;  %v7193_v37 = vcombine.low %v7014_v27, %v7020_v16  ;;  %v7194_v0 = vcombine.high %v7014_v27, %v7020_v16  ;;  %v7209_v45 = vcombine.low %v7017_v13, %v7023_v25  ;;  %v7210_v55 = vcombine.high %v7017_v13, %v7023_v25 }
 0xcc5   : > { %v7249_v52 = vrot.slane %v7241_v18, %v19865_v57  ;;  %v7256_v19 = vrot.slane %v7242_v35, %v19865_v57  ;;  %v17527_v4 = vcombine.low %v7233_v10, %v7240_v56  ;;  %v17529_v15 = vcombine.high %v7233_v10, %v7240_v56  ;;  %18445 = vmatpush3.xpose.msk.msra.mxu1 %vm2642_vm2, %v7428_v3 }
 0xcc6   : > { %v7201_v38 = vrot.slane %v7193_v37, %v19858_v50  ;;  %v7208_v63 = vrot.slane %v7194_v0, %v19858_v50  ;;  %v7217_v8 = vrot.slane %v7209_v45, %v19858_v50  ;;  %v7224_v21 = vrot.slane %v7210_v55, %v19858_v50  ;;  %18446 = vmatprep.mubr.msk.f32.mxu1 %vm23415_vm1, %v19415_v11 }
 0xcc7   : > { %v7378_v1 = vcombine.high %v21167_v42, %v21170_v24  ;;  %v7409_v36 = vcombine.low %v21180_v28, %v21183_v17  ;;  %v17531_v41 = vcombine.low %v7249_v52, %v7256_v19  ;;  %v17533_v20 = vcombine.high %v7249_v52, %v7256_v19  ;;  %18454 = vmatprep.subr.mxu1 %v19415_v11  ;;  %v6430_v5 = vpop.permute.xlu1 %6429  ;;  %v6433_v35 = vpop.permute.xlu0 %6432 }
 0xcc8   : > { %v7257_v61 = vcombine.low %v7201_v38, %v7217_v8  ;;  %v7258_v60 = vcombine.high %v7201_v38, %v7217_v8  ;;  %v7273_v51 = vcombine.low %v7208_v63, %v7224_v21  ;;  %v7274_v6 = vcombine.high %v7208_v63, %v7224_v21  ;;  %18447 = vmatmul.mubr.msk.f32.vlgmr.msra.gmra.mxu1 %vm2642_vm2, %v6838_v30 }
 0xcc9   : > { %v7410_v7 = vcombine.high %v21180_v28, %v21183_v17  ;;  %v21236_v27 = vrot.slane %v17527_v4, %v19858_v50  ;;  %v21239_v42 = vrot.slane %v17529_v15, %v19858_v50  ;;  %v7385_v24 = vrot.slane %v7377_v54, %v19865_v57  ;;  %18456 = vmatprep.mubr.msk.f32.mxu1 %vm23415_vm1, %v19415_v11 }
 0xcca   : > { %v7265_v13 = vrot.slane %v7257_v61, %v19865_v57  ;;  %v7272_v33 = vrot.slane %v7258_v60, %v19865_v57  ;;  %v7281_v34 = vrot.slane %v7273_v51, %v19865_v57  ;;  %v7288_v40 = vrot.slane %v7274_v6, %v19865_v57 }
 0xccb   : > { %v21249_v28 = vrot.slane %v17531_v41, %v19858_v50  ;;  %v21252_v17 = vrot.slane %v17533_v20, %v19858_v50  ;;  %v7417_v3 = vrot.slane %v7409_v36, %v19865_v57  ;;  %v6603_v54 = vcombine.low %v21093_v9, %v6430_v5  ;;  %v7574_v61 = vpop.permute.xlu1 %7573 }
 0xccc   : > { %v17528_v30 = vcombine.low %v7265_v13, %v7272_v33  ;;  %v17530_v10 = vcombine.high %v7265_v13, %v7272_v33  ;;  %v17532_v56 = vcombine.low %v7281_v34, %v7288_v40  ;;  %v17534_v18 = vcombine.high %v7281_v34, %v7288_v40 }
 0xccd   : > { %v7497_v16 = vcombine.low %v21236_v27, %v21239_v42  ;;  %v7429_v25 = vcombine.low %v7385_v24, %v7417_v3  ;;  %v7430_v37 = vcombine.high %v7385_v24, %v7417_v3  ;;  %v6604_v0 = vcombine.high %v21093_v9, %v6430_v5 }
 0xcce   : > { %v7498_v45 = vcombine.high %v21236_v27, %v21239_v42  ;;  %v21262_v55 = vrot.slane %v17528_v30, %v19858_v50  ;;  %v21265_v52 = vrot.slane %v17530_v10, %v19858_v50  ;;  %v6611_v19 = vrot.slane %v6603_v54, %v19858_v50 }
 0xccf   : > { %18450 = vmatpush3.xpose.msk.msra.mxu0 %vm2642_vm2, %v7429_v25  ;;  %18455 = vmatpush3.xpose.msk.msra.mxu1 %vm2642_vm2, %v7430_v37  ;;  %v6618_v4 = vrot.slane %v6604_v0, %v19858_v50  ;;  %v6619_v15 = vcombine.low %v21095_v29, %v6433_v35  ;;  %v6620_v9 = vcombine.high %v21095_v29, %v6433_v35 }
 0xcd0   : > { %v7529_v38 = vcombine.low %v21249_v28, %v21252_v17  ;;  %v7530_v63 = vcombine.high %v21249_v28, %v21252_v17  ;;  %v21278_v8 = vrot.slane %v17532_v56, %v19858_v50  ;;  %v21281_v21 = vrot.slane %v17534_v18, %v19858_v50  ;;  %18459 = vmatprep.subr.mxu0 %v19415_v11 }
 0xcd1   : > { %v7513_v36 = vcombine.low %v21262_v55, %v21265_v52  ;;  %v6627_v41 = vrot.slane %v6619_v15, %v19858_v50  ;;  %v6634_v29 = vrot.slane %v6620_v9, %v19858_v50  ;;  %v6839_v20 = vcombine.low %v21193_v14, %v21199_v26  ;;  %18464 = vmatprep.subr.mxu1 %v19415_v11 }
 0xcd2   : > { %v7514_v60 = vcombine.high %v21262_v55, %v21265_v52  ;;  %v6840_v51 = vcombine.high %v21193_v14, %v21199_v26  ;;  %v7392_v6 = vrot.slane %v7378_v1, %v19865_v57  ;;  %v7424_v5 = vrot.slane %v7410_v7, %v19865_v57 }
 0xcd3   : > { %v6667_v24 = vcombine.low %v6611_v19, %v6627_v41  ;;  %v6668_v13 = vcombine.high %v6611_v19, %v6627_v41  ;;  %v6683_v33 = vcombine.low %v6618_v4, %v6634_v29  ;;  %v6684_v34 = vcombine.high %v6618_v4, %v6634_v29  ;;  %18452 = vmatmul.mubr.msk.f32.vlgmr.msra.gmra.mxu0 %vm2642_vm2, %v6839_v20  ;;  %v7577_v19 = vpop.permute.xlu1 %7576 }
 0xcd4   : > { %18457 = vmatmul.mubr.msk.f32.vlgmr.msra.gmra.mxu1 %vm2642_vm2, %v6840_v51  ;;  %v7431_v40 = vcombine.low %v7392_v6, %v7424_v5  ;;  %v7432_v3 = vcombine.high %v7392_v6, %v7424_v5  ;;  %v7615_v54 = vcombine.low %v20964_v43, %v7574_v61  ;;  %v7616_v30 = vcombine.high %v20964_v43, %v7574_v61 }
 0xcd5   : > { %v6675_v14 = vrot.slane %v6667_v24, %v19865_v57  ;;  %v6682_v26 = vrot.slane %v6668_v13, %v19865_v57  ;;  %v6691_v1 = vrot.slane %v6683_v33, %v19865_v57  ;;  %v6698_v7 = vrot.slane %v6684_v34, %v19865_v57  ;;  %18461 = vmatprep.mubr.msk.f32.mxu0 %vm23415_vm1, %v19415_v11 }
 0xcd6   : > { %18460 = vmatpush3.xpose.msk.msra.mxu0 %vm2642_vm2, %v7431_v40  ;;  %18465 = vmatpush3.xpose.msk.msra.mxu1 %vm2642_vm2, %v7432_v3  ;;  %v6802_v10 = vrot.slane %v6788_v53, %v19865_v57  ;;  %v6834_v56 = vrot.slane %v6820_v62, %v19865_v57  ;;  %v7505_v18 = vrot.slane %v7497_v16, %v19865_v57  ;;  %v7571_v62 = vpop.permute.xlu0 %7570 }
 0xcd7   : > { %v17512_v35 = vcombine.low %v6675_v14, %v6682_v26  ;;  %v17514_v25 = vcombine.high %v6675_v14, %v6682_v26  ;;  %v17516_v37 = vcombine.low %v6691_v1, %v6698_v7  ;;  %v17518_v0 = vcombine.high %v6691_v1, %v6698_v7  ;;  %18466 = vmatprep.mubr.msk.f32.mxu1 %vm23415_vm1, %v19415_v11 }
 0xcd8   : > { %v6841_v4 = vcombine.low %v6802_v10, %v6834_v56  ;;  %v6842_v15 = vcombine.high %v6802_v10, %v6834_v56  ;;  %18469 = vmatprep.subr.mxu0 %v19415_v11  ;;  %18474 = vmatprep.subr.mxu1 %v19415_v11  ;;  %v7537_v48 = vrot.slane %v7529_v38, %v19865_v57 }
 0xcd9   : > { %v7545_v44 = vcombine.low %v21278_v8, %v21281_v21  ;;  %v21326_v39 = vrot.slane %v17512_v35, %v19858_v50  ;;  %v21329_v58 = vrot.slane %v17514_v25, %v19858_v50  ;;  %v7623_v53 = vrot.slane %v7615_v54, %v19858_v50 }
 0xcda   : > { %18462 = vmatmul.mubr.msk.f32.vlgmr.msra.gmra.mxu0 %vm2642_vm2, %v6841_v4  ;;  %18467 = vmatmul.mubr.msk.f32.vlgmr.msra.gmra.mxu1 %vm2642_vm2, %v6842_v15  ;;  %v7561_v16 = vcombine.low %v7505_v18, %v7537_v48  ;;  %v7562_v9 = vcombine.high %v7505_v18, %v7537_v48  ;;  %v7631_v41 = vcombine.low %v7571_v62, %v7577_v19 }
 0xcdb   : > { %v21335_v38 = vrot.slane %v17516_v37, %v19858_v50  ;;  %v21338_v29 = vrot.slane %v17518_v0, %v19858_v50  ;;  %v6923_v20 = vcombine.low %v21326_v39, %v21329_v58  ;;  %v7630_v61 = vrot.slane %v7616_v30, %v19858_v50  ;;  %18471 = vmatprep.mubr.msk.f32.mxu0 %vm23415_vm1, %v19415_v11 }
 0xcdc   : > { %18470 = vmatpush3.xpose.msk.msra.mxu0 %vm2642_vm2, %v7561_v16  ;;  %18475 = vmatpush3.xpose.msk.msra.mxu1 %vm2642_vm2, %v7562_v9  ;;  %v7632_v51 = vcombine.high %v7571_v62, %v7577_v19  ;;  %v7639_v6 = vrot.slane %v7631_v41, %v19858_v50  ;;  %v6915_v5 = vrot.slane %v6907_v12, %v19865_v57 }
 0xcdd   : > { %18476 = vmatprep.mubr.msk.f32.mxu1 %vm23415_vm1, %v19415_v11  ;;  %v6947_v24 = vrot.slane %v6939_v46, %v19865_v57  ;;  %18479 = vmatprep.subr.mxu0 %v19415_v11  ;;  %v7512_v13 = vrot.slane %v7498_v45, %v19865_v57  ;;  %v7544_v12 = vrot.slane %v7530_v63, %v19865_v57 }
 0xcde   : > { %v7646_v33 = vrot.slane %v7632_v51, %v19858_v50  ;;  %v7679_v34 = vcombine.low %v7623_v53, %v7639_v6  ;;  %v7680_v40 = vcombine.high %v7623_v53, %v7639_v6  ;;  %18484 = vmatprep.subr.mxu1 %v19415_v11  ;;  %v6922_v46 = vrot.slane %v6908_v2, %v19865_v57 }
 0xcdf   : > { %v6971_v3 = vcombine.low %v6915_v5, %v6947_v24  ;;  %v6972_v54 = vcombine.high %v6915_v5, %v6947_v24  ;;  %v7563_v27 = vcombine.low %v7512_v13, %v7544_v12  ;;  %v7564_v42 = vcombine.high %v7512_v13, %v7544_v12 }
 0xce0   : > { %v7687_v45 = vrot.slane %v7679_v34, %v19865_v57  ;;  %v7694_v28 = vrot.slane %v7680_v40, %v19865_v57  ;;  %v7695_v17 = vcombine.low %v7630_v61, %v7646_v33  ;;  %v7696_v63 = vcombine.high %v7630_v61, %v7646_v33 }
 0xce1   : > { %18472 = vmatmul.mubr.msk.f32.vlgmr.msra.gmra.mxu0 %vm2642_vm2, %v6971_v3  ;;  %18477 = vmatmul.mubr.msk.f32.vlgmr.msra.gmra.mxu1 %vm2642_vm2, %v6972_v54  ;;  %v6954_v23 = vrot.slane %v6940_v31, %v19865_v57  ;;  %v7521_v32 = vrot.slane %v7513_v36, %v19865_v57  ;;  %v7553_v2 = vrot.slane %v7545_v44, %v19865_v57 }
 0xce2   : > { %v7546_v30 = vcombine.high %v21278_v8, %v21281_v21  ;;  %v6924_v14 = vcombine.high %v21326_v39, %v21329_v58  ;;  %v6955_v26 = vcombine.low %v21335_v38, %v21338_v29  ;;  %v6956_v59 = vcombine.high %v21335_v38, %v21338_v29  ;;  %18480 = vmatpush3.xpose.msk.msra.mxu0 %vm2642_vm2, %v7563_v27 }
 0xce3   : > { %v7703_v49 = vrot.slane %v7695_v17, %v19865_v57  ;;  %18485 = vmatpush3.xpose.msk.msra.mxu1 %vm2642_vm2, %v7564_v42  ;;  %18481 = vmatprep.mubr.msk.f32.mxu0 %vm23415_vm1, %v19415_v11  ;;  %v6973_v31 = vcombine.low %v6922_v46, %v6954_v23  ;;  %v7565_v8 = vcombine.low %v7521_v32, %v7553_v2 }
 0xce4   : > { %v7710_v21 = vrot.slane %v7696_v63, %v19865_v57  ;;  %18486 = vmatprep.mubr.msk.f32.mxu1 %vm23415_vm1, %v19415_v11  ;;  %v6974_v36 = vcombine.high %v6922_v46, %v6954_v23  ;;  %18489 = vmatprep.subr.mxu0 %v19415_v11  ;;  %v7566_v1 = vcombine.high %v7521_v32, %v7553_v2 }
 0xce5   : > { %v17535_v7 = vcombine.low %v7687_v45, %v7694_v28  ;;  %v17537_v10 = vcombine.high %v7687_v45, %v7694_v28  ;;  %18482 = vmatmul.mubr.msk.f32.vlgmr.msra.gmra.mxu0 %vm2642_vm2, %v6973_v31  ;;  %18494 = vmatprep.subr.mxu1 %v19415_v11  ;;  %v6931_v56 = vrot.slane %v6923_v20, %v19865_v57 }
 0xce6   : > { %18487 = vmatmul.mubr.msk.f32.vlgmr.msra.gmra.mxu1 %vm2642_vm2, %v6974_v36  ;;  %18490 = vmatpush3.xpose.msk.msra.mxu0 %vm2642_vm2, %v7565_v8  ;;  %v6963_v18 = vrot.slane %v6955_v26, %v19865_v57  ;;  %v7528_v35 = vrot.slane %v7514_v60, %v19865_v57  ;;  %v7560_v25 = vrot.slane %v7546_v30, %v19865_v57 }
 0xce7   : > { %18495 = vmatpush3.xpose.msk.msra.mxu1 %vm2642_vm2, %v7566_v1  ;;  %18491 = vmatprep.mubr.msk.f32.mxu0 %vm23415_vm1, %v19415_v11  ;;  %v17539_v37 = vcombine.low %v7703_v49, %v7710_v21  ;;  %v17541_v4 = vcombine.high %v7703_v49, %v7710_v21  ;;  %v6938_v60 = vrot.slane %v6924_v14, %v19865_v57 }
 0xce8   : > { %18496 = vmatprep.mubr.msk.f32.mxu1 %vm23415_vm1, %v19415_v11  ;;  %18499 = vmatprep.subr.mxu0 %v19415_v11  ;;  %v6975_v0 = vcombine.low %v6931_v56, %v6963_v18  ;;  %v6976_v19 = vcombine.high %v6931_v56, %v6963_v18  ;;  %v7567_v55 = vcombine.low %v7528_v35, %v7560_v25 }
 0xce9   : > { %18504 = vmatprep.subr.mxu1 %v19415_v11  ;;  %v7568_v52 = vcombine.high %v7528_v35, %v7560_v25  ;;  %v6970_v15 = vrot.slane %v6956_v59, %v19865_v57  ;;  %v7895_v48 = vrot.slane %v17535_v7, %v19858_v50  ;;  %v7911_v44 = vrot.slane %v17537_v10, %v19858_v50 }
 0xcea   : > { %18492 = vmatmul.mubr.msk.f32.vlgmr.msra.gmra.mxu0 %vm2642_vm2, %v6975_v0  ;;  %18497 = vmatmul.mubr.msk.f32.vlgmr.msra.gmra.mxu1 %vm2642_vm2, %v6976_v19  ;;  %v7927_v53 = vrot.slane %v17539_v37, %v19858_v50  ;;  %v7943_v62 = vrot.slane %v17541_v4, %v19858_v50 }
 0xceb   : > { %18500 = vmatpush3.xpose.msk.msra.mxu0 %vm2642_vm2, %v7567_v55  ;;  %18505 = vmatpush3.xpose.msk.msra.mxu1 %vm2642_vm2, %v7568_v52  ;;  %v6977_v39 = vcombine.low %v6938_v60, %v6970_v15  ;;  %v6978_v58 = vcombine.high %v6938_v60, %v6970_v15  ;;  %v7951_v16 = vcombine.low %v7895_v48, %v7911_v44 }
 0xcec   : > { %18501 = vmatprep.mubr.msk.f32.mxu0 %vm23415_vm1, %v19415_v11  ;;  %18506 = vmatprep.mubr.msk.f32.mxu1 %vm23415_vm1, %v19415_v11  ;;  %v7983_v41 = vcombine.low %v7927_v53, %v7943_v62  ;;  %v7952_v29 = vcombine.high %v7895_v48, %v7911_v44  ;;  %v7984_v20 = vcombine.high %v7927_v53, %v7943_v62 }
 0xced   : > { %18509 = vmatprep.subr.mxu0 %v19415_v11  ;;  %18514 = vmatprep.subr.mxu1 %v19415_v11  ;;  %v7959_v9 = vrot.slane %v7951_v16, %v19865_v57 }
 0xcee   : > { %18502 = vmatmul.mubr.msk.f32.vlgmr.msra.gmra.mxu0 %vm2642_vm2, %v6977_v39  ;;  %18507 = vmatmul.mubr.msk.f32.vlgmr.msra.gmra.mxu1 %vm2642_vm2, %v6978_v58  ;;  %v7991_v38 = vrot.slane %v7983_v41, %v19865_v57  ;;  %v21446_v6 = vrot.slane %v7952_v29, %v19865_v57  ;;  %v21449_v5 = vrot.slane %v7984_v20, %v19865_v57 }
 0xcef   : > { %18511 = vmatprep.mubr.msk.f32.mxu0 %vm23415_vm1, %v19415_v11  ;;  %18516 = vmatprep.mubr.msk.f32.mxu1 %vm23415_vm1, %v19415_v11 }
 0xcf0   : > { %v8015_v61 = vcombine.low %v7959_v9, %v7991_v38  ;;  %v8016_v51 = vcombine.high %v7959_v9, %v7991_v38  ;;  %v8017_v24 = vcombine.low %v21446_v6, %v21449_v5  ;;  %v8018_v13 = vcombine.high %v21446_v6, %v21449_v5 }
 0xcf2   : > { %18510 = vmatpush3.msra.mxu0 %v8015_v61  ;;  %18515 = vmatpush3.msra.mxu1 %v8016_v51 }
 0xcf3   : > { %18519 = vmatprep.subr.mxu0 %v19415_v11  ;;  %18524 = vmatprep.subr.mxu1 %v19415_v11 }
 0xd80   : > { %v8231_v12 = vpop.f32.mrf.mxu1 }
 0xd81   : > { %v21458_v33 = vadd.f32 %v8231_v12, %v20302_v47  ;;  %v8383_v34 = vpop.f32.mrf.mxu0 }
 0xd82   : > { %v21461_v40 = vadd.f32 %v8383_v34, %v20302_v47  ;;  %v18433_v46 = vpop.f32.mrf.mxu1 }
 0xd83   : > { %v18443_v3 = vpop.f32.mrf.mxu0  ;;  %v9375_v54 = vsel %vm3859_vm4, %v21458_v33, -inf }
 0xd84   : > { %v9381_v27 = vsel %vm3859_vm4, %v21461_v40, -inf  ;;  %9376 = vmax.xlane.f32.xlu1 %v9375_v54  ;;  %v8307_v42 = vpop.f32.mrf.mxu1 }
 0xd85   : > { %9382 = vmax.xlane.f32.xlu0 %v9381_v27  ;;  %v21468_v45 = vadd.f32 %v8307_v42, %v20302_v47 }
 0xd86   : > { %v18438_v28 = vpop.f32.mrf.mxu1 }
 0xd87   : > { %v9378_v17 = vsel %vm3859_vm4, %v21468_v45, -inf }
 0xd88   : > { %v8459_v63 = vpop.f32.mrf.mxu1 }
 0xd89   : > { %9379 = vmax.xlane.f32.xlu0 %v9378_v17  ;;  %v21473_v23 = vadd.f32 %v8459_v63, %v20302_v47 }
 0xd8a   : > { %v18448_v32 = vpop.f32.mrf.mxu1 }
 0xd8b   : > { %v9384_v2 = vsel %vm3859_vm4, %v21473_v23, -inf  ;;  %v21541_v32 = vpop.permute.xlu1 %7579 }
 0xd8c   : > { %9385 = vmax.xlane.f32.xlu1 %v9384_v2 }
 0xd8f   : > { %v21543_v2 = vpop.permute.xlu1 %7585 }
 0xd93   : > { %v8535_v30 = vpop.f32.mrf.mxu0 }
 0xd94   : > { %v21478_v14 = vadd.f32 %v8535_v30, %v20302_v47  ;;  %v8611_v26 = vpop.f32.mrf.mxu1  ;;  %v21545_v30 = vpop.permute.xlu1 %7588 }
 0xd95   : > { %v21481_v59 = vadd.f32 %v8611_v26, %v20302_v47  ;;  %v18453_v49 = vpop.f32.mrf.mxu0 }
 0xd96   : > { %v18458_v31 = vpop.f32.mrf.mxu1  ;;  %v9387_v8 = vsel %vm3859_vm4, %v21478_v14, -inf }
 0xd97   : > { %9388 = vmax.xlane.f32.xlu0 %v9387_v8  ;;  %v9390_v21 = vsel %vm3859_vm4, %v21481_v59, -inf  ;;  %v21551_v31 = vpop.permute.xlu0 %7582 }
 0xd98   : > { %9391 = vmax.xlane.f32.xlu1 %v9390_v21  ;;  %v21547_v26 = vpop.permute.xlu1 %7591 }
 0xd9a   : > { %v8687_v36 = vpop.f32.mrf.mxu0  ;;  %v8763_v1 = vpop.f32.mrf.mxu1 }
 0xd9b   : > { %v21488_v7 = vadd.f32 %v8687_v36, %v20302_v47  ;;  %v21491_v10 = vadd.f32 %v8763_v1, %v20302_v47  ;;  %v21555_v21 = vpop.permute.xlu0 %7594 }
 0xd9c   : > { %v18463_v56 = vpop.f32.mrf.mxu0  ;;  %v18468_v18 = vpop.f32.mrf.mxu1 }
 0xd9d   : > { %v9393_v35 = vsel %vm3859_vm4, %v21488_v7, -inf  ;;  %v9396_v25 = vsel %vm3859_vm4, %v21491_v10, -inf  ;;  %v21549_v49 = vpop.permute.xlu1 %7597 }
 0xd9e   : > { %9394 = vmax.xlane.f32.xlu0 %v9393_v35  ;;  %9397 = vmax.xlane.f32.xlu1 %v9396_v25 }
 0xda1   : > { %v8839_v37 = vpop.f32.mrf.mxu0  ;;  %v8915_v0 = vpop.f32.mrf.mxu1 }
 0xda2   : > { %v21498_v19 = vadd.f32 %v8839_v37, %v20302_v47  ;;  %v21501_v4 = vadd.f32 %v8915_v0, %v20302_v47  ;;  %v21553_v8 = vpop.permute.xlu1 %7600 }
 0xda3   : > { %v18473_v55 = vpop.f32.mrf.mxu0  ;;  %v18478_v52 = vpop.f32.mrf.mxu1 }
 0xda4   : > { %v9399_v60 = vsel %vm3859_vm4, %v21498_v19, -inf  ;;  %v9402_v15 = vsel %vm3859_vm4, %v21501_v4, -inf }
 0xda5   : > { %v8991_v48 = vpop.f32.mrf.mxu0  ;;  %9400 = vmax.xlane.f32.xlu0 %v9399_v60  ;;  %9403 = vmax.xlane.f32.xlu1 %v9402_v15 }
 0xda6   : > { %v21508_v44 = vadd.f32 %v8991_v48, %v20302_v47  ;;  %v9067_v39 = vpop.f32.mrf.mxu1 }
 0xda7   : > { %v21511_v58 = vadd.f32 %v9067_v39, %v20302_v47  ;;  %v18483_v53 = vpop.f32.mrf.mxu0 }
 0xda8   : > { %v18488_v62 = vpop.f32.mrf.mxu1  ;;  %v9405_v16 = vsel %vm3859_vm4, %v21508_v44, -inf }
 0xda9   : > { %9406 = vmax.xlane.f32.xlu0 %v9405_v16  ;;  %v9408_v9 = vsel %vm3859_vm4, %v21511_v58, -inf }
 0xdaa   : > { %9409 = vmax.xlane.f32.xlu1 %v9408_v9  ;;  %v9143_v41 = vpop.f32.mrf.mxu0  ;;  %v9219_v38 = vpop.f32.mrf.mxu1 }
 0xdab   : > { %v21518_v29 = vadd.f32 %v9143_v41, %v20302_v47  ;;  %v21521_v20 = vadd.f32 %v9219_v38, %v20302_v47 }
 0xdac   : > { %v18493_v61 = vpop.f32.mrf.mxu0  ;;  %v18498_v51 = vpop.f32.mrf.mxu1 }
 0xdad   : > { %v9411_v12 = vsel %vm3859_vm4, %v21518_v29, -inf  ;;  %v9414_v34 = vsel %vm3859_vm4, %v21521_v20, -inf }
 0xdae   : > { %v9295_v46 = vpop.f32.mrf.mxu0  ;;  %9412 = vmax.xlane.f32.xlu0 %v9411_v12  ;;  %9415 = vmax.xlane.f32.xlu1 %v9414_v34  ;;  %v9371_v3 = vpop.f32.mrf.mxu1 }
 0xdaf   : > { %v21528_v54 = vadd.f32 %v9295_v46, %v20302_v47  ;;  %v21531_v27 = vadd.f32 %v9371_v3, %v20302_v47 }
 0xdb0   : > { %v18503_v42 = vpop.f32.mrf.mxu0  ;;  %v18508_v28 = vpop.f32.mrf.mxu1 }
 0xdb1   : > { %v9417_v17 = vsel %vm3859_vm4, %v21528_v54, -inf  ;;  %v9420_v63 = vsel %vm3859_vm4, %v21531_v27, -inf }
 0xdb2   : > { %9418 = vmax.xlane.f32.xlu0 %v9417_v17  ;;  %9421 = vmax.xlane.f32.xlu1 %v9420_v63 }
 0xdc3   : > { %7606 = vrot.lane.b32.xlu1 %v20964_v43, %s23460_s21 }
 0xdc8   : > { %7603 = vrot.lane.b32.xlu0 %v20964_v43, %s23459_s29 }
 0xe0d   : > { %v9377_v36 = vpop.xlane.xlu1 %9376 }
 0xe0e   : > { %v9383_v1 = vpop.xlane.xlu0 %9382  ;;  %v9423_v56 = vsub.f32 %v21458_v33, %v9377_v36 }
 0xe0f   : > { %v9425_v18 = vsub.f32 %v21461_v40, %v9383_v1 }
 0xe10   : > { %v9439_v35 = vmul.f32 1.442695, %v9423_v56 }
 0xe11   : > { %v9443_v25 = vmul.f32 1.442695, %v9425_v18 }
 0xe12   : > { %19093 = vpow2.f32 %v9439_v35  ;;  %v9380_v37 = vpop.xlane.xlu0 %9379 }
 0xe13   : > { %v9424_v0 = vsub.f32 %v21468_v45, %v9380_v37  ;;  %19095 = vpow2.f32 %v9443_v25 }
 0xe15   : > { %v9441_v55 = vmul.f32 1.442695, %v9424_v0  ;;  %v9386_v52 = vpop.xlane.xlu1 %9385 }
 0xe16   : > { %v9426_v60 = vsub.f32 %v21473_v23, %v9386_v52 }
 0xe17   : > { %19097 = vpow2.f32 %v9441_v55 }
 0xe18   : > { %v9445_v15 = vmul.f32 1.442695, %v9426_v60 }
 0xe1a   : > { %19099 = vpow2.f32 %v9445_v15 }
 0xe1f   : > { %v21561_v48 = vpop.eup %19093 }
 0xe20   : > { %v9389_v39 = vpop.xlane.xlu0 %9388  ;;  %v9471_v33 = vsel %vm3859_vm4, %v21561_v48, 0.0  ;;  %v21565_v40 = vpop.eup %19095 }
 0xe21   : > { %v9427_v53 = vsub.f32 %v21478_v14, %v9389_v39  ;;  %v9392_v62 = vpop.xlane.xlu1 %9391  ;;  %9472 = vadd.xlane.f32.xlu0 %v9471_v33  ;;  %v9477_v41 = vsel %vm3859_vm4, %v21565_v40, 0.0 }
 0xe22   : > { %v9428_v45 = vsub.f32 %v21481_v59, %v9392_v62 }
 0xe23   : > { %v9447_v16 = vmul.f32 1.442695, %v9427_v53 }
 0xe24   : > { %v21569_v9 = vpop.eup %19097  ;;  %v9449_v23 = vmul.f32 1.442695, %v9428_v45 }
 0xe25   : > { %19101 = vpow2.f32 %v9447_v16  ;;  %9478 = vadd.xlane.f32.xlu0 %v9477_v41  ;;  %v9474_v38 = vsel %vm3859_vm4, %v21569_v9, 0.0 }
 0xe26   : > { %19103 = vpow2.f32 %v9449_v23  ;;  %9475 = vadd.xlane.f32.xlu1 %v9474_v38 }
 0xe27   : > { %v21575_v61 = vpop.eup %19099  ;;  %v9395_v14 = vpop.xlane.xlu0 %9394 }
 0xe28   : > { %v9398_v51 = vpop.xlane.xlu1 %9397  ;;  %v9429_v59 = vsub.f32 %v21488_v7, %v9395_v14  ;;  %v9480_v34 = vsel %vm3859_vm4, %v21575_v61, 0.0 }
 0xe29   : > { %v9430_v12 = vsub.f32 %v21491_v10, %v9398_v51 }
 0xe2a   : > { %v9451_v46 = vmul.f32 1.442695, %v9429_v59  ;;  %9481 = vadd.xlane.f32.xlu1 %v9480_v34 }
 0xe2b   : > { %v9453_v3 = vmul.f32 1.442695, %v9430_v12 }
 0xe2c   : > { %19105 = vpow2.f32 %v9451_v46 }
 0xe2d   : > { %19107 = vpow2.f32 %v9453_v3 }
 0xe2e   : > { %v9401_v42 = vpop.xlane.xlu0 %9400  ;;  %v9404_v28 = vpop.xlane.xlu1 %9403 }
 0xe2f   : > { %v9431_v17 = vsub.f32 %v21498_v19, %v9401_v42  ;;  %v9432_v36 = vsub.f32 %v21501_v4, %v9404_v28 }
 0xe31   : > { %v9455_v63 = vmul.f32 1.442695, %v9431_v17  ;;  %v9457_v37 = vmul.f32 1.442695, %v9432_v36 }
 0xe32   : > { %v21583_v1 = vpop.eup %19101  ;;  %v9407_v7 = vpop.xlane.xlu0 %9406 }
 0xe33   : > { %v21585_v56 = vpop.eup %19103  ;;  %19109 = vpow2.f32 %v9455_v63  ;;  %v9433_v10 = vsub.f32 %v21508_v44, %v9407_v7  ;;  %v9410_v18 = vpop.xlane.xlu1 %9409  ;;  %v9483_v35 = vsel %vm3859_vm4, %v21583_v1, 0.0 }
 0xe34   : > { %v9434_v25 = vsub.f32 %v21511_v58, %v9410_v18  ;;  %9484 = vadd.xlane.f32.xlu0 %v9483_v35  ;;  %v9486_v19 = vsel %vm3859_vm4, %v21585_v56, 0.0  ;;  %v7664_v18 = vcombine.high %v21551_v31, %v21545_v30  ;;  %v7647_v35 = vcombine.low %v21541_v32, %v21543_v2 }
 0xe35   : > { %v9459_v4 = vmul.f32 1.442695, %v9433_v10  ;;  %9487 = vadd.xlane.f32.xlu1 %v9486_v19  ;;  %v7663_v10 = vcombine.low %v21551_v31, %v21545_v30 }
 0xe36   : > { %v9461_v0 = vmul.f32 1.442695, %v9434_v25  ;;  %v7648_v25 = vcombine.high %v21541_v32, %v21543_v2 }
 0xe37   : > { %19111 = vpow2.f32 %v9459_v4  ;;  %v9413_v55 = vpop.xlane.xlu0 %9412  ;;  %v9416_v52 = vpop.xlane.xlu1 %9415  ;;  %v7671_v19 = vrot.slane %v7663_v10, %v19858_v50  ;;  %v7655_v4 = vrot.slane %v7647_v35, %v19858_v50 }
 0xe38   : > { %19113 = vpow2.f32 %v9461_v0  ;;  %v9435_v44 = vsub.f32 %v21518_v29, %v9413_v55  ;;  %v9436_v29 = vsub.f32 %v21521_v20, %v9416_v52 }
 0xe39   : > { %v21594_v60 = vpop.eup %19105  ;;  %19115 = vpow2.f32 %v9457_v37  ;;  %v7678_v37 = vrot.slane %v7664_v18, %v19858_v50  ;;  %v7711_v0 = vcombine.low %v7655_v4, %v7671_v19  ;;  %v7712_v55 = vcombine.high %v7655_v4, %v7671_v19 }
 0xe3a   : > { %v21596_v15 = vpop.eup %19107  ;;  %v9463_v58 = vmul.f32 1.442695, %v9435_v44  ;;  %v9489_v39 = vsel %vm3859_vm4, %v21594_v60, 0.0  ;;  %v9465_v14 = vmul.f32 1.442695, %v9436_v29 }
 0xe3b   : > { %v9419_v33 = vpop.xlane.xlu0 %9418  ;;  %v9422_v53 = vpop.xlane.xlu1 %9421  ;;  %9490 = vadd.xlane.f32.xlu0 %v9489_v39  ;;  %v9492_v62 = vsel %vm3859_vm4, %v21596_v15, 0.0  ;;  %v7719_v30 = vrot.slane %v7711_v0, %v19865_v57  ;;  %v7726_v31 = vrot.slane %v7712_v55, %v19865_v57 }
 0xe3c   : > { %v9437_v45 = vsub.f32 %v21528_v54, %v9419_v33  ;;  %v9438_v16 = vsub.f32 %v21531_v27, %v9422_v53  ;;  %9493 = vadd.xlane.f32.xlu1 %v9492_v62  ;;  %19117 = vpow2.f32 %v9463_v58 }
 0xe3d   : > { %v17536_v53 = vcombine.low %v7719_v30, %v7726_v31  ;;  %v17538_v62 = vcombine.high %v7719_v30, %v7726_v31 }
 0xe3e   : > { %v9467_v23 = vmul.f32 1.442695, %v9437_v45  ;;  %v9469_v41 = vmul.f32 1.442695, %v9438_v16 }
 0xe3f   : > { %v21653_v58 = vpop.permute.xlu0 %7603  ;;  %v21659_v33 = vpop.permute.xlu1 %7606 }
 0xe40   : > { %v21605_v38 = vpop.eup %19109  ;;  %19119 = vpow2.f32 %v9467_v23 }
 0xe41   : > { %19121 = vpow2.f32 %v9469_v41  ;;  %v9495_v51 = vsel %vm3859_vm4, %v21605_v38, 0.0  ;;  %v21662_v41 = vrot.slane %v17536_v53, %v19858_v50 }
 0xe42   : > { %9496 = vadd.xlane.f32.xlu0 %v9495_v51  ;;  %19123 = vpow2.f32 %v9465_v14  ;;  %v21665_v14 = vrot.slane %v17538_v62, %v19858_v50 }
 0xe44   : > { %v21609_v59 = vpop.eup %19111  ;;  %v7968_v5 = vcombine.high %v21662_v41, %v21665_v14 }
 0xe45   : > { %v21611_v54 = vpop.eup %19113  ;;  %v9501_v27 = vsel %vm3859_vm4, %v21609_v59, 0.0 }
 0xe46   : > { %v21615_v20 = vpop.eup %19115  ;;  %9502 = vadd.xlane.f32.xlu0 %v9501_v27  ;;  %v9504_v12 = vsel %vm3859_vm4, %v21611_v54, 0.0 }
 0xe47   : > { %9505 = vadd.xlane.f32.xlu1 %v9504_v12  ;;  %v9498_v34 = vsel %vm3859_vm4, %v21615_v20, 0.0  ;;  %v7767_v12 = vcombine.low %v21555_v21, %v21553_v8 }
 0xe49   : > { %v21621_v46 = vpop.eup %19117  ;;  %v7775_v18 = vrot.slane %v7767_v12, %v19858_v50 }
 0xe4a   : > { %9499 = vadd.xlane.f32.xlu0 %v9498_v34  ;;  %v9507_v42 = vsel %vm3859_vm4, %v21621_v46, 0.0 }
 0xe4d   : > { %v21623_v3 = vpop.eup %19119 }
 0xe4e   : > { %v21627_v28 = vpop.eup %19121  ;;  %9508 = vadd.xlane.f32.xlu0 %v9507_v42  ;;  %v9513_v63 = vsel %vm3859_vm4, %v21623_v3, 0.0  ;;  %v7768_v42 = vcombine.high %v21555_v21, %v21553_v8 }
 0xe4f   : > { %v9516_v17 = vsel %vm3859_vm4, %v21627_v28, 0.0  ;;  %v21633_v36 = vpop.eup %19123 }
 0xe50   : > { %9517 = vadd.xlane.f32.xlu1 %v9516_v17  ;;  %v9510_v7 = vsel %vm3859_vm4, %v21633_v36, 0.0  ;;  %v7751_v17 = vcombine.low %v21547_v26, %v21549_v49 }
 0xe52   : > { %9514 = vadd.xlane.f32.xlu0 %v9513_v63  ;;  %v7752_v63 = vcombine.high %v21547_v26, %v21549_v49  ;;  %v7759_v8 = vrot.slane %v7751_v17, %v19858_v50 }
 0xe54   : > { %v7766_v19 = vrot.slane %v7752_v63, %v19858_v50  ;;  %v7815_v49 = vcombine.low %v7759_v8, %v7775_v18  ;;  %v7982_v63 = vrot.slane %v7968_v5, %v19865_v57 }
 0xe56   : > { %9511 = vadd.xlane.f32.xlu0 %v9510_v7  ;;  %v7967_v7 = vcombine.low %v21662_v41, %v21665_v14 }
 0xe61   : > { %7612 = vrot.lane.b32.xlu1 %v20964_v43, %s23462_s22 }
 0xe6c   : > { %7609 = vrot.lane.b32.xlu0 %v20964_v43, %s23461_s20  ;;  %v7662_v43 = vrot.slane %v7648_v25, %v19858_v50  ;;  %v7782_v25 = vrot.slane %v7768_v42, %v19858_v50 }
 0xe6e   : > { %v7727_v52 = vcombine.low %v7662_v43, %v7678_v37  ;;  %v7728_v44 = vcombine.high %v7662_v43, %v7678_v37  ;;  %v7975_v37 = vrot.slane %v7967_v7, %v19865_v57  ;;  %v7816_v43 = vcombine.high %v7759_v8, %v7775_v18 }
 0xe6f   : > { %v7831_v0 = vcombine.low %v7766_v19, %v7782_v25  ;;  %v7832_v55 = vcombine.high %v7766_v19, %v7782_v25 }
 0xe70   : > { %v7735_v32 = vrot.slane %v7727_v52, %v19865_v57  ;;  %v7742_v2 = vrot.slane %v7728_v44, %v19865_v57 }
 0xe71   : > { %v7846_v53 = vrot.slane %v7832_v55, %v19865_v57 }
 0xe72   : > { %v17540_v45 = vcombine.low %v7735_v32, %v7742_v2  ;;  %v17542_v16 = vcombine.high %v7735_v32, %v7742_v2  ;;  %v7823_v2 = vrot.slane %v7815_v49, %v19865_v57 }
 0xe74   : > { %v21668_v51 = vrot.slane %v17540_v45, %v19858_v50  ;;  %v21671_v27 = vrot.slane %v17542_v16, %v19858_v50 }
 0xe76   : > { %v7999_v10 = vcombine.low %v21668_v51, %v21671_v27 }
 0xe78   : > { %v8007_v26 = vrot.slane %v7999_v10, %v19865_v57 }
 0xe7a   : > { %v8019_v32 = vcombine.low %v7975_v37, %v8007_v26  ;;  %v8020_v62 = vcombine.high %v7975_v37, %v8007_v26 }
 0xeaa   : > { %v9473_v39 = vpop.xlane.xlu0 %9472 }
 0xeab   : > { %19125 = vrcp.f32 %v9473_v39  ;;  %v7839_v39 = vrot.slane %v7831_v0, %v19865_v57 }
 0xeae   : > { %v9479_v29 = vpop.xlane.xlu0 %9478 }
 0xeaf   : > { %19127 = vrcp.f32 %v9479_v29  ;;  %v9476_v23 = vpop.xlane.xlu1 %9475  ;;  %v17547_v29 = vcombine.low %v7839_v39, %v7846_v53 }
 0xeb0   : > { %19129 = vrcp.f32 %v9476_v23  ;;  %v17549_v23 = vcombine.high %v7839_v39, %v7846_v53 }
 0xeb1   : > { %v8063_v42 = vrot.slane %v17547_v29, %v19858_v50 }
 0xeb2   : > { %v8079_v17 = vrot.slane %v17549_v23, %v19858_v50 }
 0xeb3   : > { %v9482_v34 = vpop.xlane.xlu1 %9481 }
 0xeb4   : > { %19131 = vrcp.f32 %v9482_v34  ;;  %v8119_v18 = vcombine.low %v8063_v42, %v8079_v17  ;;  %v8120_v0 = vcombine.high %v8063_v42, %v8079_v17 }
 0xeb8   : > { %v19126_v35 = vpop.eup %19125 }
 0xeb9   : > { %v9520_v21 = vmul.f32 %v19126_v35, %v21561_v48 }
 0xebb   : > { %18512 = vmatmul.mubr.msk.f32.vlgmr.msra.gmra.mxu0 %vm3859_vm4, %v9520_v21 }
 0xebc   : > { %v19128_v4 = vpop.eup %19127  ;;  %18520 = vmatpush3.msra.mxu0 %v8017_v24  ;;  %18521 = vmatprep.mubr.msk.f32.mxu0 %vm23415_vm1, %v19415_v11  ;;  %v7830_v24 = vrot.slane %v7816_v43, %v19865_v57 }
 0xebd   : > { %v19130_v48 = vpop.eup %19129  ;;  %v9485_v52 = vpop.xlane.xlu0 %9484  ;;  %18529 = vmatprep.subr.mxu0 %v19415_v11  ;;  %v9524_v44 = vmul.f32 %v19128_v4, %v21565_v40 }
 0xebe   : > { %19133 = vrcp.f32 %v9485_v52  ;;  %v9488_v30 = vpop.xlane.xlu1 %9487  ;;  %v9522_v31 = vmul.f32 %v19130_v48, %v21569_v9  ;;  %v17543_v45 = vcombine.low %v7823_v2, %v7830_v24  ;;  %v17545_v16 = vcombine.high %v7823_v2, %v7830_v24 }
 0xebf   : > { %19135 = vrcp.f32 %v9488_v30  ;;  %18522 = vmatmul.mubr.msk.f32.vlgmr.msra.gmra.mxu0 %vm3859_vm4, %v9524_v44  ;;  %v8134_v30 = vrot.slane %v8120_v0, %v19865_v57 }
 0xec0   : > { %18517 = vmatmul.mubr.msk.f32.vlgmr.msra.gmra.mxu1 %vm3859_vm4, %v9522_v31  ;;  %18530 = vmatpush3.msra.mxu0 %v8019_v32  ;;  %v8047_v34 = vrot.slane %v17545_v16, %v19858_v50 }
 0xec1   : > { %v19132_v40 = vpop.eup %19131  ;;  %18525 = vmatpush3.msra.mxu1 %v8018_v13  ;;  %18526 = vmatprep.mubr.msk.f32.mxu1 %vm23415_vm1, %v19415_v11  ;;  %v8000_v13 = vcombine.high %v21668_v51, %v21671_v27 }
 0xec2   : > { %18534 = vmatprep.subr.mxu1 %v19415_v11  ;;  %v9526_v9 = vmul.f32 %v19132_v40, %v21575_v61  ;;  %18531 = vmatprep.mubr.msk.f32.mxu0 %vm23415_vm1, %v19415_v11  ;;  %v8031_v61 = vrot.slane %v17543_v45, %v19858_v50 }
 0xec3   : > { %18539 = vmatprep.subr.mxu0 %v19415_v11  ;;  %v8014_v7 = vrot.slane %v8000_v13, %v19865_v57 }
 0xec4   : > { %v9491_v12 = vpop.xlane.xlu0 %9490  ;;  %18527 = vmatmul.mubr.msk.f32.vlgmr.msra.gmra.mxu1 %vm3859_vm4, %v9526_v9  ;;  %v8087_v27 = vcombine.low %v8031_v61, %v8047_v34  ;;  %v8088_v43 = vcombine.high %v8031_v61, %v8047_v34 }
 0xec5   : > { %19137 = vrcp.f32 %v9491_v12  ;;  %v9494_v6 = vpop.xlane.xlu1 %9493  ;;  %18535 = vmatpush3.msra.mxu1 %v8020_v62  ;;  %18536 = vmatprep.mubr.msk.f32.mxu1 %vm23415_vm1, %v19415_v11  ;;  %v8021_v25 = vcombine.low %v7982_v63, %v8014_v7  ;;  %v8022_v8 = vcombine.high %v7982_v63, %v8014_v7 }
 0xec6   : > { %19139 = vrcp.f32 %v9494_v6  ;;  %18544 = vmatprep.subr.mxu1 %v19415_v11  ;;  %v8095_v19 = vrot.slane %v8087_v27, %v19865_v57 }
 0xecb   : > { %v19134_v10 = vpop.eup %19133  ;;  %v9497_v41 = vpop.xlane.xlu0 %9496 }
 0xecc   : > { %v19136_v14 = vpop.eup %19135  ;;  %19141 = vrcp.f32 %v9497_v41  ;;  %v9528_v51 = vmul.f32 %v19134_v10, %v21583_v1  ;;  %v8127_v1 = vrot.slane %v8119_v18, %v19865_v57 }
 0xecd   : > { %v9530_v35 = vmul.f32 %v19136_v14, %v21585_v56 }
 0xece   : > { %18532 = vmatmul.mubr.msk.f32.vlgmr.msra.gmra.mxu0 %vm3859_vm4, %v9528_v51  ;;  %v8151_v48 = vcombine.low %v8095_v19, %v8127_v1  ;;  %v8152_v52 = vcombine.high %v8095_v19, %v8127_v1 }
 0xecf   : > { %v9503_v21 = vpop.xlane.xlu0 %9502  ;;  %18537 = vmatmul.mubr.msk.f32.vlgmr.msra.gmra.mxu1 %vm3859_vm4, %v9530_v35  ;;  %18540 = vmatpush3.msra.mxu0 %v8021_v25 }
 0xed0   : > { %19143 = vrcp.f32 %v9503_v21  ;;  %18545 = vmatpush3.msra.mxu1 %v8022_v8  ;;  %18541 = vmatprep.mubr.msk.f32.mxu0 %vm23415_vm1, %v19415_v11  ;;  %v9506_v37 = vpop.xlane.xlu1 %9505 }
 0xed1   : > { %18549 = vmatprep.subr.mxu0 %v19415_v11  ;;  %18546 = vmatprep.mubr.msk.f32.mxu1 %vm23415_vm1, %v19415_v11 }
 0xed2   : > { %v19138_v56 = vpop.eup %19137  ;;  %18554 = vmatprep.subr.mxu1 %v19415_v11 }
 0xed3   : > { %v19140_v26 = vpop.eup %19139  ;;  %v9500_v49 = vpop.xlane.xlu0 %9499  ;;  %v9532_v4 = vmul.f32 %v19138_v56, %v21594_v60  ;;  %v8102_v60 = vrot.slane %v8088_v43, %v19865_v57 }
 0xed4   : > { %19145 = vrcp.f32 %v9500_v49  ;;  %v9534_v55 = vmul.f32 %v19140_v26, %v21596_v15 }
 0xed5   : > { %19147 = vrcp.f32 %v9506_v37  ;;  %18542 = vmatmul.mubr.msk.f32.vlgmr.msra.gmra.mxu0 %vm3859_vm4, %v9532_v4  ;;  %v8153_v24 = vcombine.low %v8102_v60, %v8134_v30  ;;  %v8154_v12 = vcombine.high %v8102_v60, %v8134_v30 }
 0xed6   : > { %18547 = vmatmul.mubr.msk.f32.vlgmr.msra.gmra.mxu1 %vm3859_vm4, %v9534_v55  ;;  %18550 = vmatpush3.msra.mxu0 %v8151_v48 }
 0xed7   : > { %v9509_v44 = vpop.xlane.xlu0 %9508  ;;  %18555 = vmatpush3.msra.mxu1 %v8152_v52  ;;  %18551 = vmatprep.mubr.msk.f32.mxu0 %vm23415_vm1, %v19415_v11 }
 0xed8   : > { %18559 = vmatprep.subr.mxu0 %v19415_v11  ;;  %18556 = vmatprep.mubr.msk.f32.mxu1 %vm23415_vm1, %v19415_v11  ;;  %19149 = vrcp.f32 %v9509_v44 }
 0xed9   : > { %v19142_v15 = vpop.eup %19141  ;;  %v9518_v31 = vpop.xlane.xlu1 %9517  ;;  %18564 = vmatprep.subr.mxu1 %v19415_v11 }
 0xeda   : > { %v9536_v32 = vmul.f32 %v19142_v15, %v21605_v38 }
 0xedb   : > { %v9515_v2 = vpop.xlane.xlu0 %9514 }
 0xedc   : > { %18552 = vmatmul.mubr.msk.f32.vlgmr.msra.gmra.mxu0 %vm3859_vm4, %v9536_v32 }
 0xedd   : > { %v19144_v39 = vpop.eup %19143  ;;  %18560 = vmatpush3.msra.mxu0 %v8153_v24  ;;  %18561 = vmatprep.mubr.msk.f32.mxu0 %vm23415_vm1, %v19415_v11  ;;  %v7613_v40 = vpop.permute.xlu1 %7612 }
 0xede   : > { %v9540_v53 = vmul.f32 %v19144_v39, %v21609_v59  ;;  %18569 = vmatprep.subr.mxu0 %v19415_v11  ;;  %v7799_v45 = vcombine.low %v21659_v33, %v7613_v40  ;;  %v7800_v16 = vcombine.high %v21659_v33, %v7613_v40 }
 0xedf   : > { %v9512_v9 = vpop.xlane.xlu0 %9511 }
 0xee0   : > { %18562 = vmatmul.mubr.msk.f32.vlgmr.msra.gmra.mxu0 %vm3859_vm4, %v9540_v53  ;;  %19151 = vrcp.f32 %v9512_v9  ;;  %v7807_v33 = vrot.slane %v7799_v45, %v19858_v50 }
 0xee1   : > { %v19146_v62 = vpop.eup %19145  ;;  %18571 = vmatprep.mubr.msk.f32.mxu0 %vm23415_vm1, %v19415_v11  ;;  %19153 = vrcp.f32 %v9518_v31 }
 0xee2   : > { %v19148_v38 = vpop.eup %19147  ;;  %v9538_v29 = vmul.f32 %v19146_v62, %v21615_v20  ;;  %v7814_v20 = vrot.slane %v7800_v16, %v19858_v50  ;;  %19155 = vrcp.f32 %v9515_v2 }
 0xee3   : > { %v7610_v23 = vpop.permute.xlu0 %7609  ;;  %v9542_v5 = vmul.f32 %v19148_v38, %v21611_v54 }
 0xee4   : > { %v7783_v59 = vcombine.low %v21653_v58, %v7610_v23  ;;  %v7784_v6 = vcombine.high %v21653_v58, %v7610_v23  ;;  %18557 = vmatmul.mubr.msk.f32.vlgmr.msra.gmra.mxu1 %vm3859_vm4, %v9538_v29 }
 0xee5   : > { %18565 = vmatpush3.msra.mxu1 %v8154_v12  ;;  %18566 = vmatprep.mubr.msk.f32.mxu1 %vm23415_vm1, %v19415_v11  ;;  %v19150_v37 = vpop.eup %19149 }
 0xee6   : > { %v7791_v13 = vrot.slane %v7783_v59, %v19858_v50  ;;  %v7798_v61 = vrot.slane %v7784_v6, %v19858_v50  ;;  %18574 = vmatprep.subr.mxu1 %v19415_v11  ;;  %v9544_v44 = vmul.f32 %v19150_v37, %v21621_v46 }
 0xee8   : > { %v7847_v58 = vcombine.low %v7791_v13, %v7807_v33  ;;  %v7848_v34 = vcombine.high %v7791_v13, %v7807_v33  ;;  %v7863_v42 = vcombine.low %v7798_v61, %v7814_v20  ;;  %v7864_v17 = vcombine.high %v7798_v61, %v7814_v20  ;;  %18567 = vmatmul.mubr.msk.f32.vlgmr.msra.gmra.mxu1 %vm3859_vm4, %v9542_v5 }
 0xee9   : > { %18576 = vmatprep.mubr.msk.f32.mxu1 %vm23415_vm1, %v19415_v11 }
 0xeea   : > { %v7855_v54 = vrot.slane %v7847_v58, %v19865_v57  ;;  %v7862_v63 = vrot.slane %v7848_v34, %v19865_v57  ;;  %v7871_v7 = vrot.slane %v7863_v42, %v19865_v57  ;;  %v7878_v10 = vrot.slane %v7864_v17, %v19865_v57 }
 0xeec   : > { %v17544_v41 = vcombine.low %v7855_v54, %v7862_v63  ;;  %v17546_v14 = vcombine.high %v7855_v54, %v7862_v63  ;;  %v17548_v51 = vcombine.low %v7871_v7, %v7878_v10  ;;  %v17550_v27 = vcombine.high %v7871_v7, %v7878_v10 }
 0xeed   : > { %v19152_v26 = vpop.eup %19151 }
 0xeee   : > { %v8038_v18 = vrot.slane %v17544_v41, %v19858_v50  ;;  %v8054_v35 = vrot.slane %v17546_v14, %v19858_v50  ;;  %v8070_v25 = vrot.slane %v17548_v51, %v19858_v50  ;;  %v8086_v8 = vrot.slane %v17550_v27, %v19858_v50  ;;  %v19154_v55 = vpop.eup %19153 }
 0xeef   : > { %v9546_v60 = vmul.f32 %v19152_v26, %v21633_v36  ;;  %v19156_v30 = vpop.eup %19155  ;;  %v9550_v46 = vmul.f32 %v19154_v55, %v21627_v28 }
 0xef0   : > { %v8103_v21 = vcombine.low %v8038_v18, %v8054_v35  ;;  %v8135_v19 = vcombine.low %v8070_v25, %v8086_v8  ;;  %v8104_v1 = vcombine.high %v8038_v18, %v8054_v35  ;;  %v8136_v56 = vcombine.high %v8070_v25, %v8086_v8 }
 0xef1   : > { %v9548_v32 = vmul.f32 %v19156_v30, %v21623_v3 }
 0xef2   : > { %v8111_v49 = vrot.slane %v8103_v21, %v19865_v57  ;;  %v8143_v4 = vrot.slane %v8135_v19, %v19865_v57  ;;  %v8118_v43 = vrot.slane %v8104_v1, %v19865_v57  ;;  %v8150_v0 = vrot.slane %v8136_v56, %v19865_v57 }
 0xef4   : > { %v8155_v48 = vcombine.low %v8111_v49, %v8143_v4  ;;  %v8156_v52 = vcombine.high %v8111_v49, %v8143_v4  ;;  %v8157_v15 = vcombine.low %v8118_v43, %v8150_v0  ;;  %v8158_v31 = vcombine.high %v8118_v43, %v8150_v0 }
 0xef6   : > { %18570 = vmatpush3.msra.mxu0 %v8155_v48  ;;  %18575 = vmatpush3.msra.mxu1 %v8156_v52 }
 0xef7   : > { %18572 = vmatmul.mubr.msk.f32.vlgmr.msra.gmra.mxu0 %vm3859_vm4, %v9544_v44  ;;  %18577 = vmatmul.mubr.msk.f32.vlgmr.msra.gmra.mxu1 %vm3859_vm4, %v9546_v60 }
 0xef8   : > { %18579 = vmatprep.subr.mxu0 %v19415_v11  ;;  %18584 = vmatprep.subr.mxu1 %v19415_v11 }
 0xef9   : > { %18580 = vmatpush3.msra.mxu0 %v8157_v15  ;;  %18585 = vmatpush3.msra.mxu1 %v8158_v31 }
 0xefa   : > { %18581 = vmatprep.mubr.msk.f32.mxu0 %vm23415_vm1, %v19415_v11  ;;  %18586 = vmatprep.mubr.msk.f32.mxu1 %vm23415_vm1, %v19415_v11 }
 0xefb   : > { %18582 = vmatmul.mubr.msk.f32.vlgmr.msra.gmra.mxu0 %vm3859_vm4, %v9548_v32  ;;  %18587 = vmatmul.mubr.msk.f32.vlgmr.msra.gmra.mxu1 %vm3859_vm4, %v9550_v46 }
 0xefc   : > { %18589 = vmatprep.subr.mxu0 %v19415_v11  ;;  %18597 = vmatprep.mubr.msk.f32.mxu0 %vm23415_vm1, %v19415_v11 }
 0xefd   : > { %18600 = vmatprep.subr.mxu1 %v19415_v11  ;;  %18608 = vmatprep.mubr.msk.f32.mxu1 %vm23415_vm1, %v19415_v11  ;;  %vm23478_vm1 = vcmask 113664  }
 0xf7b   : > { %v9620_v3 = vpop.f32.mrf.mxu0 }
 0xf7d   : > { %v18513_v28 = vpop.f32.mrf.mxu0 }
 0xf7f   : > { %v9766_v36 = vpop.f32.mrf.mxu0 }
 0xf80   : > { %v9693_v2 = vpop.f32.mrf.mxu1  ;;  %v10719_v53 = vcombine.low %v9620_v3, %v9766_v36  ;;  %v10720_v40 = vcombine.high %v9620_v3, %v9766_v36 }
 0xf81   : > { %v18523_v24 = vpop.f32.mrf.mxu0 }
 0xf82   : > { %v18518_v39 = vpop.f32.mrf.mxu1  ;;  %v10727_v16 = vrot.slane %v10719_v53, %v19858_v50  ;;  %v10734_v29 = vrot.slane %v10720_v40, %v19858_v50 }
 0xf84   : > { %v9839_v9 = vpop.f32.mrf.mxu1 }
 0xf85   : > { %v10735_v62 = vcombine.low %v9693_v2, %v9839_v9  ;;  %v10736_v38 = vcombine.high %v9693_v2, %v9839_v9 }
 0xf86   : > { %v18528_v45 = vpop.f32.mrf.mxu1 }
 0xf87   : > { %v10743_v23 = vrot.slane %v10735_v62, %v19858_v50  ;;  %v10750_v12 = vrot.slane %v10736_v38, %v19858_v50 }
 0xf89   : > { %v10783_v59 = vcombine.low %v10727_v16, %v10743_v23  ;;  %v10784_v6 = vcombine.high %v10727_v16, %v10743_v23  ;;  %v10799_v5 = vcombine.low %v10734_v29, %v10750_v12  ;;  %v10800_v33 = vcombine.high %v10734_v29, %v10750_v12 }
 0xf8b   : > { %v10791_v20 = vrot.slane %v10783_v59, %v19865_v57  ;;  %v10798_v13 = vrot.slane %v10784_v6, %v19865_v57  ;;  %v10807_v61 = vrot.slane %v10799_v5, %v19865_v57  ;;  %v10814_v58 = vrot.slane %v10800_v33, %v19865_v57 }
 0xf8d   : > { %v17599_v34 = vcombine.low %v10791_v20, %v10798_v13  ;;  %v17601_v42 = vcombine.high %v10791_v20, %v10798_v13  ;;  %v17603_v17 = vcombine.low %v10807_v61, %v10814_v58  ;;  %v17605_v54 = vcombine.high %v10807_v61, %v10814_v58 }
 0xf8e   : > { %v9912_v63 = vpop.f32.mrf.mxu0 }
 0xf8f   : > { %v10999_v7 = vrot.slane %v17599_v34, %v19858_v50  ;;  %v11015_v10 = vrot.slane %v17601_v42, %v19858_v50  ;;  %v11031_v41 = vrot.slane %v17603_v17, %v19858_v50  ;;  %v11047_v14 = vrot.slane %v17605_v54, %v19858_v50  ;;  %v9985_v51 = vpop.f32.mrf.mxu1 }
 0xf90   : > { %v18533_v27 = vpop.f32.mrf.mxu0 }
 0xf91   : > { %v18538_v18 = vpop.f32.mrf.mxu1  ;;  %v11056_v35 = vcombine.high %v10999_v7, %v11015_v10  ;;  %v11088_v25 = vcombine.high %v11031_v41, %v11047_v14  ;;  %v11055_v8 = vcombine.low %v10999_v7, %v11015_v10  ;;  %v11087_v21 = vcombine.low %v11031_v41, %v11047_v14 }
 0xf93   : > { %v11070_v19 = vrot.slane %v11056_v35, %v19865_v57  ;;  %v11102_v1 = vrot.slane %v11088_v25, %v19865_v57  ;;  %v21828_v56 = vrot.slane %v11055_v8, %v19865_v57  ;;  %v21831_v37 = vrot.slane %v11087_v21, %v19865_v57 }
 0xf95   : > { %v10058_v26 = vpop.f32.mrf.mxu0  ;;  %v11121_v49 = vcombine.low %v11070_v19, %v11102_v1  ;;  %v11120_v4 = vcombine.high %v21828_v56, %v21831_v37  ;;  %v11119_v43 = vcombine.low %v21828_v56, %v21831_v37  ;;  %v11122_v3 = vcombine.high %v11070_v19, %v11102_v1 }
 0xf96   : > { %v10751_v0 = vcombine.low %v9912_v63, %v10058_v26  ;;  %v10752_v55 = vcombine.high %v9912_v63, %v10058_v26  ;;  %v10131_v48 = vpop.f32.mrf.mxu1 }
 0xf97   : > { %v10767_v52 = vcombine.low %v9985_v51, %v10131_v48  ;;  %v10768_v44 = vcombine.high %v9985_v51, %v10131_v48  ;;  %v18543_v60 = vpop.f32.mrf.mxu0  ;;  %11268 = vrot.lane.b32.xlu1 %v11121_v49, %s23463_s23  ;;  %11264 = vrot.lane.b32.xlu0 %v11120_v4, %s23464_s16 }
 0xf98   : > { %v10759_v30 = vrot.slane %v10751_v0, %v19858_v50  ;;  %v10766_v15 = vrot.slane %v10752_v55, %v19858_v50  ;;  %v18548_v31 = vpop.f32.mrf.mxu1 }
 0xf99   : > { %v10775_v32 = vrot.slane %v10767_v52, %v19858_v50  ;;  %v10782_v46 = vrot.slane %v10768_v44, %v19858_v50 }
 0xf9b   : > { %v10815_v28 = vcombine.low %v10759_v30, %v10775_v32  ;;  %v10816_v36 = vcombine.high %v10759_v30, %v10775_v32  ;;  %v10831_v2 = vcombine.low %v10766_v15, %v10782_v46  ;;  %v10832_v24 = vcombine.high %v10766_v15, %v10782_v46  ;;  %11272 = vrot.lane.b32.xlu0 %v11122_v3, %s23465_s24 }
 0xf9c   : > { %v10204_v39 = vpop.f32.mrf.mxu0 }
 0xf9d   : > { %v10823_v53 = vrot.slane %v10815_v28, %v19865_v57  ;;  %v10830_v40 = vrot.slane %v10816_v36, %v19865_v57  ;;  %v10839_v9 = vrot.slane %v10831_v2, %v19865_v57  ;;  %v10846_v62 = vrot.slane %v10832_v24, %v19865_v57  ;;  %v17618_v28 = vld [vmem:[%s23453_s7 + $0x38] sm:$0xff] }
 0xf9e   : > { %v18553_v38 = vpop.f32.mrf.mxu0  ;;  %18590 = vmatpush3.msra.mxu0 %v17618_v28 }
 0xf9f   : > { %v17600_v45 = vcombine.low %v10823_v53, %v10830_v40  ;;  %v17602_v16 = vcombine.high %v10823_v53, %v10830_v40  ;;  %v17604_v29 = vcombine.low %v10839_v9, %v10846_v62  ;;  %v17606_v23 = vcombine.high %v10839_v9, %v10846_v62  ;;  %18591 = vmatprep.subr.mxu0 %v19415_v11 }
 0xfa0   : > { %v10350_v12 = vpop.f32.mrf.mxu0 }
 0xfa1   : > { %v11006_v59 = vrot.slane %v17600_v45, %v19858_v50  ;;  %v11022_v6 = vrot.slane %v17602_v16, %v19858_v50  ;;  %v11038_v5 = vrot.slane %v17604_v29, %v19858_v50  ;;  %v11054_v33 = vrot.slane %v17606_v23, %v19858_v50 }
 0xfa2   : > { %v18563_v20 = vpop.f32.mrf.mxu0  ;;  %v10855_v63 = vcombine.low %v10204_v39, %v10350_v12  ;;  %v10856_v7 = vcombine.high %v10204_v39, %v10350_v12 }
 0xfa3   : > { %v11071_v13 = vcombine.low %v11006_v59, %v11022_v6  ;;  %v11103_v61 = vcombine.low %v11038_v5, %v11054_v33  ;;  %v11072_v58 = vcombine.high %v11006_v59, %v11022_v6  ;;  %v11104_v34 = vcombine.high %v11038_v5, %v11054_v33 }
 0xfa4   : > { %v10277_v42 = vpop.f32.mrf.mxu1  ;;  %v10863_v8 = vrot.slane %v10855_v63, %v19858_v50  ;;  %v10870_v19 = vrot.slane %v10856_v7, %v19858_v50 }
 0xfa5   : > { %v11079_v17 = vrot.slane %v11071_v13, %v19865_v57  ;;  %v11111_v54 = vrot.slane %v11103_v61, %v19865_v57  ;;  %v11086_v51 = vrot.slane %v11072_v58, %v19865_v57  ;;  %v11118_v27 = vrot.slane %v11104_v34, %v19865_v57 }
 0xfa6   : > { %v18558_v10 = vpop.f32.mrf.mxu1 }
 0xfa7   : > { %v11124_v41 = vcombine.high %v11079_v17, %v11111_v54  ;;  %v11123_v14 = vcombine.low %v11079_v17, %v11111_v54  ;;  %v11126_v49 = vcombine.high %v11086_v51, %v11118_v27  ;;  %v11125_v4 = vcombine.low %v11086_v51, %v11118_v27 }
 0xfa8   : > { %v10423_v18 = vpop.f32.mrf.mxu1 }
 0xfa9   : > { %v10871_v35 = vcombine.low %v10277_v42, %v10423_v18  ;;  %v10872_v25 = vcombine.high %v10277_v42, %v10423_v18  ;;  %11280 = vrot.lane.b32.xlu0 %v11124_v41, %s23466_s18  ;;  %11276 = vrot.lane.b32.xlu1 %v11123_v14, %s23467_s30 }
 0xfaa   : > { %v18568_v21 = vpop.f32.mrf.mxu1 }
 0xfab   : > { %v10879_v1 = vrot.slane %v10871_v35, %v19858_v50  ;;  %v10886_v26 = vrot.slane %v10872_v25, %v19858_v50  ;;  %v17616_v21 = vld [vmem:[%s23453_s7 + $0x28] sm:$0xff] }
 0xfad   : > { %v10919_v0 = vcombine.low %v10863_v8, %v10879_v1  ;;  %v10920_v55 = vcombine.high %v10863_v8, %v10879_v1  ;;  %v10935_v48 = vcombine.low %v10870_v19, %v10886_v26  ;;  %v10936_v52 = vcombine.high %v10870_v19, %v10886_v26  ;;  %11288 = vrot.lane.b32.xlu0 %v11126_v49, %s23468_s2  ;;  %v17617_v8 = vld [vmem:[%s23453_s7 + $0x30] sm:$0xff]  ;;  %s23476_s2 = smov 30  }
 0xfae   : > { %11284 = vrot.lane.b32.xlu1 %v11125_v4, %s23469_s0  ;;  %18592 = vmatpush3.msra.mxu0 %v17617_v8  ;;  %s23477_s0 = smov 28  }
 0xfaf   : > { %v10927_v44 = vrot.slane %v10919_v0, %v19865_v57  ;;  %v10934_v60 = vrot.slane %v10920_v55, %v19865_v57  ;;  %v10943_v30 = vrot.slane %v10935_v48, %v19865_v57  ;;  %v10950_v15 = vrot.slane %v10936_v52, %v19865_v57  ;;  %18593 = vmatprep.subr.mxu0 %v19415_v11 }
 0xfb0   : > { %18594 = vmatpush3.msra.mxu0 %v17616_v21 }
 0xfb1   : > { %v17607_v31 = vcombine.low %v10927_v44, %v10934_v60  ;;  %v17609_v32 = vcombine.high %v10927_v44, %v10934_v60  ;;  %v17611_v46 = vcombine.low %v10943_v30, %v10950_v15  ;;  %v17613_v3 = vcombine.high %v10943_v30, %v10950_v15  ;;  %18595 = vmatprep.subr.mxu0 %v19415_v11  ;;  %v17615_v15 = vld [vmem:[%s23453_s7 + $0x20] sm:$0xff]  ;;  %s23484_s7 = smov 116  }
 0xfb2   : > { %18596 = vmatpush3.msra.mxu0 %v17615_v15  ;;  %v17646_v15 = vld [vmem:[%s23329_s13 + $0xe8] sm:$0xff] }
 0xfb3   : > { %v11135_v36 = vrot.slane %v17607_v31, %v19858_v50  ;;  %v11151_v2 = vrot.slane %v17609_v32, %v19858_v50  ;;  %v11167_v24 = vrot.slane %v17611_v46, %v19858_v50  ;;  %v11183_v39 = vrot.slane %v17613_v3, %v19858_v50  ;;  %18611 = vmatprep.subr.mxu0 %v19415_v11 }
 0xfb5   : > { %v11191_v53 = vcombine.low %v11135_v36, %v11151_v2  ;;  %v11223_v40 = vcombine.low %v11167_v24, %v11183_v39  ;;  %v11192_v9 = vcombine.high %v11135_v36, %v11151_v2  ;;  %v11224_v62 = vcombine.high %v11167_v24, %v11183_v39 }
 0xfb7   : > { %v10496_v38 = vpop.f32.mrf.mxu0  ;;  %v10569_v45 = vpop.f32.mrf.mxu1  ;;  %v11199_v16 = vrot.slane %v11191_v53, %v19865_v57  ;;  %v11231_v29 = vrot.slane %v11223_v40, %v19865_v57  ;;  %v11206_v5 = vrot.slane %v11192_v9, %v19865_v57  ;;  %v11238_v33 = vrot.slane %v11224_v62, %v19865_v57 }
 0xfb9   : > { %v18573_v23 = vpop.f32.mrf.mxu0  ;;  %v18578_v12 = vpop.f32.mrf.mxu1  ;;  %v11256_v59 = vcombine.high %v11199_v16, %v11231_v29  ;;  %v11255_v6 = vcombine.low %v11199_v16, %v11231_v29  ;;  %v11258_v63 = vcombine.high %v11206_v5, %v11238_v33  ;;  %v11257_v7 = vcombine.low %v11206_v5, %v11238_v33 }
 0xfbb   : > { %v10642_v20 = vpop.f32.mrf.mxu0  ;;  %11296 = vrot.lane.b32.xlu0 %v11256_v59, %s23470_s25  ;;  %11292 = vrot.lane.b32.xlu1 %v11255_v6, %s23471_s17  ;;  %v10715_v13 = vpop.f32.mrf.mxu1  ;;  %s23474_s25 = smov 26   ;;  %s23475_s17 = smov 24  }
 0xfbc   : > { %v10887_v61 = vcombine.low %v10496_v38, %v10642_v20  ;;  %v10888_v58 = vcombine.high %v10496_v38, %v10642_v20  ;;  %v10903_v34 = vcombine.low %v10569_v45, %v10715_v13  ;;  %v10904_v42 = vcombine.high %v10569_v45, %v10715_v13 }
 0xfbd   : > { %v18583_v17 = vpop.f32.mrf.mxu0  ;;  %v18588_v54 = vpop.f32.mrf.mxu1 }
 0xfbe   : > { %v10895_v10 = vrot.slane %v10887_v61, %v19858_v50  ;;  %v10902_v41 = vrot.slane %v10888_v58, %v19858_v50  ;;  %v10911_v14 = vrot.slane %v10903_v34, %v19858_v50  ;;  %v10918_v51 = vrot.slane %v10904_v42, %v19858_v50 }
 0xfbf   : > { %11304 = vrot.lane.b32.xlu0 %v11258_v63, %s23472_s26  ;;  %11300 = vrot.lane.b32.xlu1 %v11257_v7, %s23473_s28  ;;  %s23483_s28 = smov 122   ;;  %s23485_s26 = smov 118  }
 0xfc0   : > { %v10951_v27 = vcombine.low %v10895_v10, %v10911_v14  ;;  %v10952_v18 = vcombine.high %v10895_v10, %v10911_v14  ;;  %v10967_v35 = vcombine.low %v10902_v41, %v10918_v51  ;;  %v10968_v25 = vcombine.high %v10902_v41, %v10918_v51 }
 0xfc2   : > { %v10959_v19 = vrot.slane %v10951_v27, %v19865_v57  ;;  %v10966_v1 = vrot.slane %v10952_v18, %v19865_v57  ;;  %v10975_v26 = vrot.slane %v10967_v35, %v19865_v57  ;;  %v10982_v49 = vrot.slane %v10968_v25, %v19865_v57  ;;  %v17620_v35 = vld [vmem:[%s23454_s8 + $0x1] ss:$0 sm:$0xff]  ;;  %s23482_s8 = smov 120  }
 0xfc4   : > { %v17608_v4 = vcombine.low %v10959_v19, %v10966_v1  ;;  %v17610_v0 = vcombine.high %v10959_v19, %v10966_v1  ;;  %v17612_v55 = vcombine.low %v10975_v26, %v10982_v49  ;;  %v17614_v48 = vcombine.high %v10975_v26, %v10982_v49 }
 0xfc6   : > { %v11142_v52 = vrot.slane %v17608_v4, %v19858_v50  ;;  %v11158_v44 = vrot.slane %v17610_v0, %v19858_v50  ;;  %v11174_v60 = vrot.slane %v17612_v55, %v19858_v50  ;;  %v11190_v30 = vrot.slane %v17614_v48, %v19858_v50  ;;  %v17629_v48 = vld [vmem:[%s23327_s11 + $0x38] sm:$0xff] }
 0xfc7   : > { %18601 = vmatpush3.msra.mxu1 %v17629_v48  ;;  %v17660_v48 = vld [vmem:[%s23321_s5 + $0x48] sm:$0xff] }
 0xfc8   : > { %v11207_v31 = vcombine.low %v11142_v52, %v11158_v44  ;;  %v11239_v32 = vcombine.low %v11174_v60, %v11190_v30  ;;  %v11208_v46 = vcombine.high %v11142_v52, %v11158_v44  ;;  %v11240_v3 = vcombine.high %v11174_v60, %v11190_v30  ;;  %v17628_v52 = vld [vmem:[%s23327_s11 + $0x30] sm:$0xff]  ;;  %18602 = vmatprep.subr.mxu1 %v19415_v11  ;;  %v17626_v44 = vld [vmem:[%s23327_s11 + $0x20] sm:$0xff]  ;;  %v17648_v60 = vld [vmem:[%s23329_s13 + $0xf8] sm:$0xff] }
 0xfc9   : > { %18603 = vmatpush3.msra.mxu1 %v17628_v52  ;;  %v17647_v30 = vld [vmem:[%s23329_s13 + $0xf0] sm:$0xff]  ;;  %v17659_v52 = vld [vmem:[%s23321_s5 + $0x40] sm:$0xff] }
 0xfca   : > { %v11215_v28 = vrot.slane %v11207_v31, %v19865_v57  ;;  %v11247_v36 = vrot.slane %v11239_v32, %v19865_v57  ;;  %v11222_v39 = vrot.slane %v11208_v46, %v19865_v57  ;;  %v11254_v53 = vrot.slane %v11240_v3, %v19865_v57  ;;  %18604 = vmatprep.subr.mxu1 %v19415_v11  ;;  %v17645_v31 = vld [vmem:[%s23329_s13 + $0xe0] sm:$0xff]  ;;  %v17644_v32 = vld [vmem:[%s23329_s13 + $0xd8] sm:$0xff]  ;;  %v17643_v46 = vld [vmem:[%s23329_s13 + $0xd0] sm:$0xff] }
 0xfcb   : > { %v17642_v3 = vld [vmem:[%s23329_s13 + $0xc8] sm:$0xff] }
 0xfcc   : > { %v11260_v2 = vcombine.high %v11215_v28, %v11247_v36  ;;  %v11259_v24 = vcombine.low %v11215_v28, %v11247_v36  ;;  %v11262_v40 = vcombine.high %v11222_v39, %v11254_v53  ;;  %v11261_v9 = vcombine.low %v11222_v39, %v11254_v53  ;;  %v17641_v28 = vld [vmem:[%s23329_s13 + $0xc0] sm:$0xff]  ;;  %v17640_v36 = vld [vmem:[%s23329_s13 + $0xb8] sm:$0xff] }
 0xfcd   : > { %v17637_v39 = vld [vmem:[%s23329_s13 + $0xa0] sm:$0xff]  ;;  %v17636_v53 = vld [vmem:[%s23329_s13 + $0x98] sm:$0xff] }
 0xfce   : > { %11312 = vrot.lane.b32.xlu0 %v11260_v2, %s23474_s25  ;;  %11308 = vrot.lane.b32.xlu1 %v11259_v24, %s23475_s17  ;;  %v17639_v2 = vld [vmem:[%s23329_s13 + $0xb0] sm:$0xff]  ;;  %v17638_v24 = vld [vmem:[%s23329_s13 + $0xa8] sm:$0xff]  ;;  %s23486_s25 = smov 112  }
 0xfd2   : > { %11320 = vrot.lane.b32.xlu0 %v11262_v40, %s23476_s2  ;;  %11316 = vrot.lane.b32.xlu1 %v11261_v9, %s23477_s0  ;;  %s23480_s2 = smov 124   ;;  %s23481_s0 = smov 126  }
0x1009   : > { %v11265_v62 = vpop.permute.xlu0 %11264  ;;  %v11269_v38 = vpop.permute.xlu1 %11268 }
0x100a   : > { %v11323_v29 = vsel %vm2642_vm2, %v11119_v43, %v11265_v62 }
0x100b   : > { %v11324_v12 = vsel %vm5809_vm5, %v11323_v29, %v11269_v38  ;;  %v17625_v29 = vld [vmem:[%s23326_s10 + $0x1] ss:$0 sm:$0xff] }
0x100d   : > { %v11273_v45 = vpop.permute.xlu0 %11272 }
0x100e   : > { %v11325_v59 = vsel %vm5811_vm6, %v11324_v12, %v11273_v45  ;;  %v17624_v45 = vld [vmem:[%s23325_s9 + $0x1] ss:$0 sm:$0xff] }
0x101b   : > { %v11277_v16 = vpop.permute.xlu1 %11276  ;;  %v11281_v23 = vpop.permute.xlu0 %11280 }
0x101c   : > { %v11326_v5 = vsel %vm3859_vm4, %v11325_v59, %v11277_v16  ;;  %v17635_v59 = vld [vmem:[%s23329_s13 + $0x90] sm:$0xff] }
0x101d   : > { %v11327_v20 = vsel %vm5814_vm7, %v11326_v5, %v11281_v23  ;;  %v17633_v5 = vld [vmem:[%s23329_s13 + $0x80] sm:$0xff] }
0x101f   : > { %v11289_v33 = vpop.permute.xlu0 %11288 }
0x1020   : > { %v11285_v6 = vpop.permute.xlu1 %11284 }
0x1021   : > { %v11328_v61 = vsel %vm5816_vm8, %v11327_v20, %v11285_v6  ;;  %v17634_v6 = vld [vmem:[%s23329_s13 + $0x88] sm:$0xff] }
0x1022   : > { %v11329_v34 = vsel %vm23478_vm1, %v11328_v61, %v11289_v33  ;;  %vm23479_vm1 = vmmov 0   ;;  %v17631_v33 = vld [vmem:[%s23328_s12 + $0x1] ss:$0 sm:$0xff] }
0x102d   : > { %v11293_v13 = vpop.permute.xlu1 %11292  ;;  %v11297_v58 = vpop.permute.xlu0 %11296 }
0x102e   : > { %v11330_v56 = vsel %vm5820_vm10, %v11329_v34, %v11293_v13  ;;  %v17650_v34 = vld [vmem:[%s23330_s14 + $0x1] ss:$0 sm:$0xff] }
0x102f   : > { %v11331_v42 = vsel %vm5822_vm11, %v11330_v56, %v11297_v58 }
0x1031   : > { %v11301_v37 = vpop.permute.xlu1 %11300  ;;  %v11305_v43 = vpop.permute.xlu0 %11304 }
0x1032   : > { %v11332_v17 = vsel %vm5824_vm12, %v11331_v42, %v11301_v37 }
0x1033   : > { %v11333_v63 = vsel %vm5826_vm13, %v11332_v17, %v11305_v43 }
0x1040   : > { %v11313_v54 = vpop.permute.xlu0 %11312  ;;  %v11309_v7 = vpop.permute.xlu1 %11308 }
0x1041   : > { %v11334_v10 = vsel %vm5828_vm14, %v11333_v63, %v11309_v7 }
0x1042   : > { %v11335_v14 = vsel %vm5830_vm15, %v11334_v10, %v11313_v54 }
0x1044   : > { %v11321_v41 = vpop.permute.xlu0 %11320  ;;  %v11317_v51 = vpop.permute.xlu1 %11316 }
0x1045   : > { %v11336_v27 = vsel %vm5832_vm3, %v11335_v14, %v11317_v51  ;;  %v17657_v14 = vld [vmem:[%s23320_s4 + $0x58] sm:$0xff]  ;;  %v17656_v51 = vld [vmem:[%s23320_s4 + $0x50] sm:$0xff] }
0x1046   : > { %v11337_v18 = vsel %vm5834_vm9, %v11336_v27, %v11321_v41  ;;  %v17655_v27 = vld [vmem:[%s23320_s4 + $0x48] sm:$0xff] }
0x1047   : > { %18598 = vmatmul.mubr.msk.f32.vlgmr.msra.gmra.mxu0 %vm23418_vm0, %v11337_v18  ;;  %v17654_v18 = vld [vmem:[%s23320_s4 + $0x40] sm:$0xff] }
0x1048   : > { %18643 = vmatprep.mubr.msk.f32.mxu0 %vm23479_vm1, %v19415_v11  ;;  %18612 = vmatpush3.msra.mxu0 %v17648_v60  ;;  %v17665_v60 = vld [vmem:[%s23322_s6 + $0x48] sm:$0xff] }
0x1049   : > { %18613 = vmatprep.subr.mxu0 %v19415_v11 }
0x104a   : > { %18614 = vmatpush3.msra.mxu0 %v17647_v30  ;;  %v17664_v30 = vld [vmem:[%s23322_s6 + $0x40] sm:$0xff] }
0x104b   : > { %18615 = vmatprep.subr.mxu0 %v19415_v11 }
0x104c   : > { %18616 = vmatpush3.msra.mxu0 %v17646_v15 }
0x104d   : > { %18617 = vmatprep.subr.mxu0 %v19415_v11 }
0x104e   : > { %18618 = vmatpush3.msra.mxu0 %v17645_v31 }
0x104f   : > { %18619 = vmatprep.subr.mxu0 %v19415_v11 }
0x1050   : > { %18620 = vmatpush3.msra.mxu0 %v17644_v32 }
0x1051   : > { %18621 = vmatprep.subr.mxu0 %v19415_v11 }
0x1052   : > { %18622 = vmatpush3.msra.mxu0 %v17643_v46 }
0x1053   : > { %18623 = vmatprep.subr.mxu0 %v19415_v11 }
0x1054   : > { %18624 = vmatpush3.msra.mxu0 %v17642_v3 }
0x1055   : > { %18625 = vmatprep.subr.mxu0 %v19415_v11 }
0x1056   : > { %18626 = vmatpush3.msra.mxu0 %v17641_v28 }
0x1057   : > { %18627 = vmatprep.subr.mxu0 %v19415_v11 }
0x1058   : > { %18628 = vmatpush3.msra.mxu0 %v17640_v36 }
0x1059   : > { %18629 = vmatprep.subr.mxu0 %v19415_v11 }
0x105a   : > { %18630 = vmatpush3.msra.mxu0 %v17639_v2 }
0x105b   : > { %18631 = vmatprep.subr.mxu0 %v19415_v11 }
0x105c   : > { %18632 = vmatpush3.msra.mxu0 %v17638_v24 }
0x105d   : > { %18633 = vmatprep.subr.mxu0 %v19415_v11 }
0x105e   : > { %18634 = vmatpush3.msra.mxu0 %v17637_v39 }
0x105f   : > { %18635 = vmatprep.subr.mxu0 %v19415_v11 }
0x1060   : > { %18636 = vmatpush3.msra.mxu0 %v17636_v53 }
0x1061   : > { %18637 = vmatprep.subr.mxu0 %v19415_v11 }
0x1062   : > { %18638 = vmatpush3.msra.mxu0 %v17635_v59 }
0x1063   : > { %18639 = vmatprep.subr.mxu0 %v19415_v11 }
0x1064   : > { %18640 = vmatpush3.msra.mxu0 %v17634_v6 }
0x1065   : > { %18641 = vmatprep.subr.mxu0 %v19415_v11 }
0x1066   : > { %18642 = vmatpush3.msra.mxu0 %v17633_v5 }
0x1067   : > { %18689 = vmatprep.subr.mxu0 %v19415_v11 }
0x1107   : > { %v11420_v25 = vpop.f32.mrf.mxu0 }
0x1108   : > { %v11421_v8 = vadd.f32 %v17620_v35, %v11420_v25 }
0x1109   : > { %v18599_v21 = vpop.f32.mrf.mxu0 }
0x110a   : > { %v11424_v19 = vadd.f32 %v11421_v8, %v20908_v22  ;;  %v17627_v22 = vld [vmem:[%s23327_s11 + $0x28] sm:$0xff] }
0x110b   : > { %18605 = vmatpush3.msra.mxu1 %v17627_v22  ;;  %v17667_v22 = vld [vmem:[%s23322_s6 + $0x58] sm:$0xff] }
0x110c   : > { %v11429_v1 = vsel %vm23418_vm0, %v11424_v19, 0.0  ;;  %18606 = vmatprep.subr.mxu1 %v19415_v11 }
0x110d   : > { %11430 = vadd.xlane.f32.xlu1 %v11429_v1  ;;  %18607 = vmatpush3.msra.mxu1 %v17626_v44  ;;  %v17666_v44 = vld [vmem:[%s23322_s6 + $0x50] sm:$0xff] }
0x110e   : > { %18646 = vmatprep.subr.mxu1 %v19415_v11 }
0x1196   : > { %v11431_v26 = vpop.xlane.xlu1 %11430 }
0x1197   : > { %v11432_v49 = vmul.f32 0.03125, %v11431_v26  ;;  %v17653_v26 = vld [vmem:[%s23319_s3 + $0x2] ss:$0 sm:$0xff] }
0x1199   : > { %v11433_v4 = vsub.f32 %v11424_v19, %v11432_v49  ;;  %v17652_v19 = vld [vmem:[#allocation7 + $0x2] ss:$0 sm:$0xff] }
0x119b   : > { %v11434_v0 = vmul.f32 %v11433_v4, %v11433_v4 }
0x119d   : > { %v11435_v55 = vsel %vm23418_vm0, %v11434_v0, 0.0  ;;  %v17662_v0 = vld [vmem:[%s23321_s5 + $0x58] sm:$0xff] }
0x119e   : > { %11436 = vadd.xlane.f32.xlu0 %v11435_v55  ;;  %v17661_v55 = vld [vmem:[%s23321_s5 + $0x50] sm:$0xff] }
0x1227   : > { %v11437_v40 = vpop.xlane.xlu0 %11436 }
0x1228   : > { %v11438_v9 = vmul.f32 0.03125, %v11437_v40 }
0x122a   : > { %v11439_v62 = vadd.f32 1e-05, %v11438_v9 }
0x122c   : > { %19157 = vrsqrt.f32 %v11439_v62 }
0x1239   : > { %v19158_v38 = vpop.eup %19157 }
0x123a   : > { %v11441_v16 = vmul.f32 %v19158_v38, %v11433_v4 }
0x123c   : > { %v11448_v23 = vmul.f32 %v17624_v45, %v11441_v16 }
0x123e   : > { %v11455_v12 = vadd.f32 %v17625_v29, %v11448_v23 }
0x1240   : > { %18609 = vmatmul.mubr.msk.f32.vlgmr.msra.gmra.mxu1 %vm23418_vm0, %v11455_v12 }
0x1241   : > { %18654 = vmatprep.mubr.msk.f32.mxu1 %vm23479_vm1, %v19415_v11  ;;  %18647 = vmatpush3.msra.mxu1 %v17657_v14 }
0x1242   : > { %18648 = vmatprep.subr.mxu1 %v19415_v11 }
0x1243   : > { %18649 = vmatpush3.msra.mxu1 %v17656_v51 }
0x1244   : > { %18650 = vmatprep.subr.mxu1 %v19415_v11 }
0x1245   : > { %18651 = vmatpush3.msra.mxu1 %v17655_v27 }
0x1246   : > { %18652 = vmatprep.subr.mxu1 %v19415_v11 }
0x1247   : > { %18653 = vmatpush3.msra.mxu1 %v17654_v18 }
0x1248   : > { %18657 = vmatprep.subr.mxu1 %v19415_v11 }
0x1300   : > { %v11538_v20 = vpop.f32.mrf.mxu1 }
0x1301   : > { %v11539_v13 = vadd.f32 %v17631_v33, %v11538_v20 }
0x1302   : > { %v18610_v61 = vpop.f32.mrf.mxu1 }
0x1303   : > { %v11542_v58 = vmax.f32 %v11539_v13, 0.0 }
0x1305   : > { %18644 = vmatmul.mubr.f32.vlgmr.msra.gmra.mxu0 %v11542_v58 }
0x1306   : > { %18691 = vmatprep.mubr.msk.f32.mxu0 %vm23479_vm1, %v19415_v11 }
0x13c5   : > { %v11634_v56 = vpop.f32.mrf.mxu0 }
0x13c6   : > { %v11635_v37 = vadd.f32 %v17650_v34, %v11634_v56 }
0x13c7   : > { %v18645_v43 = vpop.f32.mrf.mxu0 }
0x13c8   : > { %v11638_v42 = vadd.f32 %v11635_v37, %v11455_v12 }
0x13ca   : > { %v11643_v17 = vsel %vm23418_vm0, %v11638_v42, 0.0 }
0x13cb   : > { %11644 = vadd.xlane.f32.xlu0 %v11643_v17 }
0x1454   : > { %v11645_v54 = vpop.xlane.xlu0 %11644 }
0x1455   : > { %v11646_v63 = vmul.f32 0.03125, %v11645_v54 }
0x1457   : > { %v11647_v7 = vsub.f32 %v11638_v42, %v11646_v63 }
0x1459   : > { %v11648_v10 = vmul.f32 %v11647_v7, %v11647_v7 }
0x145b   : > { %v11649_v41 = vsel %vm23418_vm0, %v11648_v10, 0.0 }
0x145c   : > { %11650 = vadd.xlane.f32.xlu1 %v11649_v41 }
0x14e5   : > { %v11651_v35 = vpop.xlane.xlu1 %11650 }
0x14e6   : > { %v11652_v25 = vmul.f32 0.03125, %v11651_v35 }
0x14e8   : > { %v11653_v8 = vadd.f32 1e-05, %v11652_v25 }
0x14ea   : > { %19159 = vrsqrt.f32 %v11653_v8 }
0x14f7   : > { %v19160_v21 = vpop.eup %19159 }
0x14f8   : > { %v11655_v1 = vmul.f32 %v19160_v21, %v11647_v7 }
0x14fa   : > { %v11662_v49 = vmul.f32 %v17652_v19, %v11655_v1 }
0x14fc   : > { %v22061_v4 = vadd.f32 %v17653_v26, %v11662_v49 }
0x14fe   : > { %18655 = vmatmul.mubr.msk.f32.vlgmr.msra.gmra.mxu1 %vm23418_vm0, %v22061_v4 }
0x14ff   : > { %18658 = vmatpush3.msra.mxu1 %v17662_v0  ;;  %18665 = vmatprep.mubr.msk.f32.mxu1 %vm23479_vm1, %v19415_v11 }
0x1500   : > { %18659 = vmatprep.subr.mxu1 %v19415_v11 }
0x1501   : > { %18660 = vmatpush3.msra.mxu1 %v17661_v55 }
0x1502   : > { %18661 = vmatprep.subr.mxu1 %v19415_v11 }
0x1503   : > { %18662 = vmatpush3.msra.mxu1 %v17660_v48 }
0x1504   : > { %18663 = vmatprep.subr.mxu1 %v19415_v11 }
0x1505   : > { %18664 = vmatpush3.msra.mxu1 %v17659_v52 }
0x1506   : > { %18666 = vmatmul.mubr.msk.f32.vlgmr.msra.gmra.mxu1 %vm23418_vm0, %v22061_v4  ;;  %18668 = vmatprep.subr.mxu1 %v19415_v11 }
0x1507   : > { %18669 = vmatpush3.msra.mxu1 %v17667_v22  ;;  %18676 = vmatprep.mubr.msk.f32.mxu1 %vm23479_vm1, %v19415_v11 }
0x1508   : > { %18670 = vmatprep.subr.mxu1 %v19415_v11 }
0x1509   : > { %18671 = vmatpush3.msra.mxu1 %v17666_v44 }
0x150a   : > { %18672 = vmatprep.subr.mxu1 %v19415_v11 }
0x150b   : > { %18673 = vmatpush3.msra.mxu1 %v17665_v60 }
0x150c   : > { %18674 = vmatprep.subr.mxu1 %v19415_v11 }
0x150d   : > { %18675 = vmatpush3.msra.mxu1 %v17664_v30 }
0x150e   : > { %18677 = vmatmul.mubr.msk.f32.vlgmr.msra.gmra.mxu1 %vm23418_vm0, %v22061_v4  ;;  %18679 = vmatprep.subr.mxu1 %v19415_v11  ;;  %vm23498_vm0 = vcmask 113664  }
0x150f   : > { %18681 = vmatprep.mubr.msk.f32.mxu1 %vm23479_vm1, %v19415_v11 }
0x15be   : > { %v11744_v15 = vpop.f32.mrf.mxu1 }
0x15bf   : > { %v11748_v31 = vmul.f32 0.17677669, %v11744_v15 }
0x15c0   : > { %v18656_v32 = vpop.f32.mrf.mxu1 }
0x15c1   : > { %11903 = vrot.lane.b32.xlu1 %v11748_v31, %s23480_s2  ;;  %11900 = vrot.lane.b32.xlu0 %v11748_v31, %s23481_s0 }
0x15c5   : > { %11909 = vrot.lane.b32.xlu1 %v11748_v31, %s23482_s8  ;;  %11906 = vrot.lane.b32.xlu0 %v11748_v31, %s23483_s28 }
0x15c6   : > { %v22111_v46 = vpop.f32.mrf.mxu1 }
0x15c8   : > { %v18667_v3 = vpop.f32.mrf.mxu1 }
0x15c9   : > { %11915 = vrot.lane.b32.xlu1 %v11748_v31, %s23484_s7  ;;  %11912 = vrot.lane.b32.xlu0 %v11748_v31, %s23485_s26 }
0x15cd   : > { %11921 = vrot.lane.b32.xlu1 %v11748_v31, %s23486_s25  ;;  %11918 = vrot.lane.b32.xlu0 %v11748_v31, %s23455_s27 }
0x15ce   : > { %v22117_v28 = vpop.f32.mrf.mxu1 }
0x15d0   : > { %v18678_v36 = vpop.f32.mrf.mxu1 }
0x15d1   : > { %11927 = vrot.lane.b32.xlu1 %v11748_v31, %s23456_s1  ;;  %11924 = vrot.lane.b32.xlu0 %v11748_v31, %s23457_s19 }
0x15d5   : > { %11930 = vrot.lane.b32.xlu0 %v11748_v31, %s23458_s15  ;;  %12493 = vrot.lane.b32.xlu1 %v22111_v46, %s23480_s2 }
0x15d9   : > { %12496 = vrot.lane.b32.xlu1 %v22111_v46, %s23483_s28  ;;  %12490 = vrot.lane.b32.xlu0 %v22111_v46, %s23481_s0 }
0x15dd   : > { %11933 = vrot.lane.b32.xlu1 %v11748_v31, %s23459_s29  ;;  %11936 = vrot.lane.b32.xlu0 %v11748_v31, %s23460_s21 }
0x15e1   : > { %12499 = vrot.lane.b32.xlu1 %v22111_v46, %s23482_s8  ;;  %12502 = vrot.lane.b32.xlu0 %v22111_v46, %s23485_s26 }
0x15e5   : > { %12505 = vrot.lane.b32.xlu1 %v22111_v46, %s23484_s7  ;;  %12508 = vrot.lane.b32.xlu0 %v22111_v46, %s23455_s27 }
0x15e9   : > { %12511 = vrot.lane.b32.xlu1 %v22111_v46, %s23486_s25  ;;  %12514 = vrot.lane.b32.xlu0 %v22111_v46, %s23457_s19 }
0x15ed   : > { %12517 = vrot.lane.b32.xlu1 %v22111_v46, %s23456_s1  ;;  %12520 = vrot.lane.b32.xlu0 %v22111_v46, %s23458_s15 }
0x15f1   : > { %12523 = vrot.lane.b32.xlu1 %v22111_v46, %s23459_s29  ;;  %12526 = vrot.lane.b32.xlu0 %v22111_v46, %s23460_s21 }
0x15f5   : > { %12529 = vrot.lane.b32.xlu1 %v22111_v46, %s23461_s20  ;;  %12532 = vrot.lane.b32.xlu0 %v22111_v46, %s23462_s22 }
0x15f9   : > { %11939 = vrot.lane.b32.xlu1 %v11748_v31, %s23461_s20  ;;  %11942 = vrot.lane.b32.xlu0 %v11748_v31, %s23462_s22 }
0x15fd   : > { %13083 = vrot.lane.b32.xlu1 %v22117_v28, %s23480_s2  ;;  %13080 = vrot.lane.b32.xlu0 %v22117_v28, %s23481_s0  ;;  %s23494_s0 = smov 26  }
0x1601   : > { %13086 = vrot.lane.b32.xlu1 %v22117_v28, %s23483_s28  ;;  %13092 = vrot.lane.b32.xlu0 %v22117_v28, %s23485_s26  ;;  %s23496_s28 = smov 30   ;;  %s23510_s26 = sld [smem:[#allocation32_spill]] }
0x1605   : > { %13089 = vrot.lane.b32.xlu1 %v22117_v28, %s23482_s8  ;;  %13104 = vrot.lane.b32.xlu0 %v22117_v28, %s23457_s19  ;;  %s23492_s19 = smov 22   ;;  %s23495_s8 = smov 24  }
0x1609   : > { %13095 = vrot.lane.b32.xlu1 %v22117_v28, %s23484_s7  ;;  %s23497_s7 = smov 28  }
0x160d   : > { %13098 = vrot.lane.b32.xlu1 %v22117_v28, %s23455_s27  ;;  %s23490_s27 = smov 18  }
0x1611   : > { %13101 = vrot.lane.b32.xlu1 %v22117_v28, %s23486_s25 }
0x1615   : > { %13107 = vrot.lane.b32.xlu1 %v22117_v28, %s23456_s1  ;;  %s23491_s1 = smov 16  }
0x1619   : > { %13110 = vrot.lane.b32.xlu1 %v22117_v28, %s23458_s15  ;;  %s23493_s15 = smov 20  }
0x1633   : > { %v11904_v2 = vpop.permute.xlu1 %11903  ;;  %v11901_v24 = vpop.permute.xlu0 %11900 }
0x1634   : > { %v11945_v39 = vcombine.low %v11748_v31, %v11904_v2  ;;  %v11946_v53 = vcombine.high %v11748_v31, %v11904_v2 }
0x1636   : > { %v11953_v45 = vrot.slane %v11945_v39, %v19858_v50  ;;  %v11960_v16 = vrot.slane %v11946_v53, %v19858_v50 }
0x1637   : > { %v11910_v40 = vpop.permute.xlu1 %11909  ;;  %v11907_v9 = vpop.permute.xlu0 %11906 }
0x1638   : > { %v11961_v62 = vcombine.low %v11901_v24, %v11907_v9  ;;  %v11962_v38 = vcombine.high %v11901_v24, %v11907_v9 }
0x163a   : > { %v11969_v29 = vrot.slane %v11961_v62, %v19858_v50  ;;  %v11976_v23 = vrot.slane %v11962_v38, %v19858_v50 }
0x163b   : > { %v11916_v12 = vpop.permute.xlu1 %11915  ;;  %v11913_v59 = vpop.permute.xlu0 %11912 }
0x163c   : > { %v12009_v6 = vcombine.low %v11953_v45, %v11969_v29  ;;  %v12010_v5 = vcombine.high %v11953_v45, %v11969_v29  ;;  %v12025_v33 = vcombine.low %v11960_v16, %v11976_v23  ;;  %v12026_v20 = vcombine.high %v11960_v16, %v11976_v23 }
0x163d   : > { %v11977_v56 = vcombine.low %v11910_v40, %v11916_v12  ;;  %v11978_v37 = vcombine.high %v11910_v40, %v11916_v12 }
0x163e   : > { %v12017_v13 = vrot.slane %v12009_v6, %v19865_v57  ;;  %v12024_v61 = vrot.slane %v12010_v5, %v19865_v57  ;;  %v12033_v58 = vrot.slane %v12025_v33, %v19865_v57  ;;  %v12040_v34 = vrot.slane %v12026_v20, %v19865_v57 }
0x163f   : > { %v11922_v43 = vpop.permute.xlu1 %11921  ;;  %v11919_v42 = vpop.permute.xlu0 %11918  ;;  %v11985_v35 = vrot.slane %v11977_v56, %v19858_v50  ;;  %v11992_v25 = vrot.slane %v11978_v37, %v19858_v50 }
0x1640   : > { %v17669_v17 = vcombine.low %v12017_v13, %v12024_v61  ;;  %v17671_v54 = vcombine.high %v12017_v13, %v12024_v61  ;;  %v17673_v63 = vcombine.low %v12033_v58, %v12040_v34  ;;  %v17675_v7 = vcombine.high %v12033_v58, %v12040_v34 }
0x1641   : > { %v11993_v10 = vcombine.low %v11913_v59, %v11919_v42  ;;  %v11994_v41 = vcombine.high %v11913_v59, %v11919_v42 }
0x1642   : > { %v22187_v14 = vrot.slane %v17669_v17, %v19858_v50  ;;  %v22190_v51 = vrot.slane %v17671_v54, %v19858_v50  ;;  %v22193_v27 = vrot.slane %v17673_v63, %v19858_v50  ;;  %v22196_v18 = vrot.slane %v17675_v7, %v19858_v50 }
0x1643   : > { %v12001_v8 = vrot.slane %v11993_v10, %v19858_v50  ;;  %v12008_v21 = vrot.slane %v11994_v41, %v19858_v50  ;;  %v11928_v19 = vpop.permute.xlu1 %11927  ;;  %v11925_v1 = vpop.permute.xlu0 %11924 }
0x1644   : > { %v12281_v26 = vcombine.low %v22187_v14, %v22190_v51  ;;  %v12282_v49 = vcombine.high %v22187_v14, %v22190_v51  ;;  %v12313_v0 = vcombine.low %v22193_v27, %v22196_v18  ;;  %v12314_v55 = vcombine.high %v22193_v27, %v22196_v18 }
0x1645   : > { %v12041_v48 = vcombine.low %v11985_v35, %v12001_v8  ;;  %v12042_v52 = vcombine.high %v11985_v35, %v12001_v8  ;;  %v12057_v22 = vcombine.low %v11992_v25, %v12008_v21  ;;  %v12058_v44 = vcombine.high %v11992_v25, %v12008_v21 }
0x1646   : > { %v12081_v60 = vcombine.low %v11922_v43, %v11928_v19  ;;  %v12082_v30 = vcombine.high %v11922_v43, %v11928_v19  ;;  %v22211_v15 = vrot.slane %v12281_v26, %v19865_v57  ;;  %v22214_v31 = vrot.slane %v12313_v0, %v19865_v57 }
0x1647   : > { %v12049_v32 = vrot.slane %v12041_v48, %v19865_v57  ;;  %v12056_v3 = vrot.slane %v12042_v52, %v19865_v57  ;;  %v12065_v36 = vrot.slane %v12057_v22, %v19865_v57  ;;  %v12072_v2 = vrot.slane %v12058_v44, %v19865_v57  ;;  %v11931_v24 = vpop.permute.xlu0 %11930  ;;  %v12494_v39 = vpop.permute.xlu1 %12493 }
0x1648   : > { %v12089_v53 = vrot.slane %v12081_v60, %v19858_v50  ;;  %v12096_v40 = vrot.slane %v12082_v30, %v19858_v50  ;;  %v12097_v9 = vcombine.low %v11925_v1, %v11931_v24  ;;  %v12098_v62 = vcombine.high %v11925_v1, %v11931_v24 }
0x1649   : > { %v17670_v38 = vcombine.low %v12049_v32, %v12056_v3  ;;  %v17672_v45 = vcombine.high %v12049_v32, %v12056_v3  ;;  %v17674_v16 = vcombine.low %v12065_v36, %v12072_v2  ;;  %v17676_v29 = vcombine.high %v12065_v36, %v12072_v2 }
0x164a   : > { %v12105_v23 = vrot.slane %v12097_v9, %v19858_v50  ;;  %v12112_v12 = vrot.slane %v12098_v62, %v19858_v50  ;;  %v12535_v59 = vcombine.low %v22111_v46, %v12494_v39  ;;  %v12536_v6 = vcombine.high %v22111_v46, %v12494_v39 }
0x164b   : > { %v22227_v5 = vrot.slane %v17670_v38, %v19858_v50  ;;  %v22230_v33 = vrot.slane %v17672_v45, %v19858_v50  ;;  %v22233_v20 = vrot.slane %v17674_v16, %v19858_v50  ;;  %v22236_v13 = vrot.slane %v17676_v29, %v19858_v50  ;;  %v12497_v61 = vpop.permute.xlu1 %12496  ;;  %v12491_v58 = vpop.permute.xlu0 %12490 }
0x164c   : > { %v12145_v34 = vcombine.low %v12089_v53, %v12105_v23  ;;  %v12146_v56 = vcombine.high %v12089_v53, %v12105_v23  ;;  %v12161_v37 = vcombine.low %v12096_v40, %v12112_v12  ;;  %v12162_v43 = vcombine.high %v12096_v40, %v12112_v12 }
0x164d   : > { %v12297_v46 = vcombine.low %v22227_v5, %v22230_v33  ;;  %v12298_v42 = vcombine.high %v22227_v5, %v22230_v33  ;;  %v12329_v17 = vcombine.low %v22233_v20, %v22236_v13  ;;  %v12330_v54 = vcombine.high %v22233_v20, %v22236_v13 }
0x164e   : > { %v12153_v63 = vrot.slane %v12145_v34, %v19865_v57  ;;  %v12160_v7 = vrot.slane %v12146_v56, %v19865_v57  ;;  %v12169_v10 = vrot.slane %v12161_v37, %v19865_v57  ;;  %v12176_v41 = vrot.slane %v12162_v43, %v19865_v57 }
0x164f   : > { %v12543_v14 = vrot.slane %v12535_v59, %v19858_v50  ;;  %v12550_v51 = vrot.slane %v12536_v6, %v19858_v50  ;;  %v12551_v35 = vcombine.low %v12491_v58, %v12497_v61  ;;  %v12552_v25 = vcombine.high %v12491_v58, %v12497_v61  ;;  %v22252_v8 = vpop.permute.xlu1 %11933  ;;  %v22254_v21 = vpop.permute.xlu0 %11936 }
0x1650   : > { %v17677_v19 = vcombine.low %v12153_v63, %v12160_v7  ;;  %v17679_v1 = vcombine.high %v12153_v63, %v12160_v7  ;;  %v17681_v26 = vcombine.low %v12169_v10, %v12176_v41  ;;  %v17683_v0 = vcombine.high %v12169_v10, %v12176_v41 }
0x1651   : > { %v12559_v48 = vrot.slane %v12551_v35, %v19858_v50  ;;  %v12566_v52 = vrot.slane %v12552_v25, %v19858_v50  ;;  %v12345_v22 = vcombine.low %v22211_v15, %v22214_v31  ;;  %v22261_v44 = vrot.slane %v12282_v49, %v19865_v57 }
0x1652   : > { %v22264_v60 = vrot.slane %v17677_v19, %v19858_v50  ;;  %v22267_v30 = vrot.slane %v17679_v1, %v19858_v50  ;;  %v22270_v32 = vrot.slane %v17681_v26, %v19858_v50  ;;  %v22273_v3 = vrot.slane %v17683_v0, %v19858_v50 }
0x1653   : > { %v12599_v36 = vcombine.low %v12543_v14, %v12559_v48  ;;  %v12600_v2 = vcombine.high %v12543_v14, %v12559_v48  ;;  %v12615_v24 = vcombine.low %v12550_v51, %v12566_v52  ;;  %v12616_v39 = vcombine.high %v12550_v51, %v12566_v52  ;;  %v12500_v53 = vpop.permute.xlu1 %12499  ;;  %v12503_v40 = vpop.permute.xlu0 %12502 }
0x1654   : > { %v12417_v49 = vcombine.low %v22264_v60, %v22267_v30  ;;  %v12418_v9 = vcombine.high %v22264_v60, %v22267_v30  ;;  %v12449_v62 = vcombine.low %v22270_v32, %v22273_v3  ;;  %v12450_v38 = vcombine.high %v22270_v32, %v22273_v3 }
0x1655   : > { %v12607_v45 = vrot.slane %v12599_v36, %v19865_v57  ;;  %v12614_v16 = vrot.slane %v12600_v2, %v19865_v57  ;;  %v12623_v29 = vrot.slane %v12615_v24, %v19865_v57  ;;  %v12630_v23 = vrot.slane %v12616_v39, %v19865_v57 }
0x1656   : > { %v22291_v12 = vrot.slane %v12314_v55, %v19865_v57  ;;  %v12346_v59 = vcombine.high %v22211_v15, %v22214_v31  ;;  %v22296_v6 = vrot.slane %v12297_v46, %v19865_v57  ;;  %v22299_v61 = vrot.slane %v12329_v17, %v19865_v57 }
0x1657   : > { %v17685_v58 = vcombine.low %v12607_v45, %v12614_v16  ;;  %v17687_v34 = vcombine.high %v12607_v45, %v12614_v16  ;;  %v17689_v56 = vcombine.low %v12623_v29, %v12630_v23  ;;  %v17691_v37 = vcombine.high %v12623_v29, %v12630_v23  ;;  %v12506_v43 = vpop.permute.xlu1 %12505  ;;  %v12509_v63 = vpop.permute.xlu0 %12508 }
0x1658   : > { %v12567_v7 = vcombine.low %v12500_v53, %v12506_v43  ;;  %v12568_v10 = vcombine.high %v12500_v53, %v12506_v43  ;;  %v12583_v27 = vcombine.low %v12503_v40, %v12509_v63  ;;  %v12584_v18 = vcombine.high %v12503_v40, %v12509_v63 }
0x1659   : > { %v12815_v55 = vrot.slane %v17685_v58, %v19858_v50  ;;  %v12831_v41 = vrot.slane %v17687_v34, %v19858_v50  ;;  %v12847_v46 = vrot.slane %v17689_v56, %v19858_v50  ;;  %v12863_v14 = vrot.slane %v17691_v37, %v19858_v50 }
0x165a   : > { %v12575_v17 = vrot.slane %v12567_v7, %v19858_v50  ;;  %v12582_v51 = vrot.slane %v12568_v10, %v19858_v50  ;;  %v12591_v35 = vrot.slane %v12583_v27, %v19858_v50  ;;  %v12598_v25 = vrot.slane %v12584_v18, %v19858_v50 }
0x165b   : > { %v12871_v19 = vcombine.low %v12815_v55, %v12831_v41  ;;  %v12872_v1 = vcombine.high %v12815_v55, %v12831_v41  ;;  %v12903_v26 = vcombine.low %v12847_v46, %v12863_v14  ;;  %v12904_v0 = vcombine.high %v12847_v46, %v12863_v14  ;;  %v12512_v48 = vpop.permute.xlu1 %12511  ;;  %v12515_v52 = vpop.permute.xlu0 %12514 }
0x165c   : > { %v12631_v36 = vcombine.low %v12575_v17, %v12591_v35  ;;  %v12632_v2 = vcombine.high %v12575_v17, %v12591_v35  ;;  %v12647_v24 = vcombine.low %v12582_v51, %v12598_v25  ;;  %v12648_v39 = vcombine.high %v12582_v51, %v12598_v25 }
0x165d   : > { %v12879_v53 = vrot.slane %v12871_v19, %v19865_v57  ;;  %v12911_v40 = vrot.slane %v12903_v26, %v19865_v57  ;;  %v22312_v45 = vrot.slane %v12872_v1, %v19865_v57  ;;  %v22315_v16 = vrot.slane %v12904_v0, %v19865_v57 }
0x165e   : > { %v12639_v29 = vrot.slane %v12631_v36, %v19865_v57  ;;  %v12646_v23 = vrot.slane %v12632_v2, %v19865_v57  ;;  %v12655_v58 = vrot.slane %v12647_v24, %v19865_v57  ;;  %v12662_v34 = vrot.slane %v12648_v39, %v19865_v57 }
0x165f   : > { %v12935_v56 = vcombine.low %v12879_v53, %v12911_v40  ;;  %v12937_v37 = vcombine.low %v22312_v45, %v22315_v16  ;;  %v12518_v43 = vpop.permute.xlu1 %12517  ;;  %v12521_v63 = vpop.permute.xlu0 %12520  ;;  %v12347_v7 = vcombine.low %v22261_v44, %v22291_v12  ;;  %v12936_v10 = vcombine.high %v12879_v53, %v12911_v40 }
0x1660   : > { %v17686_v27 = vcombine.low %v12639_v29, %v12646_v23  ;;  %v17688_v18 = vcombine.high %v12639_v29, %v12646_v23  ;;  %v17690_v55 = vcombine.low %v12655_v58, %v12662_v34  ;;  %v17692_v41 = vcombine.high %v12655_v58, %v12662_v34 }
0x1661   : > { %18680 = vmatpush3.xpose.msk.msra.mxu1 %vm2642_vm2, %v12935_v56  ;;  %18690 = vmatpush3.xpose.msk.msra.mxu0 %vm2642_vm2, %v12937_v37  ;;  %v12671_v46 = vcombine.low %v12512_v48, %v12518_v43  ;;  %v12672_v14 = vcombine.high %v12512_v48, %v12518_v43  ;;  %v12687_v17 = vcombine.low %v12515_v52, %v12521_v63 }
0x1662   : > { %v22328_v51 = vrot.slane %v17686_v27, %v19858_v50  ;;  %v22331_v35 = vrot.slane %v17688_v18, %v19858_v50  ;;  %v22334_v25 = vrot.slane %v17690_v55, %v19858_v50  ;;  %v22337_v19 = vrot.slane %v17692_v41, %v19858_v50  ;;  %18684 = vmatprep.subr.mxu1 %v19415_v11 }
0x1663   : > { %v12679_v1 = vrot.slane %v12671_v46, %v19858_v50  ;;  %v12686_v26 = vrot.slane %v12672_v14, %v19858_v50  ;;  %v12688_v0 = vcombine.high %v12515_v52, %v12521_v63  ;;  %v12695_v48 = vrot.slane %v12687_v17, %v19858_v50  ;;  %v12524_v36 = vpop.permute.xlu1 %12523  ;;  %v12527_v2 = vpop.permute.xlu0 %12526  ;;  %18699 = vmatprep.subr.mxu0 %v19415_v11 }
0x1664   : > { %v12887_v24 = vcombine.low %v22328_v51, %v22331_v35  ;;  %v12888_v39 = vcombine.high %v22328_v51, %v22331_v35  ;;  %v12919_v53 = vcombine.low %v22334_v25, %v22337_v19  ;;  %v12920_v40 = vcombine.high %v22334_v25, %v22337_v19  ;;  %18682 = vmatmul.mubr.msk.f32.vlgmr.msra.gmra.mxu1 %vm2642_vm2, %v12345_v22 }
0x1665   : > { %v12702_v52 = vrot.slane %v12688_v0, %v19858_v50  ;;  %v12735_v29 = vcombine.low %v12679_v1, %v12695_v48  ;;  %v12736_v23 = vcombine.high %v12679_v1, %v12695_v48  ;;  %18692 = vmatmul.mubr.msk.f32.vlgmr.msra.gmra.mxu0 %vm2642_vm2, %v12347_v7  ;;  %18685 = vmatpush3.xpose.msk.msra.mxu1 %vm2642_vm2, %v12936_v10 }
0x1666   : > { %18686 = vmatprep.mubr.msk.f32.mxu1 %vm23479_vm1, %v19415_v11  ;;  %18694 = vmatprep.subr.mxu1 %v19415_v11  ;;  %v12938_v58 = vcombine.high %v22312_v45, %v22315_v16  ;;  %v12348_v34 = vcombine.high %v22261_v44, %v22291_v12  ;;  %v22367_v22 = vrot.slane %v12887_v24, %v19865_v57 }
0x1667   : > { %v12743_v56 = vrot.slane %v12735_v29, %v19865_v57  ;;  %v12750_v37 = vrot.slane %v12736_v23, %v19865_v57  ;;  %v12751_v43 = vcombine.low %v12686_v26, %v12702_v52  ;;  %v12752_v63 = vcombine.high %v12686_v26, %v12702_v52  ;;  %v12530_v7 = vpop.permute.xlu1 %12529  ;;  %v12533_v10 = vpop.permute.xlu0 %12532  ;;  %18701 = vmatprep.mubr.msk.f32.mxu0 %vm23479_vm1, %v19415_v11 }
0x1668   : > { %18687 = vmatmul.mubr.msk.f32.vlgmr.msra.gmra.mxu1 %vm2642_vm2, %v12346_v59  ;;  %v12703_v44 = vcombine.low %v12524_v36, %v12530_v7  ;;  %v12704_v12 = vcombine.high %v12524_v36, %v12530_v7  ;;  %v12719_v45 = vcombine.low %v12527_v2, %v12533_v10  ;;  %v12720_v16 = vcombine.high %v12527_v2, %v12533_v10 }
0x1669   : > { %v12759_v27 = vrot.slane %v12751_v43, %v19865_v57  ;;  %v12766_v18 = vrot.slane %v12752_v63, %v19865_v57  ;;  %v17693_v55 = vcombine.low %v12743_v56, %v12750_v37  ;;  %v17695_v41 = vcombine.high %v12743_v56, %v12750_v37  ;;  %18695 = vmatpush3.xpose.msk.msra.mxu1 %vm2642_vm2, %v12938_v58 }
0x166a   : > { %v12711_v46 = vrot.slane %v12703_v44, %v19858_v50  ;;  %v12718_v14 = vrot.slane %v12704_v12, %v19858_v50  ;;  %v12727_v15 = vrot.slane %v12719_v45, %v19858_v50  ;;  %v12734_v31 = vrot.slane %v12720_v16, %v19858_v50  ;;  %18696 = vmatprep.mubr.msk.f32.mxu1 %vm23479_vm1, %v19415_v11 }
0x166b   : > { %v22387_v59 = vrot.slane %v17693_v55, %v19858_v50  ;;  %v22390_v17 = vrot.slane %v17695_v41, %v19858_v50  ;;  %v17697_v1 = vcombine.low %v12759_v27, %v12766_v18  ;;  %v17699_v26 = vcombine.high %v12759_v27, %v12766_v18  ;;  %18704 = vmatprep.subr.mxu1 %v19415_v11  ;;  %v11940_v0 = vpop.permute.xlu1 %11939  ;;  %v11943_v55 = vpop.permute.xlu0 %11942 }
0x166c   : > { %v12767_v48 = vcombine.low %v12711_v46, %v12727_v15  ;;  %v12768_v36 = vcombine.high %v12711_v46, %v12727_v15  ;;  %v12783_v2 = vcombine.low %v12718_v14, %v12734_v31  ;;  %v12784_v24 = vcombine.high %v12718_v14, %v12734_v31  ;;  %18697 = vmatmul.mubr.msk.f32.vlgmr.msra.gmra.mxu1 %vm2642_vm2, %v12348_v34 }
0x166d   : > { %v22395_v52 = vrot.slane %v17697_v1, %v19858_v50  ;;  %v22398_v29 = vrot.slane %v17699_v26, %v19858_v50  ;;  %v13007_v23 = vcombine.low %v22387_v59, %v22390_v17  ;;  %v13008_v58 = vcombine.high %v22387_v59, %v22390_v17  ;;  %18706 = vmatprep.mubr.msk.f32.mxu1 %vm23479_vm1, %v19415_v11 }
0x166e   : > { %v12775_v56 = vrot.slane %v12767_v48, %v19865_v57  ;;  %v12782_v37 = vrot.slane %v12768_v36, %v19865_v57  ;;  %v12791_v34 = vrot.slane %v12783_v2, %v19865_v57  ;;  %v12798_v43 = vrot.slane %v12784_v24, %v19865_v57 }
0x166f   : > { %v13039_v63 = vcombine.low %v22395_v52, %v22398_v29  ;;  %v13040_v7 = vcombine.high %v22395_v52, %v22398_v29  ;;  %v12927_v10 = vrot.slane %v12919_v53, %v19865_v57  ;;  %v12113_v44 = vcombine.low %v22252_v8, %v11940_v0  ;;  %v13084_v12 = vpop.permute.xlu1 %13083 }
0x1670   : > { %v17694_v45 = vcombine.low %v12775_v56, %v12782_v37  ;;  %v17696_v16 = vcombine.high %v12775_v56, %v12782_v37  ;;  %v17698_v27 = vcombine.low %v12791_v34, %v12798_v43  ;;  %v17700_v18 = vcombine.high %v12791_v34, %v12798_v43 }
0x1671   : > { %v12939_v41 = vcombine.low %v22367_v22, %v12927_v10  ;;  %v12940_v46 = vcombine.high %v22367_v22, %v12927_v10  ;;  %v12114_v14 = vcombine.high %v22252_v8, %v11940_v0  ;;  %v12121_v15 = vrot.slane %v12113_v44, %v19858_v50 }
0x1672   : > { %v22421_v31 = vrot.slane %v17694_v45, %v19858_v50  ;;  %v22424_v53 = vrot.slane %v17696_v16, %v19858_v50  ;;  %v22427_v1 = vrot.slane %v17698_v27, %v19858_v50  ;;  %v22430_v26 = vrot.slane %v17700_v18, %v19858_v50 }
0x1673   : > { %18700 = vmatpush3.xpose.msk.msra.mxu0 %vm2642_vm2, %v12939_v41  ;;  %18705 = vmatpush3.xpose.msk.msra.mxu1 %vm2642_vm2, %v12940_v46  ;;  %v12128_v8 = vrot.slane %v12114_v14, %v19858_v50  ;;  %v12129_v22 = vcombine.low %v22254_v21, %v11943_v55  ;;  %v12130_v0 = vcombine.high %v22254_v21, %v11943_v55  ;;  %v22437_v48 = vpop.permute.xlu1 %13086 }
0x1674   : > { %v13023_v36 = vcombine.low %v22421_v31, %v22424_v53  ;;  %v13024_v2 = vcombine.high %v22421_v31, %v22424_v53  ;;  %v13055_v24 = vcombine.low %v22427_v1, %v22430_v26  ;;  %v13056_v56 = vcombine.high %v22427_v1, %v22430_v26  ;;  %18709 = vmatprep.subr.mxu0 %v19415_v11 }
0x1675   : > { %v12137_v37 = vrot.slane %v12129_v22, %v19858_v50  ;;  %v12144_v21 = vrot.slane %v12130_v0, %v19858_v50  ;;  %v12349_v34 = vcombine.low %v22296_v6, %v22299_v61  ;;  %v12350_v43 = vcombine.high %v22296_v6, %v22299_v61  ;;  %18714 = vmatprep.subr.mxu1 %v19415_v11 }
0x1676   : > { %v12902_v10 = vrot.slane %v12888_v39, %v19865_v57  ;;  %v12934_v44 = vrot.slane %v12920_v40, %v19865_v57  ;;  %v13125_v45 = vcombine.low %v22117_v28, %v13084_v12  ;;  %v13126_v16 = vcombine.high %v22117_v28, %v13084_v12 }
0x1677   : > { %v12177_v27 = vcombine.low %v12121_v15, %v12137_v37  ;;  %v12178_v18 = vcombine.high %v12121_v15, %v12137_v37  ;;  %v12193_v55 = vcombine.low %v12128_v8, %v12144_v21  ;;  %v12194_v6 = vcombine.high %v12128_v8, %v12144_v21  ;;  %18702 = vmatmul.mubr.msk.f32.vlgmr.msra.gmra.mxu0 %vm2642_vm2, %v12349_v34  ;;  %v22466_v61 = vpop.permute.xlu1 %13089  ;;  %v13081_v34 = vpop.permute.xlu0 %13080 }
0x1678   : > { %18707 = vmatmul.mubr.msk.f32.vlgmr.msra.gmra.mxu1 %vm2642_vm2, %v12350_v43  ;;  %v12941_v51 = vcombine.low %v12902_v10, %v12934_v44  ;;  %v12942_v35 = vcombine.high %v12902_v10, %v12934_v44  ;;  %v13133_v39 = vrot.slane %v13125_v45, %v19858_v50  ;;  %v22471_v25 = vrot.slane %v13126_v16, %v19858_v50 }
0x1679   : > { %v12185_v19 = vrot.slane %v12177_v27, %v19865_v57  ;;  %v12192_v40 = vrot.slane %v12178_v18, %v19865_v57  ;;  %v12201_v12 = vrot.slane %v12193_v55, %v19865_v57  ;;  %v12208_v41 = vrot.slane %v12194_v6, %v19865_v57  ;;  %18711 = vmatprep.mubr.msk.f32.mxu0 %vm23479_vm1, %v19415_v11 }
0x167a   : > { %18710 = vmatpush3.xpose.msk.msra.mxu0 %vm2642_vm2, %v12941_v51  ;;  %18715 = vmatpush3.xpose.msk.msra.mxu1 %vm2642_vm2, %v12942_v35  ;;  %v12312_v46 = vrot.slane %v12298_v42, %v19865_v57  ;;  %v12344_v14 = vrot.slane %v12330_v54, %v19865_v57  ;;  %v13015_v15 = vrot.slane %v13007_v23, %v19865_v57 }
0x167b   : > { %v17678_v8 = vcombine.low %v12185_v19, %v12192_v40  ;;  %v17680_v22 = vcombine.high %v12185_v19, %v12192_v40  ;;  %v17682_v0 = vcombine.low %v12201_v12, %v12208_v41  ;;  %v17684_v37 = vcombine.high %v12201_v12, %v12208_v41  ;;  %18716 = vmatprep.mubr.msk.f32.mxu1 %vm23479_vm1, %v19415_v11  ;;  %v22501_v20 = vpop.permute.xlu1 %13095 }
0x167c   : > { %v12351_v21 = vcombine.low %v12312_v46, %v12344_v14  ;;  %v12352_v5 = vcombine.high %v12312_v46, %v12344_v14  ;;  %18719 = vmatprep.subr.mxu0 %v19415_v11  ;;  %18724 = vmatprep.subr.mxu1 %v19415_v11  ;;  %v13047_v33 = vrot.slane %v13039_v63, %v19865_v57 }
0x167d   : > { %v22504_v13 = vrot.slane %v17678_v8, %v19858_v50  ;;  %v22507_v42 = vrot.slane %v17680_v22, %v19858_v50  ;;  %v22510_v54 = vrot.slane %v17682_v0, %v19858_v50  ;;  %v22513_v23 = vrot.slane %v17684_v37, %v19858_v50 }
0x167e   : > { %18712 = vmatmul.mubr.msk.f32.vlgmr.msra.gmra.mxu0 %vm2642_vm2, %v12351_v21  ;;  %18717 = vmatmul.mubr.msk.f32.vlgmr.msra.gmra.mxu1 %vm2642_vm2, %v12352_v5  ;;  %v13071_v63 = vcombine.low %v13015_v15, %v13047_v33  ;;  %v13072_v43 = vcombine.high %v13015_v15, %v13047_v33  ;;  %v13141_v10 = vcombine.low %v13081_v34, %v22437_v48 }
0x167f   : > { %v12433_v44 = vcombine.low %v22504_v13, %v22507_v42  ;;  %v12434_v45 = vcombine.high %v22504_v13, %v22507_v42  ;;  %v12465_v16 = vcombine.low %v22510_v54, %v22513_v23  ;;  %v12466_v27 = vcombine.high %v22510_v54, %v22513_v23  ;;  %18721 = vmatprep.mubr.msk.f32.mxu0 %vm23479_vm1, %v19415_v11  ;;  %v22557_v12 = vpop.permute.xlu1 %13098 }
0x1680   : > { %18720 = vmatpush3.xpose.msk.msra.mxu0 %vm2642_vm2, %v13071_v63  ;;  %18725 = vmatpush3.xpose.msk.msra.mxu1 %vm2642_vm2, %v13072_v43  ;;  %v13142_v18 = vcombine.high %v13081_v34, %v22437_v48  ;;  %v13149_v55 = vrot.slane %v13141_v10, %v19858_v50  ;;  %v12425_v6 = vrot.slane %v12417_v49, %v19865_v57  ;;  %v13093_v43 = vpop.permute.xlu0 %13092 }
0x1681   : > { %18726 = vmatprep.mubr.msk.f32.mxu1 %vm23479_vm1, %v19415_v11  ;;  %v12457_v51 = vrot.slane %v12449_v62, %v19865_v57  ;;  %18729 = vmatprep.subr.mxu0 %v19415_v11  ;;  %v13022_v48 = vrot.slane %v13008_v58, %v19865_v57  ;;  %v13054_v49 = vrot.slane %v13040_v7, %v19865_v57 }
0x1682   : > { %v13156_v35 = vrot.slane %v13142_v18, %v19858_v50  ;;  %v13189_v19 = vcombine.low %v13133_v39, %v13149_v55  ;;  %v13190_v40 = vcombine.high %v13133_v39, %v13149_v55  ;;  %18734 = vmatprep.subr.mxu1 %v19415_v11  ;;  %v12432_v62 = vrot.slane %v12418_v9, %v19865_v57 }
0x1683   : > { %v12481_v59 = vcombine.low %v12425_v6, %v12457_v51  ;;  %v12482_v17 = vcombine.high %v12425_v6, %v12457_v51  ;;  %v13073_v58 = vcombine.low %v13022_v48, %v13054_v49  ;;  %v13074_v41 = vcombine.high %v13022_v48, %v13054_v49  ;;  %v22591_v0 = vpop.permute.xlu1 %13101 }
0x1684   : > { %v13197_v52 = vrot.slane %v13189_v19, %v19865_v57  ;;  %v13204_v29 = vrot.slane %v13190_v40, %v19865_v57  ;;  %v13205_v7 = vcombine.low %v22471_v25, %v13156_v35  ;;  %v13206_v39 = vcombine.high %v22471_v25, %v13156_v35 }
0x1685   : > { %18722 = vmatmul.mubr.msk.f32.vlgmr.msra.gmra.mxu0 %vm2642_vm2, %v12481_v59  ;;  %18727 = vmatmul.mubr.msk.f32.vlgmr.msra.gmra.mxu1 %vm2642_vm2, %v12482_v17  ;;  %v12464_v60 = vrot.slane %v12450_v38, %v19865_v57  ;;  %v13031_v30 = vrot.slane %v13023_v36, %v19865_v57  ;;  %v13063_v9 = vrot.slane %v13055_v24, %v19865_v57 }
0x1686   : > { %v13213_v25 = vrot.slane %v13205_v7, %v19865_v57  ;;  %v13220_v46 = vrot.slane %v13206_v39, %v19865_v57  ;;  %v17701_v14 = vcombine.low %v13197_v52, %v13204_v29  ;;  %v17703_v15 = vcombine.high %v13197_v52, %v13204_v29  ;;  %18730 = vmatpush3.xpose.msk.msra.mxu0 %vm2642_vm2, %v13073_v58 }
0x1687   : > { %18735 = vmatpush3.xpose.msk.msra.mxu1 %vm2642_vm2, %v13074_v41  ;;  %18731 = vmatprep.mubr.msk.f32.mxu0 %vm23479_vm1, %v19415_v11  ;;  %v12483_v32 = vcombine.low %v12432_v62, %v12464_v60  ;;  %v12484_v3 = vcombine.high %v12432_v62, %v12464_v60  ;;  %v13075_v38 = vcombine.low %v13031_v30, %v13063_v9  ;;  %v13108_v1 = vpop.permute.xlu1 %13107 }
0x1688   : > { %v22584_v36 = vrot.slane %v17701_v14, %v19858_v50  ;;  %v22587_v24 = vrot.slane %v17703_v15, %v19858_v50  ;;  %v17705_v8 = vcombine.low %v13213_v25, %v13220_v46  ;;  %v17707_v22 = vcombine.high %v13213_v25, %v13220_v46  ;;  %18736 = vmatprep.mubr.msk.f32.mxu1 %vm23479_vm1, %v19415_v11  ;;  %v13105_v25 = vpop.permute.xlu0 %13104 }
0x1689   : > { %18732 = vmatmul.mubr.msk.f32.vlgmr.msra.gmra.mxu0 %vm2642_vm2, %v12483_v32  ;;  %18739 = vmatprep.subr.mxu0 %v19415_v11  ;;  %v13076_v37 = vcombine.high %v13031_v30, %v13063_v9  ;;  %v13157_v21 = vcombine.low %v22466_v61, %v22501_v20  ;;  %v13158_v5 = vcombine.high %v22466_v61, %v22501_v20 }
0x168a   : > { %v22600_v33 = vrot.slane %v17705_v8, %v19858_v50  ;;  %v22603_v34 = vrot.slane %v17707_v22, %v19858_v50  ;;  %18737 = vmatmul.mubr.msk.f32.vlgmr.msra.gmra.mxu1 %vm2642_vm2, %v12484_v3  ;;  %18744 = vmatprep.subr.mxu1 %v19415_v11  ;;  %v12441_v63 = vrot.slane %v12433_v44, %v19865_v57 }
0x168b   : > { %18740 = vmatpush3.xpose.msk.msra.mxu0 %vm2642_vm2, %v13075_v38  ;;  %18745 = vmatpush3.xpose.msk.msra.mxu1 %vm2642_vm2, %v13076_v37  ;;  %v13165_v10 = vrot.slane %v13157_v21, %v19858_v50  ;;  %v13172_v61 = vrot.slane %v13158_v5, %v19858_v50  ;;  %v12473_v20 = vrot.slane %v12465_v16, %v19865_v57  ;;  %v13111_v7 = vpop.permute.xlu1 %13110 }
0x168c   : > { %18741 = vmatprep.mubr.msk.f32.mxu0 %vm23479_vm1, %v19415_v11  ;;  %18746 = vmatprep.mubr.msk.f32.mxu1 %vm23479_vm1, %v19415_v11  ;;  %v13038_v44 = vrot.slane %v13024_v2, %v19865_v57  ;;  %v13070_v18 = vrot.slane %v13056_v56, %v19865_v57  ;;  %v13173_v55 = vcombine.low %v13093_v43, %v22557_v12 }
0x168d   : > { %18749 = vmatprep.subr.mxu0 %v19415_v11  ;;  %18754 = vmatprep.subr.mxu1 %v19415_v11  ;;  %v12485_v16 = vcombine.low %v12441_v63, %v12473_v20  ;;  %v12486_v6 = vcombine.high %v12441_v63, %v12473_v20  ;;  %v13174_v51 = vcombine.high %v13093_v43, %v22557_v12 }
0x168e   : > { %v13077_v48 = vcombine.low %v13038_v44, %v13070_v18  ;;  %v13078_v49 = vcombine.high %v13038_v44, %v13070_v18  ;;  %v13181_v31 = vrot.slane %v13173_v55, %v19858_v50  ;;  %v12448_v53 = vrot.slane %v12434_v45, %v19865_v57 }
0x168f   : > { %18742 = vmatmul.mubr.msk.f32.vlgmr.msra.gmra.mxu0 %vm2642_vm2, %v12485_v16  ;;  %18747 = vmatmul.mubr.msk.f32.vlgmr.msra.gmra.mxu1 %vm2642_vm2, %v12486_v6  ;;  %v13188_v26 = vrot.slane %v13174_v51, %v19858_v50  ;;  %v12480_v2 = vrot.slane %v12466_v27, %v19865_v57  ;;  %v13461_v56 = vcombine.low %v22584_v36, %v22587_v24 }
0x1690   : > { %18750 = vmatpush3.xpose.msk.msra.mxu0 %vm2642_vm2, %v13077_v48  ;;  %18755 = vmatpush3.xpose.msk.msra.mxu1 %vm2642_vm2, %v13078_v49  ;;  %v13221_v13 = vcombine.low %v13165_v10, %v13181_v31  ;;  %v13222_v42 = vcombine.high %v13165_v10, %v13181_v31  ;;  %v13493_v45 = vcombine.low %v22600_v33, %v22603_v34 }
0x1691   : > { %v13237_v35 = vcombine.low %v13172_v61, %v13188_v26  ;;  %v13238_v19 = vcombine.high %v13172_v61, %v13188_v26  ;;  %18751 = vmatprep.mubr.msk.f32.mxu0 %vm23479_vm1, %v19415_v11  ;;  %18756 = vmatprep.mubr.msk.f32.mxu1 %vm23479_vm1, %v19415_v11  ;;  %v12487_v54 = vcombine.low %v12448_v53, %v12480_v2 }
0x1692   : > { %v13229_v23 = vrot.slane %v13221_v13, %v19865_v57  ;;  %v13236_v27 = vrot.slane %v13222_v42, %v19865_v57  ;;  %v12488_v40 = vcombine.high %v12448_v53, %v12480_v2  ;;  %18759 = vmatprep.subr.mxu0 %v19415_v11  ;;  %18764 = vmatprep.subr.mxu1 %v19415_v11 }
0x1693   : > { %v13245_v62 = vrot.slane %v13237_v35, %v19865_v57  ;;  %v13252_v12 = vrot.slane %v13238_v19, %v19865_v57  ;;  %18752 = vmatmul.mubr.msk.f32.vlgmr.msra.gmra.mxu0 %vm2642_vm2, %v12487_v54  ;;  %v13469_v59 = vrot.slane %v13461_v56, %v19865_v57  ;;  %v13501_v17 = vrot.slane %v13493_v45, %v19865_v57 }
0x1694   : > { %v17702_v58 = vcombine.low %v13229_v23, %v13236_v27  ;;  %v17704_v41 = vcombine.high %v13229_v23, %v13236_v27  ;;  %18757 = vmatmul.mubr.msk.f32.vlgmr.msra.gmra.mxu1 %vm2642_vm2, %v12488_v40  ;;  %v13261_v52 = vcombine.low %v22591_v0, %v13108_v1  ;;  %v13262_v29 = vcombine.high %v22591_v0, %v13108_v1 }
0x1695   : > { %v17706_v39 = vcombine.low %v13245_v62, %v13252_v12  ;;  %v17708_v60 = vcombine.high %v13245_v62, %v13252_v12  ;;  %v13525_v30 = vcombine.low %v13469_v59, %v13501_v17  ;;  %v13526_v9 = vcombine.high %v13469_v59, %v13501_v17  ;;  %18761 = vmatprep.mubr.msk.f32.mxu0 %vm23479_vm1, %v19415_v11 }
0x1696   : > { %v13412_v46 = vrot.slane %v17702_v58, %v19858_v50  ;;  %v13428_v14 = vrot.slane %v17704_v41, %v19858_v50  ;;  %v13269_v15 = vrot.slane %v13261_v52, %v19858_v50  ;;  %v13276_v32 = vrot.slane %v13262_v29, %v19858_v50  ;;  %18766 = vmatprep.mubr.msk.f32.mxu1 %vm23479_vm1, %v19415_v11 }
0x1697   : > { %v13444_v3 = vrot.slane %v17706_v39, %v19858_v50  ;;  %v13460_v38 = vrot.slane %v17708_v60, %v19858_v50  ;;  %18760 = vmatpush3.msra.mxu0 %v13525_v30  ;;  %18765 = vmatpush3.msra.mxu1 %v13526_v9  ;;  %v13277_v8 = vcombine.low %v13105_v25, %v13111_v7 }
0x1698   : > { %v13278_v22 = vcombine.high %v13105_v25, %v13111_v7  ;;  %18769 = vmatprep.subr.mxu0 %v19415_v11  ;;  %v13462_v0 = vcombine.high %v22584_v36, %v22587_v24  ;;  %v13494_v37 = vcombine.high %v22600_v33, %v22603_v34  ;;  %18774 = vmatprep.subr.mxu1 %v19415_v11 }
0x1699   : > { %v13285_v21 = vrot.slane %v13277_v8, %v19858_v50  ;;  %v13477_v5 = vcombine.low %v13412_v46, %v13428_v14  ;;  %v13509_v63 = vcombine.low %v13444_v3, %v13460_v38  ;;  %v13478_v43 = vcombine.high %v13412_v46, %v13428_v14 }
0x169a   : > { %v13292_v10 = vrot.slane %v13278_v22, %v19858_v50  ;;  %v22685_v61 = vrot.slane %v13462_v0, %v19865_v57  ;;  %v22688_v20 = vrot.slane %v13494_v37, %v19865_v57  ;;  %v13510_v44 = vcombine.high %v13444_v3, %v13460_v38 }
0x169b   : > { %v13325_v36 = vcombine.low %v13269_v15, %v13285_v21  ;;  %v13326_v24 = vcombine.high %v13269_v15, %v13285_v21  ;;  %v22691_v33 = vrot.slane %v13477_v5, %v19865_v57  ;;  %v22694_v34 = vrot.slane %v13509_v63, %v19865_v57 }
0x169c   : > { %v13341_v18 = vcombine.low %v13276_v32, %v13292_v10  ;;  %v13342_v55 = vcombine.high %v13276_v32, %v13292_v10  ;;  %v13527_v16 = vcombine.low %v22685_v61, %v22688_v20  ;;  %v13528_v6 = vcombine.high %v22685_v61, %v22688_v20 }
0x169d   : > { %v13333_v51 = vrot.slane %v13325_v36, %v19865_v57  ;;  %v13340_v48 = vrot.slane %v13326_v24, %v19865_v57  ;;  %v13529_v49 = vcombine.low %v22691_v33, %v22694_v34  ;;  %v13530_v31 = vcombine.high %v22691_v33, %v22694_v34 }
0x169e   : > { %v13349_v53 = vrot.slane %v13341_v18, %v19865_v57  ;;  %v13356_v1 = vrot.slane %v13342_v55, %v19865_v57  ;;  %v22709_v26 = vrot.slane %v13478_v43, %v19865_v57  ;;  %v22712_v2 = vrot.slane %v13510_v44, %v19865_v57 }
0x169f   : > { %v17709_v56 = vcombine.low %v13333_v51, %v13340_v48  ;;  %v17711_v13 = vcombine.high %v13333_v51, %v13340_v48 }
0x16a0   : > { %v17713_v42 = vcombine.low %v13349_v53, %v13356_v1  ;;  %v17715_v45 = vcombine.high %v13349_v53, %v13356_v1  ;;  %v13531_v35 = vcombine.low %v22709_v26, %v22712_v2  ;;  %v13532_v19 = vcombine.high %v22709_v26, %v22712_v2 }
0x16a1   : > { %v13541_v54 = vrot.slane %v17709_v56, %v19858_v50  ;;  %v13557_v23 = vrot.slane %v17711_v13, %v19858_v50 }
0x16a2   : > { %v13573_v27 = vrot.slane %v17713_v42, %v19858_v50  ;;  %v13589_v40 = vrot.slane %v17715_v45, %v19858_v50 }
0x16a3   : > { %v13597_v62 = vcombine.low %v13541_v54, %v13557_v23  ;;  %v13598_v12 = vcombine.high %v13541_v54, %v13557_v23 }
0x16a4   : > { %v13629_v59 = vcombine.low %v13573_v27, %v13589_v40  ;;  %v13630_v17 = vcombine.high %v13573_v27, %v13589_v40 }
0x16a5   : > { %v22723_v58 = vrot.slane %v13597_v62, %v19865_v57  ;;  %v22726_v41 = vrot.slane %v13598_v12, %v19865_v57 }
0x16a6   : > { %v22729_v52 = vrot.slane %v13629_v59, %v19865_v57  ;;  %v22732_v29 = vrot.slane %v13630_v17, %v19865_v57 }
0x16a8   : > { %v13661_v7 = vcombine.low %v22723_v58, %v22729_v52  ;;  %v13662_v39 = vcombine.high %v22723_v58, %v22729_v52  ;;  %v13663_v60 = vcombine.low %v22726_v41, %v22732_v29  ;;  %v13664_v30 = vcombine.high %v22726_v41, %v22732_v29 }
0x1724   : > { %v13741_v9 = vpop.f32.mrf.mxu1 }
0x1725   : > { %v22743_v25 = vadd.f32 %v13741_v9, %v20302_v47  ;;  %v13893_v46 = vpop.f32.mrf.mxu0 }
0x1726   : > { %v22746_v14 = vadd.f32 %v13893_v46, %v20302_v47  ;;  %v18683_v15 = vpop.f32.mrf.mxu1 }
0x1727   : > { %v18693_v32 = vpop.f32.mrf.mxu0  ;;  %v14885_v3 = vsel %vm3859_vm4, %v22743_v25, -inf }
0x1728   : > { %v14891_v38 = vsel %vm3859_vm4, %v22746_v14, -inf  ;;  %14886 = vmax.xlane.f32.xlu1 %v14885_v3  ;;  %v13817_v8 = vpop.f32.mrf.mxu1 }
0x1729   : > { %14892 = vmax.xlane.f32.xlu0 %v14891_v38  ;;  %v22753_v22 = vadd.f32 %v13817_v8, %v20302_v47 }
0x172a   : > { %v18688_v0 = vpop.f32.mrf.mxu1 }
0x172b   : > { %v14888_v37 = vsel %vm3859_vm4, %v22753_v22, -inf }
0x172c   : > { %v13969_v21 = vpop.f32.mrf.mxu1 }
0x172d   : > { %14889 = vmax.xlane.f32.xlu0 %v14888_v37  ;;  %v22758_v5 = vadd.f32 %v13969_v21, %v20302_v47 }
0x172e   : > { %v18698_v63 = vpop.f32.mrf.mxu1 }
0x172f   : > { %v14894_v43 = vsel %vm3859_vm4, %v22758_v5, -inf }
0x1730   : > { %14895 = vmax.xlane.f32.xlu1 %v14894_v43 }
0x1737   : > { %v14045_v10 = vpop.f32.mrf.mxu0 }
0x1738   : > { %v22763_v44 = vadd.f32 %v14045_v10, %v20302_v47  ;;  %v14121_v36 = vpop.f32.mrf.mxu1 }
0x1739   : > { %v22766_v24 = vadd.f32 %v14121_v36, %v20302_v47  ;;  %v18703_v18 = vpop.f32.mrf.mxu0 }
0x173a   : > { %v18708_v55 = vpop.f32.mrf.mxu1  ;;  %v14897_v51 = vsel %vm3859_vm4, %v22763_v44, -inf }
0x173b   : > { %14898 = vmax.xlane.f32.xlu0 %v14897_v51  ;;  %v14900_v48 = vsel %vm3859_vm4, %v22766_v24, -inf }
0x173c   : > { %14901 = vmax.xlane.f32.xlu1 %v14900_v48 }
0x173e   : > { %v14197_v53 = vpop.f32.mrf.mxu0  ;;  %v14273_v1 = vpop.f32.mrf.mxu1 }
0x173f   : > { %v22773_v56 = vadd.f32 %v14197_v53, %v20302_v47  ;;  %v22776_v13 = vadd.f32 %v14273_v1, %v20302_v47 }
0x1740   : > { %v18713_v42 = vpop.f32.mrf.mxu0  ;;  %v18718_v45 = vpop.f32.mrf.mxu1 }
0x1741   : > { %v14903_v54 = vsel %vm3859_vm4, %v22773_v56, -inf  ;;  %v14906_v23 = vsel %vm3859_vm4, %v22776_v13, -inf }
0x1742   : > { %14904 = vmax.xlane.f32.xlu0 %v14903_v54  ;;  %14907 = vmax.xlane.f32.xlu1 %v14906_v23 }
0x1745   : > { %v14349_v27 = vpop.f32.mrf.mxu0  ;;  %v14425_v40 = vpop.f32.mrf.mxu1 }
0x1746   : > { %v22783_v62 = vadd.f32 %v14349_v27, %v20302_v47  ;;  %v22786_v12 = vadd.f32 %v14425_v40, %v20302_v47 }
0x1747   : > { %v18723_v59 = vpop.f32.mrf.mxu0  ;;  %v18728_v17 = vpop.f32.mrf.mxu1 }
0x1748   : > { %v14909_v9 = vsel %vm3859_vm4, %v22783_v62, -inf  ;;  %v14912_v46 = vsel %vm3859_vm4, %v22786_v12, -inf }
0x1749   : > { %v14501_v15 = vpop.f32.mrf.mxu0  ;;  %14910 = vmax.xlane.f32.xlu0 %v14909_v9  ;;  %14913 = vmax.xlane.f32.xlu1 %v14912_v46 }
0x174a   : > { %v22793_v32 = vadd.f32 %v14501_v15, %v20302_v47  ;;  %v14577_v3 = vpop.f32.mrf.mxu1 }
0x174b   : > { %v22796_v38 = vadd.f32 %v14577_v3, %v20302_v47  ;;  %v18733_v8 = vpop.f32.mrf.mxu0 }
0x174c   : > { %v18738_v0 = vpop.f32.mrf.mxu1  ;;  %v14915_v37 = vsel %vm3859_vm4, %v22793_v32, -inf }
0x174d   : > { %14916 = vmax.xlane.f32.xlu0 %v14915_v37  ;;  %v14918_v21 = vsel %vm3859_vm4, %v22796_v38, -inf }
0x174e   : > { %14919 = vmax.xlane.f32.xlu1 %v14918_v21 }
0x174f   : > { %v14653_v63 = vpop.f32.mrf.mxu0  ;;  %v14729_v43 = vpop.f32.mrf.mxu1 }
0x1750   : > { %v22803_v10 = vadd.f32 %v14653_v63, %v20302_v47  ;;  %v22806_v36 = vadd.f32 %v14729_v43, %v20302_v47 }
0x1751   : > { %v18743_v18 = vpop.f32.mrf.mxu0  ;;  %v18748_v55 = vpop.f32.mrf.mxu1 }
0x1752   : > { %v14921_v51 = vsel %vm3859_vm4, %v22803_v10, -inf  ;;  %v14924_v48 = vsel %vm3859_vm4, %v22806_v36, -inf }
0x1753   : > { %v14805_v53 = vpop.f32.mrf.mxu0  ;;  %14922 = vmax.xlane.f32.xlu0 %v14921_v51  ;;  %14925 = vmax.xlane.f32.xlu1 %v14924_v48 }
0x1754   : > { %v22813_v1 = vadd.f32 %v14805_v53, %v20302_v47  ;;  %v14881_v42 = vpop.f32.mrf.mxu1 }
0x1755   : > { %v22816_v45 = vadd.f32 %v14881_v42, %v20302_v47  ;;  %v18753_v54 = vpop.f32.mrf.mxu0 }
0x1756   : > { %v18758_v23 = vpop.f32.mrf.mxu1  ;;  %v14927_v27 = vsel %vm3859_vm4, %v22813_v1, -inf }
0x1757   : > { %14928 = vmax.xlane.f32.xlu0 %v14927_v27  ;;  %v14930_v40 = vsel %vm3859_vm4, %v22816_v45, -inf }
0x1758   : > { %14931 = vmax.xlane.f32.xlu1 %v14930_v40 }
0x1769   : > { %13116 = vrot.lane.b32.xlu1 %v22117_v28, %s23460_s21 }
0x176d   : > { %13113 = vrot.lane.b32.xlu0 %v22117_v28, %s23459_s29  ;;  %s23506_s29 = sld [smem:[#allocation23_spill]] }
0x1773   : > { %p23512_p12 = scmp.ne.s32.totalorder %s23506_s29, 0 }
0x17b1   : > { %v14887_v59 = vpop.xlane.xlu1 %14886 }
0x17b2   : > { %v14893_v17 = vpop.xlane.xlu0 %14892  ;;  %v14933_v47 = vsub.f32 %v22743_v25, %v14887_v59 }
0x17b3   : > { %v14935_v9 = vsub.f32 %v22746_v14, %v14893_v17 }
0x17b4   : > { %v14949_v46 = vmul.f32 1.442695, %v14933_v47 }
0x17b5   : > { %v14953_v15 = vmul.f32 1.442695, %v14935_v9 }
0x17b6   : > { %19161 = vpow2.f32 %v14949_v46  ;;  %v14890_v3 = vpop.xlane.xlu0 %14889 }
0x17b7   : > { %v14934_v8 = vsub.f32 %v22753_v22, %v14890_v3  ;;  %19163 = vpow2.f32 %v14953_v15 }
0x17b9   : > { %v14951_v0 = vmul.f32 1.442695, %v14934_v8  ;;  %v14896_v37 = vpop.xlane.xlu1 %14895 }
0x17ba   : > { %v14936_v21 = vsub.f32 %v22758_v5, %v14896_v37 }
0x17bb   : > { %19165 = vpow2.f32 %v14951_v0 }
0x17bc   : > { %v14955_v63 = vmul.f32 1.442695, %v14936_v21 }
0x17be   : > { %19167 = vpow2.f32 %v14955_v63 }
0x17c3   : > { %v22830_v43 = vpop.eup %19161 }
0x17c4   : > { %v14899_v18 = vpop.xlane.xlu0 %14898  ;;  %v14981_v25 = vsel %vm3859_vm4, %v22830_v43, 0.0  ;;  %v22834_v14 = vpop.eup %19163 }
0x17c5   : > { %v14937_v55 = vsub.f32 %v22763_v44, %v14899_v18  ;;  %v14902_v51 = vpop.xlane.xlu1 %14901  ;;  %14982 = vadd.xlane.f32.xlu0 %v14981_v25  ;;  %v14987_v42 = vsel %vm3859_vm4, %v22834_v14, 0.0 }
0x17c6   : > { %v14938_v22 = vsub.f32 %v22766_v24, %v14902_v51 }
0x17c7   : > { %v14957_v48 = vmul.f32 1.442695, %v14937_v55 }
0x17c8   : > { %v22838_v53 = vpop.eup %19165  ;;  %v14959_v5 = vmul.f32 1.442695, %v14938_v22 }
0x17c9   : > { %19169 = vpow2.f32 %v14957_v48  ;;  %14988 = vadd.xlane.f32.xlu0 %v14987_v42  ;;  %v14984_v54 = vsel %vm3859_vm4, %v22838_v53, 0.0 }
0x17ca   : > { %19171 = vpow2.f32 %v14959_v5  ;;  %14985 = vadd.xlane.f32.xlu1 %v14984_v54 }
0x17cb   : > { %v22844_v23 = vpop.eup %19167  ;;  %v14905_v44 = vpop.xlane.xlu0 %14904 }
0x17cc   : > { %v14908_v27 = vpop.xlane.xlu1 %14907  ;;  %v14939_v24 = vsub.f32 %v22773_v56, %v14905_v44  ;;  %v14990_v59 = vsel %vm3859_vm4, %v22844_v23, 0.0 }
0x17cd   : > { %v14940_v40 = vsub.f32 %v22776_v13, %v14908_v27 }
0x17ce   : > { %v14961_v17 = vmul.f32 1.442695, %v14939_v24  ;;  %14991 = vadd.xlane.f32.xlu1 %v14990_v59 }
0x17cf   : > { %v14963_v47 = vmul.f32 1.442695, %v14940_v40 }
0x17d0   : > { %19173 = vpow2.f32 %v14961_v17 }
0x17d1   : > { %19175 = vpow2.f32 %v14963_v47 }
0x17d2   : > { %v14911_v9 = vpop.xlane.xlu0 %14910  ;;  %v14914_v46 = vpop.xlane.xlu1 %14913 }
0x17d3   : > { %v14941_v15 = vsub.f32 %v22783_v62, %v14911_v9  ;;  %v14942_v8 = vsub.f32 %v22786_v12, %v14914_v46 }
0x17d5   : > { %v14965_v3 = vmul.f32 1.442695, %v14941_v15  ;;  %v14967_v25 = vmul.f32 1.442695, %v14942_v8 }
0x17d6   : > { %v22852_v0 = vpop.eup %19169  ;;  %v14917_v56 = vpop.xlane.xlu0 %14916 }
0x17d7   : > { %v22854_v37 = vpop.eup %19171  ;;  %19177 = vpow2.f32 %v14965_v3  ;;  %v14943_v13 = vsub.f32 %v22793_v32, %v14917_v56  ;;  %v14920_v21 = vpop.xlane.xlu1 %14919  ;;  %v14993_v63 = vsel %vm3859_vm4, %v22852_v0, 0.0 }
0x17d8   : > { %v14944_v18 = vsub.f32 %v22796_v38, %v14920_v21  ;;  %14994 = vadd.xlane.f32.xlu0 %v14993_v63  ;;  %v14996_v62 = vsel %vm3859_vm4, %v22854_v37, 0.0 }
0x17d9   : > { %v14969_v12 = vmul.f32 1.442695, %v14943_v13  ;;  %14997 = vadd.xlane.f32.xlu1 %v14996_v62 }
0x17da   : > { %v14971_v55 = vmul.f32 1.442695, %v14944_v18 }
0x17db   : > { %19179 = vpow2.f32 %v14969_v12 }
0x17dc   : > { %19181 = vpow2.f32 %v14971_v55  ;;  %v14923_v51 = vpop.xlane.xlu0 %14922  ;;  %v14926_v22 = vpop.xlane.xlu1 %14925 }
0x17dd   : > { %v22862_v48 = vpop.eup %19173  ;;  %19183 = vpow2.f32 %v14967_v25  ;;  %v14945_v32 = vsub.f32 %v22803_v10, %v14923_v51  ;;  %v14946_v27 = vsub.f32 %v22806_v36, %v14926_v22 }
0x17de   : > { %v22865_v5 = vpop.eup %19175  ;;  %v14999_v38 = vsel %vm3859_vm4, %v22862_v48, 0.0 }
0x17df   : > { %v14973_v42 = vmul.f32 1.442695, %v14945_v32  ;;  %15000 = vadd.xlane.f32.xlu0 %v14999_v38  ;;  %v15002_v54 = vsel %vm3859_vm4, %v22865_v5, 0.0  ;;  %v14975_v9 = vmul.f32 1.442695, %v14946_v27 }
0x17e0   : > { %v14929_v44 = vpop.xlane.xlu0 %14928  ;;  %15003 = vadd.xlane.f32.xlu1 %v15002_v54 }
0x17e1   : > { %19185 = vpow2.f32 %v14973_v42  ;;  %v14947_v24 = vsub.f32 %v22813_v1, %v14929_v44  ;;  %v14932_v40 = vpop.xlane.xlu1 %14931 }
0x17e2   : > { %v14948_v10 = vsub.f32 %v22816_v45, %v14932_v40 }
0x17e3   : > { %v14977_v59 = vmul.f32 1.442695, %v14947_v24 }
0x17e4   : > { %v22874_v17 = vpop.eup %19177  ;;  %v14979_v47 = vmul.f32 1.442695, %v14948_v10  ;;  %v22910_v55 = vpop.permute.xlu0 %13113 }
0x17e5   : > { %19187 = vpow2.f32 %v14977_v59  ;;  %v15005_v46 = vsel %vm3859_vm4, %v22874_v17, 0.0  ;;  %v22912_v22 = vpop.permute.xlu1 %13116 }
0x17e6   : > { %19189 = vpow2.f32 %v14979_v47  ;;  %15006 = vadd.xlane.f32.xlu0 %v15005_v46 }
0x17e7   : > { %19191 = vpow2.f32 %v14975_v9 }
0x17e8   : > { %v22878_v15 = vpop.eup %19179 }
0x17e9   : > { %v22880_v3 = vpop.eup %19181  ;;  %v15011_v36 = vsel %vm3859_vm4, %v22878_v15, 0.0 }
0x17ea   : > { %v22884_v1 = vpop.eup %19183  ;;  %15012 = vadd.xlane.f32.xlu0 %v15011_v36  ;;  %v15014_v45 = vsel %vm3859_vm4, %v22880_v3, 0.0 }
0x17eb   : > { %15015 = vadd.xlane.f32.xlu1 %v15014_v45  ;;  %v15008_v8 = vsel %vm3859_vm4, %v22884_v1, 0.0 }
0x17ee   : > { %v22890_v56 = vpop.eup %19185  ;;  %15009 = vadd.xlane.f32.xlu0 %v15008_v8 }
0x17ef   : > { %v15017_v13 = vsel %vm3859_vm4, %v22890_v56, 0.0 }
0x17f2   : > { %v22894_v21 = vpop.eup %19187  ;;  %15018 = vadd.xlane.f32.xlu0 %v15017_v13 }
0x17f3   : > { %v22896_v63 = vpop.eup %19189  ;;  %v15023_v62 = vsel %vm3859_vm4, %v22894_v21, 0.0 }
0x17f4   : > { %v15026_v18 = vsel %vm3859_vm4, %v22896_v63, 0.0  ;;  %v22902_v25 = vpop.eup %19191 }
0x17f5   : > { %15027 = vadd.xlane.f32.xlu1 %v15026_v18  ;;  %v15020_v12 = vsel %vm3859_vm4, %v22902_v25, 0.0 }
0x17f6   : > { %15024 = vadd.xlane.f32.xlu0 %v15023_v62 }
0x17fa   : > { %15021 = vadd.xlane.f32.xlu0 %v15020_v12 }
0x1806   : > { %13122 = vrot.lane.b32.xlu1 %v22117_v28, %s23462_s22  ;;  %s23508_s22 = sld [smem:[#allocation31_spill]] }
0x1810   : > { %13119 = vrot.lane.b32.xlu0 %v22117_v28, %s23461_s20 }
0x184e   : > { %v14983_v51 = vpop.xlane.xlu0 %14982 }
0x184f   : > { %19193 = vrcp.f32 %v14983_v51 }
0x1852   : > { %v14989_v32 = vpop.xlane.xlu0 %14988 }
0x1853   : > { %19195 = vrcp.f32 %v14989_v32  ;;  %v14986_v38 = vpop.xlane.xlu1 %14985 }
0x1854   : > { %19197 = vrcp.f32 %v14986_v38 }
0x1857   : > { %v14992_v42 = vpop.xlane.xlu1 %14991 }
0x1858   : > { %19199 = vrcp.f32 %v14992_v42 }
0x185c   : > { %v19194_v54 = vpop.eup %19193 }
0x185d   : > { %v15030_v44 = vmul.f32 %v19194_v54, %v22830_v43 }
0x185f   : > { %18762 = vmatmul.mubr.msk.f32.vlgmr.msra.gmra.mxu0 %vm3859_vm4, %v15030_v44 }
0x1860   : > { %v19196_v27 = vpop.eup %19195  ;;  %18770 = vmatpush3.msra.mxu0 %v13527_v16  ;;  %18771 = vmatprep.mubr.msk.f32.mxu0 %vm23479_vm1, %v19415_v11 }
0x1861   : > { %v19198_v28 = vpop.eup %19197  ;;  %v14995_v24 = vpop.xlane.xlu0 %14994  ;;  %18779 = vmatprep.subr.mxu0 %v19415_v11  ;;  %v15034_v40 = vmul.f32 %v19196_v27, %v22834_v14 }
0x1862   : > { %19201 = vrcp.f32 %v14995_v24  ;;  %v14998_v10 = vpop.xlane.xlu1 %14997  ;;  %v15032_v43 = vmul.f32 %v19198_v28, %v22838_v53 }
0x1863   : > { %19203 = vrcp.f32 %v14998_v10  ;;  %18772 = vmatmul.mubr.msk.f32.vlgmr.msra.gmra.mxu0 %vm3859_vm4, %v15034_v40 }
0x1864   : > { %18767 = vmatmul.mubr.msk.f32.vlgmr.msra.gmra.mxu1 %vm3859_vm4, %v15032_v43  ;;  %18780 = vmatpush3.msra.mxu0 %v13529_v49 }
0x1865   : > { %v19200_v16 = vpop.eup %19199  ;;  %18775 = vmatpush3.msra.mxu1 %v13528_v6  ;;  %18776 = vmatprep.mubr.msk.f32.mxu1 %vm23479_vm1, %v19415_v11 }
0x1866   : > { %18784 = vmatprep.subr.mxu1 %v19415_v11  ;;  %v15036_v14 = vmul.f32 %v19200_v16, %v22844_v23  ;;  %18781 = vmatprep.mubr.msk.f32.mxu0 %vm23479_vm1, %v19415_v11 }
0x1867   : > { %18789 = vmatprep.subr.mxu0 %v19415_v11 }
0x1868   : > { %v15001_v53 = vpop.xlane.xlu0 %15000  ;;  %18777 = vmatmul.mubr.msk.f32.vlgmr.msra.gmra.mxu1 %vm3859_vm4, %v15036_v14 }
0x1869   : > { %19205 = vrcp.f32 %v15001_v53  ;;  %v15004_v49 = vpop.xlane.xlu1 %15003  ;;  %18785 = vmatpush3.msra.mxu1 %v13530_v31  ;;  %18786 = vmatprep.mubr.msk.f32.mxu1 %vm23479_vm1, %v19415_v11 }
0x186a   : > { %19207 = vrcp.f32 %v15004_v49  ;;  %18794 = vmatprep.subr.mxu1 %v19415_v11 }
0x186f   : > { %v19202_v61 = vpop.eup %19201  ;;  %v15007_v20 = vpop.xlane.xlu0 %15006 }
0x1870   : > { %v19204_v6 = vpop.eup %19203  ;;  %19209 = vrcp.f32 %v15007_v20  ;;  %v15038_v23 = vmul.f32 %v19202_v61, %v22852_v0 }
0x1871   : > { %v15040_v59 = vmul.f32 %v19204_v6, %v22854_v37 }
0x1872   : > { %18782 = vmatmul.mubr.msk.f32.vlgmr.msra.gmra.mxu0 %vm3859_vm4, %v15038_v23 }
0x1873   : > { %v15013_v47 = vpop.xlane.xlu0 %15012  ;;  %18787 = vmatmul.mubr.msk.f32.vlgmr.msra.gmra.mxu1 %vm3859_vm4, %v15040_v59  ;;  %18790 = vmatpush3.msra.mxu0 %v13531_v35 }
0x1874   : > { %19211 = vrcp.f32 %v15013_v47  ;;  %18795 = vmatpush3.msra.mxu1 %v13532_v19  ;;  %18791 = vmatprep.mubr.msk.f32.mxu0 %vm23479_vm1, %v19415_v11  ;;  %v15016_v34 = vpop.xlane.xlu1 %15015 }
0x1875   : > { %18799 = vmatprep.subr.mxu0 %v19415_v11  ;;  %18796 = vmatprep.mubr.msk.f32.mxu1 %vm23479_vm1, %v19415_v11 }
0x1876   : > { %v19206_v33 = vpop.eup %19205  ;;  %18804 = vmatprep.subr.mxu1 %v19415_v11 }
0x1877   : > { %v19208_v31 = vpop.eup %19207  ;;  %v15010_v0 = vpop.xlane.xlu0 %15009  ;;  %v15042_v35 = vmul.f32 %v19206_v33, %v22862_v48 }
0x1878   : > { %v15044_v37 = vmul.f32 %v19208_v31, %v22865_v5  ;;  %19213 = vrcp.f32 %v15010_v0 }
0x1879   : > { %19215 = vrcp.f32 %v15016_v34  ;;  %18792 = vmatmul.mubr.msk.f32.vlgmr.msra.gmra.mxu0 %vm3859_vm4, %v15042_v35 }
0x187a   : > { %18797 = vmatmul.mubr.msk.f32.vlgmr.msra.gmra.mxu1 %vm3859_vm4, %v15044_v37  ;;  %18800 = vmatpush3.msra.mxu0 %v13661_v7 }
0x187b   : > { %v15019_v26 = vpop.xlane.xlu0 %15018  ;;  %18805 = vmatpush3.msra.mxu1 %v13662_v39  ;;  %18801 = vmatprep.mubr.msk.f32.mxu0 %vm23479_vm1, %v19415_v11 }
0x187c   : > { %18809 = vmatprep.subr.mxu0 %v19415_v11  ;;  %18806 = vmatprep.mubr.msk.f32.mxu1 %vm23479_vm1, %v19415_v11  ;;  %19217 = vrcp.f32 %v15019_v26 }
0x187d   : > { %v19210_v2 = vpop.eup %19209  ;;  %18814 = vmatprep.subr.mxu1 %v19415_v11 }
0x187e   : > { %v15028_v19 = vpop.xlane.xlu1 %15027  ;;  %v15046_v48 = vmul.f32 %v19210_v2, %v22874_v17 }
0x187f   : > { %v15025_v7 = vpop.xlane.xlu0 %15024 }
0x1880   : > { %18802 = vmatmul.mubr.msk.f32.vlgmr.msra.gmra.mxu0 %vm3859_vm4, %v15046_v48 }
0x1881   : > { %v19212_v5 = vpop.eup %19211  ;;  %18810 = vmatpush3.msra.mxu0 %v13663_v60  ;;  %18811 = vmatprep.mubr.msk.f32.mxu0 %vm23479_vm1, %v19415_v11 }
0x1882   : > { %v15050_v58 = vmul.f32 %v19212_v5, %v22878_v15  ;;  %18819 = vmatprep.subr.mxu0 %v19415_v11  ;;  %v13123_v52 = vpop.permute.xlu1 %13122 }
0x1883   : > { %v15022_v39 = vpop.xlane.xlu0 %15021  ;;  %v13309_v60 = vcombine.low %v22912_v22, %v13123_v52  ;;  %v13310_v36 = vcombine.high %v22912_v22, %v13123_v52 }
0x1884   : > { %18812 = vmatmul.mubr.msk.f32.vlgmr.msra.gmra.mxu0 %vm3859_vm4, %v15050_v58  ;;  %19219 = vrcp.f32 %v15022_v39 }
0x1885   : > { %v19214_v17 = vpop.eup %19213  ;;  %18821 = vmatprep.mubr.msk.f32.mxu0 %vm23479_vm1, %v19415_v11  ;;  %v13324_v18 = vrot.slane %v13310_v36, %v19858_v50  ;;  %19221 = vrcp.f32 %v15028_v19 }
0x1886   : > { %v19216_v9 = vpop.eup %19215  ;;  %v15048_v46 = vmul.f32 %v19214_v17, %v22884_v1  ;;  %v13317_v1 = vrot.slane %v13309_v60, %v19858_v50  ;;  %19223 = vrcp.f32 %v15025_v7 }
0x1887   : > { %v13120_v45 = vpop.permute.xlu0 %13119  ;;  %v15052_v13 = vmul.f32 %v19216_v9, %v22880_v3 }
0x1888   : > { %v13293_v15 = vcombine.low %v22910_v55, %v13120_v45  ;;  %v13294_v8 = vcombine.high %v22910_v55, %v13120_v45  ;;  %18807 = vmatmul.mubr.msk.f32.vlgmr.msra.gmra.mxu1 %vm3859_vm4, %v15048_v46 }
0x1889   : > { %18815 = vmatpush3.msra.mxu1 %v13664_v30  ;;  %18816 = vmatprep.mubr.msk.f32.mxu1 %vm23479_vm1, %v19415_v11  ;;  %v19218_v16 = vpop.eup %19217 }
0x188a   : > { %v13301_v62 = vrot.slane %v13293_v15, %v19858_v50  ;;  %v13308_v12 = vrot.slane %v13294_v8, %v19858_v50  ;;  %18824 = vmatprep.subr.mxu1 %v19415_v11  ;;  %v15054_v0 = vmul.f32 %v19218_v16, %v22890_v56 }
0x188c   : > { %v13357_v3 = vcombine.low %v13301_v62, %v13317_v1  ;;  %v13358_v55 = vcombine.high %v13301_v62, %v13317_v1  ;;  %v13373_v51 = vcombine.low %v13308_v12, %v13324_v18  ;;  %v13374_v22 = vcombine.high %v13308_v12, %v13324_v18  ;;  %18817 = vmatmul.mubr.msk.f32.vlgmr.msra.gmra.mxu1 %vm3859_vm4, %v15052_v13 }
0x188d   : > { %18826 = vmatprep.mubr.msk.f32.mxu1 %vm23479_vm1, %v19415_v11 }
0x188e   : > { %v13365_v41 = vrot.slane %v13357_v3, %v19865_v57  ;;  %v13372_v29 = vrot.slane %v13358_v55, %v19865_v57  ;;  %v13381_v30 = vrot.slane %v13373_v51, %v19865_v57  ;;  %v13388_v32 = vrot.slane %v13374_v22, %v19865_v57 }
0x1890   : > { %v17710_v38 = vcombine.low %v13365_v41, %v13372_v29  ;;  %v17712_v42 = vcombine.high %v13365_v41, %v13372_v29  ;;  %v17714_v54 = vcombine.low %v13381_v30, %v13388_v32  ;;  %v17716_v44 = vcombine.high %v13381_v30, %v13388_v32 }
0x1891   : > { %v19220_v49 = vpop.eup %19219 }
0x1892   : > { %v13548_v27 = vrot.slane %v17710_v38, %v19858_v50  ;;  %v13564_v28 = vrot.slane %v17712_v42, %v19858_v50  ;;  %v13580_v24 = vrot.slane %v17714_v54, %v19858_v50  ;;  %v13596_v40 = vrot.slane %v17716_v44, %v19858_v50  ;;  %v19222_v6 = vpop.eup %19221 }
0x1893   : > { %v19224_v34 = vpop.eup %19223  ;;  %v15056_v31 = vmul.f32 %v19220_v49, %v22902_v25  ;;  %v15060_v26 = vmul.f32 %v19222_v6, %v22896_v63 }
0x1894   : > { %v13613_v10 = vcombine.low %v13548_v27, %v13564_v28  ;;  %v13614_v43 = vcombine.high %v13548_v27, %v13564_v28  ;;  %v13645_v14 = vcombine.low %v13580_v24, %v13596_v40  ;;  %v13646_v53 = vcombine.high %v13580_v24, %v13596_v40 }
0x1895   : > { %v15058_v25 = vmul.f32 %v19224_v34, %v22894_v21 }
0x1896   : > { %v13621_v61 = vrot.slane %v13613_v10, %v19865_v57  ;;  %v13653_v20 = vrot.slane %v13645_v14, %v19865_v57  ;;  %v13628_v23 = vrot.slane %v13614_v43, %v19865_v57  ;;  %v13660_v59 = vrot.slane %v13646_v53, %v19865_v57 }
0x1898   : > { %v13665_v47 = vcombine.low %v13621_v61, %v13653_v20  ;;  %v13666_v33 = vcombine.high %v13621_v61, %v13653_v20  ;;  %v13667_v35 = vcombine.low %v13628_v23, %v13660_v59  ;;  %v13668_v37 = vcombine.high %v13628_v23, %v13660_v59 }
0x189a   : > { %18820 = vmatpush3.msra.mxu0 %v13665_v47  ;;  %18825 = vmatpush3.msra.mxu1 %v13666_v33 }
0x189b   : > { %18822 = vmatmul.mubr.msk.f32.vlgmr.msra.gmra.mxu0 %vm3859_vm4, %v15054_v0  ;;  %18827 = vmatmul.mubr.msk.f32.vlgmr.msra.gmra.mxu1 %vm3859_vm4, %v15056_v31 }
0x189c   : > { %18829 = vmatprep.subr.mxu0 %v19415_v11  ;;  %18834 = vmatprep.subr.mxu1 %v19415_v11 }
0x189d   : > { %18830 = vmatpush3.msra.mxu0 %v13667_v35  ;;  %18835 = vmatpush3.msra.mxu1 %v13668_v37 }
0x189e   : > { %18831 = vmatprep.mubr.msk.f32.mxu0 %vm23479_vm1, %v19415_v11  ;;  %18836 = vmatprep.mubr.msk.f32.mxu1 %vm23479_vm1, %v19415_v11 }
0x189f   : > { %18832 = vmatmul.mubr.msk.f32.vlgmr.msra.gmra.mxu0 %vm3859_vm4, %v15058_v25  ;;  %18837 = vmatmul.mubr.msk.f32.vlgmr.msra.gmra.mxu1 %vm3859_vm4, %v15060_v26 }
0x18a0   : > { %18839 = vmatprep.subr.mxu0 %v19415_v11  ;;  %18847 = vmatprep.mubr.msk.f32.mxu0 %vm23479_vm1, %v19415_v11 }
0x18a1   : > { %18850 = vmatprep.subr.mxu1 %v19415_v11  ;;  %18858 = vmatprep.mubr.msk.f32.mxu1 %vm23479_vm1, %v19415_v11 }
0x191f   : > { %v15130_v56 = vpop.f32.mrf.mxu0 }
0x1921   : > { %v18763_v21 = vpop.f32.mrf.mxu0 }
0x1923   : > { %v15276_v63 = vpop.f32.mrf.mxu0 }
0x1924   : > { %v15203_v2 = vpop.f32.mrf.mxu1  ;;  %v16229_v7 = vcombine.low %v15130_v56, %v15276_v63  ;;  %v16230_v5 = vcombine.high %v15130_v56, %v15276_v63 }
0x1925   : > { %v18773_v19 = vpop.f32.mrf.mxu0 }
0x1926   : > { %v18768_v48 = vpop.f32.mrf.mxu1  ;;  %v16237_v9 = vrot.slane %v16229_v7, %v19858_v50  ;;  %v16244_v46 = vrot.slane %v16230_v5, %v19858_v50 }
0x1928   : > { %v15349_v58 = vpop.f32.mrf.mxu1 }
0x1929   : > { %v16245_v52 = vcombine.low %v15203_v2, %v15349_v58  ;;  %v16246_v39 = vcombine.high %v15203_v2, %v15349_v58 }
0x192a   : > { %v18778_v17 = vpop.f32.mrf.mxu1 }
0x192b   : > { %v16253_v60 = vrot.slane %v16245_v52, %v19858_v50  ;;  %v16260_v36 = vrot.slane %v16246_v39, %v19858_v50 }
0x192d   : > { %v16293_v45 = vcombine.low %v16237_v9, %v16253_v60  ;;  %v16294_v15 = vcombine.high %v16237_v9, %v16253_v60  ;;  %v16309_v8 = vcombine.low %v16244_v46, %v16260_v36  ;;  %v16310_v13 = vcombine.high %v16244_v46, %v16260_v36 }
0x192f   : > { %v16301_v1 = vrot.slane %v16293_v45, %v19865_v57  ;;  %v16308_v18 = vrot.slane %v16294_v15, %v19865_v57  ;;  %v16317_v62 = vrot.slane %v16309_v8, %v19865_v57  ;;  %v16324_v12 = vrot.slane %v16310_v13, %v19865_v57 }
0x1931   : > { %v17765_v3 = vcombine.low %v16301_v1, %v16308_v18  ;;  %v17767_v55 = vcombine.high %v16301_v1, %v16308_v18  ;;  %v17769_v51 = vcombine.low %v16317_v62, %v16324_v12  ;;  %v17771_v22 = vcombine.high %v16317_v62, %v16324_v12 }
0x1932   : > { %v15422_v41 = vpop.f32.mrf.mxu0 }
0x1933   : > { %v16509_v29 = vrot.slane %v17765_v3, %v19858_v50  ;;  %v16525_v30 = vrot.slane %v17767_v55, %v19858_v50  ;;  %v16541_v32 = vrot.slane %v17769_v51, %v19858_v50  ;;  %v16557_v38 = vrot.slane %v17771_v22, %v19858_v50  ;;  %v15495_v42 = vpop.f32.mrf.mxu1 }
0x1934   : > { %v18783_v54 = vpop.f32.mrf.mxu0 }
0x1935   : > { %v18788_v44 = vpop.f32.mrf.mxu1  ;;  %v16566_v27 = vcombine.high %v16509_v29, %v16525_v30  ;;  %v16598_v28 = vcombine.high %v16541_v32, %v16557_v38  ;;  %v16565_v24 = vcombine.low %v16509_v29, %v16525_v30  ;;  %v16597_v40 = vcombine.low %v16541_v32, %v16557_v38 }
0x1937   : > { %v16580_v10 = vrot.slane %v16566_v27, %v19865_v57  ;;  %v16612_v43 = vrot.slane %v16598_v28, %v19865_v57  ;;  %v23057_v16 = vrot.slane %v16565_v24, %v19865_v57  ;;  %v23060_v14 = vrot.slane %v16597_v40, %v19865_v57 }
0x1939   : > { %v15568_v53 = vpop.f32.mrf.mxu0  ;;  %v16631_v49 = vcombine.low %v16580_v10, %v16612_v43  ;;  %v16630_v61 = vcombine.high %v23057_v16, %v23060_v14  ;;  %v16629_v20 = vcombine.low %v23057_v16, %v23060_v14  ;;  %v16632_v25 = vcombine.high %v16580_v10, %v16612_v43 }
0x193a   : > { %v16261_v6 = vcombine.low %v15422_v41, %v15568_v53  ;;  %v16262_v23 = vcombine.high %v15422_v41, %v15568_v53  ;;  %v15641_v59 = vpop.f32.mrf.mxu1 }
0x193b   : > { %v16277_v47 = vcombine.low %v15495_v42, %v15641_v59  ;;  %v16278_v33 = vcombine.high %v15495_v42, %v15641_v59  ;;  %v18793_v34 = vpop.f32.mrf.mxu0  ;;  %16778 = vrot.lane.b32.xlu1 %v16631_v49, %s23463_s23  ;;  %16774 = vrot.lane.b32.xlu0 %v16630_v61, %s23464_s16  ;;  %s23487_s16 = smov 14   ;;  %s23489_s23 = sld [smem:[#allocation28_spill]] }
0x193c   : > { %v16269_v31 = vrot.slane %v16261_v6, %v19858_v50  ;;  %v16276_v0 = vrot.slane %v16262_v23, %v19858_v50  ;;  %v18798_v35 = vpop.f32.mrf.mxu1 }
0x193d   : > { %v16285_v37 = vrot.slane %v16277_v47, %v19858_v50  ;;  %v16292_v26 = vrot.slane %v16278_v33, %v19858_v50 }
0x193f   : > { %v16325_v56 = vcombine.low %v16269_v31, %v16285_v37  ;;  %v16326_v21 = vcombine.high %v16269_v31, %v16285_v37  ;;  %v16341_v63 = vcombine.low %v16276_v0, %v16292_v26  ;;  %v16342_v2 = vcombine.high %v16276_v0, %v16292_v26  ;;  %16782 = vrot.lane.b32.xlu0 %v16632_v25, %s23465_s24  ;;  %s19450_s24 = smov [#allocation10]  }
0x1940   : > { %v15714_v19 = vpop.f32.mrf.mxu0 }
0x1941   : > { %v16333_v48 = vrot.slane %v16325_v56, %v19865_v57  ;;  %v16340_v7 = vrot.slane %v16326_v21, %v19865_v57  ;;  %v16349_v5 = vrot.slane %v16341_v63, %v19865_v57  ;;  %v16356_v58 = vrot.slane %v16342_v2, %v19865_v57  ;;  %v17784_v2 = vld [vmem:[%s23489_s23 + $0x58] sm:$0xff] }
0x1942   : > { %v18803_v52 = vpop.f32.mrf.mxu0  ;;  %18840 = vmatpush3.msra.mxu0 %v17784_v2 }
0x1943   : > { %v17766_v39 = vcombine.low %v16333_v48, %v16340_v7  ;;  %v17768_v17 = vcombine.high %v16333_v48, %v16340_v7  ;;  %v17770_v9 = vcombine.low %v16349_v5, %v16356_v58  ;;  %v17772_v46 = vcombine.high %v16349_v5, %v16356_v58  ;;  %18841 = vmatprep.subr.mxu0 %v19415_v11 }
0x1944   : > { %v15860_v60 = vpop.f32.mrf.mxu0 }
0x1945   : > { %v16516_v36 = vrot.slane %v17766_v39, %v19858_v50  ;;  %v16532_v45 = vrot.slane %v17768_v17, %v19858_v50  ;;  %v16548_v15 = vrot.slane %v17770_v9, %v19858_v50  ;;  %v16564_v8 = vrot.slane %v17772_v46, %v19858_v50 }
0x1946   : > { %v18813_v13 = vpop.f32.mrf.mxu0  ;;  %v16365_v22 = vcombine.low %v15714_v19, %v15860_v60  ;;  %v16366_v41 = vcombine.high %v15714_v19, %v15860_v60 }
0x1947   : > { %v16581_v1 = vcombine.low %v16516_v36, %v16532_v45  ;;  %v16613_v18 = vcombine.low %v16548_v15, %v16564_v8  ;;  %v16582_v62 = vcombine.high %v16516_v36, %v16532_v45  ;;  %v16614_v12 = vcombine.high %v16548_v15, %v16564_v8 }
0x1948   : > { %v15787_v3 = vpop.f32.mrf.mxu1  ;;  %v16373_v28 = vrot.slane %v16365_v22, %v19858_v50  ;;  %v16380_v40 = vrot.slane %v16366_v41, %v19858_v50 }
0x1949   : > { %v16589_v55 = vrot.slane %v16581_v1, %v19865_v57  ;;  %v16621_v51 = vrot.slane %v16613_v18, %v19865_v57  ;;  %v16596_v38 = vrot.slane %v16582_v62, %v19865_v57  ;;  %v16628_v42 = vrot.slane %v16614_v12, %v19865_v57 }
0x194a   : > { %v18808_v29 = vpop.f32.mrf.mxu1 }
0x194b   : > { %v16634_v30 = vcombine.high %v16589_v55, %v16621_v51  ;;  %v16633_v32 = vcombine.low %v16589_v55, %v16621_v51  ;;  %v16636_v53 = vcombine.high %v16596_v38, %v16628_v42  ;;  %v16635_v49 = vcombine.low %v16596_v38, %v16628_v42 }
0x194c   : > { %v15933_v54 = vpop.f32.mrf.mxu1 }
0x194d   : > { %v16381_v44 = vcombine.low %v15787_v3, %v15933_v54  ;;  %v16382_v27 = vcombine.high %v15787_v3, %v15933_v54  ;;  %16790 = vrot.lane.b32.xlu0 %v16634_v30, %s23466_s18  ;;  %16786 = vrot.lane.b32.xlu1 %v16633_v32, %s23467_s30  ;;  %s23488_s18 = smov 12  }
0x194e   : > { %v18818_v24 = vpop.f32.mrf.mxu1 }
0x194f   : > { %v16389_v10 = vrot.slane %v16381_v44, %v19858_v50  ;;  %v16396_v43 = vrot.slane %v16382_v27, %v19858_v50  ;;  %v17783_v27 = vld [vmem:[%s23489_s23 + $0x50] sm:$0xff] }
0x1950   : > { %18842 = vmatpush3.msra.mxu0 %v17783_v27 }
0x1951   : > { %v16429_v61 = vcombine.low %v16373_v28, %v16389_v10  ;;  %v16430_v6 = vcombine.high %v16373_v28, %v16389_v10  ;;  %v16445_v23 = vcombine.low %v16380_v40, %v16396_v43  ;;  %v16446_v59 = vcombine.high %v16380_v40, %v16396_v43  ;;  %16798 = vrot.lane.b32.xlu0 %v16636_v53, %s23487_s16  ;;  %v17782_v28 = vld [vmem:[%s23489_s23 + $0x48] sm:$0xff]  ;;  %s23500_s16 = sld [smem:[#allocation29_spill]] }
0x1952   : > { %16794 = vrot.lane.b32.xlu1 %v16635_v49, %s23488_s18  ;;  %18843 = vmatprep.subr.mxu0 %v19415_v11 }
0x1953   : > { %v16437_v47 = vrot.slane %v16429_v61, %v19865_v57  ;;  %v16444_v33 = vrot.slane %v16430_v6, %v19865_v57  ;;  %v16453_v34 = vrot.slane %v16445_v23, %v19865_v57  ;;  %v16460_v31 = vrot.slane %v16446_v59, %v19865_v57  ;;  %18844 = vmatpush3.msra.mxu0 %v17782_v28 }
0x1954   : > { %18845 = vmatprep.subr.mxu0 %v19415_v11 }
0x1955   : > { %v17773_v0 = vcombine.low %v16437_v47, %v16444_v33  ;;  %v17775_v35 = vcombine.high %v16437_v47, %v16444_v33  ;;  %v17777_v37 = vcombine.low %v16453_v34, %v16460_v31  ;;  %v17779_v26 = vcombine.high %v16453_v34, %v16460_v31  ;;  %v17781_v34 = vld [vmem:[%s23489_s23 + $0x40] sm:$0xff]  ;;  %s19337_s23 = sshll.u32 %s19450_s24, 4  ;;  %s19338_s23 = int_to_ptr.vmem [resolvable:$false] %s19337_s23 }
0x1956   : > { %18846 = vmatpush3.msra.mxu0 %v17781_v34  ;;  %v17809_v34 = vld [vmem:[%s23329_s13 + $0x150] sm:$0xff] }
0x1957   : > { %v16645_v25 = vrot.slane %v17773_v0, %v19858_v50  ;;  %v16661_v56 = vrot.slane %v17775_v35, %v19858_v50  ;;  %v16677_v21 = vrot.slane %v17777_v37, %v19858_v50  ;;  %v16693_v63 = vrot.slane %v17779_v26, %v19858_v50  ;;  %18861 = vmatprep.subr.mxu0 %v19415_v11 }
0x1959   : > { %v16701_v19 = vcombine.low %v16645_v25, %v16661_v56  ;;  %v16733_v48 = vcombine.low %v16677_v21, %v16693_v63  ;;  %v16702_v7 = vcombine.high %v16645_v25, %v16661_v56  ;;  %v16734_v5 = vcombine.high %v16677_v21, %v16693_v63 }
0x195b   : > { %v16709_v58 = vrot.slane %v16701_v19, %v19865_v57  ;;  %v16741_v52 = vrot.slane %v16733_v48, %v19865_v57  ;;  %v16006_v39 = vpop.f32.mrf.mxu0  ;;  %v16079_v17 = vpop.f32.mrf.mxu1  ;;  %v16716_v9 = vrot.slane %v16702_v7, %v19865_v57  ;;  %v16748_v46 = vrot.slane %v16734_v5, %v19865_v57 }
0x195d   : > { %v16766_v60 = vcombine.high %v16709_v58, %v16741_v52  ;;  %v16765_v36 = vcombine.low %v16709_v58, %v16741_v52  ;;  %v18823_v45 = vpop.f32.mrf.mxu0  ;;  %v18828_v15 = vpop.f32.mrf.mxu1  ;;  %v16768_v1 = vcombine.high %v16716_v9, %v16748_v46  ;;  %v16767_v22 = vcombine.low %v16716_v9, %v16748_v46 }
0x195f   : > { %16806 = vrot.lane.b32.xlu0 %v16766_v60, %s23490_s27  ;;  %16802 = vrot.lane.b32.xlu1 %v16765_v36, %s23491_s1  ;;  %v16152_v8 = vpop.f32.mrf.mxu0  ;;  %v16225_v13 = vpop.f32.mrf.mxu1  ;;  %s23504_s27 = sld [smem:[#allocation19_spill]] }
0x1960   : > { %v16397_v18 = vcombine.low %v16006_v39, %v16152_v8  ;;  %v16398_v62 = vcombine.high %v16006_v39, %v16152_v8  ;;  %v16413_v12 = vcombine.low %v16079_v17, %v16225_v13  ;;  %v16414_v3 = vcombine.high %v16079_v17, %v16225_v13  ;;  %s23505_s1 = sld [smem:[#allocation24_spill]] }
0x1961   : > { %v18833_v55 = vpop.f32.mrf.mxu0  ;;  %v18838_v51 = vpop.f32.mrf.mxu1 }
0x1962   : > { %v16405_v41 = vrot.slane %v16397_v18, %v19858_v50  ;;  %v16412_v29 = vrot.slane %v16398_v62, %v19858_v50  ;;  %v16421_v30 = vrot.slane %v16413_v12, %v19858_v50  ;;  %v16428_v32 = vrot.slane %v16414_v3, %v19858_v50 }
0x1963   : > { %16814 = vrot.lane.b32.xlu0 %v16768_v1, %s23492_s19  ;;  %16810 = vrot.lane.b32.xlu1 %v16767_v22, %s23493_s15 }
0x1964   : > { %v16461_v38 = vcombine.low %v16405_v41, %v16421_v30  ;;  %v16462_v42 = vcombine.high %v16405_v41, %v16421_v30  ;;  %v16477_v54 = vcombine.low %v16412_v29, %v16428_v32  ;;  %v16478_v44 = vcombine.high %v16412_v29, %v16428_v32  ;;  %v17786_v32 = vld [vmem:[%s23500_s16 + $0x2] ss:$0 sm:$0xff]  ;;  %s23511_s16 = smov %s23510_s26 }
0x1965   : > { %s17820_s17 = sshll.u32 %s23504_s27, 7  ;;  %s19339_s27 = scalar_lea.vmem %s19338_s23, 256 }
0x1966   : > { %v16469_v24 = vrot.slane %v16461_v38, %v19865_v57  ;;  %v16476_v40 = vrot.slane %v16462_v42, %v19865_v57  ;;  %v16485_v10 = vrot.slane %v16477_v54, %v19865_v57  ;;  %v16492_v43 = vrot.slane %v16478_v44, %v19865_v57  ;;  %s23509_s2 = sshll.u32 %s23505_s1, 3  ;;  %s23279_s25 = scalar_lea.hbm %s23510_s26, %s17820_s17 }
0x1967   : > { %s17235_s18 = scalar_lea.sflag [#allocation4], %s23505_s1 }
0x1968   : > { %v17774_v53 = vcombine.low %v16469_v24, %v16476_v40  ;;  %v17776_v49 = vcombine.high %v16469_v24, %v16476_v40  ;;  %v17778_v61 = vcombine.low %v16485_v10, %v16492_v43  ;;  %v17780_v6 = vcombine.high %v16485_v10, %v16492_v43 }
0x196a   : > { %v16652_v23 = vrot.slane %v17774_v53, %v19858_v50  ;;  %v16668_v59 = vrot.slane %v17776_v49, %v19858_v50  ;;  %v16684_v47 = vrot.slane %v17778_v61, %v19858_v50  ;;  %v16700_v33 = vrot.slane %v17780_v6, %v19858_v50  ;;  %v17795_v53 = vld [vmem:[%s23327_s11 + $0x58] sm:$0xff]  ;;  %v17794_v49 = vld [vmem:[%s23327_s11 + $0x50] sm:$0xff]  ;;  %v17792_v61 = vld [vmem:[%s23327_s11 + $0x40] sm:$0xff] }
0x196b   : > { %18851 = vmatpush3.msra.mxu1 %v17795_v53  ;;  %v17814_v6 = vld [vmem:[%s23329_s13 + $0x178] sm:$0xff] }
0x196c   : > { %v16717_v31 = vcombine.low %v16652_v23, %v16668_v59  ;;  %v16749_v0 = vcombine.low %v16684_v47, %v16700_v33  ;;  %v16718_v35 = vcombine.high %v16652_v23, %v16668_v59  ;;  %v16750_v37 = vcombine.high %v16684_v47, %v16700_v33  ;;  %18852 = vmatprep.subr.mxu1 %v19415_v11  ;;  %v17813_v23 = vld [vmem:[%s23329_s13 + $0x170] sm:$0xff]  ;;  %v17812_v59 = vld [vmem:[%s23329_s13 + $0x168] sm:$0xff]  ;;  %v17811_v47 = vld [vmem:[%s23329_s13 + $0x160] sm:$0xff] }
0x196d   : > { %18853 = vmatpush3.msra.mxu1 %v17794_v49  ;;  %v17810_v33 = vld [vmem:[%s23329_s13 + $0x158] sm:$0xff] }
0x196e   : > { %v16725_v26 = vrot.slane %v16717_v31, %v19865_v57  ;;  %v16757_v25 = vrot.slane %v16749_v0, %v19865_v57  ;;  %v16732_v63 = vrot.slane %v16718_v35, %v19865_v57  ;;  %v16764_v50 = vrot.slane %v16750_v37, %v19865_v57  ;;  %18854 = vmatprep.subr.mxu1 %v19415_v11  ;;  %v17808_v31 = vld [vmem:[%s23329_s13 + $0x148] sm:$0xff]  ;;  %v17807_v0 = vld [vmem:[%s23329_s13 + $0x140] sm:$0xff]  ;;  %v17806_v35 = vld [vmem:[%s23329_s13 + $0x138] sm:$0xff] }
0x196f   : > { %v17805_v37 = vld [vmem:[%s23329_s13 + $0x130] sm:$0xff] }
0x1970   : > { %v16770_v56 = vcombine.high %v16725_v26, %v16757_v25  ;;  %v16769_v21 = vcombine.low %v16725_v26, %v16757_v25  ;;  %v16772_v2 = vcombine.high %v16732_v63, %v16764_v50  ;;  %v16771_v19 = vcombine.low %v16732_v63, %v16764_v50  ;;  %v17804_v26 = vld [vmem:[%s23329_s13 + $0x128] sm:$0xff]  ;;  %v17803_v25 = vld [vmem:[%s23329_s13 + $0x120] sm:$0xff] }
0x1972   : > { %16822 = vrot.lane.b32.xlu0 %v16770_v56, %s23494_s0  ;;  %16818 = vrot.lane.b32.xlu1 %v16769_v21, %s23495_s8  ;;  %v17802_v56 = vld [vmem:[%s23329_s13 + $0x118] sm:$0xff]  ;;  %s605_s0 = scalar_lea.vmem [#allocation10], %s23509_s2 }
0x1973   : > { %s17248_s8 = sshll.u32 %s605_s0, 4  ;;  %s17249_s8 = int_to_ptr.vmem [resolvable:$true] %s17248_s8 }
0x1974   : > { %s19333_s30 = scalar_lea.vmem %s17249_s8, 128  ;;  %p19340_p10 = scmp.lt.s32.totalorder %s17249_s8, %s19338_s23 }
0x1975   : > { %p19334_p0 = scmp.ne.s32.totalorder %s17249_s8, %s19333_s30  ;;  %p19341_p13 = scmp.lt.s32.totalorder %s19339_s27, %s19333_s30 }
0x1976   : > { %16830 = vrot.lane.b32.xlu0 %v16772_v2, %s23496_s28  ;;  %16826 = vrot.lane.b32.xlu1 %v16771_v19, %s23497_s7  ;;  %v17790_v19 = vld [vmem:[%s23325_s9 + $0x2] ss:$0 sm:$0xff] }
0x1977   : > { %p19335_p7 = pnand %p19334_p0, %p23512_p12  ;;  %p19342_p2 = por %p19341_p13, %p19340_p10 }
0x1979   : > { %p19336_p1 = pneg %p19335_p7 }
0x197b   : > { %p19343_p3 = pnand %p19342_p2, %p19336_p1 }
0x19ad   : > { %v16775_v48 = vpop.permute.xlu0 %16774  ;;  %v16779_v7 = vpop.permute.xlu1 %16778 }
0x19ae   : > { %v16833_v52 = vsel %vm2642_vm2, %v16629_v20, %v16775_v48 }
0x19af   : > { %v16834_v39 = vsel %vm5809_vm5, %v16833_v52, %v16779_v7  ;;  %v17791_v7 = vld [vmem:[%s23326_s10 + $0x2] ss:$0 sm:$0xff]  ;;  %v17801_v52 = vld [vmem:[%s23329_s13 + $0x110] sm:$0xff] }
0x19b1   : > { %v16783_v5 = vpop.permute.xlu0 %16782 }
0x19b2   : > { %v16835_v17 = vsel %vm5811_vm6, %v16834_v39, %v16783_v5  ;;  %v17799_v39 = vld [vmem:[%s23329_s13 + $0x100] sm:$0xff] }
0x19bf   : > { %v16787_v58 = vpop.permute.xlu1 %16786  ;;  %v16791_v57 = vpop.permute.xlu0 %16790 }
0x19c0   : > { %v16836_v46 = vsel %vm3859_vm4, %v16835_v17, %v16787_v58  ;;  %v17152_v17 = vld [vmem:[#allocation8 + $0x18] sm:$0xff] }
0x19c1   : > { %v16837_v36 = vsel %vm5814_vm7, %v16836_v46, %v16791_v57  ;;  %v17800_v57 = vld [vmem:[%s23329_s13 + $0x108] sm:$0xff] }
0x19c3   : > { %v16799_v60 = vpop.permute.xlu0 %16798 }
0x19c4   : > { %v16795_v9 = vpop.permute.xlu1 %16794 }
0x19c5   : > { %v16838_v15 = vsel %vm5816_vm8, %v16837_v36, %v16795_v9  ;;  %v17797_v9 = vld [vmem:[%s23328_s12 + $0x2] ss:$0 sm:$0xff] }
0x19c6   : > { %v16839_v13 = vsel %vm23498_vm0, %v16838_v15, %v16799_v60  ;;  %vm23499_vm0 = vcmask 261120   ;;  %v17151_v15 = vld [vmem:[#allocation8 + $0x10] sm:$0xff] }
0x19c7   : > { %vm23501_vm2 = vmmov %vm23499_vm0 }
0x19c8   : > { %vm23502_vm4 = vmmov %vm23499_vm0 }
0x19c9   : > { %vm23503_vm5 = vmmov %vm23499_vm0 }
0x19ca   : > { %vm23507_vm6 = vmmov %vm23499_vm0 }
0x19d1   : > { %v16803_v45 = vpop.permute.xlu1 %16802  ;;  %v16807_v8 = vpop.permute.xlu0 %16806 }
0x19d2   : > { %v16840_v16 = vsel %vm5820_vm10, %v16839_v13, %v16803_v45  ;;  %v17149_v13 = vld [vmem:[#allocation8] sm:$0xff] }
0x19d3   : > { %v16841_v1 = vsel %vm5822_vm11, %v16840_v16, %v16807_v8  ;;  %v17150_v8 = vld [vmem:[#allocation8 + $0x8] sm:$0xff]  ;;  %v17816_v16 = vld [vmem:[%s23330_s14 + $0x2] ss:$0 sm:$0xff] }
0x19d5   : > { %v16811_v14 = vpop.permute.xlu1 %16810  ;;  %v16815_v20 = vpop.permute.xlu0 %16814 }
0x19d6   : > { %v16842_v18 = vsel %vm5824_vm12, %v16841_v1, %v16811_v14 }
0x19d7   : > { %v16843_v12 = vsel %vm5826_vm13, %v16842_v18, %v16815_v20 }
0x19e4   : > { %v16823_v62 = vpop.permute.xlu0 %16822  ;;  %v16819_v3 = vpop.permute.xlu1 %16818 }
0x19e5   : > { %v16844_v55 = vsel %vm5828_vm14, %v16843_v12, %v16819_v3 }
0x19e6   : > { %v16845_v22 = vsel %vm5830_vm15, %v16844_v55, %v16823_v62  ;;  %v17817_v62 = vld [vmem:[%s23508_s22] ss:$0 sm:$0xff] }
0x19e8   : > { %v16831_v51 = vpop.permute.xlu0 %16830  ;;  %v16827_v41 = vpop.permute.xlu1 %16826 }
0x19e9   : > { %v16846_v29 = vsel %vm5832_vm3, %v16845_v22, %v16827_v41 }
0x19ea   : > { %v16847_v30 = vsel %vm5834_vm9, %v16846_v29, %v16831_v51 }
0x19eb   : > { %18848 = vmatmul.mubr.msk.f32.vlgmr.msra.gmra.mxu0 %vm23499_vm0, %v16847_v30 }
0x19ec   : > { %18893 = vmatprep.mubr.msk.f32.mxu0 %vm23479_vm1, %v19415_v11  ;;  %18862 = vmatpush3.msra.mxu0 %v17814_v6 }
0x19ed   : > { %18863 = vmatprep.subr.mxu0 %v19415_v11 }
0x19ee   : > { %18864 = vmatpush3.msra.mxu0 %v17813_v23 }
0x19ef   : > { %18865 = vmatprep.subr.mxu0 %v19415_v11 }
0x19f0   : > { %18866 = vmatpush3.msra.mxu0 %v17812_v59 }
0x19f1   : > { %18867 = vmatprep.subr.mxu0 %v19415_v11 }
0x19f2   : > { %18868 = vmatpush3.msra.mxu0 %v17811_v47 }
0x19f3   : > { %18869 = vmatprep.subr.mxu0 %v19415_v11 }
0x19f4   : > { %18870 = vmatpush3.msra.mxu0 %v17810_v33 }
0x19f5   : > { %18871 = vmatprep.subr.mxu0 %v19415_v11 }
0x19f6   : > { %18872 = vmatpush3.msra.mxu0 %v17809_v34 }
0x19f7   : > { %18873 = vmatprep.subr.mxu0 %v19415_v11 }
0x19f8   : > { %18874 = vmatpush3.msra.mxu0 %v17808_v31 }
0x19f9   : > { %18875 = vmatprep.subr.mxu0 %v19415_v11 }
0x19fa   : > { %18876 = vmatpush3.msra.mxu0 %v17807_v0 }
0x19fb   : > { %18877 = vmatprep.subr.mxu0 %v19415_v11 }
0x19fc   : > { %18878 = vmatpush3.msra.mxu0 %v17806_v35 }
0x19fd   : > { %18879 = vmatprep.subr.mxu0 %v19415_v11 }
0x19fe   : > { %18880 = vmatpush3.msra.mxu0 %v17805_v37 }
0x19ff   : > { %18881 = vmatprep.subr.mxu0 %v19415_v11 }
0x1a00   : > { %18882 = vmatpush3.msra.mxu0 %v17804_v26 }
0x1a01   : > { %18883 = vmatprep.subr.mxu0 %v19415_v11 }
0x1a02   : > { %18884 = vmatpush3.msra.mxu0 %v17803_v25 }
0x1a03   : > { %18885 = vmatprep.subr.mxu0 %v19415_v11 }
0x1a04   : > { %18886 = vmatpush3.msra.mxu0 %v17802_v56 }
0x1a05   : > { %18887 = vmatprep.subr.mxu0 %v19415_v11 }
0x1a06   : > { %18888 = vmatpush3.msra.mxu0 %v17801_v52 }
0x1a07   : > { %18889 = vmatprep.subr.mxu0 %v19415_v11 }
0x1a08   : > { %18890 = vmatpush3.msra.mxu0 %v17800_v57 }
0x1a09   : > { %18891 = vmatprep.subr.mxu0 %v19415_v11 }
0x1a0a   : > { %18892 = vmatpush3.msra.mxu0 %v17799_v39 }
0x1aab   : > { %v16930_v38 = vpop.f32.mrf.mxu0 }
0x1aac   : > { %v16931_v42 = vadd.f32 %v17786_v32, %v16930_v38 }
0x1aad   : > { %v18849_v54 = vpop.f32.mrf.mxu0 }
0x1aae   : > { %v16934_v44 = vadd.f32 %v16931_v42, %v22061_v4  ;;  %v17793_v4 = vld [vmem:[%s23327_s11 + $0x48] sm:$0xff] }
0x1aaf   : > { %18855 = vmatpush3.msra.mxu1 %v17793_v4 }
0x1ab0   : > { %v16939_v27 = vsel %vm23501_vm2, %v16934_v44, 0.0  ;;  %18856 = vmatprep.subr.mxu1 %v19415_v11 }
0x1ab1   : > { %16940 = vadd.xlane.f32.xlu1 %v16939_v27  ;;  %18857 = vmatpush3.msra.mxu1 %v17792_v61 }
0x1ab2   : > { %18896 = vmatprep.subr.mxu1 %v19415_v11 }
0x1b3a   : > { %v16941_v28 = vpop.xlane.xlu1 %16940 }
0x1b3b   : > { %v16942_v24 = vmul.f32 0.03125, %v16941_v28 }
0x1b3d   : > { %v16943_v40 = vsub.f32 %v16934_v44, %v16942_v24 }
0x1b3f   : > { %v16944_v10 = vmul.f32 %v16943_v40, %v16943_v40 }
0x1b41   : > { %v16945_v43 = vsel %vm23502_vm4, %v16944_v10, 0.0 }
0x1b42   : > { %16946 = vadd.xlane.f32.xlu0 %v16945_v43 }
0x1bcb   : > { %v16947_v21 = vpop.xlane.xlu0 %16946 }
0x1bcc   : > { %v16948_v63 = vmul.f32 0.03125, %v16947_v21 }
0x1bce   : > { %v16949_v50 = vadd.f32 1e-05, %v16948_v63 }
0x1bd0   : > { %19225 = vrsqrt.f32 %v16949_v50 }
0x1bdd   : > { %v19226_v2 = vpop.eup %19225 }
0x1bde   : > { %v16951_v48 = vmul.f32 %v19226_v2, %v16943_v40 }
0x1be0   : > { %v16958_v5 = vmul.f32 %v17790_v19, %v16951_v48 }
0x1be2   : > { %v16965_v58 = vadd.f32 %v17791_v7, %v16958_v5 }
0x1be4   : > { %18859 = vmatmul.mubr.msk.f32.vlgmr.msra.gmra.mxu1 %vm23503_vm5, %v16965_v58 }
0x1be5   : > { %18904 = vmatprep.mubr.msk.f32.mxu1 %vm23479_vm1, %v19415_v11  ;;  %18897 = vmatpush3.msra.mxu1 %v17152_v17 }
0x1be6   : > { %18898 = vmatprep.subr.mxu1 %v19415_v11 }
0x1be7   : > { %18899 = vmatpush3.msra.mxu1 %v17151_v15 }
0x1be8   : > { %18900 = vmatprep.subr.mxu1 %v19415_v11 }
0x1be9   : > { %18901 = vmatpush3.msra.mxu1 %v17150_v8 }
0x1bea   : > { %18902 = vmatprep.subr.mxu1 %v19415_v11 }
0x1beb   : > { %18903 = vmatpush3.msra.mxu1 %v17149_v13 }
0x1ca4   : > { %v17048_v46 = vpop.f32.mrf.mxu1 }
0x1ca5   : > { %v17049_v60 = vadd.f32 %v17797_v9, %v17048_v46 }
0x1ca6   : > { %v18860_v36 = vpop.f32.mrf.mxu1 }
0x1ca7   : > { %v17052_v45 = vmax.f32 %v17049_v60, 0.0 }
0x1ca9   : > { %18894 = vmatmul.mubr.f32.vlgmr.msra.gmra.mxu0 %v17052_v45 }
0x1d69   : > { %v17144_v14 = vpop.f32.mrf.mxu0 }
0x1d6a   : > { %v17145_v20 = vadd.f32 %v17816_v16, %v17144_v14 }
0x1d6b   : > { %v18895_v1 = vpop.f32.mrf.mxu0 }
0x1d6c   : > { %v17148_v18 = vadd.f32 %v17145_v20, %v16965_v58 }
0x1d6e   : > { %18905 = vmatmul.mubr.msk.f32.vlgmr.msra.gmra.mxu1 %vm23507_vm6, %v17148_v18 }
0x1e2e   : > { %v17229_v11 = vpop.f32.mrf.mxu1 }
0x1e2f   : > { %v17230_v12 = vadd.f32 %v17817_v62, %v17229_v11 }
0x1e30   : > { %v18906_v3 = vpop.f32.mrf.mxu1 }
0x1e31   : > { %17233 = vst [vmem:[%s605_s0] sm:$0xff] %v17230_v12 }
0x1e32   : > { %19346 = shalt.err (!%p19343_p3)
}
0x1e33   : > { %s19347_s19 = scalar_lea.hbm %s23279_s25, 128  ;;  %s19351_s21 = scalar_lea.hbm %s23511_s16, 256 }
0x1e34   : > { %p19348_p5 = scmp.ne.s32.totalorder %s23279_s25, %s19347_s19  ;;  %p19352_p8 = scmp.lt.s32.totalorder %s23279_s25, %s23511_s16 }
0x1e35   : > { %p19353_p9 = scmp.lt.s32.totalorder %s19351_s21, %s19347_s19 }
0x1e36   : > { %p19349_p4 = pnand %p19348_p5, %p23512_p12 }
0x1e37   : > { %p19354_p11 = por %p19353_p9, %p19352_p8 }
0x1e38   : > { %p19350_p6 = pneg %p19349_p4 }
0x1e3a   : > { %p19355_p0 = pnand %p19354_p11, %p19350_p6 }
0x1e3c   : > { %19358 = shalt.err (!%p19355_p0)
}
0x1e3d   : > { %18921 = dma.vmem_to_hbm [thread:$0]  (%p23512_p12), %s17249_s8, 128, %s23279_s25, %s17235_s18  }
0x1e3e PF: > { %s23513_s17 = sld [smem:[#allocation15_spill]] }
0x1e3f   : > { %s23514_s2 = sld [smem:[#allocation20_spill]] }
0x1e40   : > { %s23515_s0 = sld [smem:[#allocation18_spill]] }
0x1e44   : > { %s17260_s28 = sand.u32 1, %s23513_s17  }
0x1e45   : > { %p23516_p7 = scmp.ne.s32.totalorder %s23514_s2, 0  ;;  %s17261_s7 = scalar_lea.sflag [#allocation4], %s17260_s28 }
0x1e46   : > { %p23517_p1 = scmp.ge.s32.totalorder %s23515_s0, 2 }
0x1e48   : > { %p18938_p10 = pnand %p23517_p1, %p23516_p7 }
0x1e4a   : > { %p18939_p13 = pneg %p18938_p10 }
0x1e4c   : > { %19388 = dma.done.wait (%p18939_p13), %s17261_s7, 128  }
0x1e4d   : > { %19390 = vsyncadd (%p18939_p13), %s17261_s7, 4294967168  ;;  %s23518_s27 = sld [smem:[#allocation21_spill]] }
0x1e4e   : > { %s23519_s24 = sld [smem:[#allocation16_spill]] }
0x1e4f   : > { %s23520_s25 = sld [smem:[#allocation17_spill]] }
0x1e50   : > { %s23521_s26 = sld [smem:[#allocation22_spill]] }
0x1e53   : > { %p32_p2 = scmp.ge.s32.totalorder %s23518_s27, 4  }
0x1e55   :  { %34 = sbr.rel (!%p32_p2) target bundleno = 16 (0x10), region = 171 }
0x1e5a   :  { %17266 = vsyncpa [#allocation3], 1 }
0x1e5b   :  { %17268 = vsyncpa [#allocation3 + $0x1], 1 }
0x1e5c   :  { %17269 = vsyncpa [#allocation6], 1 }
0x1e5d   :  { %17270 = vsyncpa [#allocation9], 1 }
0x1e5e   :  { %17271 = vsyncpa [#allocation4], 1 }
0x1e5f   :  { %17273 = vsyncpa [#allocation4 + $0x1], 1 }

</bundles_post_ra>
